<compile_context>
chip_gen: v7x
topology: tpu7x:2x2x1
jax: 0.10.0
libtpu: 0.0.40
codegen_flags: <defaults>
</compile_context>

<pallas_src>
import jax
import jax.numpy as jnp
from jax import lax
from jax.experimental import pallas as pl
from jax.experimental.pallas import tpu as pltpu


def _safe_pow(x, gamma):
    # Matches torch's x ** gamma for x >= 0 (returns 0 cleanly at x == 0 instead
    # of the NaN that exp(gamma * log(0)) would give for a zero eigenvalue).
    p = jnp.exp(gamma * jnp.log(jnp.maximum(x, 1e-30)))
    return jnp.where(x > 0.0, p, 0.0)


def _make_fused_kernel(K, C, lam, gamma):
    lam = float(lam)
    gamma = float(gamma)

    def kernel(ex_ref, ey_ref, etx_ref, fx_ref, ety_ref, fy_ref,
               out_ref, f_acc, g_acc):
        step = pl.program_id(0)

        @pl.when(step == 0)
        def _init():
            f_acc[...] = jnp.zeros_like(f_acc)
            g_acc[...] = jnp.zeros_like(g_acc)

        # ------- spectral projection, accumulated over V tiles (MXU) ---------
        f_acc[...] += jnp.dot(etx_ref[...], fx_ref[...],
                              preferred_element_type=jnp.float32)
        g_acc[...] += jnp.dot(ety_ref[...], fy_ref[...],
                              preferred_element_type=jnp.float32)

        @pl.when(step == pl.num_programs(0) - 1)
        def _finalize():
            f = f_acc[...]                               # (K, C) = F_hat
            g = g_acc[...]                               # (K, C) = G_hat
            dn = (((1,), (1,)), ((), ()))                # contract channel dim
            aat = lax.dot_general(f, f, dn, preferred_element_type=jnp.float32)
            bat = lax.dot_general(g, f, dn, preferred_element_type=jnp.float32)

            # --- resolvent mask D[i, q] (i over evals_y, q over evals_x) -----
            ex = ex_ref[...]                             # (1, 1, K)
            ey = ey_ref[...]                             # (K, 1, 1)
            scale = jnp.maximum(jnp.max(ex, keepdims=True),
                                jnp.max(ey, keepdims=True))        # (1,1,1)
            e1 = _safe_pow(ex / scale, gamma)            # (1,1,K)
            e2 = _safe_pow(ey / scale, gamma)            # (K,1,1)
            m_re = e2 / (e2 * e2 + 1.0) - e1 / (e1 * e1 + 1.0)      # (K,1,K)
            m_im = 1.0 / (e2 * e2 + 1.0) - 1.0 / (e1 * e1 + 1.0)    # (K,1,K)
            dmask = m_re * m_re + m_im * m_im                       # (K,1,K)

            # --- batched regularized systems ---------------------------------
            # S[i, p, q] = M_i[q, p] = AAt[p, q] (AAt symmetric) + lam*(p==q)*D[i, q]
            eye_pq = (lax.broadcasted_iota(jnp.int32, (1, K, K), 1) ==
                      lax.broadcasted_iota(jnp.int32, (1, K, K), 2)
                      ).astype(jnp.float32)
            S = aat[None, :, :] + lam * (eye_pq * dmask)            # (K,K,K)

            # b3[i, 0, q] = BAt[i, q]: one-time gather that moves the system
            # index i from sublanes to the leading axis (avoids an in-kernel
            # 2D->3D relayout reshape).
            i_idx = lax.broadcasted_iota(jnp.int32, (K, K, K), 0)
            s_idx = lax.broadcasted_iota(jnp.int32, (K, K, K), 1)
            b3 = jnp.sum(jnp.where(s_idx == i_idx, bat[None, :, :], 0.0),
                         axis=1, keepdims=True)                     # (K,1,K)

            # --- batched Gauss-Jordan, fully unrolled, slice-based -----------
            # TODO(synk): pivot-free GJ assumes AAt + lam*diag(D) stays
            # well-conditioned (same assumption the torch.inverse reference
            # makes at these settings).
            for k in range(K):
                piv = S[:, k:k + 1, k:k + 1]                        # (K,1,1)
                inv_p = 1.0 / piv
                u = S[:, :, k:k + 1] * inv_p                        # (K,K,1) normalized pivot row
                v_coef = S[:, k:k + 1, :]                           # (K,1,K) elimination coeffs
                onehot = (lax.broadcasted_iota(jnp.int32, (1, 1, K), 2) == k
                          ).astype(jnp.float32)
                v_adj = v_coef - onehot   # makes lane q==k land on u / b_norm
                b_nrm = b3[:, :, k:k + 1] * inv_p                   # (K,1,1)
                S = S - u * v_adj
                b3 = b3 - b_nrm * v_adj

            out_ref[...] = b3            # out[i, 0, q] = C[i, q]

    return kernel


def regularized_fm_forward(feat_x, feat_y, evals_x, evals_y,
                           evecs_trans_x, evecs_trans_y,
                           lambda_=0.001, resolvant_gamma=0.5, tile_v=None):
    """Fused Pallas forward.  feat_*: (1, V, C); evals_*: (K,); evecs_trans_*: (K, V)."""
    assert feat_x.ndim == 3 and feat_x.shape[0] == 1 and feat_y.shape[0] == 1
    K, V = evecs_trans_x.shape
    C = feat_x.shape[-1]

    fx = feat_x[0].astype(jnp.float32)
    fy = feat_y[0].astype(jnp.float32)
    # TODO(synk): for very large V, feats/evecs could be fed in bf16 (MXU takes
    # bf16 natively with f32 accumulation) to halve HBM traffic.
    etx = evecs_trans_x.astype(jnp.float32)
    ety = evecs_trans_y.astype(jnp.float32)
    ex3 = evals_x.reshape(1, 1, K).astype(jnp.float32)
    ey3 = evals_y.reshape(K, 1, 1).astype(jnp.float32)

    if tile_v is None:
        tile_v = V
        if V > 2048:
            for cand in (2048, 1024, 512, 256, 128):
                if V % cand == 0:
                    tile_v = cand
                    break
    assert V % tile_v == 0, "V must be a multiple of tile_v"

    kernel = _make_fused_kernel(K, C, lambda_, resolvant_gamma)
    out = pl.pallas_call(
        kernel,
        out_shape=jax.ShapeDtypeStruct((K, 1, K), jnp.float32),
        grid_spec=pltpu.PrefetchScalarGridSpec(
            num_scalar_prefetch=0,
            grid=(V // tile_v,),
            in_specs=[
                pl.BlockSpec((1, 1, K), lambda v: (0, 0, 0)),   # evals_x
                pl.BlockSpec((K, 1, 1), lambda v: (0, 0, 0)),   # evals_y
                pl.BlockSpec((K, tile_v), lambda v: (0, v)),    # evecs_trans_x
                pl.BlockSpec((tile_v, C), lambda v: (v, 0)),    # feat_x
                pl.BlockSpec((K, tile_v), lambda v: (0, v)),    # evecs_trans_y
                pl.BlockSpec((tile_v, C), lambda v: (v, 0)),    # feat_y
            ],
            out_specs=pl.BlockSpec((K, 1, K), lambda v: (0, 0, 0)),
            scratch_shapes=[pltpu.VMEM((K, C), jnp.float32),
                            pltpu.VMEM((K, C), jnp.float32)]),
        compiler_params=pltpu.CompilerParams(
            dimension_semantics=("arbitrary",)),
    )(ex3, ey3, etx, fx, ety, fy)
    # out[i, 0, q] = C[i, q]  ->  (1, K, K)
    return out.reshape(1, K, K)


class RegularizedFMNet:
    """Pallas-TPU port of the PyTorch RegularizedFMNet.forward (batch == 1)."""

    def __init__(self, lambda_=0.001, resolvant_gamma=0.5):
        self.lambda_ = lambda_
        self.resolvant_gamma = resolvant_gamma

    def __call__(self, feat_x, feat_y, evals_x, evals_y,
                 evecs_trans_x, evecs_trans_y):
        return regularized_fm_forward(feat_x, feat_y, evals_x, evals_y,
                                      evecs_trans_x, evecs_trans_y,
                                      self.lambda_, self.resolvant_gamma)


# ----------------------------------------------------------------------------
# Pure-JAX reference (mirrors the PyTorch forward)
# ----------------------------------------------------------------------------
def reference_forward(feat_x, feat_y, evals_x, evals_y, etx, ety, lam, gamma):
    f_hat = etx @ feat_x[0]
    g_hat = ety @ feat_y[0]
    scale = jnp.maximum(evals_x.max(), evals_y.max())
    e1 = (evals_x / scale) ** gamma
    e2 = (evals_y / scale) ** gamma
    m_re = e2[:, None] / (e2[:, None] ** 2 + 1) - e1[None, :] / (e1[None, :] ** 2 + 1)
    m_im = 1.0 / (e2[:, None] ** 2 + 1) - 1.0 / (e1[None, :] ** 2 + 1)
    d = m_re ** 2 + m_im ** 2
    aat = f_hat @ f_hat.T
    bat = g_hat @ f_hat.T
    K = evals_x.shape[0]
    rows = [jnp.linalg.solve(aat + lam * jnp.diag(d[i]), bat[i]) for i in range(K)]
    return jnp.stack(rows)[None]


if __name__ == "__main__":
    key = jax.random.PRNGKey(0)
    K, C, V = 16, 32, 256   # spectral dim, feature channels, vertices
    k1, k2, k3, k4, k5, k6 = jax.random.split(key, 6)
    feat_x = jax.random.normal(k1, (1, V, C), jnp.float32)
    feat_y = jax.random.normal(k2, (1, V, C), jnp.float32)
    evecs_trans_x = jax.random.normal(k3, (K, V), jnp.float32) / jnp.sqrt(V)
    evecs_trans_y = jax.random.normal(k4, (K, V), jnp.float32) / jnp.sqrt(V)
    evals_x = jnp.sort(jax.random.uniform(k5, (K,), jnp.float32, 0.01, 2.0))
    evals_y = jnp.sort(jax.random.uniform(k6, (K,), jnp.float32, 0.01, 2.0))

    net = RegularizedFMNet(lambda_=0.001, resolvant_gamma=0.5)
    C_fm = net(feat_x, feat_y, evals_x, evals_y, evecs_trans_x, evecs_trans_y)
    C_fm = jax.block_until_ready(C_fm)
    assert C_fm.shape == (1, K, K)

    C_ref = reference_forward(feat_x, feat_y, evals_x, evals_y,
                              evecs_trans_x, evecs_trans_y, 0.001, 0.5)
    rel_err = jnp.max(jnp.abs(C_fm - C_ref)) / (jnp.max(jnp.abs(C_ref)) + 1e-6)
    assert float(rel_err) < 5e-3, f"mismatch vs reference: rel_err={rel_err}"
    print("KERNEL_OK")
</pallas_src>

<mosaic_0001>
module attributes {stable_mosaic.version = 11 : i64} {
  func.func @kernel(%arg0: i32, %arg1: memref<1x1x16xf32, #tpu.memory_space<vmem>>, %arg2: memref<16x1x1xf32, #tpu.memory_space<vmem>>, %arg3: memref<16x256xf32, #tpu.memory_space<vmem>>, %arg4: memref<256x32xf32, #tpu.memory_space<vmem>>, %arg5: memref<16x256xf32, #tpu.memory_space<vmem>>, %arg6: memref<256x32xf32, #tpu.memory_space<vmem>>, %arg7: memref<16x1x16xf32, #tpu.memory_space<vmem>>, %arg8: memref<16x32xf32, #tpu.memory_space<vmem>>, %arg9: memref<16x32xf32, #tpu.memory_space<vmem>>) attributes {dimension_semantics = [#tpu.dimension_semantics<arbitrary>], iteration_bounds = array<i64: 1>, scalar_prefetch = 0 : i64, scratch_operands = 2 : i64, tpu.core_type = #tpu.core_type<tc>, window_params = [{pipeline_mode = #tpu.pipeline_mode<synchronous>, transform_indices = @transform_0, window_bounds = array<i64: 1, 1, 16>}, {pipeline_mode = #tpu.pipeline_mode<synchronous>, transform_indices = @transform_1, window_bounds = array<i64: 16, 1, 1>}, {transform_indices = @transform_2, window_bounds = array<i64: 16, 256>}, {transform_indices = @transform_3, window_bounds = array<i64: 256, 32>}, {transform_indices = @transform_4, window_bounds = array<i64: 16, 256>}, {transform_indices = @transform_5, window_bounds = array<i64: 256, 32>}, {pipeline_mode = #tpu.pipeline_mode<synchronous>, transform_indices = @transform_6, window_bounds = array<i64: 16, 1, 16>}]} {
    %c0_i32 = arith.constant 0 : i32
    %0 = arith.cmpi eq, %arg0, %c0_i32 : i32
    %1 = arith.extui %0 : i1 to i32
    %c0_i32_0 = arith.constant 0 : i32
    %2 = arith.cmpi ne, %1, %c0_i32_0 : i32
    scf.if %2 {
      %cst_19 = arith.constant 0.000000e+00 : f32
      %18 = vector.broadcast %cst_19 : f32 to vector<16x32xf32>
      %c0_20 = arith.constant 0 : index
      %c0_21 = arith.constant 0 : index
      %19 = vector.load %arg8[%c0_20, %c0_21] : memref<16x32xf32, #tpu.memory_space<vmem>>, vector<16x32xf32>
      tpu.vector_store %arg8[%c0_20, %c0_21], %18 {strides = array<i32>} : memref<16x32xf32, #tpu.memory_space<vmem>>, vector<16x32xf32>,
      %cst_22 = arith.constant 0.000000e+00 : f32
      %20 = vector.broadcast %cst_22 : f32 to vector<16x32xf32>
      %c0_23 = arith.constant 0 : index
      %c0_24 = arith.constant 0 : index
      %21 = vector.load %arg9[%c0_23, %c0_24] : memref<16x32xf32, #tpu.memory_space<vmem>>, vector<16x32xf32>
      tpu.vector_store %arg9[%c0_23, %c0_24], %20 {strides = array<i32>} : memref<16x32xf32, #tpu.memory_space<vmem>>, vector<16x32xf32>,
    } else {
    }
    %c0 = arith.constant 0 : index
    %c0_1 = arith.constant 0 : index
    %3 = vector.load %arg8[%c0, %c0_1] : memref<16x32xf32, #tpu.memory_space<vmem>>, vector<16x32xf32>
    %c0_2 = arith.constant 0 : index
    %c0_3 = arith.constant 0 : index
    %4 = vector.load %arg3[%c0_2, %c0_3] : memref<16x256xf32, #tpu.memory_space<vmem>>, vector<16x256xf32>
    %c0_4 = arith.constant 0 : index
    %c0_5 = arith.constant 0 : index
    %5 = vector.load %arg4[%c0_4, %c0_5] : memref<256x32xf32, #tpu.memory_space<vmem>>, vector<256x32xf32>
    %cst = arith.constant dense<0.000000e+00> : vector<16x32xf32>
    %6 = tpu.matmul %4, %5, %cst {dimension_numbers = #tpu.dot_dimension_numbers<[1], [0], [0], [1], [0, 0, 1, 1], [], []>} : vector<16x256xf32>, vector<256x32xf32>, vector<16x32xf32> -> vector<16x32xf32>
    %7 = arith.addf %3, %6 : vector<16x32xf32>
    %c0_6 = arith.constant 0 : index
    %c0_7 = arith.constant 0 : index
    %8 = vector.load %arg8[%c0_6, %c0_7] : memref<16x32xf32, #tpu.memory_space<vmem>>, vector<16x32xf32>
    tpu.vector_store %arg8[%c0_6, %c0_7], %7 {strides = array<i32>} : memref<16x32xf32, #tpu.memory_space<vmem>>, vector<16x32xf32>,
    %c0_8 = arith.constant 0 : index
    %c0_9 = arith.constant 0 : index
    %9 = vector.load %arg9[%c0_8, %c0_9] : memref<16x32xf32, #tpu.memory_space<vmem>>, vector<16x32xf32>
    %c0_10 = arith.constant 0 : index
    %c0_11 = arith.constant 0 : index
    %10 = vector.load %arg5[%c0_10, %c0_11] : memref<16x256xf32, #tpu.memory_space<vmem>>, vector<16x256xf32>
    %c0_12 = arith.constant 0 : index
    %c0_13 = arith.constant 0 : index
    %11 = vector.load %arg6[%c0_12, %c0_13] : memref<256x32xf32, #tpu.memory_space<vmem>>, vector<256x32xf32>
    %cst_14 = arith.constant dense<0.000000e+00> : vector<16x32xf32>
    %12 = tpu.matmul %10, %11, %cst_14 {dimension_numbers = #tpu.dot_dimension_numbers<[1], [0], [0], [1], [0, 0, 1, 1], [], []>} : vector<16x256xf32>, vector<256x32xf32>, vector<16x32xf32> -> vector<16x32xf32>
    %13 = arith.addf %9, %12 : vector<16x32xf32>
    %c0_15 = arith.constant 0 : index
    %c0_16 = arith.constant 0 : index
    %14 = vector.load %arg9[%c0_15, %c0_16] : memref<16x32xf32, #tpu.memory_space<vmem>>, vector<16x32xf32>
    tpu.vector_store %arg9[%c0_15, %c0_16], %13 {strides = array<i32>} : memref<16x32xf32, #tpu.memory_space<vmem>>, vector<16x32xf32>,
    %c0_i32_17 = arith.constant 0 : i32
    %15 = arith.cmpi eq, %arg0, %c0_i32_17 : i32
    %16 = arith.extui %15 : i1 to i32
    %c0_i32_18 = arith.constant 0 : i32
    %17 = arith.cmpi ne, %16, %c0_i32_18 : i32
    scf.if %17 {
      %c0_19 = arith.constant 0 : index
      %c0_20 = arith.constant 0 : index
      %18 = vector.load %arg8[%c0_19, %c0_20] : memref<16x32xf32, #tpu.memory_space<vmem>>, vector<16x32xf32>
      %c0_21 = arith.constant 0 : index
      %c0_22 = arith.constant 0 : index
      %19 = vector.load %arg9[%c0_21, %c0_22] : memref<16x32xf32, #tpu.memory_space<vmem>>, vector<16x32xf32>
      %cst_23 = arith.constant dense<0.000000e+00> : vector<16x16xf32>
      %20 = tpu.matmul %18, %18, %cst_23 {dimension_numbers = #tpu.dot_dimension_numbers<[1], [1], [0], [0], [0, 0, 1, 0], [], []>} : vector<16x32xf32>, vector<16x32xf32>, vector<16x16xf32> -> vector<16x16xf32>
      %cst_24 = arith.constant dense<0.000000e+00> : vector<16x16xf32>
      %21 = tpu.matmul %19, %18, %cst_24 {dimension_numbers = #tpu.dot_dimension_numbers<[1], [1], [0], [0], [0, 0, 1, 0], [], []>} : vector<16x32xf32>, vector<16x32xf32>, vector<16x16xf32> -> vector<16x16xf32>
      %c0_25 = arith.constant 0 : index
      %c0_26 = arith.constant 0 : index
      %c0_27 = arith.constant 0 : index
      %22 = vector.load %arg1[%c0_25, %c0_26, %c0_27] : memref<1x1x16xf32, #tpu.memory_space<vmem>>, vector<1x1x16xf32>
      %c0_28 = arith.constant 0 : index
      %c0_29 = arith.constant 0 : index
      %c0_30 = arith.constant 0 : index
      %23 = vector.load %arg2[%c0_28, %c0_29, %c0_30] : memref<16x1x1xf32, #tpu.memory_space<vmem>>, vector<16x1x1xf32>
      %24 = vector.shape_cast %22 : vector<1x1x16xf32> to vector<1x1x1x16xf32>
      %cst_31 = arith.constant dense<0xFF800000> : vector<1xf32>
      %25 = vector.multi_reduction <maximumf>, %24, %cst_31 [1, 2, 3] : vector<1x1x1x16xf32> to vector<1xf32>
      %26 = vector.shape_cast %25 : vector<1xf32> to vector<1x1x1x1xf32>
      %27 = vector.extract %26[0, 0, 0, 0] : f32 from vector<1x1x1x1xf32>
      %28 = vector.broadcast %27 : f32 to vector<1x1x1xf32>
      %29 = vector.shape_cast %23 : vector<16x1x1xf32> to vector<1x16x1x1xf32>
      %cst_32 = arith.constant dense<0xFF800000> : vector<1xf32>
      %30 = vector.multi_reduction <maximumf>, %29, %cst_32 [1, 2, 3] : vector<1x16x1x1xf32> to vector<1xf32>
      %31 = vector.shape_cast %30 : vector<1xf32> to vector<1x1x1x1xf32>
      %32 = vector.extract %31[0, 0, 0, 0] : f32 from vector<1x1x1x1xf32>
      %33 = vector.broadcast %32 : f32 to vector<1x1x1xf32>
      %34 = arith.maximumf %28, %33 : vector<1x1x1xf32>
      %35 = vector.broadcast %34 : vector<1x1x1xf32> to vector<1x1x16xf32>
      %36 = arith.divf %22, %35 : vector<1x1x16xf32>
      %cst_33 = arith.constant 1.000000e-30 : f32
      %37 = vector.broadcast %cst_33 : f32 to vector<1x1x16xf32>
      %38 = arith.maximumf %36, %37 : vector<1x1x16xf32>
      %39 = math.log %38 : vector<1x1x16xf32>
      %cst_34 = arith.constant 5.000000e-01 : f32
      %40 = vector.broadcast %cst_34 : f32 to vector<1x1x16xf32>
      %41 = arith.mulf %40, %39 : vector<1x1x16xf32>
      %42 = math.exp %41 : vector<1x1x16xf32>
      %cst_35 = arith.constant 0.000000e+00 : f32
      %43 = vector.broadcast %cst_35 : f32 to vector<1x1x16xf32>
      %44 = arith.cmpf ogt, %36, %43 : vector<1x1x16xf32>
      %cst_36 = arith.constant 0.000000e+00 : f32
      %45 = vector.broadcast %cst_36 : f32 to vector<1x1x16xf32>
      %46 = arith.select %44, %42, %45 : vector<1x1x16xi1>, vector<1x1x16xf32>
      %47 = vector.broadcast %34 : vector<1x1x1xf32> to vector<16x1x1xf32>
      %48 = arith.divf %23, %47 : vector<16x1x1xf32>
      %cst_37 = arith.constant 1.000000e-30 : f32
      %49 = vector.broadcast %cst_37 : f32 to vector<16x1x1xf32>
      %50 = arith.maximumf %48, %49 : vector<16x1x1xf32>
      %51 = math.log %50 : vector<16x1x1xf32>
      %cst_38 = arith.constant 5.000000e-01 : f32
      %52 = vector.broadcast %cst_38 : f32 to vector<16x1x1xf32>
      %53 = arith.mulf %52, %51 : vector<16x1x1xf32>
      %54 = math.exp %53 : vector<16x1x1xf32>
      %cst_39 = arith.constant 0.000000e+00 : f32
      %55 = vector.broadcast %cst_39 : f32 to vector<16x1x1xf32>
      %56 = arith.cmpf ogt, %48, %55 : vector<16x1x1xf32>
      %cst_40 = arith.constant 0.000000e+00 : f32
      %57 = vector.broadcast %cst_40 : f32 to vector<16x1x1xf32>
      %58 = arith.select %56, %54, %57 : vector<16x1x1xi1>, vector<16x1x1xf32>
      %59 = arith.mulf %58, %58 : vector<16x1x1xf32>
      %cst_41 = arith.constant 1.000000e+00 : f32
      %60 = vector.broadcast %cst_41 : f32 to vector<16x1x1xf32>
      %61 = arith.addf %59, %60 : vector<16x1x1xf32>
      %62 = arith.divf %58, %61 : vector<16x1x1xf32>
      %63 = arith.mulf %46, %46 : vector<1x1x16xf32>
      %cst_42 = arith.constant 1.000000e+00 : f32
      %64 = vector.broadcast %cst_42 : f32 to vector<1x1x16xf32>
      %65 = arith.addf %63, %64 : vector<1x1x16xf32>
      %66 = arith.divf %46, %65 : vector<1x1x16xf32>
      %67 = vector.broadcast %62 : vector<16x1x1xf32> to vector<16x1x16xf32>
      %68 = vector.broadcast %66 : vector<1x1x16xf32> to vector<16x1x16xf32>
      %69 = arith.subf %67, %68 : vector<16x1x16xf32>
      %70 = arith.mulf %58, %58 : vector<16x1x1xf32>
      %cst_43 = arith.constant 1.000000e+00 : f32
      %71 = vector.broadcast %cst_43 : f32 to vector<16x1x1xf32>
      %72 = arith.addf %70, %71 : vector<16x1x1xf32>
      %cst_44 = arith.constant 1.000000e+00 : f32
      %73 = vector.broadcast %cst_44 : f32 to vector<16x1x1xf32>
      %74 = arith.divf %73, %72 : vector<16x1x1xf32>
      %75 = arith.mulf %46, %46 : vector<1x1x16xf32>
      %cst_45 = arith.constant 1.000000e+00 : f32
      %76 = vector.broadcast %cst_45 : f32 to vector<1x1x16xf32>
      %77 = arith.addf %75, %76 : vector<1x1x16xf32>
      %cst_46 = arith.constant 1.000000e+00 : f32
      %78 = vector.broadcast %cst_46 : f32 to vector<1x1x16xf32>
      %79 = arith.divf %78, %77 : vector<1x1x16xf32>
      %80 = vector.broadcast %74 : vector<16x1x1xf32> to vector<16x1x16xf32>
      %81 = vector.broadcast %79 : vector<1x1x16xf32> to vector<16x1x16xf32>
      %82 = arith.subf %80, %81 : vector<16x1x16xf32>
      %83 = arith.mulf %69, %69 : vector<16x1x16xf32>
      %84 = arith.mulf %82, %82 : vector<16x1x16xf32>
      %85 = arith.addf %83, %84 : vector<16x1x16xf32>
      %86 = tpu.iota {dimensions = array<i32: 1>} : vector<1x16x16xi32>
      %87 = tpu.iota {dimensions = array<i32: 2>} : vector<1x16x16xi32>
      %88 = arith.cmpi eq, %86, %87 : vector<1x16x16xi32>
      %89 = arith.extui %88 : vector<1x16x16xi1> to vector<1x16x16xi32>
      %90 = arith.sitofp %89 : vector<1x16x16xi32> to vector<1x16x16xf32>
      %91 = vector.shape_cast %20 : vector<16x16xf32> to vector<1x16x16xf32>
      %92 = vector.broadcast %90 : vector<1x16x16xf32> to vector<16x16x16xf32>
      %93 = vector.broadcast %85 : vector<16x1x16xf32> to vector<16x16x16xf32>
      %94 = arith.mulf %92, %93 : vector<16x16x16xf32>
      %cst_47 = arith.constant 1.000000e-03 : f32
      %95 = vector.broadcast %cst_47 : f32 to vector<16x16x16xf32>
      %96 = arith.mulf %95, %94 : vector<16x16x16xf32>
      %97 = vector.broadcast %91 : vector<1x16x16xf32> to vector<16x16x16xf32>
      %98 = arith.addf %97, %96 : vector<16x16x16xf32>
      %99 = tpu.iota {dimensions = array<i32: 0>} : vector<16x16x16xi32>
      %100 = tpu.iota {dimensions = array<i32: 1>} : vector<16x16x16xi32>
      %101 = arith.cmpi eq, %100, %99 : vector<16x16x16xi32>
      %102 = vector.shape_cast %21 : vector<16x16xf32> to vector<1x16x16xf32>
      %cst_48 = arith.constant 0.000000e+00 : f32
      %103 = vector.shape_cast %102 : vector<1x16x16xf32> to vector<1x16x16xf32>
      %104 = vector.broadcast %103 : vector<1x16x16xf32> to vector<16x16x16xf32>
      %105 = vector.broadcast %cst_48 : f32 to vector<16x16x16xf32>
      %106 = arith.select %101, %104, %105 : vector<16x16x16xi1>, vector<16x16x16xf32>
      %cst_49 = arith.constant dense<0.000000e+00> : vector<16x16xf32>
      %107 = vector.multi_reduction <add>, %106, %cst_49 [1] : vector<16x16x16xf32> to vector<16x16xf32>
      %108 = vector.shape_cast %107 : vector<16x16xf32> to vector<16x1x16xf32>
      %109 = vector.extract_strided_slice %98 {offsets = [0, 0, 0], sizes = [16, 1, 1], strides = [1, 1, 1]} : vector<16x16x16xf32> to vector<16x1x1xf32>
      %cst_50 = arith.constant 1.000000e+00 : f32
      %110 = vector.broadcast %cst_50 : f32 to vector<16x1x1xf32>
      %111 = arith.divf %110, %109 : vector<16x1x1xf32>
      %112 = vector.extract_strided_slice %98 {offsets = [0, 0, 0], sizes = [16, 16, 1], strides = [1, 1, 1]} : vector<16x16x16xf32> to vector<16x16x1xf32>
      %113 = vector.broadcast %111 : vector<16x1x1xf32> to vector<16x16x1xf32>
      %114 = arith.mulf %112, %113 : vector<16x16x1xf32>
      %115 = vector.extract_strided_slice %98 {offsets = [0, 0, 0], sizes = [16, 1, 16], strides = [1, 1, 1]} : vector<16x16x16xf32> to vector<16x1x16xf32>
      %116 = tpu.iota {dimensions = array<i32: 2>} : vector<1x1x16xi32>
      %c0_i32_51 = arith.constant 0 : i32
      %117 = vector.broadcast %c0_i32_51 : i32 to vector<1x1x16xi32>
      %118 = arith.cmpi eq, %116, %117 : vector<1x1x16xi32>
      %119 = arith.extui %118 : vector<1x1x16xi1> to vector<1x1x16xi32>
      %120 = arith.sitofp %119 : vector<1x1x16xi32> to vector<1x1x16xf32>
      %121 = vector.broadcast %120 : vector<1x1x16xf32> to vector<16x1x16xf32>
      %122 = arith.subf %115, %121 : vector<16x1x16xf32>
      %123 = vector.extract_strided_slice %108 {offsets = [0, 0, 0], sizes = [16, 1, 1], strides = [1, 1, 1]} : vector<16x1x16xf32> to vector<16x1x1xf32>
      %124 = arith.mulf %123, %111 : vector<16x1x1xf32>
      %125 = vector.broadcast %114 : vector<16x16x1xf32> to vector<16x16x16xf32>
      %126 = vector.broadcast %122 : vector<16x1x16xf32> to vector<16x16x16xf32>
      %127 = arith.mulf %125, %126 : vector<16x16x16xf32>
      %128 = arith.subf %98, %127 : vector<16x16x16xf32>
      %129 = vector.broadcast %124 : vector<16x1x1xf32> to vector<16x1x16xf32>
      %130 = arith.mulf %129, %122 : vector<16x1x16xf32>
      %131 = arith.subf %108, %130 : vector<16x1x16xf32>
      %132 = vector.extract_strided_slice %128 {offsets = [0, 1, 1], sizes = [16, 1, 1], strides = [1, 1, 1]} : vector<16x16x16xf32> to vector<16x1x1xf32>
      %cst_52 = arith.constant 1.000000e+00 : f32
      %133 = vector.broadcast %cst_52 : f32 to vector<16x1x1xf32>
      %134 = arith.divf %133, %132 : vector<16x1x1xf32>
      %135 = vector.extract_strided_slice %128 {offsets = [0, 0, 1], sizes = [16, 16, 1], strides = [1, 1, 1]} : vector<16x16x16xf32> to vector<16x16x1xf32>
      %136 = vector.broadcast %134 : vector<16x1x1xf32> to vector<16x16x1xf32>
      %137 = arith.mulf %135, %136 : vector<16x16x1xf32>
      %138 = vector.extract_strided_slice %128 {offsets = [0, 1, 0], sizes = [16, 1, 16], strides = [1, 1, 1]} : vector<16x16x16xf32> to vector<16x1x16xf32>
      %139 = tpu.iota {dimensions = array<i32: 2>} : vector<1x1x16xi32>
      %c1_i32 = arith.constant 1 : i32
      %140 = vector.broadcast %c1_i32 : i32 to vector<1x1x16xi32>
      %141 = arith.cmpi eq, %139, %140 : vector<1x1x16xi32>
      %142 = arith.extui %141 : vector<1x1x16xi1> to vector<1x1x16xi32>
      %143 = arith.sitofp %142 : vector<1x1x16xi32> to vector<1x1x16xf32>
      %144 = vector.broadcast %143 : vector<1x1x16xf32> to vector<16x1x16xf32>
      %145 = arith.subf %138, %144 : vector<16x1x16xf32>
      %146 = vector.extract_strided_slice %131 {offsets = [0, 0, 1], sizes = [16, 1, 1], strides = [1, 1, 1]} : vector<16x1x16xf32> to vector<16x1x1xf32>
      %147 = arith.mulf %146, %134 : vector<16x1x1xf32>
      %148 = vector.broadcast %137 : vector<16x16x1xf32> to vector<16x16x16xf32>
      %149 = vector.broadcast %145 : vector<16x1x16xf32> to vector<16x16x16xf32>
      %150 = arith.mulf %148, %149 : vector<16x16x16xf32>
      %151 = arith.subf %128, %150 : vector<16x16x16xf32>
      %152 = vector.broadcast %147 : vector<16x1x1xf32> to vector<16x1x16xf32>
      %153 = arith.mulf %152, %145 : vector<16x1x16xf32>
      %154 = arith.subf %131, %153 : vector<16x1x16xf32>
      %155 = vector.extract_strided_slice %151 {offsets = [0, 2, 2], sizes = [16, 1, 1], strides = [1, 1, 1]} : vector<16x16x16xf32> to vector<16x1x1xf32>
      %cst_53 = arith.constant 1.000000e+00 : f32
      %156 = vector.broadcast %cst_53 : f32 to vector<16x1x1xf32>
      %157 = arith.divf %156, %155 : vector<16x1x1xf32>
      %158 = vector.extract_strided_slice %151 {offsets = [0, 0, 2], sizes = [16, 16, 1], strides = [1, 1, 1]} : vector<16x16x16xf32> to vector<16x16x1xf32>
      %159 = vector.broadcast %157 : vector<16x1x1xf32> to vector<16x16x1xf32>
      %160 = arith.mulf %158, %159 : vector<16x16x1xf32>
      %161 = vector.extract_strided_slice %151 {offsets = [0, 2, 0], sizes = [16, 1, 16], strides = [1, 1, 1]} : vector<16x16x16xf32> to vector<16x1x16xf32>
      %162 = tpu.iota {dimensions = array<i32: 2>} : vector<1x1x16xi32>
      %c2_i32 = arith.constant 2 : i32
      %163 = vector.broadcast %c2_i32 : i32 to vector<1x1x16xi32>
      %164 = arith.cmpi eq, %162, %163 : vector<1x1x16xi32>
      %165 = arith.extui %164 : vector<1x1x16xi1> to vector<1x1x16xi32>
      %166 = arith.sitofp %165 : vector<1x1x16xi32> to vector<1x1x16xf32>
      %167 = vector.broadcast %166 : vector<1x1x16xf32> to vector<16x1x16xf32>
      %168 = arith.subf %161, %167 : vector<16x1x16xf32>
      %169 = vector.extract_strided_slice %154 {offsets = [0, 0, 2], sizes = [16, 1, 1], strides = [1, 1, 1]} : vector<16x1x16xf32> to vector<16x1x1xf32>
      %170 = arith.mulf %169, %157 : vector<16x1x1xf32>
      %171 = vector.broadcast %160 : vector<16x16x1xf32> to vector<16x16x16xf32>
      %172 = vector.broadcast %168 : vector<16x1x16xf32> to vector<16x16x16xf32>
      %173 = arith.mulf %171, %172 : vector<16x16x16xf32>
      %174 = arith.subf %151, %173 : vector<16x16x16xf32>
      %175 = vector.broadcast %170 : vector<16x1x1xf32> to vector<16x1x16xf32>
      %176 = arith.mulf %175, %168 : vector<16x1x16xf32>
      %177 = arith.subf %154, %176 : vector<16x1x16xf32>
      %178 = vector.extract_strided_slice %174 {offsets = [0, 3, 3], sizes = [16, 1, 1], strides = [1, 1, 1]} : vector<16x16x16xf32> to vector<16x1x1xf32>
      %cst_54 = arith.constant 1.000000e+00 : f32
      %179 = vector.broadcast %cst_54 : f32 to vector<16x1x1xf32>
      %180 = arith.divf %179, %178 : vector<16x1x1xf32>
      %181 = vector.extract_strided_slice %174 {offsets = [0, 0, 3], sizes = [16, 16, 1], strides = [1, 1, 1]} : vector<16x16x16xf32> to vector<16x16x1xf32>
      %182 = vector.broadcast %180 : vector<16x1x1xf32> to vector<16x16x1xf32>
      %183 = arith.mulf %181, %182 : vector<16x16x1xf32>
      %184 = vector.extract_strided_slice %174 {offsets = [0, 3, 0], sizes = [16, 1, 16], strides = [1, 1, 1]} : vector<16x16x16xf32> to vector<16x1x16xf32>
      %185 = tpu.iota {dimensions = array<i32: 2>} : vector<1x1x16xi32>
      %c3_i32 = arith.constant 3 : i32
      %186 = vector.broadcast %c3_i32 : i32 to vector<1x1x16xi32>
      %187 = arith.cmpi eq, %185, %186 : vector<1x1x16xi32>
      %188 = arith.extui %187 : vector<1x1x16xi1> to vector<1x1x16xi32>
      %189 = arith.sitofp %188 : vector<1x1x16xi32> to vector<1x1x16xf32>
      %190 = vector.broadcast %189 : vector<1x1x16xf32> to vector<16x1x16xf32>
      %191 = arith.subf %184, %190 : vector<16x1x16xf32>
      %192 = vector.extract_strided_slice %177 {offsets = [0, 0, 3], sizes = [16, 1, 1], strides = [1, 1, 1]} : vector<16x1x16xf32> to vector<16x1x1xf32>
      %193 = arith.mulf %192, %180 : vector<16x1x1xf32>
      %194 = vector.broadcast %183 : vector<16x16x1xf32> to vector<16x16x16xf32>
      %195 = vector.broadcast %191 : vector<16x1x16xf32> to vector<16x16x16xf32>
      %196 = arith.mulf %194, %195 : vector<16x16x16xf32>
      %197 = arith.subf %174, %196 : vector<16x16x16xf32>
      %198 = vector.broadcast %193 : vector<16x1x1xf32> to vector<16x1x16xf32>
      %199 = arith.mulf %198, %191 : vector<16x1x16xf32>
      %200 = arith.subf %177, %199 : vector<16x1x16xf32>
      %201 = vector.extract_strided_slice %197 {offsets = [0, 4, 4], sizes = [16, 1, 1], strides = [1, 1, 1]} : vector<16x16x16xf32> to vector<16x1x1xf32>
      %cst_55 = arith.constant 1.000000e+00 : f32
      %202 = vector.broadcast %cst_55 : f32 to vector<16x1x1xf32>
      %203 = arith.divf %202, %201 : vector<16x1x1xf32>
      %204 = vector.extract_strided_slice %197 {offsets = [0, 0, 4], sizes = [16, 16, 1], strides = [1, 1, 1]} : vector<16x16x16xf32> to vector<16x16x1xf32>
      %205 = vector.broadcast %203 : vector<16x1x1xf32> to vector<16x16x1xf32>
      %206 = arith.mulf %204, %205 : vector<16x16x1xf32>
      %207 = vector.extract_strided_slice %197 {offsets = [0, 4, 0], sizes = [16, 1, 16], strides = [1, 1, 1]} : vector<16x16x16xf32> to vector<16x1x16xf32>
      %208 = tpu.iota {dimensions = array<i32: 2>} : vector<1x1x16xi32>
      %c4_i32 = arith.constant 4 : i32
      %209 = vector.broadcast %c4_i32 : i32 to vector<1x1x16xi32>
      %210 = arith.cmpi eq, %208, %209 : vector<1x1x16xi32>
      %211 = arith.extui %210 : vector<1x1x16xi1> to vector<1x1x16xi32>
      %212 = arith.sitofp %211 : vector<1x1x16xi32> to vector<1x1x16xf32>
      %213 = vector.broadcast %212 : vector<1x1x16xf32> to vector<16x1x16xf32>
      %214 = arith.subf %207, %213 : vector<16x1x16xf32>
      %215 = vector.extract_strided_slice %200 {offsets = [0, 0, 4], sizes = [16, 1, 1], strides = [1, 1, 1]} : vector<16x1x16xf32> to vector<16x1x1xf32>
      %216 = arith.mulf %215, %203 : vector<16x1x1xf32>
      %217 = vector.broadcast %206 : vector<16x16x1xf32> to vector<16x16x16xf32>
      %218 = vector.broadcast %214 : vector<16x1x16xf32> to vector<16x16x16xf32>
      %219 = arith.mulf %217, %218 : vector<16x16x16xf32>
      %220 = arith.subf %197, %219 : vector<16x16x16xf32>
      %221 = vector.broadcast %216 : vector<16x1x1xf32> to vector<16x1x16xf32>
      %222 = arith.mulf %221, %214 : vector<16x1x16xf32>
      %223 = arith.subf %200, %222 : vector<16x1x16xf32>
      %224 = vector.extract_strided_slice %220 {offsets = [0, 5, 5], sizes = [16, 1, 1], strides = [1, 1, 1]} : vector<16x16x16xf32> to vector<16x1x1xf32>
      %cst_56 = arith.constant 1.000000e+00 : f32
      %225 = vector.broadcast %cst_56 : f32 to vector<16x1x1xf32>
      %226 = arith.divf %225, %224 : vector<16x1x1xf32>
      %227 = vector.extract_strided_slice %220 {offsets = [0, 0, 5], sizes = [16, 16, 1], strides = [1, 1, 1]} : vector<16x16x16xf32> to vector<16x16x1xf32>
      %228 = vector.broadcast %226 : vector<16x1x1xf32> to vector<16x16x1xf32>
      %229 = arith.mulf %227, %228 : vector<16x16x1xf32>
      %230 = vector.extract_strided_slice %220 {offsets = [0, 5, 0], sizes = [16, 1, 16], strides = [1, 1, 1]} : vector<16x16x16xf32> to vector<16x1x16xf32>
      %231 = tpu.iota {dimensions = array<i32: 2>} : vector<1x1x16xi32>
      %c5_i32 = arith.constant 5 : i32
      %232 = vector.broadcast %c5_i32 : i32 to vector<1x1x16xi32>
      %233 = arith.cmpi eq, %231, %232 : vector<1x1x16xi32>
      %234 = arith.extui %233 : vector<1x1x16xi1> to vector<1x1x16xi32>
      %235 = arith.sitofp %234 : vector<1x1x16xi32> to vector<1x1x16xf32>
      %236 = vector.broadcast %235 : vector<1x1x16xf32> to vector<16x1x16xf32>
      %237 = arith.subf %230, %236 : vector<16x1x16xf32>
      %238 = vector.extract_strided_slice %223 {offsets = [0, 0, 5], sizes = [16, 1, 1], strides = [1, 1, 1]} : vector<16x1x16xf32> to vector<16x1x1xf32>
      %239 = arith.mulf %238, %226 : vector<16x1x1xf32>
      %240 = vector.broadcast %229 : vector<16x16x1xf32> to vector<16x16x16xf32>
      %241 = vector.broadcast %237 : vector<16x1x16xf32> to vector<16x16x16xf32>
      %242 = arith.mulf %240, %241 : vector<16x16x16xf32>
      %243 = arith.subf %220, %242 : vector<16x16x16xf32>
      %244 = vector.broadcast %239 : vector<16x1x1xf32> to vector<16x1x16xf32>
      %245 = arith.mulf %244, %237 : vector<16x1x16xf32>
      %246 = arith.subf %223, %245 : vector<16x1x16xf32>
      %247 = vector.extract_strided_slice %243 {offsets = [0, 6, 6], sizes = [16, 1, 1], strides = [1, 1, 1]} : vector<16x16x16xf32> to vector<16x1x1xf32>
      %cst_57 = arith.constant 1.000000e+00 : f32
      %248 = vector.broadcast %cst_57 : f32 to vector<16x1x1xf32>
      %249 = arith.divf %248, %247 : vector<16x1x1xf32>
      %250 = vector.extract_strided_slice %243 {offsets = [0, 0, 6], sizes = [16, 16, 1], strides = [1, 1, 1]} : vector<16x16x16xf32> to vector<16x16x1xf32>
      %251 = vector.broadcast %249 : vector<16x1x1xf32> to vector<16x16x1xf32>
      %252 = arith.mulf %250, %251 : vector<16x16x1xf32>
      %253 = vector.extract_strided_slice %243 {offsets = [0, 6, 0], sizes = [16, 1, 16], strides = [1, 1, 1]} : vector<16x16x16xf32> to vector<16x1x16xf32>
      %254 = tpu.iota {dimensions = array<i32: 2>} : vector<1x1x16xi32>
      %c6_i32 = arith.constant 6 : i32
      %255 = vector.broadcast %c6_i32 : i32 to vector<1x1x16xi32>
      %256 = arith.cmpi eq, %254, %255 : vector<1x1x16xi32>
      %257 = arith.extui %256 : vector<1x1x16xi1> to vector<1x1x16xi32>
      %258 = arith.sitofp %257 : vector<1x1x16xi32> to vector<1x1x16xf32>
      %259 = vector.broadcast %258 : vector<1x1x16xf32> to vector<16x1x16xf32>
      %260 = arith.subf %253, %259 : vector<16x1x16xf32>
      %261 = vector.extract_strided_slice %246 {offsets = [0, 0, 6], sizes = [16, 1, 1], strides = [1, 1, 1]} : vector<16x1x16xf32> to vector<16x1x1xf32>
      %262 = arith.mulf %261, %249 : vector<16x1x1xf32>
      %263 = vector.broadcast %252 : vector<16x16x1xf32> to vector<16x16x16xf32>
      %264 = vector.broadcast %260 : vector<16x1x16xf32> to vector<16x16x16xf32>
      %265 = arith.mulf %263, %264 : vector<16x16x16xf32>
      %266 = arith.subf %243, %265 : vector<16x16x16xf32>
      %267 = vector.broadcast %262 : vector<16x1x1xf32> to vector<16x1x16xf32>
      %268 = arith.mulf %267, %260 : vector<16x1x16xf32>
      %269 = arith.subf %246, %268 : vector<16x1x16xf32>
      %270 = vector.extract_strided_slice %266 {offsets = [0, 7, 7], sizes = [16, 1, 1], strides = [1, 1, 1]} : vector<16x16x16xf32> to vector<16x1x1xf32>
      %cst_58 = arith.constant 1.000000e+00 : f32
      %271 = vector.broadcast %cst_58 : f32 to vector<16x1x1xf32>
      %272 = arith.divf %271, %270 : vector<16x1x1xf32>
      %273 = vector.extract_strided_slice %266 {offsets = [0, 0, 7], sizes = [16, 16, 1], strides = [1, 1, 1]} : vector<16x16x16xf32> to vector<16x16x1xf32>
      %274 = vector.broadcast %272 : vector<16x1x1xf32> to vector<16x16x1xf32>
      %275 = arith.mulf %273, %274 : vector<16x16x1xf32>
      %276 = vector.extract_strided_slice %266 {offsets = [0, 7, 0], sizes = [16, 1, 16], strides = [1, 1, 1]} : vector<16x16x16xf32> to vector<16x1x16xf32>
      %277 = tpu.iota {dimensions = array<i32: 2>} : vector<1x1x16xi32>
      %c7_i32 = arith.constant 7 : i32
      %278 = vector.broadcast %c7_i32 : i32 to vector<1x1x16xi32>
      %279 = arith.cmpi eq, %277, %278 : vector<1x1x16xi32>
      %280 = arith.extui %279 : vector<1x1x16xi1> to vector<1x1x16xi32>
      %281 = arith.sitofp %280 : vector<1x1x16xi32> to vector<1x1x16xf32>
      %282 = vector.broadcast %281 : vector<1x1x16xf32> to vector<16x1x16xf32>
      %283 = arith.subf %276, %282 : vector<16x1x16xf32>
      %284 = vector.extract_strided_slice %269 {offsets = [0, 0, 7], sizes = [16, 1, 1], strides = [1, 1, 1]} : vector<16x1x16xf32> to vector<16x1x1xf32>
      %285 = arith.mulf %284, %272 : vector<16x1x1xf32>
      %286 = vector.broadcast %275 : vector<16x16x1xf32> to vector<16x16x16xf32>
      %287 = vector.broadcast %283 : vector<16x1x16xf32> to vector<16x16x16xf32>
      %288 = arith.mulf %286, %287 : vector<16x16x16xf32>
      %289 = arith.subf %266, %288 : vector<16x16x16xf32>
      %290 = vector.broadcast %285 : vector<16x1x1xf32> to vector<16x1x16xf32>
      %291 = arith.mulf %290, %283 : vector<16x1x16xf32>
      %292 = arith.subf %269, %291 : vector<16x1x16xf32>
      %293 = vector.extract_strided_slice %289 {offsets = [0, 8, 8], sizes = [16, 1, 1], strides = [1, 1, 1]} : vector<16x16x16xf32> to vector<16x1x1xf32>
      %cst_59 = arith.constant 1.000000e+00 : f32
      %294 = vector.broadcast %cst_59 : f32 to vector<16x1x1xf32>
      %295 = arith.divf %294, %293 : vector<16x1x1xf32>
      %296 = vector.extract_strided_slice %289 {offsets = [0, 0, 8], sizes = [16, 16, 1], strides = [1, 1, 1]} : vector<16x16x16xf32> to vector<16x16x1xf32>
      %297 = vector.broadcast %295 : vector<16x1x1xf32> to vector<16x16x1xf32>
      %298 = arith.mulf %296, %297 : vector<16x16x1xf32>
      %299 = vector.extract_strided_slice %289 {offsets = [0, 8, 0], sizes = [16, 1, 16], strides = [1, 1, 1]} : vector<16x16x16xf32> to vector<16x1x16xf32>
      %300 = tpu.iota {dimensions = array<i32: 2>} : vector<1x1x16xi32>
      %c8_i32 = arith.constant 8 : i32
      %301 = vector.broadcast %c8_i32 : i32 to vector<1x1x16xi32>
      %302 = arith.cmpi eq, %300, %301 : vector<1x1x16xi32>
      %303 = arith.extui %302 : vector<1x1x16xi1> to vector<1x1x16xi32>
      %304 = arith.sitofp %303 : vector<1x1x16xi32> to vector<1x1x16xf32>
      %305 = vector.broadcast %304 : vector<1x1x16xf32> to vector<16x1x16xf32>
      %306 = arith.subf %299, %305 : vector<16x1x16xf32>
      %307 = vector.extract_strided_slice %292 {offsets = [0, 0, 8], sizes = [16, 1, 1], strides = [1, 1, 1]} : vector<16x1x16xf32> to vector<16x1x1xf32>
      %308 = arith.mulf %307, %295 : vector<16x1x1xf32>
      %309 = vector.broadcast %298 : vector<16x16x1xf32> to vector<16x16x16xf32>
      %310 = vector.broadcast %306 : vector<16x1x16xf32> to vector<16x16x16xf32>
      %311 = arith.mulf %309, %310 : vector<16x16x16xf32>
      %312 = arith.subf %289, %311 : vector<16x16x16xf32>
      %313 = vector.broadcast %308 : vector<16x1x1xf32> to vector<16x1x16xf32>
      %314 = arith.mulf %313, %306 : vector<16x1x16xf32>
      %315 = arith.subf %292, %314 : vector<16x1x16xf32>
      %316 = vector.extract_strided_slice %312 {offsets = [0, 9, 9], sizes = [16, 1, 1], strides = [1, 1, 1]} : vector<16x16x16xf32> to vector<16x1x1xf32>
      %cst_60 = arith.constant 1.000000e+00 : f32
      %317 = vector.broadcast %cst_60 : f32 to vector<16x1x1xf32>
      %318 = arith.divf %317, %316 : vector<16x1x1xf32>
      %319 = vector.extract_strided_slice %312 {offsets = [0, 0, 9], sizes = [16, 16, 1], strides = [1, 1, 1]} : vector<16x16x16xf32> to vector<16x16x1xf32>
      %320 = vector.broadcast %318 : vector<16x1x1xf32> to vector<16x16x1xf32>
      %321 = arith.mulf %319, %320 : vector<16x16x1xf32>
      %322 = vector.extract_strided_slice %312 {offsets = [0, 9, 0], sizes = [16, 1, 16], strides = [1, 1, 1]} : vector<16x16x16xf32> to vector<16x1x16xf32>
      %323 = tpu.iota {dimensions = array<i32: 2>} : vector<1x1x16xi32>
      %c9_i32 = arith.constant 9 : i32
      %324 = vector.broadcast %c9_i32 : i32 to vector<1x1x16xi32>
      %325 = arith.cmpi eq, %323, %324 : vector<1x1x16xi32>
      %326 = arith.extui %325 : vector<1x1x16xi1> to vector<1x1x16xi32>
      %327 = arith.sitofp %326 : vector<1x1x16xi32> to vector<1x1x16xf32>
      %328 = vector.broadcast %327 : vector<1x1x16xf32> to vector<16x1x16xf32>
      %329 = arith.subf %322, %328 : vector<16x1x16xf32>
      %330 = vector.extract_strided_slice %315 {offsets = [0, 0, 9], sizes = [16, 1, 1], strides = [1, 1, 1]} : vector<16x1x16xf32> to vector<16x1x1xf32>
      %331 = arith.mulf %330, %318 : vector<16x1x1xf32>
      %332 = vector.broadcast %321 : vector<16x16x1xf32> to vector<16x16x16xf32>
      %333 = vector.broadcast %329 : vector<16x1x16xf32> to vector<16x16x16xf32>
      %334 = arith.mulf %332, %333 : vector<16x16x16xf32>
      %335 = arith.subf %312, %334 : vector<16x16x16xf32>
      %336 = vector.broadcast %331 : vector<16x1x1xf32> to vector<16x1x16xf32>
      %337 = arith.mulf %336, %329 : vector<16x1x16xf32>
      %338 = arith.subf %315, %337 : vector<16x1x16xf32>
      %339 = vector.extract_strided_slice %335 {offsets = [0, 10, 10], sizes = [16, 1, 1], strides = [1, 1, 1]} : vector<16x16x16xf32> to vector<16x1x1xf32>
      %cst_61 = arith.constant 1.000000e+00 : f32
      %340 = vector.broadcast %cst_61 : f32 to vector<16x1x1xf32>
      %341 = arith.divf %340, %339 : vector<16x1x1xf32>
      %342 = vector.extract_strided_slice %335 {offsets = [0, 0, 10], sizes = [16, 16, 1], strides = [1, 1, 1]} : vector<16x16x16xf32> to vector<16x16x1xf32>
      %343 = vector.broadcast %341 : vector<16x1x1xf32> to vector<16x16x1xf32>
      %344 = arith.mulf %342, %343 : vector<16x16x1xf32>
      %345 = vector.extract_strided_slice %335 {offsets = [0, 10, 0], sizes = [16, 1, 16], strides = [1, 1, 1]} : vector<16x16x16xf32> to vector<16x1x16xf32>
      %346 = tpu.iota {dimensions = array<i32: 2>} : vector<1x1x16xi32>
      %c10_i32 = arith.constant 10 : i32
      %347 = vector.broadcast %c10_i32 : i32 to vector<1x1x16xi32>
      %348 = arith.cmpi eq, %346, %347 : vector<1x1x16xi32>
      %349 = arith.extui %348 : vector<1x1x16xi1> to vector<1x1x16xi32>
      %350 = arith.sitofp %349 : vector<1x1x16xi32> to vector<1x1x16xf32>
      %351 = vector.broadcast %350 : vector<1x1x16xf32> to vector<16x1x16xf32>
      %352 = arith.subf %345, %351 : vector<16x1x16xf32>
      %353 = vector.extract_strided_slice %338 {offsets = [0, 0, 10], sizes = [16, 1, 1], strides = [1, 1, 1]} : vector<16x1x16xf32> to vector<16x1x1xf32>
      %354 = arith.mulf %353, %341 : vector<16x1x1xf32>
      %355 = vector.broadcast %344 : vector<16x16x1xf32> to vector<16x16x16xf32>
      %356 = vector.broadcast %352 : vector<16x1x16xf32> to vector<16x16x16xf32>
      %357 = arith.mulf %355, %356 : vector<16x16x16xf32>
      %358 = arith.subf %335, %357 : vector<16x16x16xf32>
      %359 = vector.broadcast %354 : vector<16x1x1xf32> to vector<16x1x16xf32>
      %360 = arith.mulf %359, %352 : vector<16x1x16xf32>
      %361 = arith.subf %338, %360 : vector<16x1x16xf32>
      %362 = vector.extract_strided_slice %358 {offsets = [0, 11, 11], sizes = [16, 1, 1], strides = [1, 1, 1]} : vector<16x16x16xf32> to vector<16x1x1xf32>
      %cst_62 = arith.constant 1.000000e+00 : f32
      %363 = vector.broadcast %cst_62 : f32 to vector<16x1x1xf32>
      %364 = arith.divf %363, %362 : vector<16x1x1xf32>
      %365 = vector.extract_strided_slice %358 {offsets = [0, 0, 11], sizes = [16, 16, 1], strides = [1, 1, 1]} : vector<16x16x16xf32> to vector<16x16x1xf32>
      %366 = vector.broadcast %364 : vector<16x1x1xf32> to vector<16x16x1xf32>
      %367 = arith.mulf %365, %366 : vector<16x16x1xf32>
      %368 = vector.extract_strided_slice %358 {offsets = [0, 11, 0], sizes = [16, 1, 16], strides = [1, 1, 1]} : vector<16x16x16xf32> to vector<16x1x16xf32>
      %369 = tpu.iota {dimensions = array<i32: 2>} : vector<1x1x16xi32>
      %c11_i32 = arith.constant 11 : i32
      %370 = vector.broadcast %c11_i32 : i32 to vector<1x1x16xi32>
      %371 = arith.cmpi eq, %369, %370 : vector<1x1x16xi32>
      %372 = arith.extui %371 : vector<1x1x16xi1> to vector<1x1x16xi32>
      %373 = arith.sitofp %372 : vector<1x1x16xi32> to vector<1x1x16xf32>
      %374 = vector.broadcast %373 : vector<1x1x16xf32> to vector<16x1x16xf32>
      %375 = arith.subf %368, %374 : vector<16x1x16xf32>
      %376 = vector.extract_strided_slice %361 {offsets = [0, 0, 11], sizes = [16, 1, 1], strides = [1, 1, 1]} : vector<16x1x16xf32> to vector<16x1x1xf32>
      %377 = arith.mulf %376, %364 : vector<16x1x1xf32>
      %378 = vector.broadcast %367 : vector<16x16x1xf32> to vector<16x16x16xf32>
      %379 = vector.broadcast %375 : vector<16x1x16xf32> to vector<16x16x16xf32>
      %380 = arith.mulf %378, %379 : vector<16x16x16xf32>
      %381 = arith.subf %358, %380 : vector<16x16x16xf32>
      %382 = vector.broadcast %377 : vector<16x1x1xf32> to vector<16x1x16xf32>
      %383 = arith.mulf %382, %375 : vector<16x1x16xf32>
      %384 = arith.subf %361, %383 : vector<16x1x16xf32>
      %385 = vector.extract_strided_slice %381 {offsets = [0, 12, 12], sizes = [16, 1, 1], strides = [1, 1, 1]} : vector<16x16x16xf32> to vector<16x1x1xf32>
      %cst_63 = arith.constant 1.000000e+00 : f32
      %386 = vector.broadcast %cst_63 : f32 to vector<16x1x1xf32>
      %387 = arith.divf %386, %385 : vector<16x1x1xf32>
      %388 = vector.extract_strided_slice %381 {offsets = [0, 0, 12], sizes = [16, 16, 1], strides = [1, 1, 1]} : vector<16x16x16xf32> to vector<16x16x1xf32>
      %389 = vector.broadcast %387 : vector<16x1x1xf32> to vector<16x16x1xf32>
      %390 = arith.mulf %388, %389 : vector<16x16x1xf32>
      %391 = vector.extract_strided_slice %381 {offsets = [0, 12, 0], sizes = [16, 1, 16], strides = [1, 1, 1]} : vector<16x16x16xf32> to vector<16x1x16xf32>
      %392 = tpu.iota {dimensions = array<i32: 2>} : vector<1x1x16xi32>
      %c12_i32 = arith.constant 12 : i32
      %393 = vector.broadcast %c12_i32 : i32 to vector<1x1x16xi32>
      %394 = arith.cmpi eq, %392, %393 : vector<1x1x16xi32>
      %395 = arith.extui %394 : vector<1x1x16xi1> to vector<1x1x16xi32>
      %396 = arith.sitofp %395 : vector<1x1x16xi32> to vector<1x1x16xf32>
      %397 = vector.broadcast %396 : vector<1x1x16xf32> to vector<16x1x16xf32>
      %398 = arith.subf %391, %397 : vector<16x1x16xf32>
      %399 = vector.extract_strided_slice %384 {offsets = [0, 0, 12], sizes = [16, 1, 1], strides = [1, 1, 1]} : vector<16x1x16xf32> to vector<16x1x1xf32>
      %400 = arith.mulf %399, %387 : vector<16x1x1xf32>
      %401 = vector.broadcast %390 : vector<16x16x1xf32> to vector<16x16x16xf32>
      %402 = vector.broadcast %398 : vector<16x1x16xf32> to vector<16x16x16xf32>
      %403 = arith.mulf %401, %402 : vector<16x16x16xf32>
      %404 = arith.subf %381, %403 : vector<16x16x16xf32>
      %405 = vector.broadcast %400 : vector<16x1x1xf32> to vector<16x1x16xf32>
      %406 = arith.mulf %405, %398 : vector<16x1x16xf32>
      %407 = arith.subf %384, %406 : vector<16x1x16xf32>
      %408 = vector.extract_strided_slice %404 {offsets = [0, 13, 13], sizes = [16, 1, 1], strides = [1, 1, 1]} : vector<16x16x16xf32> to vector<16x1x1xf32>
      %cst_64 = arith.constant 1.000000e+00 : f32
      %409 = vector.broadcast %cst_64 : f32 to vector<16x1x1xf32>
      %410 = arith.divf %409, %408 : vector<16x1x1xf32>
      %411 = vector.extract_strided_slice %404 {offsets = [0, 0, 13], sizes = [16, 16, 1], strides = [1, 1, 1]} : vector<16x16x16xf32> to vector<16x16x1xf32>
      %412 = vector.broadcast %410 : vector<16x1x1xf32> to vector<16x16x1xf32>
      %413 = arith.mulf %411, %412 : vector<16x16x1xf32>
      %414 = vector.extract_strided_slice %404 {offsets = [0, 13, 0], sizes = [16, 1, 16], strides = [1, 1, 1]} : vector<16x16x16xf32> to vector<16x1x16xf32>
      %415 = tpu.iota {dimensions = array<i32: 2>} : vector<1x1x16xi32>
      %c13_i32 = arith.constant 13 : i32
      %416 = vector.broadcast %c13_i32 : i32 to vector<1x1x16xi32>
      %417 = arith.cmpi eq, %415, %416 : vector<1x1x16xi32>
      %418 = arith.extui %417 : vector<1x1x16xi1> to vector<1x1x16xi32>
      %419 = arith.sitofp %418 : vector<1x1x16xi32> to vector<1x1x16xf32>
      %420 = vector.broadcast %419 : vector<1x1x16xf32> to vector<16x1x16xf32>
      %421 = arith.subf %414, %420 : vector<16x1x16xf32>
      %422 = vector.extract_strided_slice %407 {offsets = [0, 0, 13], sizes = [16, 1, 1], strides = [1, 1, 1]} : vector<16x1x16xf32> to vector<16x1x1xf32>
      %423 = arith.mulf %422, %410 : vector<16x1x1xf32>
      %424 = vector.broadcast %413 : vector<16x16x1xf32> to vector<16x16x16xf32>
      %425 = vector.broadcast %421 : vector<16x1x16xf32> to vector<16x16x16xf32>
      %426 = arith.mulf %424, %425 : vector<16x16x16xf32>
      %427 = arith.subf %404, %426 : vector<16x16x16xf32>
      %428 = vector.broadcast %423 : vector<16x1x1xf32> to vector<16x1x16xf32>
      %429 = arith.mulf %428, %421 : vector<16x1x16xf32>
      %430 = arith.subf %407, %429 : vector<16x1x16xf32>
      %431 = vector.extract_strided_slice %427 {offsets = [0, 14, 14], sizes = [16, 1, 1], strides = [1, 1, 1]} : vector<16x16x16xf32> to vector<16x1x1xf32>
      %cst_65 = arith.constant 1.000000e+00 : f32
      %432 = vector.broadcast %cst_65 : f32 to vector<16x1x1xf32>
      %433 = arith.divf %432, %431 : vector<16x1x1xf32>
      %434 = vector.extract_strided_slice %427 {offsets = [0, 0, 14], sizes = [16, 16, 1], strides = [1, 1, 1]} : vector<16x16x16xf32> to vector<16x16x1xf32>
      %435 = vector.broadcast %433 : vector<16x1x1xf32> to vector<16x16x1xf32>
      %436 = arith.mulf %434, %435 : vector<16x16x1xf32>
      %437 = vector.extract_strided_slice %427 {offsets = [0, 14, 0], sizes = [16, 1, 16], strides = [1, 1, 1]} : vector<16x16x16xf32> to vector<16x1x16xf32>
      %438 = tpu.iota {dimensions = array<i32: 2>} : vector<1x1x16xi32>
      %c14_i32 = arith.constant 14 : i32
      %439 = vector.broadcast %c14_i32 : i32 to vector<1x1x16xi32>
      %440 = arith.cmpi eq, %438, %439 : vector<1x1x16xi32>
      %441 = arith.extui %440 : vector<1x1x16xi1> to vector<1x1x16xi32>
      %442 = arith.sitofp %441 : vector<1x1x16xi32> to vector<1x1x16xf32>
      %443 = vector.broadcast %442 : vector<1x1x16xf32> to vector<16x1x16xf32>
      %444 = arith.subf %437, %443 : vector<16x1x16xf32>
      %445 = vector.extract_strided_slice %430 {offsets = [0, 0, 14], sizes = [16, 1, 1], strides = [1, 1, 1]} : vector<16x1x16xf32> to vector<16x1x1xf32>
      %446 = arith.mulf %445, %433 : vector<16x1x1xf32>
      %447 = vector.broadcast %436 : vector<16x16x1xf32> to vector<16x16x16xf32>
      %448 = vector.broadcast %444 : vector<16x1x16xf32> to vector<16x16x16xf32>
      %449 = arith.mulf %447, %448 : vector<16x16x16xf32>
      %450 = arith.subf %427, %449 : vector<16x16x16xf32>
      %451 = vector.broadcast %446 : vector<16x1x1xf32> to vector<16x1x16xf32>
      %452 = arith.mulf %451, %444 : vector<16x1x16xf32>
      %453 = arith.subf %430, %452 : vector<16x1x16xf32>
      %454 = vector.extract_strided_slice %450 {offsets = [0, 15, 15], sizes = [16, 1, 1], strides = [1, 1, 1]} : vector<16x16x16xf32> to vector<16x1x1xf32>
      %cst_66 = arith.constant 1.000000e+00 : f32
      %455 = vector.broadcast %cst_66 : f32 to vector<16x1x1xf32>
      %456 = arith.divf %455, %454 : vector<16x1x1xf32>
      %457 = vector.extract_strided_slice %450 {offsets = [0, 15, 0], sizes = [16, 1, 16], strides = [1, 1, 1]} : vector<16x16x16xf32> to vector<16x1x16xf32>
      %458 = tpu.iota {dimensions = array<i32: 2>} : vector<1x1x16xi32>
      %c15_i32 = arith.constant 15 : i32
      %459 = vector.broadcast %c15_i32 : i32 to vector<1x1x16xi32>
      %460 = arith.cmpi eq, %458, %459 : vector<1x1x16xi32>
      %461 = arith.extui %460 : vector<1x1x16xi1> to vector<1x1x16xi32>
      %462 = arith.sitofp %461 : vector<1x1x16xi32> to vector<1x1x16xf32>
      %463 = vector.broadcast %462 : vector<1x1x16xf32> to vector<16x1x16xf32>
      %464 = arith.subf %457, %463 : vector<16x1x16xf32>
      %465 = vector.extract_strided_slice %453 {offsets = [0, 0, 15], sizes = [16, 1, 1], strides = [1, 1, 1]} : vector<16x1x16xf32> to vector<16x1x1xf32>
      %466 = arith.mulf %465, %456 : vector<16x1x1xf32>
      %467 = vector.broadcast %466 : vector<16x1x1xf32> to vector<16x1x16xf32>
      %468 = arith.mulf %467, %464 : vector<16x1x16xf32>
      %469 = arith.subf %453, %468 : vector<16x1x16xf32>
      %c0_67 = arith.constant 0 : index
      %c0_68 = arith.constant 0 : index
      %c0_69 = arith.constant 0 : index
      %470 = vector.load %arg7[%c0_67, %c0_68, %c0_69] : memref<16x1x16xf32, #tpu.memory_space<vmem>>, vector<16x1x16xf32>
      tpu.vector_store %arg7[%c0_67, %c0_68, %c0_69], %469 {strides = array<i32>} : memref<16x1x16xf32, #tpu.memory_space<vmem>>, vector<16x1x16xf32>,
    } else {
    }
    return
  }
  func.func @transform_0(%arg0: i32) -> (i32, i32, i32) {
    %c0_i32 = arith.constant 0 : i32
    %c0_i32_0 = arith.constant 0 : i32
    %c0_i32_1 = arith.constant 0 : i32
    %c0_i32_2 = arith.constant 0 : i32
    return %c0_i32, %c0_i32_0, %c0_i32_1 : i32, i32, i32
  }
  func.func @transform_1(%arg0: i32) -> (i32, i32, i32) {
    %c0_i32 = arith.constant 0 : i32
    %c0_i32_0 = arith.constant 0 : i32
    %c0_i32_1 = arith.constant 0 : i32
    %c0_i32_2 = arith.constant 0 : i32
    return %c0_i32, %c0_i32_0, %c0_i32_1 : i32, i32, i32
  }
  func.func @transform_2(%arg0: i32) -> (i32, i32) {
    %c0_i32 = arith.constant 0 : i32
    %c0_i32_0 = arith.constant 0 : i32
    return %c0_i32, %arg0 : i32, i32
  }
  func.func @transform_3(%arg0: i32) -> (i32, i32) {
    %c0_i32 = arith.constant 0 : i32
    %c0_i32_0 = arith.constant 0 : i32
    return %arg0, %c0_i32 : i32, i32
  }
  func.func @transform_4(%arg0: i32) -> (i32, i32) {
    %c0_i32 = arith.constant 0 : i32
    %c0_i32_0 = arith.constant 0 : i32
    return %c0_i32, %arg0 : i32, i32
  }
  func.func @transform_5(%arg0: i32) -> (i32, i32) {
    %c0_i32 = arith.constant 0 : i32
    %c0_i32_0 = arith.constant 0 : i32
    return %arg0, %c0_i32 : i32, i32
  }
  func.func @transform_6(%arg0: i32) -> (i32, i32, i32) {
    %c0_i32 = arith.constant 0 : i32
    %c0_i32_0 = arith.constant 0 : i32
    %c0_i32_1 = arith.constant 0 : i32
    %c0_i32_2 = arith.constant 0 : i32
    return %c0_i32, %c0_i32_0, %c0_i32_1 : i32, i32, i32
  }
}

</mosaic_0001>

<bundles_post_ra>
// kernel: tpu_custom_call.1
= control target key start
LH: loop header
LB: loop body
LE: loop exit
PB: predicated region body
PF: predicated region fallthrough
CT: control target
= control target key end

     0   :  { %vm454_vm0 = vcmask 122880   ;;  %vm466_vm1 = vcmask 0   ;;  %s18308_s0 = inlined_call_operand.vmem [shape: f32[1,1,16], index: 0, kind: input, shape index: {}]   ;;  %s18309_s1 = inlined_call_operand.vmem [shape: f32[16,1,1], index: 1, kind: input, shape index: {}]   ;;  %s18310_s2 = inlined_call_operand.vmem [shape: f32[16,256], index: 2, kind: input, shape index: {}]   ;;  %s18311_s3 = inlined_call_operand.vmem [shape: f32[256,32], index: 3, kind: input, shape index: {}]   ;;  %s18312_s4 = inlined_call_operand.vmem [shape: f32[16,256], index: 4, kind: input, shape index: {}]   ;;  %s18313_s5 = inlined_call_operand.vmem [shape: f32[256,32], index: 5, kind: input, shape index: {}]   ;;  %s18314_s6 = inlined_call_operand.hbm [shape: f32[16,1,16], index: 6, kind: output, shape index: {}]  }
   0x1   :  { %v437_v0 = vld [vmem:[%s18308_s0] sm:$0x1]  ;;  %v56_v2 = vld [vmem:[%s18311_s3 + $0x88] sm:$0xff]  ;;  %v57_v7 = vld [vmem:[%s18311_s3 + $0x90] sm:$0xff] }
   0x2   :  { %v55_v1 = vld [vmem:[%s18311_s3 + $0x80] sm:$0xff]  ;;  %v455_v3 = vsel %vm454_vm0, %v437_v0, -inf  ;;  %v40_v6 = vld [vmem:[%s18311_s3 + $0x8] sm:$0xff]  ;;  %v58_v9 = vld [vmem:[%s18311_s3 + $0x98] sm:$0xff] }
   0x3   :  { %v10628_v4 = vpack.c.bf16 %v56_v2, %v55_v1  ;;  %v39_v5 = vld [vmem:[%s18311_s3] sm:$0xff]  ;;  %456 = vmax.xlane.f32.xlu0 %v455_v3  ;;  %v41_v10 = vld [vmem:[%s18311_s3 + $0x10] sm:$0xff]  ;;  %v42_v11 = vld [vmem:[%s18311_s3 + $0x18] sm:$0xff]  ;;  %v10632_v12 = vpack.c.bf16 %v58_v9, %v57_v7 }
   0x4   :  { %v10630_v8 = vpack.c.bf16 %v40_v6, %v39_v5  ;;  %v59_v13 = vld [vmem:[%s18311_s3 + $0xa0] sm:$0xff]  ;;  %v60_v14 = vld [vmem:[%s18311_s3 + $0xa8] sm:$0xff]  ;;  %v10634_v15 = vpack.c.bf16 %v42_v11, %v41_v10  ;;  %v61_v59 = vld [vmem:[%s18311_s3 + $0xb0] sm:$0xff] }
   0x5   :  { %10629 = vmatprep.subr.bf16.mxu0 %v10628_v4  ;;  %v10636_v16 = vpack.c.bf16 %v60_v14, %v59_v13  ;;  %v11493_v17 = vld [vmem:[%s18309_s1] sm:$0x1]  ;;  %v11498_v18 = vld [vmem:[%s18309_s1 + $0x1] sm:$0x1]  ;;  %v11503_v19 = vld [vmem:[%s18309_s1 + $0x2] sm:$0x1] }
   0x6   :  { %10631 = vmatpush3.bf16.msra.mxu0 %v10630_v8  ;;  %v11508_v20 = vld [vmem:[%s18309_s1 + $0x3] sm:$0x1]  ;;  %v11513_v21 = vld [vmem:[%s18309_s1 + $0x4] sm:$0x1]  ;;  %v11518_v22 = vld [vmem:[%s18309_s1 + $0x5] sm:$0x1] }
   0x7   :  { %10633 = vmatprep.subr.bf16.mxu0 %v10632_v12  ;;  %v11523_v23 = vld [vmem:[%s18309_s1 + $0x6] sm:$0x1]  ;;  %v11528_v24 = vld [vmem:[%s18309_s1 + $0x7] sm:$0x1]  ;;  %v11533_v25 = vld [vmem:[%s18309_s1 + $0x8] sm:$0x1] }
   0x8   :  { %v11538_v26 = vld [vmem:[%s18309_s1 + $0x9] sm:$0x1]  ;;  %v11543_v27 = vld [vmem:[%s18309_s1 + $0xa] sm:$0x1]  ;;  %v11548_v28 = vld [vmem:[%s18309_s1 + $0xb] sm:$0x1] }
   0x9   :  { %v11553_v29 = vld [vmem:[%s18309_s1 + $0xc] sm:$0x1]  ;;  %v11558_v30 = vld [vmem:[%s18309_s1 + $0xd] sm:$0x1]  ;;  %v11563_v31 = vld [vmem:[%s18309_s1 + $0xe] sm:$0x1] }
   0xa   :  { %10635 = vmatpush3.bf16.msra.mxu0 %v10634_v15  ;;  %v467_v32 = vsel %vm466_vm1, %v11493_v17, -inf  ;;  %v468_v33 = vsel %vm466_vm1, %v11498_v18, -inf  ;;  %v469_v34 = vsel %vm466_vm1, %v11503_v19, -inf  ;;  %v470_v35 = vsel %vm466_vm1, %v11508_v20, -inf  ;;  %v11576_v36 = vld [vmem:[%s18309_s1 + $0xf] sm:$0x1] }
   0xb   :  { %10637 = vmatprep.subr.bf16.mxu0 %v10636_v16  ;;  %v471_v37 = vsel %vm466_vm1, %v11513_v21, -inf  ;;  %v473_v38 = vsel %vm466_vm1, %v11518_v22, -inf  ;;  %v475_v39 = vsel %vm466_vm1, %v11523_v23, -inf  ;;  %v477_v40 = vsel %vm466_vm1, %v11528_v24, -inf  ;;  %v43_v45 = vld [vmem:[%s18311_s3 + $0x20] sm:$0xff]  ;;  %v44_v46 = vld [vmem:[%s18311_s3 + $0x28] sm:$0xff] }
   0xc   :  { %v472_v41 = vmax.f32 %v467_v32, %v471_v37  ;;  %v474_v42 = vmax.f32 %v468_v33, %v473_v38  ;;  %v476_v43 = vmax.f32 %v469_v34, %v475_v39  ;;  %v478_v44 = vmax.f32 %v470_v35, %v477_v40  ;;  %v173_v47 = vld [vmem:[%s18313_s5 + $0x80] sm:$0xff]  ;;  %v174_v52 = vld [vmem:[%s18313_s5 + $0x88] sm:$0xff]  ;;  %v62_v60 = vld [vmem:[%s18311_s3 + $0xb8] sm:$0xff] }
   0xd   :  { %v479_v48 = vsel %vm466_vm1, %v11533_v25, -inf  ;;  %v481_v49 = vsel %vm466_vm1, %v11538_v26, -inf  ;;  %v483_v50 = vsel %vm466_vm1, %v11543_v27, -inf  ;;  %v485_v51 = vsel %vm466_vm1, %v11548_v28, -inf  ;;  %v157_v53 = vld [vmem:[%s18313_s5] sm:$0xff]  ;;  %v158_v58 = vld [vmem:[%s18313_s5 + $0x8] sm:$0xff] }
   0xe   :  { %v480_v54 = vmax.f32 %v472_v41, %v479_v48  ;;  %v482_v55 = vmax.f32 %v474_v42, %v481_v49  ;;  %v484_v56 = vmax.f32 %v476_v43, %v483_v50  ;;  %v486_v57 = vmax.f32 %v478_v44, %v485_v51  ;;  %v175_v1 = vld [vmem:[%s18313_s5 + $0x90] sm:$0xff]  ;;  %v176_v2 = vld [vmem:[%s18313_s5 + $0x98] sm:$0xff]  ;;  %v63_v15 = vld [vmem:[%s18311_s3 + $0xc0] sm:$0xff] }
   0xf   :  { %v487_v61 = vsel %vm466_vm1, %v11553_v29, -inf  ;;  %v489_v62 = vsel %vm466_vm1, %v11558_v30, -inf  ;;  %v491_v63 = vsel %vm466_vm1, %v11563_v31, -inf  ;;  %v493_v0 = vsel %vm466_vm1, %v11576_v36, -inf  ;;  %v45_v7 = vld [vmem:[%s18311_s3 + $0x30] sm:$0xff]  ;;  %v46_v8 = vld [vmem:[%s18311_s3 + $0x38] sm:$0xff] }
  0x10   :  { %v488_v3 = vmax.f32 %v480_v54, %v487_v61  ;;  %v490_v4 = vmax.f32 %v482_v55, %v489_v62  ;;  %v492_v5 = vmax.f32 %v484_v56, %v491_v63  ;;  %v494_v6 = vmax.f32 %v486_v57, %v493_v0  ;;  %v159_v9 = vld [vmem:[%s18313_s5 + $0x10] sm:$0xff]  ;;  %v160_v14 = vld [vmem:[%s18313_s5 + $0x18] sm:$0xff]  ;;  %v64_v16 = vld [vmem:[%s18311_s3 + $0xc8] sm:$0xff] }
  0x11   :  { %v10638_v10 = vpack.c.bf16 %v44_v46, %v43_v45  ;;  %v10660_v11 = vpack.c.bf16 %v174_v52, %v173_v47  ;;  %v10662_v12 = vpack.c.bf16 %v158_v58, %v157_v53  ;;  %v10640_v13 = vpack.c.bf16 %v62_v60, %v61_v59  ;;  %v177_v35 = vld [vmem:[%s18313_s5 + $0xa0] sm:$0xff]  ;;  %v178_v37 = vld [vmem:[%s18313_s5 + $0xa8] sm:$0xff]  ;;  %v65_v47 = vld [vmem:[%s18311_s3 + $0xd0] sm:$0xff] }
  0x12   :  { %v495_v32 = vmax.f32 %v488_v3, %v490_v4  ;;  %v496_v33 = vmax.f32 %v492_v5, %v494_v6  ;;  %v10664_v34 = vpack.c.bf16 %v176_v2, %v175_v1  ;;  %v10642_v38 = vpack.c.bf16 %v46_v8, %v45_v7  ;;  %v47_v42 = vld [vmem:[%s18311_s3 + $0x40] sm:$0xff]  ;;  %v48_v43 = vld [vmem:[%s18311_s3 + $0x48] sm:$0xff]  ;;  %v66_v48 = vld [vmem:[%s18311_s3 + $0xd8] sm:$0xff] }
  0x13   :  { %10639 = vmatpush3.bf16.msra.mxu0 %v10638_v10  ;;  %10661 = vmatprep.subr.bf16.mxu1 %v10660_v11  ;;  %v10666_v40 = vpack.c.bf16 %v160_v14, %v159_v9  ;;  %v10644_v41 = vpack.c.bf16 %v64_v16, %v63_v15  ;;  %v161_v44 = vld [vmem:[%s18313_s5 + $0x20] sm:$0xff]  ;;  %v10668_v45 = vpack.c.bf16 %v178_v37, %v177_v35  ;;  %v162_v46 = vld [vmem:[%s18313_s5 + $0x28] sm:$0xff]  ;;  %v179_v49 = vld [vmem:[%s18313_s5 + $0xb0] sm:$0xff] }
  0x14   :  { %v497_v39 = vmax.f32 %v495_v32, %v496_v33  ;;  %10663 = vmatpush3.bf16.msra.mxu1 %v10662_v12  ;;  %10641 = vmatprep.subr.bf16.mxu0 %v10640_v13  ;;  %v180_v50 = vld [vmem:[%s18313_s5 + $0xb8] sm:$0xff]  ;;  %v10646_v51 = vpack.c.bf16 %v48_v43, %v47_v42  ;;  %v10670_v52 = vpack.c.bf16 %v162_v46, %v161_v44  ;;  %v49_v54 = vld [vmem:[%s18311_s3 + $0x50] sm:$0xff]  ;;  %v67_v59 = vld [vmem:[%s18311_s3 + $0xe0] sm:$0xff] }
  0x15   :  { %10665 = vmatprep.subr.bf16.mxu1 %v10664_v34  ;;  %v10648_v53 = vpack.c.bf16 %v66_v48, %v65_v47  ;;  %v50_v55 = vld [vmem:[%s18311_s3 + $0x58] sm:$0xff]  ;;  %v163_v56 = vld [vmem:[%s18313_s5 + $0x30] sm:$0xff]  ;;  %v10672_v57 = vpack.c.bf16 %v180_v50, %v179_v49  ;;  %v68_v60 = vld [vmem:[%s18311_s3 + $0xe8] sm:$0xff] }
  0x16   :  { %498 = vmax.xlane.f32.xlu0 %v497_v39  ;;  %v164_v58 = vld [vmem:[%s18313_s5 + $0x38] sm:$0xff]  ;;  %v181_v61 = vld [vmem:[%s18313_s5 + $0xc0] sm:$0xff]  ;;  %v182_v62 = vld [vmem:[%s18313_s5 + $0xc8] sm:$0xff]  ;;  %v10650_v0 = vpack.c.bf16 %v50_v55, %v49_v54  ;;  %v10652_v2 = vpack.c.bf16 %v68_v60, %v67_v59 }
  0x17   :  { %10643 = vmatpush3.bf16.msra.mxu0 %v10642_v38  ;;  %v36_v63 = vld [vmem:[%s18310_s2 + $0x8] sm:$0xff]  ;;  %v10674_v1 = vpack.c.bf16 %v164_v58, %v163_v56  ;;  %v51_v3 = vld [vmem:[%s18311_s3 + $0x60] sm:$0xff]  ;;  %v10676_v6 = vpack.c.bf16 %v182_v62, %v181_v61  ;;  %v69_v8 = vld [vmem:[%s18311_s3 + $0xf0] sm:$0xff] }
  0x18   :  { %10667 = vmatpush3.bf16.msra.mxu1 %v10666_v40  ;;  %10645 = vmatprep.subr.bf16.mxu0 %v10644_v41  ;;  %v52_v4 = vld [vmem:[%s18311_s3 + $0x68] sm:$0xff]  ;;  %v165_v5 = vld [vmem:[%s18313_s5 + $0x40] sm:$0xff]  ;;  %v70_v9 = vld [vmem:[%s18311_s3 + $0xf8] sm:$0xff] }
  0x19   :  { %10669 = vmatprep.subr.bf16.mxu1 %v10668_v45  ;;  %135 = vmatprep.mubr.f32.mxu0 %v36_v63  ;;  %v166_v7 = vld [vmem:[%s18313_s5 + $0x48] sm:$0xff]  ;;  %v183_v10 = vld [vmem:[%s18313_s5 + $0xd0] sm:$0xff]  ;;  %v184_v11 = vld [vmem:[%s18313_s5 + $0xd8] sm:$0xff]  ;;  %v10654_v13 = vpack.c.bf16 %v52_v4, %v51_v3  ;;  %v10656_v15 = vpack.c.bf16 %v70_v9, %v69_v8 }
  0x1a   :  { %v154_v12 = vld [vmem:[%s18312_s4 + $0x8] sm:$0xff]  ;;  %v10678_v14 = vpack.c.bf16 %v166_v7, %v165_v5  ;;  %v53_v16 = vld [vmem:[%s18311_s3 + $0x70] sm:$0xff]  ;;  %v54_v32 = vld [vmem:[%s18311_s3 + $0x78] sm:$0xff] }
  0x1b   :  { %10647 = vmatpush3.bf16.msra.mxu0 %v10646_v51  ;;  %253 = vmatprep.mubr.f32.mxu1 %v154_v12 }
  0x1c   :  { %10671 = vmatpush3.bf16.msra.mxu1 %v10670_v52  ;;  %10649 = vmatprep.subr.bf16.mxu0 %v10648_v53 }
  0x1d   :  { %10673 = vmatprep.subr.bf16.mxu1 %v10672_v57 }
  0x1f   :  { %10651 = vmatpush3.bf16.msra.mxu0 %v10650_v0 }
  0x20   :  { %10675 = vmatpush3.bf16.msra.mxu1 %v10674_v1  ;;  %10653 = vmatprep.subr.bf16.mxu0 %v10652_v2 }
  0x21   :  { %11 = vsyncpa [#allocation5], 0  ;;  %10677 = vmatprep.subr.bf16.mxu1 %v10676_v6  ;;  %v10680_v33 = vpack.c.bf16 %v184_v11, %v183_v10  ;;  %v167_v34 = vld [vmem:[%s18313_s5 + $0x50] sm:$0xff]  ;;  %v168_v35 = vld [vmem:[%s18313_s5 + $0x58] sm:$0xff]  ;;  %v10658_v39 = vpack.c.bf16 %v54_v32, %v53_v16  ;;  %vm28_vm2 = vcmask 261120   ;;  %v18315_v57 = vmov 0.0  }
  0x22   :  { %v185_v37 = vld [vmem:[%s18313_s5 + $0xe0] sm:$0xff]  ;;  %v186_v38 = vld [vmem:[%s18313_s5 + $0xe8] sm:$0xff]  ;;  %v10682_v40 = vpack.c.bf16 %v168_v35, %v167_v34  ;;  %v187_v44 = vld [vmem:[%s18313_s5 + $0xf0] sm:$0xff]  ;;  %29 = vst.msk [vmem:[#allocation2] sm:$0xff] %vm28_vm2, %v18315_v57  ;;  %v11402_v0 = vmov 0  }
  0x23   :  { %10655 = vmatpush3.bf16.msra.mxu0 %v10654_v13  ;;  %v10684_v41 = vpack.c.bf16 %v186_v38, %v185_v37  ;;  %v169_v42 = vld [vmem:[%s18313_s5 + $0x60] sm:$0xff]  ;;  %v170_v43 = vld [vmem:[%s18313_s5 + $0x68] sm:$0xff]  ;;  %v188_v45 = vld [vmem:[%s18313_s5 + $0xf8] sm:$0xff]  ;;  %30 = vst.msk [vmem:[#allocation2 + $0x8] sm:$0xff] %vm28_vm2, %v18315_v57  ;;  %10729 = vset.pattern.permute.xlu1 %v11402_v0 }
  0x24   :  { %10679 = vmatpush3.bf16.msra.mxu1 %v10678_v14  ;;  %10657 = vmatprep.subr.bf16.mxu0 %v10656_v15  ;;  %v35_v46 = vld [vmem:[%s18310_s2] sm:$0xff]  ;;  %v38_v47 = vld [vmem:[%s18310_s2 + $0x18] sm:$0xff]  ;;  %v10686_v48 = vpack.c.bf16 %v170_v43, %v169_v42  ;;  %v10688_v49 = vpack.c.bf16 %v188_v45, %v187_v44  ;;  %v171_v50 = vld [vmem:[%s18313_s5 + $0x70] sm:$0xff]  ;;  %31 = vst.msk [vmem:[#allocation3] sm:$0xff] %vm28_vm2, %v18315_v57 }
  0x25   :  { %10681 = vmatprep.subr.bf16.mxu1 %v10680_v33  ;;  %v172_v51 = vld [vmem:[%s18313_s5 + $0x78] sm:$0xff]  ;;  %v37_v52 = vld [vmem:[%s18310_s2 + $0x10] sm:$0xff]  ;;  %v153_v54 = vld [vmem:[%s18312_s4] sm:$0xff]  ;;  %32 = vst.msk [vmem:[#allocation3 + $0x8] sm:$0xff] %vm28_vm2, %v18315_v57  ;;  %10728 = vset.pattern.permute.xlu0 %v11402_v0 }
  0x26   :  { %v10690_v53 = vpack.c.bf16 %v172_v51, %v171_v50  ;;  %v156_v55 = vld [vmem:[%s18312_s4 + $0x18] sm:$0xff]  ;;  %v155_v56 = vld [vmem:[%s18312_s4 + $0x10] sm:$0xff]  ;;  %vm11891_vm8 = vmpackc.low %vm28_vm2, %vm28_vm2 }
  0x27   :  { %10659 = vmatpush3.bf16.msra.mxu0 %v10658_v39 }
  0x28   :  { %10683 = vmatpush3.bf16.msra.mxu1 %v10682_v40 }
  0x29   :  { %10685 = vmatprep.subr.bf16.mxu1 %v10684_v41 }
  0x2a   :  { %136 = vmatmul.mubr.f32.vlgmr.msra.gmra.mrb[0].mxu0 %v35_v46  ;;  %v33_v46 = vld [vmem:[#allocation2] sm:$0xff] }
  0x2b   :  { %140 = vmatprep.mubr.f32.mxu0 %v38_v47 }
  0x2c   :  { %10687 = vmatpush3.bf16.msra.mxu1 %v10686_v48 }
  0x2d   :  { %10689 = vmatprep.subr.bf16.mxu1 %v10688_v49 }
  0x2e   :  { %141 = vmatmul.mubr.f32.gmra.mrb[2].mxu0 %v37_v52 }
  0x30   :  { %10691 = vmatpush3.bf16.msra.mxu1 %v10690_v53 }
  0x33   :  { %254 = vmatmul.mubr.f32.vlgmr.msra.gmra.mrb[0].mxu1 %v153_v54 }
  0x34   :  { %258 = vmatprep.mubr.f32.mxu1 %v156_v55 }
  0x37   :  { %259 = vmatmul.mubr.f32.gmra.mrb[2].mxu1 %v155_v56 }
  0x90   :  { %v457_v58 = vpop.xlane.xlu0 %456 }
  0x91   :  { %v458_v59 = vrot.slane %v457_v58, 4 }
  0x93   :  { %v459_v60 = vmax.f32 %v457_v58, %v458_v59  ;;  %v34_v58 = vld [vmem:[#allocation2 + $0x8] sm:$0xff] }
  0x95   :  { %v460_v61 = vrot.slane %v459_v60, 2 }
  0x97   :  { %v461_v62 = vmax.f32 %v459_v60, %v460_v61 }
  0x99   :  { %v462_v63 = vrot.slane %v461_v62, 1 }
  0x9b   :  { %v463_v1 = vmax.f32 %v461_v62, %v462_v63 }
  0x9d   :  { %10704 = vpush %v463_v1 }
  0xa3   :  { %v499_v2 = vpop.xlane.xlu0 %498 }
  0xa4   :  { %v500_v3 = vrot.slane %v499_v2, 4 }
  0xa6   :  { %v501_v4 = vmax.f32 %v499_v2, %v500_v3 }
  0xa8   :  { %v502_v5 = vrot.slane %v501_v4, 2 }
  0xaa   :  { %v503_v6 = vmax.f32 %v501_v4, %v502_v5 }
  0xac   :  { %v504_v7 = vrot.slane %v503_v6, 1 }
  0xae   :  { %v505_v8 = vmax.f32 %v503_v6, %v504_v7 }
  0xb0   :  { %10706 = vpush %v505_v8 }
  0xce   :  { %s10705_s2 = spop %10704 }
  0xcf   :  { %v465_v9 = vstv %s10705_s2 }
  0xe1   :  { %s10707_s4 = spop %10706 }
  0xe2   :  { %v507_v10 = vstv %s10707_s4 }
  0xe3   :  { %v508_v11 = vmax.f32 %v465_v9, %v507_v10 }
  0xe5   :  { %10760 = vrcp.f32 %v508_v11 }
  0xef   :  { %v11796_v12 = vpop.eup %10760 }
  0xf0   :  { %v11800_v13 = vmul.f32 %v11796_v12, %v11498_v18  ;;  %v11804_v14 = vmul.f32 %v11796_v12, %v11493_v17  ;;  %v11808_v15 = vmul.f32 %v11796_v12, %v11508_v20  ;;  %v11812_v16 = vmul.f32 %v11796_v12, %v11503_v19 }
  0xf1   :  { %v11816_v32 = vmul.f32 %v11796_v12, %v11518_v22  ;;  %v11821_v18 = vmul.f32 %v11796_v12, %v11513_v21  ;;  %v11825_v17 = vmul.f32 %v11796_v12, %v11528_v24  ;;  %v11835_v21 = vmul.f32 %v11796_v12, %v11523_v23 }
  0xf2   :  { %v536_v33 = vmax.f32 %v11800_v13, 1e-30  ;;  %v535_v20 = vmax.f32 %v11804_v14, 1e-30  ;;  %v538_v34 = vmax.f32 %v11808_v15, 1e-30  ;;  %v11839_v24 = vmul.f32 %v11796_v12, %v11538_v26 }
  0xf3   :  { %v537_v19 = vmax.f32 %v11812_v16, 1e-30  ;;  %v540_v22 = vmax.f32 %v11816_v32, 1e-30  ;;  %v539_v35 = vmax.f32 %v11821_v18, 1e-30  ;;  %v11843_v38 = vmul.f32 %v11796_v12, %v11533_v25 }
  0xf4   :  { %10762 = vlog2.f32 %v536_v33  ;;  %v542_v37 = vmax.f32 %v11825_v17, 1e-30  ;;  %v11847_v39 = vmul.f32 %v11796_v12, %v11548_v28  ;;  %v541_v40 = vmax.f32 %v11835_v21, 1e-30 }
  0xf5   :  { %10764 = vlog2.f32 %v535_v20  ;;  %v11852_v23 = vmul.f32 %v11796_v12, %v11543_v27  ;;  %v544_v41 = vmax.f32 %v11839_v24, 1e-30  ;;  %v543_v26 = vmax.f32 %v11843_v38, 1e-30 }
  0xf6   :  { %10766 = vlog2.f32 %v538_v34  ;;  %v546_v25 = vmax.f32 %v11847_v39, 1e-30  ;;  %v11859_v28 = vmul.f32 %v11796_v12, %v11558_v30  ;;  %v11864_v27 = vmul.f32 %v11796_v12, %v11553_v29 }
  0xf7   :  { %10768 = vlog2.f32 %v537_v19  ;;  %v545_v42 = vmax.f32 %v11852_v23, 1e-30  ;;  %v11869_v45 = vmul.f32 %v11796_v12, %v11576_v36  ;;  %v11874_v29 = vmul.f32 %v11796_v12, %v11563_v31 }
  0xf8   :  { %10770 = vlog2.f32 %v540_v22  ;;  %v548_v44 = vmax.f32 %v11859_v28, 1e-30  ;;  %v547_v30 = vmax.f32 %v11864_v27, 1e-30  ;;  %v151_v22 = vld [vmem:[#allocation3] sm:$0xff]  ;;  %vm632_vm3 = vcmp.gt.f32.partialorder %v11800_v13, 0.0 }
  0xf9   :  { %10772 = vlog2.f32 %v539_v35  ;;  %v550_v55 = vmax.f32 %v11869_v45, 1e-30  ;;  %v549_v1 = vmax.f32 %v11874_v29, 1e-30  ;;  %vm631_vm4 = vcmp.gt.f32.partialorder %v11804_v14, 0.0 }
  0xfa   :  { %10774 = vlog2.f32 %v542_v37  ;;  %vm634_vm5 = vcmp.gt.f32.partialorder %v11808_v15, 0.0  ;;  %vm633_vm6 = vcmp.gt.f32.partialorder %v11812_v16, 0.0  ;;  %vm636_vm7 = vcmp.gt.f32.partialorder %v11816_v32, 0.0 }
  0xfb   :  { %10776 = vlog2.f32 %v541_v40  ;;  %vm635_vm9 = vcmp.gt.f32.partialorder %v11821_v18, 0.0  ;;  %vm638_vm10 = vcmp.gt.f32.partialorder %v11825_v17, 0.0  ;;  %vm637_vm11 = vcmp.gt.f32.partialorder %v11835_v21, 0.0 }
  0xfc   :  { %10778 = vlog2.f32 %v544_v41  ;;  %vm640_vm12 = vcmp.gt.f32.partialorder %v11839_v24, 0.0  ;;  %vm639_vm13 = vcmp.gt.f32.partialorder %v11843_v38, 0.0  ;;  %vm642_vm14 = vcmp.gt.f32.partialorder %v11847_v39, 0.0 }
  0xfd   :  { %v10562_v43 = vpop.f32.mrb[0].mxu0  ;;  %10780 = vlog2.f32 %v543_v26  ;;  %vm641_vm15 = vcmp.gt.f32.partialorder %v11852_v23, 0.0  ;;  %vm644_vm1 = vcmp.gt.f32.partialorder %v11859_v28, 0.0 }
  0xfe   :  { %v10563_v47 = vpop.f32.mrb[1].mxu0  ;;  %v10763_v48 = vpop.eup %10762  ;;  %10782 = vlog2.f32 %v546_v25 }
  0xff   :  { %v10564_v49 = vadd.f32 %v10563_v47, %v10562_v43  ;;  %v10765_v50 = vpop.eup %10764  ;;  %v554_v51 = vmul.f32 0.6931472, %v10763_v48  ;;  %10784 = vlog2.f32 %v545_v42 }
 0x100   :  { %v10767_v52 = vpop.eup %10766  ;;  %v552_v36 = vmul.f32 0.6931472, %v10765_v50  ;;  %10786 = vlog2.f32 %v548_v44 }
 0x101   :  { %v146_v53 = vadd.f32 %v10564_v49, %v33_v46  ;;  %v10565_v54 = vpop.f32.mrb[2].mxu0  ;;  %v10769_v56 = vpop.eup %10768  ;;  %v584_v60 = vmul.f32 0.5, %v554_v51  ;;  %v558_v61 = vmul.f32 0.6931472, %v10767_v52  ;;  %10788 = vlog2.f32 %v547_v30 }
 0x102   :  { %v10566_v59 = vpop.f32.mrb[3].mxu0  ;;  %v10771_v62 = vpop.eup %10770  ;;  %v583_v63 = vmul.f32 0.5, %v552_v36  ;;  %v556_v0 = vmul.f32 0.6931472, %v10769_v56  ;;  %10790 = vlog2.f32 %v550_v55 }
 0x103   :  { %149 = vst.msk [vmem:[#allocation2] sm:$0xff] %vm28_vm2, %v146_v53  ;;  %v10567_v31 = vadd.f32 %v10566_v59, %v10565_v54  ;;  %v10773_v2 = vpop.eup %10772  ;;  %v601_v3 = vmul.f32 1.442695, %v584_v60  ;;  %v586_v4 = vmul.f32 0.5, %v558_v61  ;;  %v562_v5 = vmul.f32 0.6931472, %v10771_v62 }
 0x104   :  { %v10775_v6 = vpop.eup %10774  ;;  %v599_v8 = vmul.f32 1.442695, %v583_v63  ;;  %v585_v9 = vmul.f32 0.5, %v556_v0  ;;  %v560_v34 = vmul.f32 0.6931472, %v10773_v2  ;;  %v152_v54 = vld [vmem:[#allocation3 + $0x8] sm:$0xff] }
 0x105   :  { %v147_v7 = vadd.f32 %v10567_v31, %v34_v58  ;;  %v10777_v10 = vpop.eup %10776  ;;  %10792 = vpow2.f32 %v601_v3  ;;  %v605_v33 = vmul.f32 1.442695, %v586_v4  ;;  %v588_v20 = vmul.f32 0.5, %v562_v5 }
 0x106   :  { %v10600_v11 = vpop.f32.mrb[0].mxu1  ;;  %v10779_v19 = vpop.eup %10778  ;;  %10794 = vpow2.f32 %v599_v8  ;;  %v603_v37 = vmul.f32 1.442695, %v585_v9  ;;  %v566_v40 = vmul.f32 0.6931472, %v10775_v6  ;;  %v587_v42 = vmul.f32 0.5, %v560_v34 }
 0x107   :  { %150 = vst.msk [vmem:[#allocation2 + $0x8] sm:$0xff] %vm28_vm2, %v147_v7  ;;  %v10601_v35 = vpop.f32.mrb[1].mxu1  ;;  %v10781_v41 = vpop.eup %10780  ;;  %10796 = vpow2.f32 %v605_v33  ;;  %v609_v25 = vmul.f32 1.442695, %v588_v20 }
 0x108   :  { %v10602_v26 = vadd.f32 %v10601_v35, %v10600_v11  ;;  %v10783_v43 = vpop.eup %10782  ;;  %10798 = vpow2.f32 %v603_v37  ;;  %v590_v44 = vmul.f32 0.5, %v566_v40  ;;  %v564_v46 = vmul.f32 0.6931472, %v10777_v10 }
 0x109   :  { %v570_v47 = vmul.f32 0.6931472, %v10779_v19  ;;  %v10785_v30 = vpop.eup %10784  ;;  %10800 = vpow2.f32 %v609_v25  ;;  %v607_v51 = vmul.f32 1.442695, %v587_v42  ;;  %v568_v52 = vmul.f32 0.6931472, %v10781_v41 }
 0x10a   :  { %v264_v48 = vadd.f32 %v10602_v26, %v151_v22  ;;  %v10603_v49 = vpop.f32.mrb[2].mxu1  ;;  %v271_v50 = vld [vmem:[#allocation2] sm:$0xff]  ;;  %v10787_v53 = vpop.eup %10786  ;;  %v613_v55 = vmul.f32 1.442695, %v590_v44  ;;  %v589_v56 = vmul.f32 0.5, %v564_v46  ;;  %10802 = vlog2.f32 %v549_v1 }
 0x10b   :  { %10618 = vmatprep.mubr.msk.f32.mxu0 %vm28_vm2, %v271_v50  ;;  %v10604_v36 = vpop.f32.mrb[3].mxu1  ;;  %v592_v58 = vmul.f32 0.5, %v570_v47  ;;  %v10789_v59 = vpop.eup %10788  ;;  %10804 = vpow2.f32 %v607_v51  ;;  %v591_v61 = vmul.f32 0.5, %v568_v52  ;;  %v574_v62 = vmul.f32 0.6931472, %v10783_v43 }
 0x10c   :  { %266 = vst.msk [vmem:[#allocation3] sm:$0xff] %vm28_vm2, %v264_v48  ;;  %v10605_v60 = vadd.f32 %v10604_v36, %v10603_v49  ;;  %10806 = vpow2.f32 %v613_v55  ;;  %v611_v31 = vmul.f32 1.442695, %v589_v56  ;;  %v572_v0 = vmul.f32 0.6931472, %v10785_v30  ;;  %v10791_v7 = vpop.eup %10790 }
 0x10d   :  { %v617_v63 = vmul.f32 1.442695, %v592_v58  ;;  %v615_v4 = vmul.f32 1.442695, %v591_v61  ;;  %v594_v5 = vmul.f32 0.5, %v574_v62 }
 0x10e   :  { %v11887_v2 = vld [vmem:[#allocation2 + $0x8] sm:$0xff]  ;;  %v265_v3 = vadd.f32 %v10605_v60, %v152_v54  ;;  %v578_v6 = vmul.f32 0.6931472, %v10787_v53  ;;  %10808 = vpow2.f32 %v611_v31  ;;  %v593_v9 = vmul.f32 0.5, %v572_v0 }
 0x10f   :  { %v10692_v8 = vpack.c.bf16 %v11887_v2, %v271_v50  ;;  %v576_v10 = vmul.f32 0.6931472, %v10789_v59  ;;  %v10793_v11 = vpop.eup %10792  ;;  %10810 = vpow2.f32 %v617_v63  ;;  %v621_v33 = vmul.f32 1.442695, %v594_v5 }
 0x110   :  { %267 = vst.msk [vmem:[#allocation3 + $0x8] sm:$0xff] %vm28_vm2, %v265_v3  ;;  %v596_v20 = vmul.f32 0.5, %v578_v6  ;;  %v10795_v34 = vpop.eup %10794  ;;  %v11904_v19 = vsel %vm632_vm3, %v10793_v11, 0.0  ;;  %10812 = vpow2.f32 %v615_v4  ;;  %v619_v22 = vmul.f32 1.442695, %v593_v9 }
 0x111   :  { %10694 = vmatprep.subr.msk.bf16.mxu0 %vm11891_vm8, %v10692_v8  ;;  %10700 = vmatprep.subr.msk.bf16.mxu1 %vm11891_vm8, %v10692_v8  ;;  %v595_v35 = vmul.f32 0.5, %v576_v10  ;;  %v10797_v37 = vpop.eup %10796  ;;  %v664_v40 = vmul.f32 %v11904_v19, %v11904_v19  ;;  %v11914_v41 = vsel %vm631_vm4, %v10795_v34, 0.0  ;;  %10814 = vpow2.f32 %v621_v33 }
 0x112   :  { %10697 = vmatpush3.bf16.xpose.msk.msra.mxu0 %vm11891_vm8, %v10692_v8  ;;  %10703 = vmatpush3.bf16.xpose.msk.msra.mxu1 %vm11891_vm8, %v10692_v8  ;;  %v625_v13 = vmul.f32 1.442695, %v596_v20  ;;  %v10799_v26 = vpop.eup %10798  ;;  %v663_v42 = vmul.f32 %v11914_v41, %v11914_v41  ;;  %v11920_v43 = vsel %vm634_vm5, %v10797_v37, 0.0  ;;  %10816 = vpow2.f32 %v619_v22 }
 0x113   :  { %v273_v25 = vld [vmem:[#allocation3] sm:$0xff]  ;;  %v623_v44 = vmul.f32 1.442695, %v595_v35  ;;  %v10801_v46 = vpop.eup %10800  ;;  %v680_v47 = vadd.f32 1.0, %v664_v40  ;;  %v666_v14 = vmul.f32 %v11920_v43, %v11920_v43  ;;  %v11927_v30 = vsel %vm633_vm6, %v10799_v26, 0.0 }
 0x114   :  { %10625 = vmatprep.mubr.msk.f32.mxu1 %vm28_vm2, %v273_v25  ;;  %10818 = vpow2.f32 %v625_v13  ;;  %v10803_v48 = vpop.eup %10802  ;;  %v679_v49 = vadd.f32 1.0, %v663_v42  ;;  %v665_v15 = vmul.f32 %v11927_v30, %v11927_v30  ;;  %v11933_v50 = vsel %vm636_vm7, %v10801_v46, 0.0 }
 0x115   :  { %10820 = vpow2.f32 %v623_v44  ;;  %v10805_v51 = vpop.eup %10804  ;;  %v682_v52 = vadd.f32 1.0, %v666_v14  ;;  %v668_v53 = vmul.f32 %v11933_v50, %v11933_v50  ;;  %v582_v16 = vmul.f32 0.6931472, %v10791_v7 }
 0x116   :  { %10822 = vrcp.f32 %v680_v47  ;;  %v10807_v54 = vpop.eup %10806  ;;  %v681_v55 = vadd.f32 1.0, %v665_v15  ;;  %v11939_v56 = vsel %vm635_vm9, %v10805_v51, 0.0  ;;  %v580_v17 = vmul.f32 0.6931472, %v10803_v48 }
 0x117   :  { %v274_v36 = vld [vmem:[#allocation3 + $0x8] sm:$0xff]  ;;  %10824 = vrcp.f32 %v679_v49  ;;  %v684_v32 = vadd.f32 1.0, %v668_v53  ;;  %v667_v58 = vmul.f32 %v11939_v56, %v11939_v56  ;;  %v11944_v59 = vsel %vm638_vm10, %v10807_v54, 0.0 }
 0x118   :  { %v10809_v60 = vpop.eup %10808  ;;  %v598_v18 = vmul.f32 0.5, %v582_v16  ;;  %10826 = vrcp.f32 %v682_v52  ;;  %v670_v31 = vmul.f32 %v11944_v59, %v11944_v59  ;;  %v597_v7 = vmul.f32 0.5, %v580_v17 }
 0x119   :  { %10619 = vmatmul.mubr.msk.f32.vlgmr.msra.gmra.mrb[4].mxu0 %vm28_vm2, %v11887_v2  ;;  %10626 = vmatmul.mubr.msk.f32.vlgmr.msra.gmra.mrb[4].mxu1 %vm28_vm2, %v274_v36  ;;  %v10811_v61 = vpop.eup %10810  ;;  %v683_v62 = vadd.f32 1.0, %v667_v58  ;;  %v11954_v63 = vsel %vm637_vm11, %v10809_v60, 0.0  ;;  %10828 = vrcp.f32 %v681_v55  ;;  %vm643_vm2 = vcmp.gt.f32.partialorder %v11864_v27, 0.0 }
 0x11a   :  { %v10813_v21 = vpop.eup %10812  ;;  %v669_v0 = vmul.f32 %v11954_v63, %v11954_v63  ;;  %v11958_v2 = vsel %vm640_vm12, %v10811_v61, 0.0  ;;  %v629_v24 = vmul.f32 1.442695, %v598_v18  ;;  %10830 = vrcp.f32 %v684_v32 }
 0x11b   :  { %v10815_v3 = vpop.eup %10814  ;;  %v11960_v38 = vsel %vm639_vm13, %v10813_v21, 0.0  ;;  %10832 = vrcp.f32 %v683_v62  ;;  %v672_v4 = vmul.f32 %v11958_v2, %v11958_v2  ;;  %v686_v6 = vadd.f32 1.0, %v670_v31 }
 0x11c   :  { %v10817_v1 = vpop.eup %10816  ;;  %10834 = vpow2.f32 %v629_v24  ;;  %v685_v9 = vadd.f32 1.0, %v669_v0  ;;  %v671_v10 = vmul.f32 %v11960_v38, %v11960_v38  ;;  %v11969_v11 = vsel %vm642_vm14, %v10815_v3, 0.0 }
 0x11d   :  { %v11973_v34 = vsel %vm641_vm15, %v10817_v1, 0.0  ;;  %v688_v28 = vadd.f32 1.0, %v672_v4  ;;  %10836 = vrcp.f32 %v686_v6  ;;  %v674_v22 = vmul.f32 %v11969_v11, %v11969_v11 }
 0x11e   :  { %v10819_v5 = vpop.eup %10818  ;;  %v627_v37 = vmul.f32 1.442695, %v597_v7  ;;  %10838 = vrcp.f32 %v685_v9  ;;  %v687_v40 = vadd.f32 1.0, %v671_v10  ;;  %v673_v13 = vmul.f32 %v11973_v34, %v11973_v34 }
 0x11f   :  { %v10821_v8 = vpop.eup %10820  ;;  %v660_v33 = vsel %vm644_vm1, %v10819_v5, 0.0  ;;  %v690_v46 = vadd.f32 1.0, %v674_v22  ;;  %vm646_vm3 = vcmp.gt.f32.partialorder %v11869_v45, 0.0  ;;  %vm645_vm4 = vcmp.gt.f32.partialorder %v11874_v29, 0.0 }
 0x120   :  { %v11971_v20 = vpop.eup %10822  ;;  %v676_v39 = vmul.f32 %v660_v33, %v660_v33  ;;  %v11984_v25 = vsel %vm643_vm2, %v10821_v8, 0.0  ;;  %v689_v14 = vadd.f32 1.0, %v673_v13  ;;  %vm1383_vm11 = vcmask 130048  }
 0x121   :  { %v11975_v23 = vpop.eup %10824  ;;  %919 = vperm.xlu1 %10729, %v11971_v20   ;;  %v675_v48 = vmul.f32 %v11984_v25, %v11984_v25  ;;  %v698_v3 = vmul.f32 %v11971_v20, %v11904_v19 }
 0x122   :  { %910 = vperm.xlu0 %10728, %v11975_v23   ;;  %v692_v35 = vadd.f32 1.0, %v676_v39  ;;  %v10827_v26 = vpop.eup %10826  ;;  %v696_v29 = vmul.f32 %v11975_v23, %v11914_v41 }
 0x123   :  { %v10829_v42 = vpop.eup %10828  ;;  %v691_v51 = vadd.f32 1.0, %v675_v48  ;;  %v702_v4 = vmul.f32 %v10827_v26, %v11920_v43 }
 0x124   :  { %10840 = vrcp.f32 %v692_v35  ;;  %v10831_v44 = vpop.eup %10830  ;;  %v700_v24 = vmul.f32 %v10829_v42, %v11927_v30 }
 0x125   :  { %937 = vperm.xlu1 %10729, %v10827_v26   ;;  %10842 = vrcp.f32 %v688_v28  ;;  %v10833_v47 = vpop.eup %10832  ;;  %v706_v41 = vmul.f32 %v10831_v44, %v11933_v50 }
 0x126   :  { %928 = vperm.xlu0 %10728, %v10829_v42   ;;  %10844 = vpow2.f32 %v627_v37  ;;  %v10835_v49 = vpop.eup %10834  ;;  %v704_v5 = vmul.f32 %v10833_v47, %v11939_v56 }
 0x127   :  { %10846 = vrcp.f32 %v687_v40  ;;  %v662_v27 = vsel %vm646_vm3, %v10835_v49, 0.0  ;;  %v10837_v52 = vpop.eup %10836 }
 0x128   :  { %10848 = vrcp.f32 %v690_v46  ;;  %v678_v15 = vmul.f32 %v662_v27, %v662_v27  ;;  %v10839_v16 = vpop.eup %10838  ;;  %v710_v30 = vmul.f32 %v10837_v52, %v11944_v59  ;;  %v11376_v59 = vld [vmem:[%s18308_s0] sm:$0x1]  ;;  %s11418_s0 = smov [#allocation4]  }
 0x129   :  { %955 = vperm.xlu1 %10729, %v10831_v44   ;;  %10850 = vrcp.f32 %v689_v14  ;;  %v708_v6 = vmul.f32 %v10839_v16, %v11954_v63  ;;  %v510_v63 = vmul.f32 %v11376_v59, %v11796_v12  ;;  %v736_v44 = vlaneseq  ;;  %s10493_s26 = sshll.u32 %s11418_s0, 4  ;;  %s10494_s26 = int_to_ptr.vmem [resolvable:$true] %s10493_s26 }
 0x12a   :  { %946 = vperm.xlu0 %10728, %v10833_v47   ;;  %v694_v53 = vadd.f32 1.0, %v678_v15  ;;  %s11377_s3 = scalar_lea.vmem %s10494_s26, 256  ;;  %p11382_p1 = scmp.lt.s32.totalorder %s10494_s26, %s10494_s26 }
 0x12b   :  { %vm517_vm5 = vcmp.gt.f32.partialorder %v510_v63, 0.0  ;;  %v12023_v48 = vshrl.u32 %v736_v44, 7  ;;  %p11378_p0 = scmp.ne.s32.totalorder %s10494_s26, %s11377_s3  ;;  %p11383_p2 = scmp.lt.s32.totalorder %s11377_s3, %s11377_s3 }
 0x12c   :  { %10852 = vrcp.f32 %v694_v53 }
 0x12d   :  { %973 = vperm.xlu1 %10729, %v10837_v52   ;;  %10854 = vrcp.f32 %v691_v51  ;;  %18888 = vst [vmem:[#allocation7_spill] sm:$0xff] %v12023_v48  ;;  %vm1319_vm2 = vcmp.eq.s32.totalorder %v12023_v48, 0  ;;  %vm1321_vm3 = vcmp.eq.s32.totalorder %v12023_v48, 1  ;;  %p11384_p3 = por %p11383_p2, %p11382_p1 }
 0x12e   :  { %v10841_v54 = vpop.eup %10840  ;;  %964 = vperm.xlu0 %10728, %v10839_v16   ;;  %v12032_v16 = vand.u32 127, %v736_v44 }
 0x12f   :  { %v10843_v36 = vpop.eup %10842  ;;  %v722_v55 = vmul.f32 %v10841_v54, %v660_v33  ;;  %p11385_p4 = pnand %p11384_p3, %p11378_p0 }
 0x130   :  { %v10845_v32 = vpop.eup %10844  ;;  %v714_v7 = vmul.f32 %v10843_v36, %v11958_v2  ;;  %18890 = vst [vmem:[#allocation9_spill] sm:$0xff] %v12032_v16  ;;  %vm1121_vm6 = vcmp.eq.s32.totalorder %v12023_v48, %v12032_v16 }
 0x131   :  { %v10847_v45 = vpop.eup %10846  ;;  %991 = vperm.xlu1 %10729, %v10843_v36   ;;  %v661_v58 = vsel %vm645_vm4, %v10845_v32, 0.0  ;;  %vm1323_vm4 = vcmp.eq.s32.totalorder %v12023_v48, 2 }
 0x132   :  { %982 = vperm.xlu0 %10728, %v10847_v45   ;;  %v677_v60 = vmul.f32 %v661_v58, %v661_v58  ;;  %v10849_v18 = vpop.eup %10848  ;;  %v712_v19 = vmul.f32 %v10847_v45, %v11960_v38  ;;  %v511_v38 = vmax.f32 %v510_v63, 1e-30 }
 0x133   :  { %v10851_v61 = vpop.eup %10850  ;;  %v718_v56 = vmul.f32 %v10849_v18, %v11969_v11 }
 0x134   :  { %v693_v17 = vadd.f32 1.0, %v677_v60  ;;  %v716_v43 = vmul.f32 %v10851_v61, %v11973_v34 }
 0x135   :  { %1009 = vperm.xlu1 %10729, %v10849_v18  }
 0x136   :  { %1000 = vperm.xlu0 %10728, %v10851_v61   ;;  %10856 = vrcp.f32 %v693_v17  ;;  %v10853_v62 = vpop.eup %10852 }
 0x137   :  { %v10855_v31 = vpop.eup %10854  ;;  %v726_v21 = vmul.f32 %v10853_v62, %v662_v27  ;;  %10858 = vlog2.f32 %v511_v38  ;;  %v12026_v27 = vsub.s32 0, %v12023_v48 }
 0x138   :  { %v720_v50 = vmul.f32 %v10855_v31, %v11984_v25 }
 0x139   :  { %1027 = vperm.xlu1 %10729, %v10841_v54   ;;  %18889 = vst [vmem:[#allocation8_spill] sm:$0xff] %v12026_v27  ;;  %v12035_v54 = vadd.s32 8, %v12023_v48 }
 0x13a   :  { %1018 = vperm.xlu0 %10728, %v10855_v31  }
 0x13b   :  { %vm1122_vm7 = vcmp.eq.s32.totalorder %v12035_v54, %v12032_v16  ;;  %vm1338_vm8 = vcmp.eq.s32.totalorder %v12035_v54, 9  ;;  %vm1336_vm9 = vcmp.eq.s32.totalorder %v12035_v54, 8  ;;  %vm1340_vm10 = vcmp.eq.s32.totalorder %v12035_v54, 10 }
 0x13c   :  { %vm1342_vm12 = vcmp.eq.s32.totalorder %v12035_v54, 11  ;;  %vm1344_vm13 = vcmp.eq.s32.totalorder %v12035_v54, 12  ;;  %vm1346_vm14 = vcmp.eq.s32.totalorder %v12035_v54, 13  ;;  %vm1348_vm15 = vcmp.eq.s32.totalorder %v12035_v54, 14 }
 0x13d   :  { %1045 = vperm.xlu1 %10729, %v10853_v62   ;;  %vm1350_vm1 = vcmp.eq.s32.totalorder %v12035_v54, 15 }
 0x140   :  { %v10857_v0 = vpop.eup %10856 }
 0x141   :  { %1036 = vperm.xlu0 %10728, %v10857_v0   ;;  %733 = vperm.xlu1 %10729, %v696_v29   ;;  %v724_v1 = vmul.f32 %v10857_v0, %v661_v58  ;;  %v10859_v2 = vpop.eup %10858 }
 0x142   :  { %v513_v8 = vmul.f32 0.6931472, %v10859_v2 }
 0x144   :  { %v514_v9 = vmul.f32 0.5, %v513_v8 }
 0x145   :  { %751 = vperm.xlu0 %10728, %v700_v24   ;;  %742 = vperm.xlu1 %10729, %v698_v3  }
 0x146   :  { %v515_v11 = vmul.f32 1.442695, %v514_v9 }
 0x148   :  { %10860 = vpow2.f32 %v515_v11 }
 0x149   :  { %859 = vperm.xlu0 %10728, %v724_v1   ;;  %760 = vperm.xlu1 %10729, %v702_v4  }
 0x14d   :  { %769 = vperm.xlu1 %10729, %v704_v5  }
 0x151   :  { %778 = vperm.xlu1 %10729, %v706_v41   ;;  %v12062_v41 = vsel %vm1121_vm6, 1.0, %v18315_v57  ;;  %vm1327_vm6 = vcmp.eq.s32.totalorder %v12023_v48, 4 }
 0x152   :  { %v10861_v37 = vpop.eup %10860 }
 0x153   :  { %v518_v12 = vsel %vm517_vm5, %v10861_v37, 0.0  ;;  %vm1325_vm5 = vcmp.eq.s32.totalorder %v12023_v48, 3 }
 0x154   :  { %v727_v25 = vmul.f32 %v518_v12, %v518_v12 }
 0x155   :  { %787 = vperm.xlu1 %10729, %v708_v6  }
 0x156   :  { %v728_v46 = vadd.f32 1.0, %v727_v25 }
 0x158   :  { %10862 = vrcp.f32 %v728_v46 }
 0x159   :  { %796 = vperm.xlu1 %10729, %v710_v30   ;;  %v12065_v30 = vsel %vm1122_vm7, 1.0, %v18315_v57  ;;  %vm1329_vm7 = vcmp.eq.s32.totalorder %v12023_v48, 5 }
 0x15d   :  { %805 = vperm.xlu1 %10729, %v712_v19  }
 0x161   :  { %814 = vperm.xlu1 %10729, %v714_v7  }
 0x162   :  { %v12038_v45 = vpop.eup %10862 }
 0x163   :  { %v12056_v1 = vmul.f32 %v12038_v45, %v518_v12 }
 0x165   :  { %823 = vperm.xlu1 %10729, %v716_v43  }
 0x169   :  { %832 = vperm.xlu1 %10729, %v718_v56  }
 0x16d   :  { %841 = vperm.xlu1 %10729, %v720_v50  }
 0x171   :  { %850 = vperm.xlu1 %10729, %v722_v55  }
 0x175   :  { %868 = vperm.xlu1 %10729, %v726_v21  }
 0x1a0   :  { %v920_v10 = vpop.permute.xlu1 %919 }
 0x1a1   :  { %v911_v33 = vpop.permute.xlu0 %910  ;;  %v925_v52 = vrot.slane %v920_v10, %v12026_v27 }
 0x1a2   :  { %v916_v53 = vrot.slane %v911_v33, %v12026_v27 }
 0x1a3   :  { %v1053_v18 = vsub.f32 %v925_v52, %v12038_v45 }
 0x1a4   :  { %v938_v20 = vpop.permute.xlu1 %937  ;;  %v1052_v61 = vsub.f32 %v916_v53, %v12038_v45 }
 0x1a5   :  { %v929_v34 = vpop.permute.xlu0 %928  ;;  %v943_v36 = vrot.slane %v938_v20, %v12026_v27  ;;  %v12058_v4 = vmul.f32 %v1053_v18, %v1053_v18 }
 0x1a6   :  { %v934_v58 = vrot.slane %v929_v34, %v12026_v27  ;;  %v1084_v19 = vmul.f32 %v1052_v61, %v1052_v61 }
 0x1a7   :  { %v1055_v31 = vsub.f32 %v943_v36, %v12038_v45 }
 0x1a8   :  { %v956_v39 = vpop.permute.xlu1 %955  ;;  %v1054_v24 = vsub.f32 %v934_v58, %v12038_v45 }
 0x1a9   :  { %v947_v23 = vpop.permute.xlu0 %946  ;;  %v961_v60 = vrot.slane %v956_v39, %v12026_v27  ;;  %v1087_v50 = vmul.f32 %v1055_v31, %v1055_v31 }
 0x1aa   :  { %v952_v17 = vrot.slane %v947_v23, %v12026_v27  ;;  %v1086_v8 = vmul.f32 %v1054_v24, %v1054_v24 }
 0x1ab   :  { %v1057_v3 = vsub.f32 %v961_v60, %v12038_v45 }
 0x1ac   :  { %v974_v28 = vpop.permute.xlu1 %973  ;;  %v1056_v5 = vsub.f32 %v952_v17, %v12038_v45 }
 0x1ad   :  { %v965_v22 = vpop.permute.xlu0 %964  ;;  %v979_v62 = vrot.slane %v974_v28, %v12026_v27  ;;  %v1089_v9 = vmul.f32 %v1057_v3, %v1057_v3 }
 0x1ae   :  { %v970_v21 = vrot.slane %v965_v22, %v12026_v27  ;;  %v1088_v11 = vmul.f32 %v1056_v5, %v1056_v5 }
 0x1af   :  { %v1059_v7 = vsub.f32 %v979_v62, %v12038_v45 }
 0x1b0   :  { %v12009_v35 = vpop.permute.xlu1 %991  ;;  %v1058_v59 = vsub.f32 %v970_v21, %v12038_v45 }
 0x1b1   :  { %v12011_v40 = vpop.permute.xlu0 %982  ;;  %v997_v43 = vrot.slane %v12009_v35, %v12026_v27  ;;  %v1091_v23 = vmul.f32 %v1059_v7, %v1059_v7 }
 0x1b2   :  { %v988_v10 = vrot.slane %v12011_v40, %v12026_v27  ;;  %v1090_v37 = vmul.f32 %v1058_v59, %v1058_v59 }
 0x1b3   :  { %v1061_v28 = vsub.f32 %v997_v43, %v12038_v45 }
 0x1b4   :  { %v12013_v13 = vpop.permute.xlu1 %1009  ;;  %v1060_v46 = vsub.f32 %v988_v10, %v12038_v45 }
 0x1b5   :  { %v12015_v26 = vpop.permute.xlu0 %1000  ;;  %v1015_v40 = vrot.slane %v12013_v13, %v12026_v27 }
 0x1b6   :  { %v1092_v62 = vmul.f32 %v1060_v46, %v1060_v46 }
 0x1b7   :  { %v1063_v60 = vsub.f32 %v1015_v40, %v12038_v45 }
 0x1b8   :  { %v12017_v42 = vpop.permute.xlu1 %1027 }
 0x1b9   :  { %v12019_v47 = vpop.permute.xlu0 %1018 }
 0x1ba   :  { %v1024_v18 = vrot.slane %v12019_v47, %v12026_v27  ;;  %v12108_v47 = vmul.f32 %v1063_v60, %v1063_v60 }
 0x1bc   :  { %v12021_v14 = vpop.permute.xlu1 %1045 }
 0x1c0   :  { %v734_v49 = vpop.permute.xlu1 %733  ;;  %v12028_v15 = vpop.permute.xlu0 %1036 }
 0x1c1   :  { %v739_v29 = vrot.slane %v734_v49, %v12026_v27  ;;  %v1042_v22 = vrot.slane %v12028_v15, %v12026_v27  ;;  %v1006_v49 = vrot.slane %v12015_v26, %v12026_v27  ;;  %v1033_v15 = vrot.slane %v12017_v42, %v12026_v27 }
 0x1c3   :  { %v875_v63 = vsub.f32 %v739_v29, %v12056_v1  ;;  %v1062_v31 = vsub.f32 %v1006_v49, %v12038_v45 }
 0x1c4   :  { %v743_v51 = vpop.permute.xlu1 %742  ;;  %v752_v55 = vpop.permute.xlu0 %751 }
 0x1c5   :  { %v757_v56 = vrot.slane %v752_v55, %v12026_v27  ;;  %v748_v38 = vrot.slane %v743_v51, %v12026_v27  ;;  %v1068_v12 = vmul.f32 %v875_v63, %v875_v63  ;;  %v12097_v55 = vmul.f32 %v1061_v28, %v1061_v28 }
 0x1c7   :  { %v877_v35 = vsub.f32 %v757_v56, %v12056_v1  ;;  %v876_v25 = vsub.f32 %v748_v38, %v12056_v1  ;;  %v1100_v17 = vadd.f32 %v1084_v19, %v1068_v12  ;;  %v1064_v19 = vsub.f32 %v1024_v18, %v12038_v45 }
 0x1c8   :  { %v761_v32 = vpop.permute.xlu1 %760  ;;  %v860_v6 = vpop.permute.xlu0 %859 }
 0x1c9   :  { %v865_v33 = vrot.slane %v860_v6, %v12026_v27  ;;  %v766_v20 = vrot.slane %v761_v32, %v12026_v27  ;;  %v1066_v32 = vsub.f32 %v1042_v22, %v12038_v45  ;;  %v1070_v58 = vmul.f32 %v877_v35, %v877_v35 }
 0x1ca   :  { %v1069_v42 = vmul.f32 %v876_v25, %v876_v25  ;;  %v1146_v59 = vrot.slane %v1100_v17, %v12026_v27  ;;  %v12122_v12 = vmul.f32 %v1064_v19, %v1064_v19 }
 0x1cb   :  { %v889_v51 = vsub.f32 %v865_v33, %v12056_v1  ;;  %v878_v53 = vsub.f32 %v766_v20, %v12056_v1  ;;  %v1098_v6 = vmul.f32 %v1066_v32, %v1066_v32  ;;  %v1102_v7 = vadd.f32 %v1086_v8, %v1070_v58 }
 0x1cc   :  { %v770_v0 = vpop.permute.xlu1 %769  ;;  %v1101_v63 = vadd.f32 %v12058_v4, %v1069_v42  ;;  %v1094_v8 = vmul.f32 %v1062_v31, %v1062_v31 }
 0x1cd   :  { %v775_v34 = vrot.slane %v770_v0, %v12026_v27  ;;  %v1082_v21 = vmul.f32 %v889_v51, %v889_v51  ;;  %v1065_v0 = vsub.f32 %v1033_v15, %v12038_v45  ;;  %v1071_v24 = vmul.f32 %v878_v53, %v878_v53 }
 0x1ce   :  { %v12119_v35 = vrot.slane %v1102_v7, %v12026_v27  ;;  %v1150_v25 = vrot.slane %v1101_v63, %v12026_v27  ;;  %v1224_v15 = vmul.f32 %v12065_v30, %v1146_v59 }
 0x1cf   :  { %v879_v13 = vsub.f32 %v775_v34, %v12056_v1  ;;  %v1114_v10 = vadd.f32 %v1098_v6, %v1082_v21  ;;  %v1103_v34 = vadd.f32 %v1087_v50, %v1071_v24  ;;  %v12116_v22 = vmul.f32 %v1065_v0, %v1065_v0 }
 0x1d0   :  { %v779_v2 = vpop.permute.xlu1 %778  ;;  %v1225_v32 = vmul.f32 %v12062_v41, %v1150_v25  ;;  %v1226_v60 = vmul.f32 %v12065_v30, %v1150_v25 }
 0x1d1   :  { %v784_v39 = vrot.slane %v779_v2, %v12026_v27  ;;  %v1072_v3 = vmul.f32 %v879_v13, %v879_v13  ;;  %v1051_v2 = vrot.slane %v12021_v14, %v12026_v27  ;;  %v1223_v14 = vmul.f32 %v12062_v41, %v1146_v59 }
 0x1d2   :  { %v12174_v6 = vmul.f32 0.001, %v1225_v32  ;;  %v12180_v19 = vmul.f32 0.001, %v1226_v60 }
 0x1d3   :  { %v880_v36 = vsub.f32 %v784_v39, %v12056_v1  ;;  %v1104_v39 = vadd.f32 %v1088_v11, %v1072_v3  ;;  %v1067_v50 = vsub.f32 %v1051_v2, %v12038_v45 }
 0x1d4   :  { %v788_v44 = vpop.permute.xlu1 %787 }
 0x1d5   :  { %v793_v52 = vrot.slane %v788_v44, %v12026_v27  ;;  %v1073_v5 = vmul.f32 %v880_v36, %v880_v36  ;;  %v12133_v51 = vrot.slane %v1104_v39, %v12026_v27  ;;  %v12148_v36 = vmul.f32 0.001, %v1223_v14 }
 0x1d6   :  { %v12189_v2 = vmul.f32 %v1067_v50, %v1067_v50 }
 0x1d7   :  { %v881_v26 = vsub.f32 %v793_v52, %v12056_v1  ;;  %v1105_v28 = vadd.f32 %v1089_v9, %v1073_v5  ;;  %v12128_v9 = vrot.slane %v1114_v10, %v12026_v27  ;;  %v1231_v31 = vmul.f32 %v12062_v41, %v12133_v51 }
 0x1d8   :  { %v797_v61 = vpop.permute.xlu1 %796 }
 0x1d9   :  { %v802_v29 = vrot.slane %v797_v61, %v12026_v27  ;;  %v1074_v43 = vmul.f32 %v881_v26, %v881_v26  ;;  %v12136_v52 = vrot.slane %v1105_v28, %v12026_v27  ;;  %v1251_v18 = vmul.f32 %v12062_v41, %v12128_v9 }
 0x1db   :  { %v882_v56 = vsub.f32 %v802_v29, %v12056_v1  ;;  %v1106_v40 = vadd.f32 %v1090_v37, %v1074_v43  ;;  %v1158_v37 = vrot.slane %v1103_v34, %v12026_v27  ;;  %v1233_v21 = vmul.f32 %v12062_v41, %v12136_v52 }
 0x1dc   :  { %v806_v38 = vpop.permute.xlu1 %805  ;;  %v12166_v29 = vmul.f32 0.001, %v1224_v15  ;;  %v12182_v59 = vmul.f32 0.001, %v1251_v18 }
 0x1dd   :  { %v1075_v33 = vmul.f32 %v882_v56, %v882_v56  ;;  %v811_v20 = vrot.slane %v806_v38, %v12026_v27  ;;  %v12142_v45 = vrot.slane %v1106_v40, %v12026_v27  ;;  %v12211_v50 = vmul.f32 %v12065_v30, %v1158_v37 }
 0x1df   :  { %v883_v4 = vsub.f32 %v811_v20, %v12056_v1  ;;  %v1107_v44 = vadd.f32 %v1091_v23, %v1075_v33  ;;  %v1227_v23 = vmul.f32 %v12062_v41, %v12119_v35  ;;  %v1235_v24 = vmul.f32 %v12062_v41, %v12142_v45 }
 0x1e0   :  { %v815_v46 = vpop.permute.xlu1 %814  ;;  %v12193_v33 = vmul.f32 0.001, %v1231_v31  ;;  %v12195_v20 = vmul.f32 0.001, %v1233_v21 }
 0x1e1   :  { %v1076_v11 = vmul.f32 %v883_v4, %v883_v4  ;;  %v820_v49 = vrot.slane %v815_v46, %v12026_v27  ;;  %v12152_v58 = vrot.slane %v1107_v44, %v12026_v27  ;;  %v12168_v0 = vmul.f32 0.001, %v1227_v23 }
 0x1e2   :  { %v12197_v34 = vmul.f32 0.001, %v1235_v24  ;;  %v12208_v46 = vmul.f32 %v12065_v30, %v12119_v35 }
 0x1e3   :  { %v1108_v53 = vadd.f32 %v1092_v62, %v1076_v11  ;;  %v884_v13 = vsub.f32 %v820_v49, %v12056_v1  ;;  %v1229_v62 = vmul.f32 %v12062_v41, %v1158_v37  ;;  %v1237_v7 = vmul.f32 %v12062_v41, %v12152_v58 }
 0x1e4   :  { %v824_v26 = vpop.permute.xlu1 %823 }
 0x1e5   :  { %v12158_v17 = vrot.slane %v1108_v53, %v12026_v27  ;;  %v1077_v42 = vmul.f32 %v884_v13, %v884_v13  ;;  %v829_v61 = vrot.slane %v824_v26, %v12026_v27  ;;  %v12191_v10 = vmul.f32 0.001, %v1229_v62 }
 0x1e6   :  { %v12202_v4 = vmul.f32 0.001, %v1237_v7 }
 0x1e7   :  { %v1109_v3 = vadd.f32 %v12097_v55, %v1077_v42  ;;  %v885_v5 = vsub.f32 %v829_v61, %v12056_v1  ;;  %v1239_v43 = vmul.f32 %v12062_v41, %v12158_v17 }
 0x1e8   :  { %v833_v56 = vpop.permute.xlu1 %832 }
 0x1e9   :  { %v12185_v63 = vrot.slane %v1109_v3, %v12026_v27  ;;  %v1078_v38 = vmul.f32 %v885_v5, %v885_v5  ;;  %v838_v55 = vrot.slane %v833_v56, %v12026_v27  ;;  %v1271_v14 = vmul.f32 0.001, %v1239_v43 }
 0x1eb   :  { %v1241_v39 = vmul.f32 %v12062_v41, %v12185_v63  ;;  %v1110_v28 = vadd.f32 %v1094_v8, %v1078_v38  ;;  %v886_v40 = vsub.f32 %v838_v55, %v12056_v1 }
 0x1ec   :  { %v842_v25 = vpop.permute.xlu1 %841  ;;  %v12204_v44 = vpop.f32.mrb[4].mxu0 }
 0x1ed   :  { %v1273_v11 = vmul.f32 0.001, %v1241_v39  ;;  %v12214_v49 = vrot.slane %v1110_v28, %v12026_v27  ;;  %v1079_v8 = vmul.f32 %v886_v40, %v886_v40  ;;  %v847_v15 = vrot.slane %v842_v25, %v12026_v27  ;;  %v12217_v23 = vpop.f32.mrb[4].mxu1  ;;  %v12219_v53 = vpop.f32.mrb[5].mxu0 }
 0x1ee   :  { %v12221_v13 = vpop.f32.mrb[5].mxu1  ;;  %v1370_v35 = vsel %vm1338_vm8, %v12217_v23, 0.0  ;;  %v12227_v37 = vadd.f32 %v1271_v14, %v12219_v53  ;;  %v1368_v32 = vsel %vm1336_vm9, %v12217_v23, 0.0  ;;  %v1372_v26 = vsel %vm1340_vm10, %v12217_v23, 0.0 }
 0x1ef   :  { %v1243_v60 = vmul.f32 %v12062_v41, %v12214_v49  ;;  %v1111_v18 = vadd.f32 %v12108_v47, %v1079_v8  ;;  %v887_v42 = vsub.f32 %v847_v15, %v12056_v1  ;;  %v12240_v61 = vadd.f32 %v1273_v11, %v12219_v53 }
 0x1f0   :  { %v851_v62 = vpop.permute.xlu1 %850  ;;  %v1466_v31 = vsel %vm1383_vm11, %v1370_v35, 0.0  ;;  %v1457_v21 = vsel %vm1383_vm11, %v1368_v32, 0.0  ;;  %10864 = vrcp.f32 %v12227_v37  ;;  %v1475_v24 = vsel %vm1383_vm11, %v1372_v26, 0.0 }
 0x1f1   :  { %v1275_v3 = vmul.f32 0.001, %v1243_v60  ;;  %v12247_v5 = vrot.slane %v1111_v18, %v12026_v27  ;;  %v1080_v7 = vmul.f32 %v887_v42, %v887_v42  ;;  %v856_v47 = vrot.slane %v851_v62, %v12026_v27 }
 0x1f2   :  { %v1468_v43 = vrot.slane %v1466_v31, 4  ;;  %10866 = vrcp.f32 %v12240_v61  ;;  %v1459_v56 = vrot.slane %v1457_v21, 4  ;;  %v1477_v38 = vrot.slane %v1475_v24, 4 }
 0x1f3   :  { %v1245_v55 = vmul.f32 %v12062_v41, %v12247_v5  ;;  %v1112_v39 = vadd.f32 %v12122_v12, %v1080_v7  ;;  %v888_v28 = vsub.f32 %v856_v47, %v12056_v1  ;;  %v12257_v40 = vadd.f32 %v1275_v3, %v12219_v53 }
 0x1f4   :  { %v869_v14 = vpop.permute.xlu1 %868  ;;  %v1469_v25 = vadd.f32 %v1468_v43, %v1466_v31  ;;  %v1460_v11 = vadd.f32 %v1459_v56, %v1457_v21  ;;  %v1478_v8 = vadd.f32 %v1477_v38, %v1475_v24  ;;  %v1374_v15 = vsel %vm1342_vm12, %v12217_v23, 0.0 }
 0x1f5   :  { %v1277_v35 = vmul.f32 0.001, %v1245_v55  ;;  %v12264_v32 = vrot.slane %v1112_v39, %v12026_v27  ;;  %v1081_v12 = vmul.f32 %v888_v28, %v888_v28  ;;  %v874_v26 = vrot.slane %v869_v14, %v12026_v27 }
 0x1f6   :  { %v1470_v60 = vrot.slane %v1469_v25, 2  ;;  %v1461_v18 = vrot.slane %v1460_v11, 2  ;;  %v1479_v42 = vrot.slane %v1478_v8, 2  ;;  %10868 = vrcp.f32 %v12257_v40 }
 0x1f7   :  { %v1247_v62 = vmul.f32 %v12062_v41, %v12264_v32  ;;  %v1113_v31 = vadd.f32 %v12116_v22, %v1081_v12  ;;  %v890_v21 = vsub.f32 %v874_v26, %v12056_v1  ;;  %v12274_v24 = vadd.f32 %v1277_v35, %v12219_v53 }
 0x1f8   :  { %v1471_v3 = vadd.f32 %v1470_v60, %v1469_v25  ;;  %v1462_v7 = vadd.f32 %v1461_v18, %v1460_v11  ;;  %v1480_v47 = vadd.f32 %v1479_v42, %v1478_v8  ;;  %v1484_v43 = vsel %vm1383_vm11, %v1374_v15, 0.0 }
 0x1f9   :  { %v1279_v56 = vmul.f32 0.001, %v1247_v62  ;;  %v12279_v38 = vrot.slane %v1113_v31, %v12026_v27  ;;  %v1083_v55 = vmul.f32 %v890_v21, %v890_v21  ;;  %v1486_v39 = vrot.slane %v1484_v43, 4 }
 0x1fa   :  { %v12281_v28 = vpop.eup %10864  ;;  %v1472_v22 = vrot.slane %v1471_v3, 1  ;;  %v1463_v1 = vrot.slane %v1462_v7, 1  ;;  %v1481_v14 = vrot.slane %v1480_v47, 1  ;;  %10870 = vrcp.f32 %v12274_v24 }
 0x1fb   :  { %v1249_v25 = vmul.f32 %v12062_v41, %v12279_v38  ;;  %v1115_v11 = vadd.f32 %v12189_v2, %v1083_v55  ;;  %v1487_v8 = vadd.f32 %v1486_v39, %v1484_v43  ;;  %v12288_v15 = vadd.f32 %v1279_v56, %v12219_v53 }
 0x1fc   :  { %v12291_v35 = vpop.eup %10866  ;;  %v12293_v12 = vadd.f32 %v1472_v22, %v1471_v3  ;;  %v12295_v26 = vadd.f32 %v1463_v1, %v1462_v7  ;;  %v12297_v60 = vadd.f32 %v1481_v14, %v1480_v47  ;;  %v1376_v18 = vsel %vm1344_vm13, %v12217_v23, 0.0 }
 0x1fd   :  { %v1281_v42 = vmul.f32 0.001, %v1249_v25  ;;  %v12303_v2 = vrot.slane %v1115_v11, %v12026_v27  ;;  %v1488_v62 = vrot.slane %v1487_v8, 2  ;;  %v1493_v31 = vsel %vm1383_vm11, %v1376_v18, 0.0 }
 0x1fe   :  { %18891 = vst [vmem:[#allocation10_spill] sm:$0xff] %v12293_v12  ;;  %18892 = vst [vmem:[#allocation11_spill] sm:$0xff] %v12295_v26  ;;  %v1684_v21 = vmul.f32 %v12291_v35, %v12293_v12  ;;  %v1683_v3 = vmul.f32 %v12281_v28, %v12295_v26  ;;  %v1495_v7 = vrot.slane %v1493_v31, 4  ;;  %10872 = vrcp.f32 %v12288_v15 }
 0x1ff   :  { %18893 = vst [vmem:[#allocation12_spill] sm:$0xff] %v12297_v60  ;;  %v1253_v47 = vmul.f32 %v12062_v41, %v12303_v2  ;;  %v1489_v43 = vadd.f32 %v1488_v62, %v1487_v8  ;;  %v12315_v56 = vadd.f32 %v1281_v42, %v12219_v53  ;;  %v1378_v55 = vsel %vm1346_vm14, %v12217_v23, 0.0 }
 0x200   :  { %v12320_v39 = vpop.eup %10868  ;;  %2026 = vperm.xlu1 %10729, %v1684_v21   ;;  %2021 = vperm.xlu0 %10728, %v1683_v3   ;;  %v1496_v22 = vadd.f32 %v1495_v7, %v1493_v31  ;;  %v1502_v1 = vsel %vm1383_vm11, %v1378_v55, 0.0  ;;  %v12325_v14 = vadd.f32 %v12182_v59, %v12219_v53  ;;  %v1380_v41 = vsel %vm1348_vm15, %v12217_v23, 0.0 }
 0x201   :  { %v1285_v25 = vmul.f32 0.001, %v1253_v47  ;;  %v1685_v11 = vmul.f32 %v12320_v39, %v12297_v60  ;;  %v1490_v8 = vrot.slane %v1489_v43, 1  ;;  %v1504_v18 = vrot.slane %v1502_v1, 4 }
 0x202   :  { %v1497_v42 = vrot.slane %v1496_v22, 2  ;;  %10874 = vrcp.f32 %v12315_v56  ;;  %v1511_v62 = vsel %vm1383_vm11, %v1380_v41, 0.0  ;;  %v1382_v59 = vsel %vm1350_vm1, %v12217_v23, 0.0 }
 0x203   :  { %v12339_v31 = vadd.f32 %v1285_v25, %v12219_v53  ;;  %v12341_v21 = vadd.f32 %v1490_v8, %v1489_v43  ;;  %v1505_v3 = vadd.f32 %v1504_v18, %v1502_v1  ;;  %v1513_v7 = vrot.slane %v1511_v62, 4 }
 0x204   :  { %v12343_v47 = vpop.eup %10870  ;;  %2031 = vperm.xlu0 %10728, %v1685_v11   ;;  %v1498_v55 = vadd.f32 %v1497_v42, %v1496_v22  ;;  %10876 = vrcp.f32 %v12325_v14  ;;  %v1520_v57 = vsel %vm1383_vm11, %v1382_v59, 0.0  ;;  %v12349_v41 = vadd.f32 %v12148_v36, %v12219_v53 }
 0x205   :  { %18894 = vst [vmem:[#allocation13_spill] sm:$0xff] %v12339_v31  ;;  %18895 = vst [vmem:[#allocation14_spill] sm:$0xff] %v12341_v21  ;;  %v1686_v54 = vmul.f32 %v12343_v47, %v12341_v21  ;;  %v1506_v23 = vrot.slane %v1505_v3, 2  ;;  %v1514_v43 = vadd.f32 %v1513_v7, %v1511_v62  ;;  %v1522_v1 = vrot.slane %v1520_v57, 4 }
 0x206   :  { %v1499_v25 = vrot.slane %v1498_v55, 1  ;;  %10878 = vrcp.f32 %v12339_v31  ;;  %v1351_v22 = vsel %vm1319_vm2, %v12221_v13, 0.0  ;;  %v12360_v11 = vadd.f32 %v12174_v6, %v12219_v53 }
 0x207   :  { %2036 = vperm.xlu1 %10729, %v1686_v54   ;;  %v1507_v36 = vadd.f32 %v1506_v23, %v1505_v3  ;;  %v1515_v8 = vrot.slane %v1514_v43, 2  ;;  %v1523_v18 = vadd.f32 %v1522_v1, %v1520_v57  ;;  %v1384_v42 = vsel %vm1383_vm11, %v1351_v22, 0.0 }
 0x208   :  { %v12364_v62 = vpop.eup %10872  ;;  %v12366_v59 = vadd.f32 %v1499_v25, %v1498_v55  ;;  %v1387_v7 = vrot.slane %v1384_v42, 4  ;;  %10880 = vrcp.f32 %v12349_v41  ;;  %v1353_v6 = vsel %vm1321_vm3, %v12221_v13, 0.0 }
 0x209   :  { %v1508_v21 = vrot.slane %v1507_v36, 1  ;;  %v1516_v60 = vadd.f32 %v1515_v8, %v1514_v43  ;;  %v1524_v26 = vrot.slane %v1523_v18, 2  ;;  %v1393_v3 = vsel %vm1383_vm11, %v1353_v6, 0.0 }
 0x20a   :  { %18896 = vst [vmem:[#allocation15_spill] sm:$0xff] %v12366_v59  ;;  %v1687_v57 = vmul.f32 %v12364_v62, %v12366_v59  ;;  %v1388_v54 = vadd.f32 %v1387_v7, %v1384_v42  ;;  %v1396_v55 = vrot.slane %v1393_v3, 4  ;;  %10882 = vrcp.f32 %v12360_v11 }
 0x20b   :  { %v12377_v23 = vadd.f32 %v1508_v21, %v1507_v36  ;;  %v1517_v1 = vrot.slane %v1516_v60, 1  ;;  %v1525_v25 = vadd.f32 %v1524_v26, %v1523_v18  ;;  %v12381_v22 = vadd.f32 %v12168_v0, %v12219_v53 }
 0x20c   :  { %v12383_v43 = vpop.eup %10874  ;;  %2041 = vperm.xlu0 %10728, %v1687_v57   ;;  %v1389_v8 = vrot.slane %v1388_v54, 2  ;;  %v1397_v6 = vadd.f32 %v1396_v55, %v1393_v3  ;;  %v1355_v42 = vsel %vm1323_vm4, %v12221_v13, 0.0  ;;  %v12390_v7 = vadd.f32 %v12191_v10, %v12219_v53 }
 0x20d   :  { %18897 = vst [vmem:[#allocation16_spill] sm:$0xff] %v12377_v23  ;;  %vm1331_vm8 = vcmp.eq.s32.totalorder %v12023_v48, 6  ;;  %v1688_v26 = vmul.f32 %v12383_v43, %v12377_v23  ;;  %v12395_v0 = vadd.f32 %v1517_v1, %v1516_v60  ;;  %v1526_v21 = vrot.slane %v1525_v25, 1 }
 0x20e   :  { %v1402_v36 = vsel %vm1383_vm11, %v1355_v42, 0.0  ;;  %v12398_v18 = vpop.eup %10876  ;;  %v1390_v3 = vadd.f32 %v1389_v8, %v1388_v54  ;;  %v1398_v57 = vrot.slane %v1397_v6, 2  ;;  %10884 = vrcp.f32 %v12381_v22 }
 0x20f   :  { %18898 = vst [vmem:[#allocation17_spill] sm:$0xff] %v12395_v0  ;;  %v1405_v55 = vrot.slane %v1402_v36, 4  ;;  %vm1333_vm9 = vcmp.eq.s32.totalorder %v12023_v48, 7  ;;  %2046 = vperm.xlu1 %10729, %v1688_v26   ;;  %v1689_v10 = vmul.f32 %v12398_v18, %v12395_v0  ;;  %v12404_v59 = vadd.f32 %v1526_v21, %v1525_v25 }
 0x210   :  { %v1357_v60 = vsel %vm1325_vm5, %v12221_v13, 0.0  ;;  %10886 = vrcp.f32 %v12390_v7  ;;  %v12410_v1 = vpop.eup %10878  ;;  %v1391_v54 = vrot.slane %v1390_v3, 1  ;;  %v1399_v8 = vadd.f32 %v1398_v57, %v1397_v6 }
 0x211   :  { %18899 = vst [vmem:[#allocation18_spill] sm:$0xff] %v12404_v59  ;;  %18900 = vst [vmem:[#allocation19_spill] sm:$0xff] %v12410_v1  ;;  %v1406_v42 = vadd.f32 %v1405_v55, %v1402_v36  ;;  %v1411_v23 = vsel %vm1383_vm11, %v1357_v60, 0.0  ;;  %2051 = vperm.xlu0 %10728, %v1689_v10   ;;  %v1690_v26 = vmul.f32 %v12410_v1, %v12404_v59  ;;  %v1359_v21 = vsel %vm1327_vm6, %v12221_v13, 0.0 }
 0x212   :  { %v1414_v0 = vrot.slane %v1411_v23, 4  ;;  %v12417_v25 = vadd.f32 %v12193_v33, %v12219_v53  ;;  %v12422_v12 = vpop.eup %10880  ;;  %v12424_v16 = vadd.f32 %v1391_v54, %v1390_v3  ;;  %v1400_v6 = vrot.slane %v1399_v8, 1 }
 0x213   :  { %v1407_v36 = vrot.slane %v1406_v42, 2  ;;  %v1420_v57 = vsel %vm1383_vm11, %v1359_v21, 0.0  ;;  %2056 = vperm.xlu1 %10729, %v1690_v26   ;;  %v12430_v33 = vadd.f32 %v12195_v20, %v12219_v53  ;;  %v1361_v26 = vsel %vm1329_vm7, %v12221_v13, 0.0 }
 0x214   :  { %18901 = vst [vmem:[#allocation20_spill] sm:$0xff] %v12424_v16  ;;  %v1415_v55 = vadd.f32 %v1414_v0, %v1411_v23  ;;  %v1423_v10 = vrot.slane %v1420_v57, 4  ;;  %10888 = vrcp.f32 %v12417_v25  ;;  %v12432_v60 = vpop.eup %10882  ;;  %v1675_v59 = vmul.f32 %v12422_v12, %v12424_v16 }
 0x215   :  { %v12436_v3 = vadd.f32 %v1400_v6, %v1399_v8  ;;  %v1408_v54 = vadd.f32 %v1407_v36, %v1406_v42  ;;  %v1429_v21 = vsel %vm1383_vm11, %v1361_v26, 0.0  ;;  %10890 = vrcp.f32 %v12430_v33 }
 0x216   :  { %v1416_v23 = vrot.slane %v1415_v55, 2  ;;  %v1424_v0 = vadd.f32 %v1423_v10, %v1420_v57  ;;  %1981 = vperm.xlu0 %10728, %v1675_v59   ;;  %v1432_v1 = vrot.slane %v1429_v21, 4  ;;  %v12447_v8 = vadd.f32 %v12197_v34, %v12219_v53 }
 0x217   :  { %18902 = vst [vmem:[#allocation21_spill] sm:$0xff] %v12436_v3  ;;  %v1676_v20 = vmul.f32 %v12432_v60, %v12436_v3  ;;  %v1409_v31 = vrot.slane %v1408_v54, 1  ;;  %v1363_v36 = vsel %vm1331_vm8, %v12221_v13, 0.0  ;;  %v12454_v57 = vadd.f32 %v12202_v4, %v12219_v53 }
 0x218   :  { %v1417_v42 = vadd.f32 %v1416_v23, %v1415_v55  ;;  %v1425_v6 = vrot.slane %v1424_v0, 2  ;;  %v12456_v59 = vpop.eup %10884  ;;  %v1433_v26 = vadd.f32 %v1432_v1, %v1429_v21  ;;  %v1438_v3 = vsel %vm1383_vm11, %v1363_v36, 0.0 }
 0x219   :  { %1986 = vperm.xlu1 %10729, %v1676_v20   ;;  %v12458_v10 = vadd.f32 %v1409_v31, %v1408_v54  ;;  %10892 = vrcp.f32 %v12447_v8  ;;  %v1441_v16 = vrot.slane %v1438_v3, 4  ;;  %v1365_v4 = vsel %vm1333_vm9, %v12221_v13, 0.0 }
 0x21a   :  { %v12462_v34 = vpop.eup %10886  ;;  %v1418_v55 = vrot.slane %v1417_v42, 1  ;;  %v1426_v23 = vadd.f32 %v1425_v6, %v1424_v0  ;;  %v1434_v20 = vrot.slane %v1433_v26, 2  ;;  %v1447_v31 = vsel %vm1383_vm11, %v1365_v4, 0.0 }
 0x21b   :  { %18903 = vst [vmem:[#allocation22_spill] sm:$0xff] %v12458_v10  ;;  %v1677_v53 = vmul.f32 %v12456_v59, %v12458_v10  ;;  %10894 = vrcp.f32 %v12454_v57  ;;  %v1442_v21 = vadd.f32 %v1441_v16, %v1438_v3  ;;  %v1450_v36 = vrot.slane %v1447_v31, 4 }
 0x21c   :  { %v12471_v1 = vadd.f32 %v1418_v55, %v1417_v42  ;;  %v1427_v54 = vrot.slane %v1426_v23, 1  ;;  %v1435_v0 = vadd.f32 %v1434_v20, %v1433_v26  ;;  %v12475_v6 = vadd.f32 %v12204_v44, %v12166_v29 }
 0x21d   :  { %1991 = vperm.xlu0 %10728, %v1677_v53   ;;  %v1260_v13 = vmul.f32 0.001, %v12208_v46  ;;  %v1262_v10 = vmul.f32 0.001, %v12211_v50  ;;  %v1443_v55 = vrot.slane %v1442_v21, 2  ;;  %v1451_v16 = vadd.f32 %v1450_v36, %v1447_v31 }
 0x21e   :  { %18904 = vst [vmem:[#allocation23_spill] sm:$0xff] %v12471_v1  ;;  %v12479_v48 = vpop.eup %10888  ;;  %v1678_v4 = vmul.f32 %v12462_v34, %v12471_v1  ;;  %v12483_v42 = vadd.f32 %v1427_v54, %v1426_v23  ;;  %v1436_v3 = vrot.slane %v1435_v0, 1  ;;  %v1232_v26 = vmul.f32 %v12065_v30, %v12133_v51 }
 0x21f   :  { %v1234_v29 = vmul.f32 %v12065_v30, %v12136_v52  ;;  %v1236_v46 = vmul.f32 %v12065_v30, %v12142_v45  ;;  %v12491_v50 = vpop.eup %10890  ;;  %v1444_v23 = vadd.f32 %v1443_v55, %v1442_v21  ;;  %v1452_v20 = vrot.slane %v1451_v16, 2 }
 0x220   :  { %18905 = vst [vmem:[#allocation24_spill] sm:$0xff] %v12483_v42  ;;  %1996 = vperm.xlu1 %10729, %v1678_v4   ;;  %v1679_v53 = vmul.f32 %v12479_v48, %v12483_v42  ;;  %v12497_v31 = vadd.f32 %v12204_v44, %v12180_v19  ;;  %v12499_v54 = vadd.f32 %v1436_v3, %v1435_v0  ;;  %v1264_v55 = vmul.f32 0.001, %v1232_v26 }
 0x221   :  { %v12502_v51 = vadd.f32 %v12204_v44, %v1260_v13  ;;  %v1238_v52 = vmul.f32 %v12065_v30, %v12152_v58  ;;  %v1445_v45 = vrot.slane %v1444_v23, 1  ;;  %v1453_v36 = vadd.f32 %v1452_v20, %v1451_v16 }
 0x222   :  { %18906 = vst [vmem:[#allocation25_spill] sm:$0xff] %v12499_v54  ;;  %2001 = vperm.xlu0 %10728, %v1679_v53   ;;  %v12507_v4 = vadd.f32 %v12204_v44, %v1262_v10  ;;  %v1680_v19 = vmul.f32 %v12491_v50, %v12499_v54  ;;  %v1266_v0 = vmul.f32 0.001, %v1234_v29  ;;  %v1240_v13 = vmul.f32 %v12065_v30, %v12158_v17 }
 0x223   :  { %v12509_v21 = vpop.eup %10892  ;;  %v12515_v3 = vadd.f32 %v1445_v45, %v1444_v23  ;;  %v1454_v42 = vrot.slane %v1453_v36, 1  ;;  %v1268_v58 = vmul.f32 0.001, %v1236_v46  ;;  %v12520_v10 = vadd.f32 %v12204_v44, %v1264_v55 }
 0x224   :  { %2006 = vperm.xlu1 %10729, %v1680_v19   ;;  %v12523_v16 = vadd.f32 %v12204_v44, %v1266_v0  ;;  %v1270_v20 = vmul.f32 0.001, %v1238_v52  ;;  %v1242_v26 = vmul.f32 %v12065_v30, %v12185_v63  ;;  %v1563_v46 = vrot.slane %v12422_v12, %v12026_v27 }
 0x225   :  { %18907 = vst [vmem:[#allocation26_spill] sm:$0xff] %v12515_v3  ;;  %v12517_v53 = vpop.eup %10894  ;;  %v1681_v17 = vmul.f32 %v12509_v21, %v12515_v3  ;;  %v12529_v29 = vadd.f32 %v1454_v42, %v1453_v36  ;;  %v12534_v23 = vadd.f32 %v12204_v44, %v1268_v58  ;;  %v1272_v45 = vmul.f32 0.001, %v1240_v13 }
 0x226   :  { %v12539_v52 = vadd.f32 %v12204_v44, %v1270_v20  ;;  %v1567_v63 = vrot.slane %v12432_v60, %v12026_v27  ;;  %v1274_v36 = vmul.f32 0.001, %v1242_v26  ;;  %v1252_v12 = vmul.f32 %v12065_v30, %v12128_v9 }
 0x227   :  { %18908 = vst [vmem:[#allocation27_spill] sm:$0xff] %v12529_v29  ;;  %2011 = vperm.xlu0 %10728, %v1681_v17   ;;  %v1682_v19 = vmul.f32 %v12517_v53, %v12529_v29  ;;  %v12544_v42 = vadd.f32 %v12204_v44, %v1272_v45  ;;  %v1624_v55 = vmul.f32 %v1563_v46, %v12349_v41 }
 0x228   :  { %v1244_v0 = vmul.f32 %v12065_v30, %v12214_v49  ;;  %v12552_v13 = vadd.f32 %v12204_v44, %v1274_v36  ;;  %v1625_v58 = vmul.f32 %v1563_v46, %v12475_v6  ;;  %v1246_v20 = vmul.f32 %v12065_v30, %v12247_v5 }
 0x229   :  { %2016 = vperm.xlu1 %10729, %v1682_v19   ;;  %v1626_v26 = vmul.f32 %v1567_v63, %v12360_v11  ;;  %v1248_v9 = vmul.f32 %v12065_v30, %v12264_v32  ;;  %v1284_v17 = vmul.f32 0.001, %v1252_v12  ;;  %v1571_v49 = vrot.slane %v12456_v59, %v12026_v27 }
 0x22a   :  { %v1276_v60 = vmul.f32 0.001, %v1244_v0  ;;  %v1278_v19 = vmul.f32 0.001, %v1246_v20  ;;  %v1250_v46 = vmul.f32 %v12065_v30, %v12279_v38  ;;  %v1627_v5 = vmul.f32 %v1567_v63, %v12497_v31 }
 0x22b   :  { %1693 = vperm.xlu0 %10728, %v1624_v55   ;;  %v1280_v36 = vmul.f32 0.001, %v1248_v9  ;;  %v12572_v12 = vadd.f32 %v12204_v44, %v1284_v17  ;;  %v1254_v0 = vmul.f32 %v12065_v30, %v12303_v2  ;;  %v1628_v38 = vmul.f32 %v1571_v49, %v12381_v22 }
 0x22c   :  { %v12563_v45 = vadd.f32 %v12204_v44, %v1276_v60  ;;  %v12569_v55 = vadd.f32 %v12204_v44, %v1278_v19  ;;  %v1282_v32 = vmul.f32 0.001, %v1250_v46  ;;  %v1629_v20 = vmul.f32 %v1571_v49, %v12502_v51 }
 0x22d   :  { %1698 = vperm.xlu1 %10729, %v1625_v58   ;;  %v12575_v59 = vadd.f32 %v12204_v44, %v1280_v36  ;;  %v1575_v58 = vrot.slane %v12462_v34, %v12026_v27  ;;  %v1286_v60 = vmul.f32 0.001, %v1254_v0  ;;  %v1579_v30 = vrot.slane %v12479_v48, %v12026_v27 }
 0x22e   :  { %v12583_v63 = vadd.f32 %v12204_v44, %v1282_v32  ;;  %v1583_v17 = vrot.slane %v12491_v50, %v12026_v27  ;;  %v1587_v19 = vrot.slane %v12509_v21, %v12026_v27  ;;  %v1591_v36 = vrot.slane %v12517_v53, %v12026_v27 }
 0x22f   :  { %1703 = vperm.xlu0 %10728, %v1626_v26   ;;  %v12587_v26 = vadd.f32 %v12204_v44, %v1286_v60  ;;  %v1630_v9 = vmul.f32 %v1575_v58, %v12390_v7  ;;  %v1631_v2 = vmul.f32 %v1575_v58, %v12507_v4  ;;  %v1632_v34 = vmul.f32 %v1579_v30, %v12417_v25 }
 0x230   :  { %v1633_v49 = vmul.f32 %v1579_v30, %v12520_v10  ;;  %v1634_v44 = vmul.f32 %v1583_v17, %v12430_v33  ;;  %v1635_v48 = vmul.f32 %v1583_v17, %v12523_v16  ;;  %v1636_v46 = vmul.f32 %v1587_v19, %v12447_v8 }
 0x231   :  { %1708 = vperm.xlu1 %10729, %v1627_v5   ;;  %v1637_v50 = vmul.f32 %v1587_v19, %v12534_v23  ;;  %v1638_v5 = vmul.f32 %v1591_v36, %v12454_v57  ;;  %v1595_v32 = vrot.slane %v12281_v28, %v12026_v27  ;;  %v1639_v21 = vmul.f32 %v1591_v36, %v12539_v52  ;;  %v18910_v36 = vld [vmem:[#allocation13_spill] sm:$0xff] }
 0x232   :  { %v1603_v60 = vrot.slane %v12320_v39, %v12026_v27  ;;  %v1615_v17 = vrot.slane %v12383_v43, %v12026_v27 }
 0x233   :  { %1713 = vperm.xlu0 %10728, %v1628_v38   ;;  %v1640_v0 = vmul.f32 %v1595_v32, %v12227_v37  ;;  %v1599_v38 = vrot.slane %v12291_v35, %v12026_v27  ;;  %v1641_v53 = vmul.f32 %v1595_v32, %v12544_v42 }
 0x234   :  { %v1645_v35 = vmul.f32 %v1603_v60, %v12563_v45 }
 0x235   :  { %1718 = vperm.xlu1 %10729, %v1629_v20   ;;  %v1642_v58 = vmul.f32 %v1599_v38, %v12240_v61  ;;  %v1643_v28 = vmul.f32 %v1599_v38, %v12552_v13  ;;  %v1644_v20 = vmul.f32 %v1603_v60, %v12257_v40 }
 0x237   :  { %1723 = vperm.xlu0 %10728, %v1630_v9   ;;  %v1607_v9 = vrot.slane %v12343_v47, %v12026_v27 }
 0x239   :  { %1728 = vperm.xlu1 %10729, %v1631_v2   ;;  %v1646_v30 = vmul.f32 %v1607_v9, %v12274_v24  ;;  %v1611_v2 = vrot.slane %v12364_v62, %v12026_v27  ;;  %v1647_v39 = vmul.f32 %v1607_v9, %v12569_v55  ;;  %v1651_v62 = vmul.f32 %v1615_v17, %v12583_v63 }
 0x23b   :  { %1733 = vperm.xlu0 %10728, %v1632_v34   ;;  %v1648_v34 = vmul.f32 %v1611_v2, %v12288_v15  ;;  %v1649_v47 = vmul.f32 %v1611_v2, %v12575_v59  ;;  %v18919_v2 = vld [vmem:[#allocation9_spill] sm:$0xff] }
 0x23c   :  { %vm1656_vm10 = vcmp.eq.s32.totalorder %v18919_v2, 0 }
 0x23d   :  { %1738 = vperm.xlu1 %10729, %v1633_v49   ;;  %v1650_v49 = vmul.f32 %v1615_v17, %v12315_v56 }
 0x23f   :  { %1743 = vperm.xlu0 %10728, %v1634_v44   ;;  %v1619_v44 = vrot.slane %v12398_v18, %v12026_v27  ;;  %v11403_v18 = vmov 1  }
 0x241   :  { %1748 = vperm.xlu1 %10729, %v1635_v48   ;;  %v1652_v19 = vmul.f32 %v1619_v44, %v12325_v14  ;;  %v18909_v48 = vld [vmem:[#allocation19_spill] sm:$0xff]  ;;  %v1653_v43 = vmul.f32 %v1619_v44, %v12572_v12 }
 0x243   :  { %1753 = vperm.xlu0 %10728, %v1636_v46   ;;  %v1623_v46 = vrot.slane %v18909_v48, %v12026_v27 }
 0x245   :  { %1758 = vperm.xlu1 %10729, %v1637_v50   ;;  %v1654_v50 = vmul.f32 %v1623_v46, %v18910_v36 }
 0x247   :  { %1763 = vperm.xlu0 %10728, %v1638_v5   ;;  %v1655_v5 = vmul.f32 %v1623_v46, %v12587_v26 }
 0x249   :  { %1768 = vperm.xlu1 %10729, %v1639_v21  }
 0x24b   :  { %1773 = vperm.xlu0 %10728, %v1640_v0  }
 0x24d   :  { %1778 = vperm.xlu1 %10729, %v1641_v53  }
 0x24f   :  { %1783 = vperm.xlu0 %10728, %v1642_v58  }
 0x251   :  { %1788 = vperm.xlu1 %10729, %v1643_v28  }
 0x253   :  { %1793 = vperm.xlu0 %10728, %v1644_v20  }
 0x255   :  { %1798 = vperm.xlu1 %10729, %v1645_v35  }
 0x257   :  { %1803 = vperm.xlu0 %10728, %v1646_v30  }
 0x259   :  { %1808 = vperm.xlu1 %10729, %v1647_v39  }
 0x25b   :  { %1813 = vperm.xlu0 %10728, %v1648_v34   ;;  %v18921_v34 = vmov 0.0  }
 0x25c   :  { %v12667_v17 = vsel %vm1656_vm10, 1.0, %v18921_v34 }
 0x25d   :  { %1818 = vperm.xlu1 %10729, %v1649_v47  }
 0x25f   :  { %1823 = vperm.xlu0 %10728, %v1650_v49   ;;  %v12673_v49 = vsub.f32 %v12349_v41, %v12667_v17 }
 0x261   :  { %1828 = vperm.xlu1 %10729, %v1651_v62   ;;  %v1854_v48 = vrot.slane %v12673_v49, %v12026_v27 }
 0x263   :  { %1833 = vperm.xlu0 %10728, %v1652_v19   ;;  %v12681_v19 = vsub.f32 %v12360_v11, %v12667_v17 }
 0x265   :  { %1838 = vperm.xlu1 %10729, %v1653_v43   ;;  %v1858_v34 = vrot.slane %v12681_v19, %v12026_v27 }
 0x267   :  { %1843 = vperm.xlu0 %10728, %v1654_v50  }
 0x269   :  { %1848 = vperm.xlu1 %10729, %v1655_v5   ;;  %v12687_v5 = vsub.f32 %v12381_v22, %v12667_v17 }
 0x26b   :  { %10730 = vset.pattern.permute.xlu0 %v11403_v18 }
 0x26d   :  { %10731 = vset.pattern.permute.xlu1 %v11403_v18 }
 0x27f   :  { %v12639_v32 = vpop.permute.xlu0 %2021  ;;  %v12641_v21 = vpop.permute.xlu1 %2026 }
 0x280   :  { %18911 = vst [vmem:[#allocation19_spill] sm:$0xff] %v12639_v32  ;;  %18912 = vst [vmem:[#allocation13_spill] sm:$0xff] %v12641_v21  ;;  %v18929_v32 = vld [vmem:[#allocation7_spill] sm:$0xff] }
 0x281   :  { %v12716_v21 = vsub.s32 1, %v18929_v32 }
 0x283   :  { %v12643_v0 = vpop.permute.xlu0 %2031  ;;  %18930 = vst [vmem:[#allocation42_spill] sm:$0xff] %v12716_v21 }
 0x284   :  { %18913 = vst [vmem:[#allocation28_spill] sm:$0xff] %v12643_v0  ;;  %v12707_v0 = vsub.f32 %v12417_v25, %v12667_v17 }
 0x286   :  { %v12645_v38 = vpop.permute.xlu1 %2036  ;;  %18927 = vst [vmem:[#allocation40_spill] sm:$0xff] %v12707_v0 }
 0x287   :  { %18914 = vst [vmem:[#allocation29_spill] sm:$0xff] %v12645_v38 }
 0x28b   :  { %v12647_v53 = vpop.permute.xlu0 %2041 }
 0x28c   :  { %18915 = vst [vmem:[#allocation30_spill] sm:$0xff] %v12647_v53  ;;  %v1862_v53 = vrot.slane %v12687_v5, %v12026_v27 }
 0x28e   :  { %v12649_v58 = vpop.permute.xlu1 %2046 }
 0x28f   :  { %18916 = vst [vmem:[#allocation31_spill] sm:$0xff] %v12649_v58  ;;  %v12697_v58 = vsub.f32 %v12390_v7, %v12667_v17 }
 0x290   :  { %v12651_v60 = vpop.permute.xlu0 %2051 }
 0x291   :  { %18917 = vst [vmem:[#allocation32_spill] sm:$0xff] %v12651_v60  ;;  %v1866_v29 = vrot.slane %v12697_v58, %v12026_v27 }
 0x292   :  { %v12653_v28 = vpop.permute.xlu1 %2056 }
 0x293   :  { %18918 = vst [vmem:[#allocation33_spill] sm:$0xff] %v12653_v28 }
 0x295   :  { %v12655_v20 = vpop.permute.xlu0 %1981 }
 0x298   :  { %v12657_v9 = vpop.permute.xlu1 %1986 }
 0x29c   :  { %v12659_v35 = vpop.permute.xlu0 %1991 }
 0x29f   :  { %v12661_v30 = vpop.permute.xlu1 %1996 }
 0x2a1   :  { %v12664_v39 = vpop.permute.xlu0 %2001 }
 0x2a2   :  { %18920 = vst [vmem:[#allocation34_spill] sm:$0xff] %v12664_v39  ;;  %v12741_v39 = vsub.f32 %v12447_v8, %v12667_v17 }
 0x2a3   :  { %v12669_v47 = vpop.permute.xlu1 %2006 }
 0x2a4   :  { %18922 = vst [vmem:[#allocation35_spill] sm:$0xff] %v12669_v47 }
 0x2a6   :  { %v12675_v44 = vpop.permute.xlu0 %2011 }
 0x2a7   :  { %18923 = vst [vmem:[#allocation36_spill] sm:$0xff] %v12675_v44  ;;  %v12722_v44 = vsub.f32 %v12430_v33, %v12667_v17 }
 0x2a8   :  { %v12677_v62 = vpop.permute.xlu1 %2016 }
 0x2a9   :  { %18924 = vst [vmem:[#allocation37_spill] sm:$0xff] %v12677_v62 }
 0x2aa   :  { %v1694_v46 = vpop.permute.xlu0 %1693 }
 0x2ab   :  { %v1915_v43 = vmul.f32 %v1854_v48, %v1694_v46 }
 0x2ac   :  { %v1699_v50 = vpop.permute.xlu1 %1698 }
 0x2ad   :  { %v12690_v18 = vsub.f32 %v12349_v41, %v1915_v43 }
 0x2ae   :  { %v1704_v2 = vpop.permute.xlu0 %1703 }
 0x2af   :  { %18925 = vst [vmem:[#allocation38_spill] sm:$0xff] %v12690_v18  ;;  %10896 = vrcp.f32 %v12690_v18  ;;  %v1917_v28 = vmul.f32 %v1858_v34, %v1704_v2 }
 0x2b0   :  { %v1709_v60 = vpop.permute.xlu1 %1708 }
 0x2b1   :  { %v12700_v46 = vsub.f32 %v12360_v11, %v1917_v28  ;;  %v1916_v11 = vmul.f32 %v1854_v48, %v1699_v50  ;;  %v1870_v48 = vrot.slane %v12707_v0, %v12026_v27 }
 0x2b2   :  { %v1714_v41 = vpop.permute.xlu0 %1713 }
 0x2b3   :  { %18926 = vst [vmem:[#allocation39_spill] sm:$0xff] %v12700_v46  ;;  %10898 = vrcp.f32 %v12700_v46  ;;  %v1919_v43 = vmul.f32 %v1862_v53, %v1714_v41  ;;  %v12730_v50 = vsub.f32 %v12475_v6, %v1916_v11 }
 0x2b4   :  { %v1719_v38 = vpop.permute.xlu1 %1718 }
 0x2b5   :  { %v12710_v2 = vsub.f32 %v12381_v22, %v1919_v43  ;;  %18932 = vst [vmem:[#allocation44_spill] sm:$0xff] %v12730_v50  ;;  %v1918_v43 = vmul.f32 %v1858_v34, %v1709_v60  ;;  %v1874_v60 = vrot.slane %v12722_v44, %v12026_v27  ;;  %v1920_v11 = vmul.f32 %v1862_v53, %v1719_v38 }
 0x2b6   :  { %v1724_v28 = vpop.permute.xlu0 %1723  ;;  %v1878_v38 = vrot.slane %v12741_v39, %v12026_v27 }
 0x2b7   :  { %18928 = vst [vmem:[#allocation41_spill] sm:$0xff] %v12710_v2  ;;  %10900 = vrcp.f32 %v12710_v2  ;;  %v1921_v3 = vmul.f32 %v1866_v29, %v1724_v28  ;;  %v12749_v34 = vsub.f32 %v12497_v31, %v1918_v43  ;;  %v12760_v31 = vsub.f32 %v12454_v57, %v12667_v17 }
 0x2b8   :  { %v1729_v41 = vpop.permute.xlu1 %1728  ;;  %v12768_v53 = vsub.f32 %v12502_v51, %v1920_v11  ;;  %v12779_v51 = vsub.f32 %v12227_v37, %v12667_v17 }
 0x2b9   :  { %v12718_v62 = vpop.eup %10896  ;;  %v12725_v22 = vsub.f32 %v12390_v7, %v1921_v3  ;;  %18934 = vst [vmem:[#allocation46_spill] sm:$0xff] %v12749_v34  ;;  %v1922_v43 = vmul.f32 %v1866_v29, %v1729_v41  ;;  %v1882_v41 = vrot.slane %v12760_v31, %v12026_v27 }
 0x2ba   :  { %v1734_v28 = vpop.permute.xlu0 %1733  ;;  %v2126_v32 = vrot.slane %v12718_v62, %v12716_v21  ;;  %18936 = vst [vmem:[#allocation48_spill] sm:$0xff] %v12768_v53 }
 0x2bb   :  { %18931 = vst [vmem:[#allocation43_spill] sm:$0xff] %v12725_v22  ;;  %10902 = vrcp.f32 %v12725_v22  ;;  %v1923_v54 = vmul.f32 %v1870_v48, %v1734_v28  ;;  %v12787_v11 = vsub.f32 %v12507_v4, %v1922_v43  ;;  %v12798_v4 = vsub.f32 %v12240_v61, %v12667_v17 }
 0x2bc   :  { %v1739_v47 = vpop.permute.xlu1 %1738  ;;  %v2188_v1 = vmul.f32 %v2126_v32, %v12730_v50  ;;  %v2187_v7 = vmul.f32 %v2126_v32, %v12690_v18 }
 0x2bd   :  { %v12737_v3 = vpop.eup %10898  ;;  %v12744_v6 = vsub.f32 %v12417_v25, %v1923_v54  ;;  %18938 = vst [vmem:[#allocation50_spill] sm:$0xff] %v12787_v11 }
 0x2be   :  { %2309 = vperm.xlu1 %10731, %v2188_v1   ;;  %2304 = vperm.xlu0 %10730, %v2187_v7   ;;  %v1744_v28 = vpop.permute.xlu0 %1743  ;;  %v2130_v32 = vrot.slane %v12737_v3, %v12716_v21 }
 0x2bf   :  { %18933 = vst [vmem:[#allocation45_spill] sm:$0xff] %v12744_v6  ;;  %10904 = vrcp.f32 %v12744_v6  ;;  %v1925_v50 = vmul.f32 %v1874_v60, %v1744_v28 }
 0x2c0   :  { %v1749_v18 = vpop.permute.xlu1 %1748  ;;  %v2190_v25 = vmul.f32 %v2130_v32, %v12749_v34  ;;  %v2189_v54 = vmul.f32 %v2130_v32, %v12700_v46 }
 0x2c1   :  { %v12756_v0 = vpop.eup %10900  ;;  %v12763_v1 = vsub.f32 %v12430_v33, %v1925_v50 }
 0x2c2   :  { %2319 = vperm.xlu0 %10730, %v2190_v25   ;;  %2314 = vperm.xlu1 %10731, %v2189_v54   ;;  %v1754_v7 = vpop.permute.xlu0 %1753  ;;  %v2134_v28 = vrot.slane %v12756_v0, %v12716_v21  ;;  %v1924_v25 = vmul.f32 %v1870_v48, %v1739_v47  ;;  %v1886_v48 = vrot.slane %v12779_v51, %v12026_v27 }
 0x2c3   :  { %18935 = vst [vmem:[#allocation47_spill] sm:$0xff] %v12763_v1  ;;  %10906 = vrcp.f32 %v12763_v1  ;;  %v1927_v32 = vmul.f32 %v1878_v38, %v1754_v7 }
 0x2c4   :  { %v1759_v34 = vpop.permute.xlu1 %1758  ;;  %v2192_v33 = vmul.f32 %v2134_v28, %v12768_v53  ;;  %v2191_v50 = vmul.f32 %v2134_v28, %v12710_v2  ;;  %v12806_v43 = vsub.f32 %v12520_v10, %v1924_v25  ;;  %v12817_v10 = vsub.f32 %v12257_v40, %v12667_v17 }
 0x2c5   :  { %v12775_v46 = vpop.eup %10902  ;;  %v12782_v29 = vsub.f32 %v12447_v8, %v1927_v32 }
 0x2c6   :  { %2329 = vperm.xlu0 %10730, %v2192_v33   ;;  %2324 = vperm.xlu1 %10731, %v2191_v50   ;;  %v1764_v54 = vpop.permute.xlu0 %1763  ;;  %v2138_v7 = vrot.slane %v12775_v46, %v12716_v21  ;;  %18939 = vst [vmem:[#allocation51_spill] sm:$0xff] %v12806_v43  ;;  %v1926_v33 = vmul.f32 %v1874_v60, %v1749_v18 }
 0x2c7   :  { %18937 = vst [vmem:[#allocation49_spill] sm:$0xff] %v12782_v29  ;;  %10908 = vrcp.f32 %v12782_v29  ;;  %v1929_v28 = vmul.f32 %v1882_v41, %v1764_v54  ;;  %v1890_v60 = vrot.slane %v12798_v4, %v12026_v27 }
 0x2c8   :  { %v1769_v53 = vpop.permute.xlu1 %1768  ;;  %v2194_v8 = vmul.f32 %v2138_v7, %v12787_v11  ;;  %v2193_v32 = vmul.f32 %v2138_v7, %v12725_v22  ;;  %v12825_v25 = vsub.f32 %v12523_v16, %v1926_v33  ;;  %v12836_v16 = vsub.f32 %v12274_v24, %v12667_v17 }
 0x2c9   :  { %v12794_v2 = vpop.eup %10904  ;;  %v12801_v47 = vsub.f32 %v12454_v57, %v1929_v28 }
 0x2ca   :  { %2339 = vperm.xlu0 %10730, %v2194_v8   ;;  %2334 = vperm.xlu1 %10731, %v2193_v32   ;;  %v1774_v50 = vpop.permute.xlu0 %1773  ;;  %v2142_v54 = vrot.slane %v12794_v2, %v12716_v21  ;;  %18941 = vst [vmem:[#allocation53_spill] sm:$0xff] %v12825_v25  ;;  %v1928_v8 = vmul.f32 %v1878_v38, %v1759_v34 }
 0x2cb   :  { %10910 = vrcp.f32 %v12801_v47  ;;  %v1931_v7 = vmul.f32 %v1886_v48, %v1774_v50  ;;  %v1894_v38 = vrot.slane %v12817_v10, %v12026_v27 }
 0x2cc   :  { %v1779_v11 = vpop.permute.xlu1 %1778  ;;  %v2196_v57 = vmul.f32 %v2142_v54, %v12806_v43  ;;  %v2195_v28 = vmul.f32 %v2142_v54, %v12744_v6  ;;  %v12844_v33 = vsub.f32 %v12534_v23, %v1928_v8  ;;  %v12855_v23 = vsub.f32 %v12288_v15, %v12667_v17 }
 0x2cd   :  { %v12813_v22 = vpop.eup %10906  ;;  %v12820_v18 = vsub.f32 %v12227_v37, %v1931_v7 }
 0x2ce   :  { %2349 = vperm.xlu0 %10730, %v2196_v57   ;;  %2344 = vperm.xlu1 %10731, %v2195_v28   ;;  %v1784_v32 = vpop.permute.xlu0 %1783  ;;  %v2146_v50 = vrot.slane %v12813_v22, %v12716_v21  ;;  %18942 = vst [vmem:[#allocation54_spill] sm:$0xff] %v12844_v33  ;;  %v1930_v57 = vmul.f32 %v1882_v41, %v1769_v53 }
 0x2cf   :  { %18940 = vst [vmem:[#allocation52_spill] sm:$0xff] %v12820_v18  ;;  %10912 = vrcp.f32 %v12820_v18  ;;  %v1933_v54 = vmul.f32 %v1890_v60, %v1784_v32  ;;  %v1898_v41 = vrot.slane %v12836_v16, %v12026_v27 }
 0x2d0   :  { %v1789_v43 = vpop.permute.xlu1 %1788  ;;  %v2198_v37 = vmul.f32 %v2146_v50, %v12825_v25  ;;  %v2197_v7 = vmul.f32 %v2146_v50, %v12763_v1  ;;  %v12863_v8 = vsub.f32 %v12539_v52, %v1930_v57  ;;  %v12874_v52 = vsub.f32 %v12315_v56, %v12667_v17 }
 0x2d1   :  { %v12832_v6 = vpop.eup %10908  ;;  %v12839_v34 = vsub.f32 %v12240_v61, %v1933_v54 }
 0x2d2   :  { %2359 = vperm.xlu0 %10730, %v2198_v37   ;;  %2354 = vperm.xlu1 %10731, %v2197_v7   ;;  %v1794_v28 = vpop.permute.xlu0 %1793  ;;  %v2150_v32 = vrot.slane %v12832_v6, %v12716_v21  ;;  %18943 = vst [vmem:[#allocation55_spill] sm:$0xff] %v12863_v8  ;;  %v1932_v37 = vmul.f32 %v1886_v48, %v1779_v11 }
 0x2d3   :  { %10914 = vrcp.f32 %v12839_v34  ;;  %v1935_v50 = vmul.f32 %v1894_v38, %v1794_v28  ;;  %v1902_v48 = vrot.slane %v12855_v23, %v12026_v27 }
 0x2d4   :  { %v1799_v25 = vpop.permute.xlu1 %1798  ;;  %v2200_v61 = vmul.f32 %v2150_v32, %v12844_v33  ;;  %v2199_v54 = vmul.f32 %v2150_v32, %v12782_v29  ;;  %v12882_v57 = vsub.f32 %v12544_v42, %v1932_v37  ;;  %v12893_v42 = vsub.f32 %v12325_v14, %v12667_v17 }
 0x2d5   :  { %v12851_v1 = vpop.eup %10910  ;;  %v12858_v53 = vsub.f32 %v12257_v40, %v1935_v50  ;;  %v1906_v37 = vrot.slane %v12874_v52, %v12026_v27 }
 0x2d6   :  { %2369 = vperm.xlu0 %10730, %v2200_v61   ;;  %2364 = vperm.xlu1 %10731, %v2199_v54   ;;  %v1804_v7 = vpop.permute.xlu0 %1803  ;;  %v2154_v28 = vrot.slane %v12851_v1, %v12716_v21  ;;  %18944 = vst [vmem:[#allocation56_spill] sm:$0xff] %v12882_v57  ;;  %v1934_v61 = vmul.f32 %v1890_v60, %v1789_v43 }
 0x2d7   :  { %10916 = vrcp.f32 %v12858_v53  ;;  %v1937_v32 = vmul.f32 %v1898_v41, %v1804_v7 }
 0x2d8   :  { %v1809_v33 = vpop.permute.xlu1 %1808  ;;  %v2202_v40 = vmul.f32 %v2154_v28, %v12863_v8  ;;  %v2201_v50 = vmul.f32 %v2154_v28, %v12801_v47 }
 0x2d9   :  { %v12870_v29 = vpop.eup %10912  ;;  %v12877_v11 = vsub.f32 %v12274_v24, %v1937_v32 }
 0x2da   :  { %2379 = vperm.xlu0 %10730, %v2202_v40   ;;  %2374 = vperm.xlu1 %10731, %v2201_v50   ;;  %v1814_v54 = vpop.permute.xlu0 %1813  ;;  %v2158_v7 = vrot.slane %v12870_v29, %v12716_v21  ;;  %v12901_v40 = vsub.f32 %v12552_v13, %v1934_v61  ;;  %v1936_v50 = vmul.f32 %v1894_v38, %v1799_v25 }
 0x2db   :  { %10918 = vrcp.f32 %v12877_v11  ;;  %v1939_v28 = vmul.f32 %v1902_v48, %v1814_v54  ;;  %v12912_v13 = vsub.f32 %v18910_v36, %v12667_v17  ;;  %v1910_v38 = vrot.slane %v12893_v42, %v12026_v27 }
 0x2dc   :  { %v2204_v8 = vmul.f32 %v2158_v7, %v12882_v57  ;;  %v2203_v24 = vmul.f32 %v2158_v7, %v12820_v18  ;;  %v1819_v60 = vpop.permute.xlu1 %1818  ;;  %18945 = vst [vmem:[#allocation57_spill] sm:$0xff] %v12901_v40  ;;  %v1938_v61 = vmul.f32 %v1898_v41, %v1809_v33 }
 0x2dd   :  { %v12889_v32 = vpop.eup %10914  ;;  %v12896_v43 = vsub.f32 %v12288_v15, %v1939_v28  ;;  %v1914_v33 = vrot.slane %v12912_v13, %v12026_v27 }
 0x2de   :  { %2389 = vperm.xlu0 %10730, %v2204_v8   ;;  %2384 = vperm.xlu1 %10731, %v2203_v24   ;;  %v1824_v54 = vpop.permute.xlu0 %1823  ;;  %v2162_v7 = vrot.slane %v12889_v32, %v12716_v21  ;;  %v12920_v8 = vsub.f32 %v12563_v45, %v1936_v50  ;;  %v12935_v41 = vsub.f32 %v12569_v55, %v1938_v61 }
 0x2df   :  { %10920 = vrcp.f32 %v12896_v43  ;;  %v1941_v57 = vmul.f32 %v1906_v37, %v1824_v54  ;;  %v1940_v50 = vmul.f32 %v1902_v48, %v1819_v60 }
 0x2e0   :  { %v2206_v15 = vmul.f32 %v2162_v7, %v12901_v40  ;;  %v2205_v28 = vmul.f32 %v2162_v7, %v12839_v34  ;;  %v1829_v17 = vpop.permute.xlu1 %1828 }
 0x2e1   :  { %v12908_v18 = vpop.eup %10916  ;;  %v12915_v25 = vsub.f32 %v12315_v56, %v1941_v57  ;;  %v12948_v48 = vsub.f32 %v12575_v59, %v1940_v50  ;;  %v1942_v60 = vmul.f32 %v1906_v37, %v1829_v17 }
 0x2e2   :  { %2399 = vperm.xlu0 %10730, %v2206_v15   ;;  %2394 = vperm.xlu1 %10731, %v2205_v28   ;;  %v1834_v24 = vpop.permute.xlu0 %1833  ;;  %v2166_v54 = vrot.slane %v12908_v18, %v12716_v21 }
 0x2e3   :  { %10922 = vrcp.f32 %v12915_v25  ;;  %v1943_v7 = vmul.f32 %v1910_v38, %v1834_v24 }
 0x2e4   :  { %v2208_v56 = vmul.f32 %v2166_v54, %v12920_v8  ;;  %v2207_v57 = vmul.f32 %v2166_v54, %v12858_v53  ;;  %v1839_v27 = vpop.permute.xlu1 %1838 }
 0x2e5   :  { %v12927_v40 = vpop.eup %10918  ;;  %v12930_v45 = vsub.f32 %v12325_v14, %v1943_v7  ;;  %v1944_v37 = vmul.f32 %v1910_v38, %v1839_v27 }
 0x2e6   :  { %2409 = vperm.xlu0 %10730, %v2208_v56   ;;  %2404 = vperm.xlu1 %10731, %v2207_v57   ;;  %v1844_v15 = vpop.permute.xlu0 %1843  ;;  %v2170_v28 = vrot.slane %v12927_v40, %v12716_v21 }
 0x2e7   :  { %10924 = vrcp.f32 %v12930_v45  ;;  %v1945_v24 = vmul.f32 %v1914_v33, %v1844_v15 }
 0x2e8   :  { %v2210_v54 = vmul.f32 %v2170_v28, %v12935_v41  ;;  %v2209_v14 = vmul.f32 %v2170_v28, %v12877_v11  ;;  %v1849_v17 = vpop.permute.xlu1 %1848 }
 0x2e9   :  { %v12942_v7 = vpop.eup %10920  ;;  %v12945_v55 = vsub.f32 %v18910_v36, %v1945_v24  ;;  %v12958_v36 = vsub.f32 %v12583_v63, %v1942_v60 }
 0x2ea   :  { %2419 = vperm.xlu0 %10730, %v2210_v54   ;;  %2414 = vperm.xlu1 %10731, %v2209_v14   ;;  %v2174_v61 = vrot.slane %v12942_v7, %v12716_v21  ;;  %v12967_v54 = vsub.f32 %v12572_v12, %v1944_v37  ;;  %v1946_v14 = vmul.f32 %v1914_v33, %v1849_v17  ;;  %v2255_v37 = vrot.slane %v12737_v3, 1 }
 0x2eb   :  { %10926 = vrcp.f32 %v12945_v55  ;;  %v2254_v17 = vrot.slane %v12718_v62, 1  ;;  %v2257_v62 = vrot.slane %v12775_v46, 1 }
 0x2ec   :  { %v2212_v56 = vmul.f32 %v2174_v61, %v12948_v48  ;;  %v2211_v57 = vmul.f32 %v2174_v61, %v12896_v43  ;;  %v2059_v61 = vmul.f32 %v12655_v20, %v12673_v49  ;;  %v12980_v12 = vsub.f32 %v12587_v26, %v1946_v14  ;;  %v18946_v20 = vld [vmem:[#allocation20_spill] sm:$0xff] }
 0x2ed   :  { %v12955_v15 = vpop.eup %10922  ;;  %v2061_v26 = vmul.f32 %v12659_v35, %v12687_v5  ;;  %v18948_v14 = vld [vmem:[#allocation40_spill] sm:$0xff]  ;;  %v18951_v35 = vld [vmem:[#allocation23_spill] sm:$0xff] }
 0x2ee   :  { %v2178_v59 = vrot.slane %v12955_v15, %v12716_v21  ;;  %2429 = vperm.xlu0 %10730, %v2212_v56   ;;  %2424 = vperm.xlu1 %10731, %v2211_v57   ;;  %v2060_v56 = vmul.f32 %v12657_v9, %v12681_v19  ;;  %v12989_v49 = vsub.f32 %v18946_v20, %v2059_v61  ;;  %v18947_v9 = vld [vmem:[#allocation21_spill] sm:$0xff]  ;;  %v18950_v61 = vld [vmem:[#allocation22_spill] sm:$0xff] }
 0x2f0   :  { %v2214_v50 = vmul.f32 %v2178_v59, %v12958_v36  ;;  %v2213_v28 = vmul.f32 %v2178_v59, %v12915_v25  ;;  %v12992_v19 = vsub.f32 %v18947_v9, %v2060_v56  ;;  %v2286_v3 = vmul.f32 %v2254_v17, %v12989_v49  ;;  %v18954_v17 = vld [vmem:[#allocation25_spill] sm:$0xff]  ;;  %v18956_v9 = vld [vmem:[#allocation36_spill] sm:$0xff] }
 0x2f1   :  { %v12964_v24 = vpop.eup %10924  ;;  %v13005_v56 = vsub.f32 %v18950_v61, %v2061_v26  ;;  %v2065_v26 = vmul.f32 %v18956_v9, %v12741_v39  ;;  %v18960_v39 = vld [vmem:[#allocation26_spill] sm:$0xff]  ;;  %v2264_v9 = vrot.slane %v12908_v18, 1  ;;  %v2267_v18 = vrot.slane %v12955_v15, 1 }
 0x2f2   :  { %v2182_v63 = vrot.slane %v12964_v24, %v12716_v21  ;;  %2439 = vperm.xlu0 %10730, %v2214_v50   ;;  %2434 = vperm.xlu1 %10731, %v2213_v28   ;;  %v2062_v50 = vmul.f32 %v12661_v30, %v12697_v58  ;;  %v2287_v28 = vmul.f32 %v2255_v37, %v12992_v19  ;;  %v18952_v58 = vld [vmem:[#allocation35_spill] sm:$0xff] }
 0x2f3   :  { %v2064_v30 = vmul.f32 %v18952_v58, %v12722_v44  ;;  %v18957_v44 = vld [vmem:[#allocation37_spill] sm:$0xff]  ;;  %v2262_v58 = vrot.slane %v12870_v29, 1  ;;  %v2265_v29 = vrot.slane %v12927_v40, 1 }
 0x2f4   :  { %v2216_v27 = vmul.f32 %v2182_v63, %v12967_v54  ;;  %v2215_v38 = vmul.f32 %v2182_v63, %v12930_v45  ;;  %v2256_v63 = vrot.slane %v12756_v0, 1  ;;  %v13008_v5 = vsub.f32 %v18951_v35, %v2062_v50 }
 0x2f5   :  { %v12973_v60 = vpop.eup %10926  ;;  %v2259_v0 = vrot.slane %v12813_v22, 1  ;;  %v13020_v20 = vsub.f32 %v18954_v17, %v2064_v30  ;;  %v2066_v50 = vmul.f32 %v18957_v44, %v12760_v31  ;;  %v18962_v31 = vld [vmem:[#allocation27_spill] sm:$0xff] }
 0x2f6   :  { %v2186_v33 = vrot.slane %v12973_v60, %v12716_v21  ;;  %2449 = vperm.xlu0 %10730, %v2216_v27   ;;  %2444 = vperm.xlu1 %10731, %v2215_v38   ;;  %v18949_v27 = vld [vmem:[#allocation34_spill] sm:$0xff]  ;;  %v2288_v46 = vmul.f32 %v2256_v63, %v13005_v56 }
 0x2f7   :  { %v2063_v38 = vmul.f32 %v18949_v27, %v18948_v14  ;;  %18955 = vst [vmem:[#allocation20_spill] sm:$0xff] %v13020_v20  ;;  %v18959_v14 = vld [vmem:[#allocation19_spill] sm:$0xff]  ;;  %v13038_v61 = vsub.f32 %v18962_v31, %v2066_v50  ;;  %v18971_v50 = vld [vmem:[#allocation12_spill] sm:$0xff] }
 0x2f8   :  { %v2218_v57 = vmul.f32 %v2186_v33, %v12980_v12  ;;  %v2217_v59 = vmul.f32 %v2186_v33, %v12945_v55  ;;  %v2289_v33 = vmul.f32 %v2257_v62, %v13008_v5  ;;  %v18958_v62 = vld [vmem:[#allocation13_spill] sm:$0xff]  ;;  %v2067_v27 = vmul.f32 %v18959_v14, %v12779_v51  ;;  %v18966_v51 = vld [vmem:[#allocation11_spill] sm:$0xff]  ;;  %v18978_v14 = vld [vmem:[#allocation16_spill] sm:$0xff] }
 0x2f9   :  { %v2068_v63 = vmul.f32 %v18958_v62, %v12798_v4  ;;  %18963 = vst [vmem:[#allocation40_spill] sm:$0xff] %v13038_v61  ;;  %v18964_v4 = vld [vmem:[#allocation10_spill] sm:$0xff]  ;;  %v2266_v62 = vrot.slane %v12942_v7, 1  ;;  %v2269_v7 = vrot.slane %v12973_v60, 1  ;;  %v18986_v60 = vld [vmem:[#allocation9_spill] sm:$0xff] }
 0x2fa   :  { %2459 = vperm.xlu0 %10730, %v2218_v57   ;;  %2454 = vperm.xlu1 %10731, %v2217_v59   ;;  %v2258_v57 = vrot.slane %v12794_v2, 1  ;;  %v18953_v59 = vld [vmem:[#allocation24_spill] sm:$0xff]  ;;  %v2261_v2 = vrot.slane %v12851_v1, 1  ;;  %vm2219_vm11 = vcmp.eq.s32.totalorder %v18986_v60, 1 }
 0x2fb   :  { %v13017_v37 = vsub.f32 %v18953_v59, %v2063_v38  ;;  %v13035_v38 = vsub.f32 %v18960_v39, %v2065_v26  ;;  %v13045_v30 = vsub.f32 %v18964_v4, %v2068_v63  ;;  %v18970_v26 = vld [vmem:[#allocation30_spill] sm:$0xff]  ;;  %v18980_v39 = vld [vmem:[#allocation32_spill] sm:$0xff] }
 0x2fc   :  { %v2293_v35 = vmul.f32 %v2261_v2, %v13038_v61  ;;  %v2071_v44 = vmul.f32 %v18970_v26, %v12855_v23  ;;  %v18976_v23 = vld [vmem:[#allocation15_spill] sm:$0xff]  ;;  %v2073_v31 = vmul.f32 %v18980_v39, %v12893_v42 }
 0x2fd   :  { %v2290_v22 = vmul.f32 %v2258_v57, %v13017_v37  ;;  %18961 = vst [vmem:[#allocation21_spill] sm:$0xff] %v13035_v38  ;;  %18965 = vst [vmem:[#allocation34_spill] sm:$0xff] %v13045_v30  ;;  %v18969_v57 = vld [vmem:[#allocation29_spill] sm:$0xff]  ;;  %v18993_v39 = vld [vmem:[#allocation43_spill] sm:$0xff] }
 0x2fe   :  { %2597 = vperm.xlu0 %10730, %v2287_v28   ;;  %2592 = vperm.xlu1 %10731, %v2286_v3   ;;  %v2291_v28 = vmul.f32 %v2259_v0, %v13020_v20  ;;  %v2260_v3 = vrot.slane %v12832_v6, 1  ;;  %v2263_v6 = vrot.slane %v12889_v32, 1  ;;  %v2070_v59 = vmul.f32 %v18969_v57, %v12836_v16  ;;  %v18975_v16 = vld [vmem:[#allocation31_spill] sm:$0xff] }
 0x2ff   :  { %v2072_v2 = vmul.f32 %v18975_v16, %v12874_v52  ;;  %v13073_v63 = vsub.f32 %v18976_v23, %v2071_v44  ;;  %v18981_v52 = vld [vmem:[#allocation33_spill] sm:$0xff] }
 0x300   :  { %v2292_v1 = vmul.f32 %v2260_v3, %v13035_v38  ;;  %v2295_v17 = vmul.f32 %v2263_v6, %v13045_v30  ;;  %v2268_v6 = vrot.slane %v12964_v24, 1  ;;  %v18987_v24 = vmov 0.0  }
 0x301   :  { %18977 = vst [vmem:[#allocation24_spill] sm:$0xff] %v13073_v63  ;;  %v2298_v15 = vmul.f32 %v2266_v62, %v13073_v63  ;;  %v13096_v57 = vsel %vm2219_vm11, 1.0, %v18987_v24 }
 0x302   :  { %2607 = vperm.xlu0 %10730, %v2289_v33   ;;  %2602 = vperm.xlu1 %10731, %v2288_v46   ;;  %v13048_v33 = vsub.f32 %v18966_v51, %v2067_v27  ;;  %v18968_v46 = vld [vmem:[#allocation28_spill] sm:$0xff]  ;;  %v13076_v27 = vsub.f32 %v18978_v14, %v2072_v2  ;;  %v18984_v51 = vld [vmem:[#allocation18_spill] sm:$0xff]  ;;  %v18991_v2 = vld [vmem:[#allocation41_spill] sm:$0xff] }
 0x303   :  { %v2069_v0 = vmul.f32 %v18968_v46, %v12817_v10  ;;  %v18973_v10 = vld [vmem:[#allocation14_spill] sm:$0xff] }
 0x304   :  { %18967 = vst [vmem:[#allocation22_spill] sm:$0xff] %v13048_v33  ;;  %v2294_v32 = vmul.f32 %v2262_v58, %v13048_v33  ;;  %18979 = vst [vmem:[#allocation25_spill] sm:$0xff] %v13076_v27  ;;  %v18982_v58 = vld [vmem:[#allocation17_spill] sm:$0xff] }
 0x305   :  { %v13087_v4 = vsub.f32 %v18982_v58, %v2073_v31  ;;  %v13125_v31 = vsub.f32 %v18993_v39, %v13096_v57 }
 0x306   :  { %2617 = vperm.xlu0 %10730, %v2291_v28   ;;  %2612 = vperm.xlu1 %10731, %v2290_v22   ;;  %v13061_v28 = vsub.f32 %v18971_v50, %v2069_v0  ;;  %v13064_v22 = vsub.f32 %v18973_v10, %v2070_v59  ;;  %v11404_v0 = vmov 2   ;;  %v18988_v59 = vld [vmem:[#allocation38_spill] sm:$0xff] }
 0x307   :  { %18983 = vst [vmem:[#allocation36_spill] sm:$0xff] %v13087_v4 }
 0x308   :  { %18972 = vst [vmem:[#allocation23_spill] sm:$0xff] %v13061_v28  ;;  %18974 = vst [vmem:[#allocation35_spill] sm:$0xff] %v13064_v22  ;;  %v2297_v3 = vmul.f32 %v2265_v29, %v13064_v22  ;;  %v2296_v40 = vmul.f32 %v2264_v9, %v13061_v28  ;;  %v18989_v29 = vld [vmem:[#allocation39_spill] sm:$0xff] }
 0x309   :  { %v13106_v9 = vsub.f32 %v18989_v29, %v13096_v57 }
 0x30a   :  { %2627 = vperm.xlu0 %10730, %v2293_v35   ;;  %2622 = vperm.xlu1 %10731, %v2292_v1   ;;  %v2074_v35 = vmul.f32 %v18981_v52, %v12912_v13  ;;  %v2299_v1 = vmul.f32 %v2267_v18, %v13076_v27  ;;  %v2300_v13 = vmul.f32 %v2268_v6, %v13087_v4  ;;  %v18995_v6 = vld [vmem:[#allocation45_spill] sm:$0xff] }
 0x30b   :  { %v2469_v16 = vrot.slane %v13106_v9, %v12716_v21  ;;  %v13135_v58 = vsub.f32 %v18995_v6, %v13096_v57 }
 0x30c   :  { %v13090_v46 = vsub.f32 %v18984_v51, %v2074_v35 }
 0x30e   :  { %2637 = vperm.xlu0 %10730, %v2295_v17   ;;  %2632 = vperm.xlu1 %10731, %v2294_v32   ;;  %18985 = vst [vmem:[#allocation37_spill] sm:$0xff] %v13090_v46  ;;  %v2301_v42 = vmul.f32 %v2269_v7, %v13090_v46  ;;  %v13100_v17 = vsub.f32 %v18988_v59, %v13096_v57 }
 0x30f   :  { %v2477_v7 = vrot.slane %v13125_v31, %v12716_v21 }
 0x310   :  { %v2465_v32 = vrot.slane %v13100_v17, %v12716_v21 }
 0x312   :  { %2647 = vperm.xlu0 %10730, %v2297_v3   ;;  %2642 = vperm.xlu1 %10731, %v2296_v40   ;;  %v13115_v3 = vsub.f32 %v18991_v2, %v13096_v57 }
 0x314   :  { %v2473_v14 = vrot.slane %v13115_v3, %v12716_v21 }
 0x316   :  { %2657 = vperm.xlu0 %10730, %v2299_v1   ;;  %2652 = vperm.xlu1 %10731, %v2298_v15  }
 0x31a   :  { %2667 = vperm.xlu0 %10730, %v2301_v42   ;;  %2662 = vperm.xlu1 %10731, %v2300_v13  }
 0x31e   :  { %10733 = vset.pattern.permute.xlu0 %v11404_v0  ;;  %10732 = vset.pattern.permute.xlu1 %v11404_v0 }
 0x33d   :  { %v2310_v26 = vpop.permute.xlu1 %2309  ;;  %v2305_v44 = vpop.permute.xlu0 %2304 }
 0x33e   :  { %v2526_v50 = vmul.f32 %v2465_v32, %v2305_v44  ;;  %v2527_v51 = vmul.f32 %v2465_v32, %v2310_v26  ;;  %v19000_v32 = vld [vmem:[#allocation44_spill] sm:$0xff] }
 0x340   :  { %v13109_v10 = vsub.f32 %v18988_v59, %v2526_v50  ;;  %v18996_v59 = vld [vmem:[#allocation7_spill] sm:$0xff]  ;;  %v13153_v26 = vsub.f32 %v19000_v32, %v2527_v51  ;;  %v19003_v32 = vld [vmem:[#allocation49_spill] sm:$0xff] }
 0x341   :  { %v2315_v40 = vpop.permute.xlu1 %2314  ;;  %v2320_v18 = vpop.permute.xlu0 %2319  ;;  %v13169_v46 = vsub.f32 %v19003_v32, %v13096_v57 }
 0x342   :  { %18990 = vst [vmem:[#allocation13_spill] sm:$0xff] %v13109_v10  ;;  %10928 = vrcp.f32 %v13109_v10  ;;  %v2528_v62 = vmul.f32 %v2469_v16, %v2315_v40  ;;  %v18999_v40 = vld [vmem:[#allocation47_spill] sm:$0xff]  ;;  %19001 = vst [vmem:[#allocation11_spill] sm:$0xff] %v13153_v26 }
 0x343   :  { %v13182_v63 = vrot.slane %v13169_v46, %v12716_v21 }
 0x344   :  { %v13119_v23 = vsub.f32 %v18989_v29, %v2528_v62  ;;  %v13139_v29 = vsub.s32 2, %v18996_v59  ;;  %v13150_v62 = vsub.f32 %v18999_v40, %v13096_v57 }
 0x345   :  { %v2325_v52 = vpop.permute.xlu1 %2324  ;;  %v2330_v35 = vpop.permute.xlu0 %2329 }
 0x346   :  { %18992 = vst [vmem:[#allocation19_spill] sm:$0xff] %v13119_v23  ;;  %10930 = vrcp.f32 %v13119_v23  ;;  %v2530_v1 = vmul.f32 %v2473_v14, %v2325_v52  ;;  %18997 = vst [vmem:[#allocation27_spill] sm:$0xff] %v13139_v29  ;;  %v2485_v51 = vrot.slane %v13150_v62, %v12716_v21 }
 0x348   :  { %v13129_v15 = vsub.f32 %v18991_v2, %v2530_v1  ;;  %v2481_v2 = vrot.slane %v13135_v58, %v12716_v21 }
 0x349   :  { %v2335_v42 = vpop.permute.xlu1 %2334  ;;  %v2340_v13 = vpop.permute.xlu0 %2339 }
 0x34a   :  { %18994 = vst [vmem:[#allocation26_spill] sm:$0xff] %v13129_v15  ;;  %10932 = vrcp.f32 %v13129_v15  ;;  %v2532_v0 = vmul.f32 %v2477_v7, %v2335_v42 }
 0x34c   :  { %v13141_v44 = vpop.eup %10928  ;;  %v13144_v50 = vsub.f32 %v18993_v39, %v2532_v0 }
 0x34d   :  { %v2345_v52 = vpop.permute.xlu1 %2344  ;;  %v2350_v1 = vpop.permute.xlu0 %2349  ;;  %v2785_v42 = vrot.slane %v13141_v44, %v13139_v29 }
 0x34e   :  { %18998 = vst [vmem:[#allocation10_spill] sm:$0xff] %v13144_v50  ;;  %10934 = vrcp.f32 %v13144_v50  ;;  %v2534_v59 = vmul.f32 %v2481_v2, %v2345_v52  ;;  %v2529_v52 = vmul.f32 %v2469_v16, %v2320_v18  ;;  %v13186_v16 = vsub.f32 %v12801_v47, %v13096_v57  ;;  %v19005_v18 = vld [vmem:[#allocation46_spill] sm:$0xff] }
 0x34f   :  { %v2847_v39 = vmul.f32 %v2785_v42, %v13153_v26  ;;  %v2846_v0 = vmul.f32 %v2785_v42, %v13109_v10 }
 0x350   :  { %v13160_v24 = vpop.eup %10930  ;;  %v13163_v60 = vsub.f32 %v18995_v6, %v2534_v59 }
 0x351   :  { %v2789_v4 = vrot.slane %v13160_v24, %v13139_v29  ;;  %v2355_v27 = vpop.permute.xlu1 %2354  ;;  %2968 = vperm.xlu0 %10733, %v2847_v39   ;;  %2963 = vperm.xlu1 %10732, %v2846_v0   ;;  %v2360_v42 = vpop.permute.xlu0 %2359  ;;  %v13189_v39 = vsub.f32 %v19005_v18, %v2529_v52  ;;  %v2531_v0 = vmul.f32 %v2473_v14, %v2330_v35  ;;  %v19008_v14 = vld [vmem:[#allocation52_spill] sm:$0xff] }
 0x352   :  { %19002 = vst [vmem:[#allocation28_spill] sm:$0xff] %v13163_v60  ;;  %10936 = vrcp.f32 %v13163_v60  ;;  %v2536_v26 = vmul.f32 %v2485_v51, %v2355_v27  ;;  %v13204_v18 = vrot.slane %v13186_v16, %v12716_v21  ;;  %v13208_v35 = vsub.f32 %v19008_v14, %v13096_v57 }
 0x353   :  { %v2848_v6 = vmul.f32 %v2789_v4, %v13119_v23  ;;  %19006 = vst [vmem:[#allocation30_spill] sm:$0xff] %v13189_v39 }
 0x354   :  { %v13175_v59 = vpop.eup %10932  ;;  %v13178_v10 = vsub.f32 %v18999_v40, %v2536_v26  ;;  %v2849_v26 = vmul.f32 %v2789_v4, %v13189_v39 }
 0x355   :  { %v2793_v27 = vrot.slane %v13175_v59, %v13139_v29  ;;  %v2365_v23 = vpop.permute.xlu1 %2364  ;;  %2973 = vperm.xlu1 %10732, %v2848_v6   ;;  %v2370_v22 = vpop.permute.xlu0 %2369  ;;  %v19009_v6 = vld [vmem:[#allocation48_spill] sm:$0xff] }
 0x356   :  { %19004 = vst [vmem:[#allocation29_spill] sm:$0xff] %v13178_v10  ;;  %10938 = vrcp.f32 %v13178_v10  ;;  %v2538_v40 = vmul.f32 %v13182_v63, %v2365_v23  ;;  %v13211_v33 = vsub.f32 %v19009_v6, %v2531_v0  ;;  %v2533_v23 = vmul.f32 %v2477_v7, %v2340_v13  ;;  %v19013_v13 = vld [vmem:[#allocation50_spill] sm:$0xff] }
 0x357   :  { %v2850_v28 = vmul.f32 %v2793_v27, %v13129_v15  ;;  %v13226_v7 = vrot.slane %v13208_v35, %v12716_v21 }
 0x358   :  { %v13197_v30 = vpop.eup %10934  ;;  %v13200_v52 = vsub.f32 %v19003_v32, %v2538_v40  ;;  %19010 = vst [vmem:[#allocation14_spill] sm:$0xff] %v13211_v33  ;;  %v2851_v15 = vmul.f32 %v2793_v27, %v13211_v33  ;;  %v2535_v27 = vmul.f32 %v2481_v2, %v2350_v1 }
 0x359   :  { %v2797_v4 = vrot.slane %v13197_v30, %v13139_v29  ;;  %v2375_v39 = vpop.permute.xlu1 %2374  ;;  %2983 = vperm.xlu0 %10733, %v2850_v28   ;;  %2978 = vperm.xlu1 %10732, %v2849_v26   ;;  %v2380_v32 = vpop.permute.xlu0 %2379  ;;  %v13230_v28 = vsub.f32 %v12839_v34, %v13096_v57  ;;  %v13233_v26 = vsub.f32 %v19013_v13, %v2533_v23 }
 0x35a   :  { %19007 = vst [vmem:[#allocation12_spill] sm:$0xff] %v13200_v52  ;;  %10940 = vrcp.f32 %v13200_v52  ;;  %v2540_v40 = vmul.f32 %v13204_v18, %v2375_v39  ;;  %v2537_v13 = vmul.f32 %v2485_v51, %v2360_v42 }
 0x35b   :  { %v2852_v61 = vmul.f32 %v2797_v4, %v13144_v50  ;;  %19012 = vst [vmem:[#allocation15_spill] sm:$0xff] %v13230_v28  ;;  %19014 = vst [vmem:[#allocation16_spill] sm:$0xff] %v13233_v26  ;;  %v2853_v33 = vmul.f32 %v2797_v4, %v13233_v26  ;;  %v13248_v2 = vrot.slane %v13230_v28, %v12716_v21 }
 0x35c   :  { %v13219_v38 = vpop.eup %10936  ;;  %v13222_v0 = vsub.f32 %v12801_v47, %v2540_v40 }
 0x35d   :  { %v2801_v39 = vrot.slane %v13219_v38, %v13139_v29  ;;  %v2385_v6 = vpop.permute.xlu1 %2384  ;;  %2993 = vperm.xlu0 %10733, %v2852_v61   ;;  %2988 = vperm.xlu1 %10732, %v2851_v15   ;;  %v2390_v47 = vpop.permute.xlu0 %2389  ;;  %v13252_v61 = vsub.f32 %v12858_v53, %v13096_v57  ;;  %v19017_v15 = vld [vmem:[#allocation51_spill] sm:$0xff] }
 0x35e   :  { %19011 = vst [vmem:[#allocation31_spill] sm:$0xff] %v13222_v0  ;;  %10942 = vrcp.f32 %v13222_v0  ;;  %v2542_v40 = vmul.f32 %v13226_v7, %v2385_v6  ;;  %v13255_v1 = vsub.f32 %v19017_v15, %v2535_v27  ;;  %v2539_v15 = vmul.f32 %v13182_v63, %v2370_v22 }
 0x35f   :  { %v2854_v50 = vmul.f32 %v2801_v39, %v13163_v60  ;;  %19016 = vst [vmem:[#allocation33_spill] sm:$0xff] %v13252_v61  ;;  %v13270_v51 = vrot.slane %v13252_v61, %v12716_v21  ;;  %v13297_v63 = vsub.f32 %v12896_v43, %v13096_v57 }
 0x360   :  { %v13241_v20 = vpop.eup %10938  ;;  %v13244_v23 = vsub.f32 %v19008_v14, %v2542_v40  ;;  %19018 = vst [vmem:[#allocation17_spill] sm:$0xff] %v13255_v1  ;;  %v2855_v26 = vmul.f32 %v2801_v39, %v13255_v1 }
 0x361   :  { %v2805_v4 = vrot.slane %v13241_v20, %v13139_v29  ;;  %v2395_v6 = vpop.permute.xlu1 %2394  ;;  %3003 = vperm.xlu0 %10733, %v2854_v50   ;;  %2998 = vperm.xlu1 %10732, %v2853_v33   ;;  %v2400_v14 = vpop.permute.xlu0 %2399  ;;  %v13274_v33 = vsub.f32 %v12877_v11, %v13096_v57  ;;  %v19021_v50 = vld [vmem:[#allocation53_spill] sm:$0xff]  ;;  %19023 = vst [vmem:[#allocation41_spill] sm:$0xff] %v13297_v63 }
 0x362   :  { %19015 = vst [vmem:[#allocation32_spill] sm:$0xff] %v13244_v23  ;;  %10944 = vrcp.f32 %v13244_v23  ;;  %v2544_v40 = vmul.f32 %v13248_v2, %v2395_v6  ;;  %v13277_v42 = vsub.f32 %v19021_v50, %v2537_v13  ;;  %v2541_v50 = vmul.f32 %v13204_v18, %v2380_v32  ;;  %v19027_v32 = vld [vmem:[#allocation55_spill] sm:$0xff] }
 0x363   :  { %v2856_v60 = vmul.f32 %v2805_v4, %v13178_v10  ;;  %19020 = vst [vmem:[#allocation38_spill] sm:$0xff] %v13274_v33  ;;  %v13293_v22 = vrot.slane %v13274_v33, %v12716_v21  ;;  %v2513_v18 = vrot.slane %v13297_v63, %v12716_v21 }
 0x364   :  { %v13263_v28 = vpop.eup %10940  ;;  %v13266_v27 = vsub.f32 %v12839_v34, %v2544_v40  ;;  %19022 = vst [vmem:[#allocation39_spill] sm:$0xff] %v13277_v42  ;;  %v2857_v1 = vmul.f32 %v2805_v4, %v13277_v42 }
 0x365   :  { %v2809_v39 = vrot.slane %v13263_v28, %v13139_v29  ;;  %v2405_v6 = vpop.permute.xlu1 %2404  ;;  %3013 = vperm.xlu0 %10733, %v2856_v60   ;;  %3008 = vperm.xlu1 %10732, %v2855_v26   ;;  %v2410_v34 = vpop.permute.xlu0 %2409  ;;  %v19024_v60 = vld [vmem:[#allocation54_spill] sm:$0xff] }
 0x366   :  { %19019 = vst [vmem:[#allocation18_spill] sm:$0xff] %v13266_v27  ;;  %10946 = vrcp.f32 %v13266_v27  ;;  %v2546_v40 = vmul.f32 %v13270_v51, %v2405_v6  ;;  %v13300_v26 = vsub.f32 %v19024_v60, %v2539_v15  ;;  %v2543_v60 = vmul.f32 %v13226_v7, %v2390_v47  ;;  %v19029_v7 = vld [vmem:[#allocation56_spill] sm:$0xff] }
 0x367   :  { %v2858_v10 = vmul.f32 %v2809_v39, %v13200_v52 }
 0x368   :  { %v13286_v61 = vpop.eup %10942  ;;  %v13289_v13 = vsub.f32 %v12858_v53, %v2546_v40  ;;  %19025 = vst [vmem:[#allocation43_spill] sm:$0xff] %v13300_v26  ;;  %v2859_v42 = vmul.f32 %v2809_v39, %v13300_v26  ;;  %v13341_v47 = vsub.f32 %v19029_v7, %v2543_v60 }
 0x369   :  { %v2813_v4 = vrot.slane %v13286_v61, %v13139_v29  ;;  %v2415_v6 = vpop.permute.xlu1 %2414  ;;  %3023 = vperm.xlu0 %10733, %v2858_v10   ;;  %3018 = vperm.xlu1 %10732, %v2857_v1   ;;  %v2420_v53 = vpop.permute.xlu0 %2419  ;;  %v13318_v10 = vsub.f32 %v12915_v25, %v13096_v57  ;;  %v13321_v1 = vsub.f32 %v19027_v32, %v2541_v50 }
 0x36a   :  { %10948 = vrcp.f32 %v13289_v13  ;;  %v2548_v40 = vmul.f32 %v13293_v22, %v2415_v6  ;;  %19030 = vst [vmem:[#allocation44_spill] sm:$0xff] %v13341_v47 }
 0x36b   :  { %v2860_v52 = vmul.f32 %v2813_v4, %v13222_v0  ;;  %19026 = vst [vmem:[#allocation45_spill] sm:$0xff] %v13318_v10  ;;  %19028 = vst [vmem:[#allocation47_spill] sm:$0xff] %v13321_v1  ;;  %v2861_v26 = vmul.f32 %v2813_v4, %v13321_v1  ;;  %v2517_v32 = vrot.slane %v13318_v10, %v12716_v21 }
 0x36c   :  { %v13309_v33 = vpop.eup %10944  ;;  %v13312_v15 = vsub.f32 %v12877_v11, %v2548_v40  ;;  %v2545_v4 = vmul.f32 %v13248_v2, %v2400_v14  ;;  %v19031_v2 = vld [vmem:[#allocation57_spill] sm:$0xff] }
 0x36d   :  { %v2817_v39 = vrot.slane %v13309_v33, %v13139_v29  ;;  %v2425_v6 = vpop.permute.xlu1 %2424  ;;  %3033 = vperm.xlu0 %10733, %v2860_v52   ;;  %3028 = vperm.xlu1 %10732, %v2859_v42   ;;  %v2430_v11 = vpop.permute.xlu0 %2429  ;;  %v13338_v52 = vsub.f32 %v12930_v45, %v13096_v57 }
 0x36e   :  { %10950 = vrcp.f32 %v13312_v15  ;;  %v2550_v40 = vmul.f32 %v2513_v18, %v2425_v6  ;;  %v13361_v14 = vsub.f32 %v19031_v2, %v2545_v4 }
 0x36f   :  { %v2862_v0 = vmul.f32 %v2817_v39, %v13244_v23  ;;  %v2863_v1 = vmul.f32 %v2817_v39, %v13341_v47  ;;  %v2521_v7 = vrot.slane %v13338_v52, %v12716_v21  ;;  %v2547_v39 = vmul.f32 %v13270_v51, %v2410_v34 }
 0x370   :  { %v13329_v63 = vpop.eup %10946  ;;  %v13332_v50 = vsub.f32 %v12896_v43, %v2550_v40  ;;  %v2549_v34 = vmul.f32 %v13293_v22, %v2420_v53  ;;  %v2551_v53 = vmul.f32 %v2513_v18, %v2430_v11 }
 0x371   :  { %v2821_v42 = vrot.slane %v13329_v63, %v13139_v29  ;;  %v2435_v6 = vpop.permute.xlu1 %2434  ;;  %3043 = vperm.xlu0 %10733, %v2862_v0   ;;  %3038 = vperm.xlu1 %10732, %v2861_v26   ;;  %v2440_v43 = vpop.permute.xlu0 %2439  ;;  %v13358_v0 = vsub.f32 %v12945_v55, %v13096_v57  ;;  %v13377_v51 = vsub.f32 %v12920_v8, %v2547_v39 }
 0x372   :  { %10952 = vrcp.f32 %v13332_v50  ;;  %v2552_v40 = vmul.f32 %v2517_v32, %v2435_v6  ;;  %v13391_v39 = vsub.f32 %v12935_v41, %v2549_v34  ;;  %v2553_v34 = vmul.f32 %v2517_v32, %v2440_v43 }
 0x373   :  { %v2864_v23 = vmul.f32 %v2821_v42, %v13266_v27  ;;  %v2865_v47 = vmul.f32 %v2821_v42, %v13361_v14  ;;  %v2525_v2 = vrot.slane %v13358_v0, %v12716_v21  ;;  %19032 = vst [vmem:[#allocation49_spill] sm:$0xff] %v13377_v51 }
 0x374   :  { %v13349_v10 = vpop.eup %10948  ;;  %v13352_v60 = vsub.f32 %v12915_v25, %v2552_v40  ;;  %19033 = vst [vmem:[#allocation46_spill] sm:$0xff] %v13391_v39 }
 0x375   :  { %v2825_v26 = vrot.slane %v13349_v10, %v13139_v29  ;;  %v2445_v6 = vpop.permute.xlu1 %2444  ;;  %3053 = vperm.xlu0 %10733, %v2864_v23   ;;  %3048 = vperm.xlu1 %10732, %v2863_v1   ;;  %v2450_v25 = vpop.permute.xlu0 %2449 }
 0x376   :  { %10954 = vrcp.f32 %v13352_v60  ;;  %v2554_v40 = vmul.f32 %v2521_v7, %v2445_v6 }
 0x377   :  { %v2866_v57 = vmul.f32 %v2825_v26, %v13289_v13 }
 0x378   :  { %v13369_v27 = vpop.eup %10950  ;;  %v13372_v4 = vsub.f32 %v12930_v45, %v2554_v40  ;;  %v2867_v45 = vmul.f32 %v2825_v26, %v13377_v51 }
 0x379   :  { %v2829_v23 = vrot.slane %v13369_v27, %v13139_v29  ;;  %v2455_v1 = vpop.permute.xlu1 %2454  ;;  %3063 = vperm.xlu0 %10733, %v2866_v57   ;;  %3058 = vperm.xlu1 %10732, %v2865_v47   ;;  %v2460_v42 = vpop.permute.xlu0 %2459 }
 0x37a   :  { %10956 = vrcp.f32 %v13372_v4  ;;  %v2556_v6 = vmul.f32 %v2525_v2, %v2455_v1 }
 0x37b   :  { %v2868_v40 = vmul.f32 %v2829_v23, %v13312_v15  ;;  %v2869_v26 = vmul.f32 %v2829_v23, %v13391_v39  ;;  %v2686_v39 = vrot.slane %v13100_v17, 1  ;;  %v2557_v17 = vmul.f32 %v2525_v2, %v2460_v42 }
 0x37c   :  { %v13385_v21 = vpop.eup %10952  ;;  %v13388_v8 = vsub.f32 %v12945_v55, %v2556_v6  ;;  %v13401_v55 = vsub.f32 %v12948_v48, %v2551_v53  ;;  %v2555_v53 = vmul.f32 %v2521_v7, %v2450_v25  ;;  %v2688_v25 = vrot.slane %v13115_v3, 1 }
 0x37d   :  { %v2833_v22 = vrot.slane %v13385_v21, %v13139_v29  ;;  %v2593_v47 = vpop.permute.xlu1 %2592  ;;  %3073 = vperm.xlu0 %10733, %v2868_v40   ;;  %3068 = vperm.xlu1 %10732, %v2867_v45   ;;  %v2598_v57 = vpop.permute.xlu0 %2597  ;;  %v13410_v40 = vsub.f32 %v12958_v36, %v2553_v34  ;;  %v2687_v36 = vrot.slane %v13106_v9, 1  ;;  %v2913_v3 = vrot.slane %v13141_v44, 2 }
 0x37e   :  { %10958 = vrcp.f32 %v13388_v8  ;;  %19034 = vst [vmem:[#allocation52_spill] sm:$0xff] %v13401_v55  ;;  %v13421_v34 = vsub.f32 %v12967_v54, %v2555_v53  ;;  %v2689_v54 = vrot.slane %v13125_v31, 1  ;;  %v2690_v2 = vrot.slane %v13135_v58, 1 }
 0x37f   :  { %v2870_v1 = vmul.f32 %v2833_v22, %v13332_v50  ;;  %v2871_v6 = vmul.f32 %v2833_v22, %v13401_v55  ;;  %19035 = vst [vmem:[#allocation48_spill] sm:$0xff] %v13410_v40  ;;  %v2718_v22 = vmul.f32 %v2686_v39, %v2593_v47  ;;  %v2914_v44 = vrot.slane %v13160_v24, 2 }
 0x380   :  { %v13398_v51 = vpop.eup %10954  ;;  %v2915_v58 = vrot.slane %v13175_v59, 2  ;;  %v2916_v24 = vrot.slane %v13197_v30, 2 }
 0x381   :  { %v2837_v41 = vrot.slane %v13398_v51, %v13139_v29  ;;  %v2603_v18 = vpop.permute.xlu1 %2602  ;;  %3083 = vperm.xlu0 %10733, %v2870_v1   ;;  %3078 = vperm.xlu1 %10732, %v2869_v26   ;;  %v2608_v11 = vpop.permute.xlu0 %2607  ;;  %v13428_v47 = vsub.f32 %v12989_v49, %v2718_v22  ;;  %v2692_v22 = vrot.slane %v13169_v46, 1  ;;  %v2917_v46 = vrot.slane %v13219_v38, 2 }
 0x382   :  { %v2721_v49 = vmul.f32 %v2689_v54, %v2608_v11  ;;  %v2918_v38 = vrot.slane %v13241_v20, 2  ;;  %v19039_v54 = vld [vmem:[#allocation33_spill] sm:$0xff] }
 0x383   :  { %v2872_v45 = vmul.f32 %v2837_v41, %v13352_v60  ;;  %v2873_v26 = vmul.f32 %v2837_v41, %v13410_v40  ;;  %v2719_v41 = vmul.f32 %v2687_v36, %v2598_v57  ;;  %v13433_v40 = vsub.f32 %v12980_v12, %v2557_v17  ;;  %v19036_v17 = vld [vmem:[#allocation20_spill] sm:$0xff] }
 0x384   :  { %v13407_v23 = vpop.eup %10956 }
 0x385   :  { %v2841_v48 = vrot.slane %v13407_v23, %v13139_v29  ;;  %v2613_v32 = vpop.permute.xlu1 %2612  ;;  %3093 = vperm.xlu0 %10733, %v2872_v45   ;;  %3088 = vperm.xlu1 %10732, %v2871_v6   ;;  %v2618_v43 = vpop.permute.xlu0 %2617  ;;  %v2720_v45 = vmul.f32 %v2688_v25, %v2603_v18  ;;  %v13438_v42 = vsub.f32 %v12992_v19, %v2719_v41  ;;  %v19037_v41 = vld [vmem:[#allocation21_spill] sm:$0xff] }
 0x386   :  { %v2722_v12 = vmul.f32 %v2690_v2, %v2613_v32  ;;  %v13450_v19 = vsub.f32 %v13008_v5, %v2721_v49  ;;  %v2694_v5 = vrot.slane %v13208_v35, 1  ;;  %v2919_v35 = vrot.slane %v13263_v28, 2 }
 0x387   :  { %v2874_v1 = vmul.f32 %v2841_v48, %v13372_v4  ;;  %v2875_v39 = vmul.f32 %v2841_v48, %v13421_v34  ;;  %v2945_v48 = vmul.f32 %v2913_v3, %v13428_v47  ;;  %v13443_v31 = vsub.f32 %v13005_v56, %v2720_v45  ;;  %v19038_v45 = vld [vmem:[#allocation15_spill] sm:$0xff] }
 0x388   :  { %v13417_v55 = vpop.eup %10958  ;;  %v2946_v36 = vmul.f32 %v2914_v44, %v13438_v42  ;;  %v13455_v32 = vsub.f32 %v13017_v37, %v2722_v12  ;;  %v2696_v3 = vrot.slane %v19039_v54, 1  ;;  %v19040_v12 = vld [vmem:[#allocation40_spill] sm:$0xff]  ;;  %v19042_v44 = vld [vmem:[#allocation38_spill] sm:$0xff]  ;;  %v2920_v28 = vrot.slane %v13286_v61, 2 }
 0x389   :  { %v2845_v7 = vrot.slane %v13417_v55, %v13139_v29  ;;  %v2623_v6 = vpop.permute.xlu1 %2622  ;;  %3103 = vperm.xlu0 %10733, %v2874_v1   ;;  %3098 = vperm.xlu1 %10732, %v2873_v26   ;;  %v2628_v53 = vpop.permute.xlu0 %2627  ;;  %v2691_v26 = vrot.slane %v13150_v62, 1  ;;  %v2947_v56 = vmul.f32 %v2915_v58, %v13443_v31  ;;  %v2697_v58 = vrot.slane %v19042_v44, 1 }
 0x38a   :  { %v2724_v62 = vmul.f32 %v2692_v22, %v2623_v6  ;;  %v2949_v37 = vmul.f32 %v2917_v46, %v13455_v32  ;;  %v2921_v22 = vrot.slane %v13309_v33, 2  ;;  %v2922_v61 = vrot.slane %v13329_v63, 2 }
 0x38b   :  { %v2876_v9 = vmul.f32 %v2845_v7, %v13388_v8  ;;  %v2877_v18 = vmul.f32 %v2845_v7, %v13433_v40  ;;  %v2723_v11 = vmul.f32 %v2691_v26, %v2618_v43  ;;  %v2693_v7 = vrot.slane %v13186_v16, 1 }
 0x38c   :  { %v2948_v43 = vmul.f32 %v2916_v24, %v13450_v19  ;;  %v13467_v6 = vsub.f32 %v19037_v41, %v2724_v62  ;;  %v2695_v16 = vrot.slane %v19038_v45, 1 }
 0x38d   :  { %3113 = vperm.xlu0 %10733, %v2876_v9   ;;  %3108 = vperm.xlu1 %10732, %v2875_v39   ;;  %v2633_v57 = vpop.permute.xlu1 %2632  ;;  %v2638_v1 = vpop.permute.xlu0 %2637  ;;  %v13463_v25 = vsub.f32 %v19036_v17, %v2723_v11  ;;  %v2725_v30 = vmul.f32 %v2693_v7, %v2628_v53  ;;  %v19043_v11 = vld [vmem:[#allocation41_spill] sm:$0xff]  ;;  %v2923_v17 = vrot.slane %v13349_v10, 2  ;;  %v2924_v10 = vrot.slane %v13369_v27, 2 }
 0x38e   :  { %v2726_v39 = vmul.f32 %v2694_v5, %v2633_v57  ;;  %v2727_v49 = vmul.f32 %v2695_v16, %v2638_v1  ;;  %v19041_v57 = vld [vmem:[#allocation22_spill] sm:$0xff]  ;;  %v2926_v27 = vrot.slane %v13398_v51, 2  ;;  %v19059_v51 = vld [vmem:[#allocation9_spill] sm:$0xff] }
 0x38f   :  { %v2950_v2 = vmul.f32 %v2918_v38, %v13463_v25  ;;  %v13476_v53 = vsub.f32 %v19040_v12, %v2725_v30  ;;  %v19044_v1 = vld [vmem:[#allocation34_spill] sm:$0xff]  ;;  %v2700_v30 = vrot.slane %v13338_v52, 1  ;;  %v19049_v38 = vld [vmem:[#allocation35_spill] sm:$0xff]  ;;  %v2701_v52 = vrot.slane %v13358_v0, 1 }
 0x390   :  { %v13479_v20 = vsub.f32 %v19041_v57, %v2726_v39  ;;  %v19055_v57 = vld [vmem:[#allocation36_spill] sm:$0xff]  ;;  %vm2878_vm12 = vcmp.eq.s32.totalorder %v19059_v51, 2 }
 0x391   :  { %3251 = vperm.xlu0 %10733, %v2945_v48   ;;  %3118 = vperm.xlu1 %10732, %v2877_v18   ;;  %v2643_v59 = vpop.permute.xlu1 %2642  ;;  %v2648_v9 = vpop.permute.xlu0 %2647  ;;  %v2951_v48 = vmul.f32 %v2919_v35, %v13467_v6  ;;  %v2952_v46 = vmul.f32 %v2920_v28, %v13476_v53  ;;  %v19057_v28 = vld [vmem:[#allocation37_spill] sm:$0xff] }
 0x392   :  { %v2728_v26 = vmul.f32 %v2696_v3, %v2643_v59  ;;  %v2729_v62 = vmul.f32 %v2697_v58, %v2648_v9  ;;  %v2953_v7 = vmul.f32 %v2921_v22, %v13479_v20  ;;  %v19046_v59 = vld [vmem:[#allocation23_spill] sm:$0xff]  ;;  %v19051_v9 = vld [vmem:[#allocation24_spill] sm:$0xff]  ;;  %v2927_v58 = vrot.slane %v13407_v23, 2 }
 0x393   :  { %v19060_v23 = vmov 0.0  }
 0x394   :  { %v13491_v5 = vsub.f32 %v19046_v59, %v2728_v26  ;;  %v13499_v45 = vsub.f32 %v19049_v38, %v2729_v62  ;;  %v13527_v62 = vsel %vm2878_vm12, 1.0, %v19060_v23 }
 0x395   :  { %3261 = vperm.xlu0 %10733, %v2947_v56   ;;  %3256 = vperm.xlu1 %10732, %v2946_v36   ;;  %v2653_v18 = vpop.permute.xlu1 %2652  ;;  %v2698_v36 = vrot.slane %v19043_v11, 1  ;;  %v13486_v56 = vsub.f32 %v19044_v1, %v2727_v49  ;;  %v2658_v24 = vpop.permute.xlu0 %2657  ;;  %v2928_v11 = vrot.slane %v13417_v55, 2  ;;  %v11405_v1 = vmov 3  }
 0x396   :  { %19047 = vst [vmem:[#allocation51_spill] sm:$0xff] %v13491_v5  ;;  %19050 = vst [vmem:[#allocation53_spill] sm:$0xff] %v13499_v45  ;;  %v2955_v16 = vmul.f32 %v2923_v17, %v13491_v5  ;;  %v2956_v49 = vmul.f32 %v2924_v10, %v13499_v45 }
 0x397   :  { %19045 = vst [vmem:[#allocation50_spill] sm:$0xff] %v13486_v56  ;;  %v2954_v39 = vmul.f32 %v2922_v61, %v13486_v56 }
 0x399   :  { %3271 = vperm.xlu0 %10733, %v2949_v37   ;;  %3266 = vperm.xlu1 %10732, %v2948_v43   ;;  %v2730_v43 = vmul.f32 %v2698_v36, %v2653_v18  ;;  %v2663_v33 = vpop.permute.xlu1 %2662  ;;  %v19048_v37 = vld [vmem:[#allocation45_spill] sm:$0xff]  ;;  %v2668_v3 = vpop.permute.xlu0 %2667 }
 0x39a   :  { %v2699_v41 = vrot.slane %v19048_v37, 1  ;;  %v2732_v54 = vmul.f32 %v2700_v30, %v2663_v33  ;;  %v2733_v44 = vmul.f32 %v2701_v52, %v2668_v3  ;;  %v19064_v37 = vld [vmem:[#allocation26_spill] sm:$0xff] }
 0x39b   :  { %v13503_v35 = vsub.f32 %v19051_v9, %v2730_v43 }
 0x39c   :  { %v2731_v63 = vmul.f32 %v2699_v41, %v2658_v24  ;;  %v13514_v26 = vsub.f32 %v19055_v57, %v2732_v54  ;;  %v13521_v22 = vsub.f32 %v19057_v28, %v2733_v44  ;;  %v19061_v24 = vld [vmem:[#allocation13_spill] sm:$0xff]  ;;  %v13546_v41 = vsub.f32 %v19064_v37, %v13527_v62 }
 0x39d   :  { %3281 = vperm.xlu0 %10733, %v2951_v48   ;;  %3276 = vperm.xlu1 %10732, %v2950_v2   ;;  %19052 = vst [vmem:[#allocation54_spill] sm:$0xff] %v13503_v35  ;;  %v2925_v2 = vrot.slane %v13385_v21, 2  ;;  %v19053_v48 = vld [vmem:[#allocation25_spill] sm:$0xff] }
 0x39e   :  { %v13511_v12 = vsub.f32 %v19053_v48, %v2731_v63  ;;  %19056 = vst [vmem:[#allocation56_spill] sm:$0xff] %v13514_v26  ;;  %v2959_v0 = vmul.f32 %v2927_v58, %v13514_v26  ;;  %19058 = vst [vmem:[#allocation57_spill] sm:$0xff] %v13521_v22  ;;  %v2960_v36 = vmul.f32 %v2928_v11, %v13521_v22  ;;  %v19066_v63 = vld [vmem:[#allocation10_spill] sm:$0xff] }
 0x39f   :  { %v2957_v18 = vmul.f32 %v2925_v2, %v13503_v35  ;;  %v3132_v9 = vrot.slane %v13546_v41, %v13139_v29  ;;  %v13556_v54 = vsub.f32 %v19066_v63, %v13527_v62 }
 0x3a0   :  { %19054 = vst [vmem:[#allocation55_spill] sm:$0xff] %v13511_v12  ;;  %v2958_v21 = vmul.f32 %v2926_v27, %v13511_v12 }
 0x3a1   :  { %3291 = vperm.xlu0 %10733, %v2953_v7   ;;  %3286 = vperm.xlu1 %10732, %v2952_v46   ;;  %v13531_v46 = vsub.f32 %v19061_v24, %v13527_v62  ;;  %v19062_v7 = vld [vmem:[#allocation19_spill] sm:$0xff] }
 0x3a2   :  { %v13537_v59 = vsub.f32 %v19062_v7, %v13527_v62 }
 0x3a3   :  { %v3124_v55 = vrot.slane %v13531_v46, %v13139_v29 }
 0x3a4   :  { %v3128_v17 = vrot.slane %v13537_v59, %v13139_v29 }
 0x3a5   :  { %3301 = vperm.xlu0 %10733, %v2955_v16   ;;  %3296 = vperm.xlu1 %10732, %v2954_v39  }
 0x3a9   :  { %3311 = vperm.xlu0 %10733, %v2957_v18   ;;  %3306 = vperm.xlu1 %10732, %v2956_v49   ;;  %v3136_v49 = vrot.slane %v13556_v54, %v13139_v29  ;;  %v19068_v18 = vld [vmem:[#allocation28_spill] sm:$0xff] }
 0x3aa   :  { %v13566_v48 = vsub.f32 %v19068_v18, %v13527_v62 }
 0x3ad   :  { %3321 = vperm.xlu0 %10733, %v2959_v0   ;;  %3316 = vperm.xlu1 %10732, %v2958_v21   ;;  %v19069_v21 = vld [vmem:[#allocation7_spill] sm:$0xff] }
 0x3ae   :  { %v13570_v0 = vsub.s32 3, %v19069_v21 }
 0x3b0   :  { %19070 = vst [vmem:[#allocation33_spill] sm:$0xff] %v13570_v0 }
 0x3b1   :  { %3326 = vperm.xlu1 %10732, %v2960_v36   ;;  %10734 = vset.pattern.permute.xlu0 %v11405_v1  ;;  %v3140_v36 = vrot.slane %v13566_v48, %v13139_v29 }
 0x3b5   :  { %10735 = vset.pattern.permute.xlu1 %v11405_v1  ;;  %v19072_v1 = vld [vmem:[#allocation29_spill] sm:$0xff] }
 0x3d0   :  { %v2964_v43 = vpop.permute.xlu1 %2963  ;;  %v2969_v30 = vpop.permute.xlu0 %2968 }
 0x3d1   :  { %v3185_v61 = vmul.f32 %v3124_v55, %v2964_v43  ;;  %v3186_v57 = vmul.f32 %v3124_v55, %v2969_v30 }
 0x3d3   :  { %v13540_v33 = vsub.f32 %v19061_v24, %v3185_v61  ;;  %v13581_v24 = vsub.f32 %v19072_v1, %v13527_v62 }
 0x3d4   :  { %v2974_v39 = vpop.permute.xlu1 %2973 }
 0x3d5   :  { %19063 = vst [vmem:[#allocation20_spill] sm:$0xff] %v13540_v33  ;;  %10960 = vrcp.f32 %v13540_v33  ;;  %v3187_v38 = vmul.f32 %v3128_v17, %v2974_v39 }
 0x3d7   :  { %v13550_v16 = vsub.f32 %v19062_v7, %v3187_v38  ;;  %v19073_v7 = vld [vmem:[#allocation11_spill] sm:$0xff] }
 0x3d8   :  { %v2979_v10 = vpop.permute.xlu1 %2978  ;;  %v2984_v3 = vpop.permute.xlu0 %2983  ;;  %v13586_v43 = vsub.f32 %v19073_v7, %v3186_v57  ;;  %v19076_v57 = vld [vmem:[#allocation12_spill] sm:$0xff] }
 0x3d9   :  { %19065 = vst [vmem:[#allocation21_spill] sm:$0xff] %v13550_v16  ;;  %10962 = vrcp.f32 %v13550_v16  ;;  %v3189_v2 = vmul.f32 %v3132_v9, %v2984_v3  ;;  %v3188_v61 = vmul.f32 %v3128_v17, %v2979_v10  ;;  %v13600_v17 = vsub.f32 %v19076_v57, %v13527_v62 }
 0x3da   :  { %19074 = vst [vmem:[#allocation22_spill] sm:$0xff] %v13586_v43 }
 0x3db   :  { %v13560_v52 = vsub.f32 %v19064_v37, %v3189_v2 }
 0x3dc   :  { %v2989_v44 = vpop.permute.xlu1 %2988  ;;  %v2994_v27 = vpop.permute.xlu0 %2993 }
 0x3dd   :  { %19067 = vst [vmem:[#allocation15_spill] sm:$0xff] %v13560_v52  ;;  %10964 = vrcp.f32 %v13560_v52  ;;  %v3191_v58 = vmul.f32 %v3136_v49, %v2994_v27  ;;  %v3144_v27 = vrot.slane %v13581_v24, %v13139_v29 }
 0x3df   :  { %v13572_v28 = vpop.eup %10960  ;;  %v13575_v11 = vsub.f32 %v19066_v63, %v3191_v58  ;;  %v19077_v58 = vld [vmem:[#allocation30_spill] sm:$0xff] }
 0x3e0   :  { %v3444_v55 = vrot.slane %v13572_v28, %v13570_v0  ;;  %v2999_v37 = vpop.permute.xlu1 %2998  ;;  %v3004_v30 = vpop.permute.xlu0 %3003  ;;  %v13605_v7 = vsub.f32 %v19077_v58, %v3188_v61  ;;  %v3148_v61 = vrot.slane %v13600_v17, %v13139_v29 }
 0x3e1   :  { %19071 = vst [vmem:[#allocation40_spill] sm:$0xff] %v13575_v11  ;;  %10966 = vrcp.f32 %v13575_v11  ;;  %v3193_v39 = vmul.f32 %v3140_v36, %v3004_v30  ;;  %v3190_v30 = vmul.f32 %v3132_v9, %v2989_v44  ;;  %v19080_v9 = vld [vmem:[#allocation31_spill] sm:$0xff]  ;;  %v3192_v58 = vmul.f32 %v3136_v49, %v2999_v37  ;;  %v19084_v49 = vld [vmem:[#allocation32_spill] sm:$0xff] }
 0x3e2   :  { %v3506_v38 = vmul.f32 %v3444_v55, %v13586_v43  ;;  %v3505_v63 = vmul.f32 %v3444_v55, %v13540_v33  ;;  %19078 = vst [vmem:[#allocation41_spill] sm:$0xff] %v13605_v7  ;;  %v13619_v44 = vsub.f32 %v19080_v9, %v13527_v62  ;;  %v13638_v37 = vsub.f32 %v19084_v49, %v13527_v62 }
 0x3e3   :  { %v13591_v3 = vpop.eup %10962  ;;  %v13594_v2 = vsub.f32 %v19068_v18, %v3193_v39 }
 0x3e4   :  { %v3448_v10 = vrot.slane %v13591_v3, %v13570_v0  ;;  %3622 = vperm.xlu0 %10734, %v3505_v63   ;;  %v3009_v55 = vpop.permute.xlu1 %3008  ;;  %3627 = vperm.xlu1 %10735, %v3506_v38   ;;  %v3014_v43 = vpop.permute.xlu0 %3013  ;;  %v19081_v38 = vld [vmem:[#allocation14_spill] sm:$0xff] }
 0x3e5   :  { %19075 = vst [vmem:[#allocation38_spill] sm:$0xff] %v13594_v2  ;;  %10968 = vrcp.f32 %v13594_v2  ;;  %v3195_v18 = vmul.f32 %v3144_v27, %v3014_v43  ;;  %v13622_v63 = vsub.f32 %v19081_v38, %v3190_v30  ;;  %v3152_v38 = vrot.slane %v13619_v44, %v13139_v29 }
 0x3e6   :  { %v3508_v39 = vmul.f32 %v3448_v10, %v13605_v7  ;;  %v3507_v21 = vmul.f32 %v3448_v10, %v13550_v16 }
 0x3e7   :  { %v13610_v33 = vpop.eup %10964  ;;  %v13613_v23 = vsub.f32 %v19072_v1, %v3195_v18  ;;  %19082 = vst [vmem:[#allocation23_spill] sm:$0xff] %v13622_v63 }
 0x3e8   :  { %v3452_v43 = vrot.slane %v13610_v33, %v13570_v0  ;;  %3637 = vperm.xlu0 %10734, %v3508_v39   ;;  %v3019_v10 = vpop.permute.xlu1 %3018  ;;  %3632 = vperm.xlu1 %10735, %v3507_v21   ;;  %v3024_v7 = vpop.permute.xlu0 %3023  ;;  %v19085_v21 = vld [vmem:[#allocation16_spill] sm:$0xff] }
 0x3e9   :  { %19079 = vst [vmem:[#allocation34_spill] sm:$0xff] %v13613_v23  ;;  %10970 = vrcp.f32 %v13613_v23  ;;  %v3197_v1 = vmul.f32 %v3148_v61, %v3024_v7  ;;  %v13641_v39 = vsub.f32 %v19085_v21, %v3192_v58  ;;  %v3156_v21 = vrot.slane %v13638_v37, %v13139_v29 }
 0x3ea   :  { %v3510_v18 = vmul.f32 %v3452_v43, %v13622_v63  ;;  %v3509_v16 = vmul.f32 %v3452_v43, %v13560_v52  ;;  %v3194_v63 = vmul.f32 %v3140_v36, %v3009_v55  ;;  %v19088_v36 = vld [vmem:[#allocation18_spill] sm:$0xff] }
 0x3eb   :  { %v13629_v51 = vpop.eup %10966  ;;  %v13632_v30 = vsub.f32 %v19076_v57, %v3197_v1  ;;  %19086 = vst [vmem:[#allocation35_spill] sm:$0xff] %v13641_v39  ;;  %v13657_v55 = vsub.f32 %v19088_v36, %v13527_v62 }
 0x3ec   :  { %v3456_v7 = vrot.slane %v13629_v51, %v13570_v0  ;;  %v3029_v43 = vpop.permute.xlu1 %3028  ;;  %3647 = vperm.xlu0 %10734, %v3510_v18   ;;  %3642 = vperm.xlu1 %10735, %v3509_v16   ;;  %v3034_v52 = vpop.permute.xlu0 %3033  ;;  %v19089_v16 = vld [vmem:[#allocation17_spill] sm:$0xff] }
 0x3ed   :  { %19083 = vst [vmem:[#allocation45_spill] sm:$0xff] %v13632_v30  ;;  %10972 = vrcp.f32 %v13632_v30  ;;  %v3199_v57 = vmul.f32 %v3152_v38, %v3034_v52  ;;  %v13660_v18 = vsub.f32 %v19089_v16, %v3194_v63  ;;  %v3160_v16 = vrot.slane %v13657_v55, %v13139_v29 }
 0x3ee   :  { %v3512_v1 = vmul.f32 %v3456_v7, %v13641_v39  ;;  %v3511_v22 = vmul.f32 %v3456_v7, %v13575_v11  ;;  %v3196_v39 = vmul.f32 %v3144_v27, %v3019_v10  ;;  %v13676_v27 = vsub.f32 %v13289_v13, %v13527_v62 }
 0x3ef   :  { %v13648_v26 = vpop.eup %10968  ;;  %v13651_v58 = vsub.f32 %v19080_v9, %v3199_v57  ;;  %19090 = vst [vmem:[#allocation25_spill] sm:$0xff] %v13660_v18 }
 0x3f0   :  { %v3460_v52 = vrot.slane %v13648_v26, %v13570_v0  ;;  %v3039_v7 = vpop.permute.xlu1 %3038  ;;  %3657 = vperm.xlu0 %10734, %v3512_v1   ;;  %3652 = vperm.xlu1 %10735, %v3511_v22   ;;  %v3044_v11 = vpop.permute.xlu0 %3043  ;;  %v19092_v22 = vld [vmem:[#allocation39_spill] sm:$0xff]  ;;  %v3198_v1 = vmul.f32 %v3148_v61, %v3029_v43  ;;  %v13695_v61 = vsub.f32 %v13312_v15, %v13527_v62 }
 0x3f1   :  { %19087 = vst [vmem:[#allocation24_spill] sm:$0xff] %v13651_v58  ;;  %10974 = vrcp.f32 %v13651_v58  ;;  %v3201_v9 = vmul.f32 %v3156_v21, %v3044_v11  ;;  %v13679_v10 = vsub.f32 %v19092_v22, %v3196_v39  ;;  %v3164_v22 = vrot.slane %v13676_v27, %v13139_v29 }
 0x3f2   :  { %v3514_v57 = vmul.f32 %v3460_v52, %v13660_v18  ;;  %v3513_v12 = vmul.f32 %v3460_v52, %v13594_v2 }
 0x3f3   :  { %v13667_v35 = vpop.eup %10970  ;;  %v13670_v63 = vsub.f32 %v19084_v49, %v3201_v9  ;;  %19093 = vst [vmem:[#allocation37_spill] sm:$0xff] %v13679_v10 }
 0x3f4   :  { %v3464_v11 = vrot.slane %v13667_v35, %v13570_v0  ;;  %v3049_v52 = vpop.permute.xlu1 %3048  ;;  %3667 = vperm.xlu0 %10734, %v3514_v57   ;;  %3662 = vperm.xlu1 %10735, %v3513_v12   ;;  %v3054_v18 = vpop.permute.xlu0 %3053  ;;  %v19095_v12 = vld [vmem:[#allocation43_spill] sm:$0xff]  ;;  %v3200_v57 = vmul.f32 %v3152_v38, %v3039_v7  ;;  %v13714_v38 = vsub.f32 %v13332_v50, %v13527_v62 }
 0x3f5   :  { %19091 = vst [vmem:[#allocation36_spill] sm:$0xff] %v13670_v63  ;;  %10976 = vrcp.f32 %v13670_v63  ;;  %v3203_v49 = vmul.f32 %v3160_v16, %v3054_v18  ;;  %v13698_v43 = vsub.f32 %v19095_v12, %v3198_v1  ;;  %v3168_v12 = vrot.slane %v13695_v61, %v13139_v29 }
 0x3f6   :  { %v3516_v9 = vmul.f32 %v3464_v11, %v13679_v10  ;;  %v3515_v2 = vmul.f32 %v3464_v11, %v13613_v23  ;;  %19098 = vst [vmem:[#allocation10_spill] sm:$0xff] %v13714_v38 }
 0x3f7   :  { %v13686_v45 = vpop.eup %10972  ;;  %v13689_v39 = vsub.f32 %v19088_v36, %v3203_v49  ;;  %19096 = vst [vmem:[#allocation19_spill] sm:$0xff] %v13698_v43 }
 0x3f8   :  { %v3468_v18 = vrot.slane %v13686_v45, %v13570_v0  ;;  %v3059_v11 = vpop.permute.xlu1 %3058  ;;  %3677 = vperm.xlu0 %10734, %v3516_v9   ;;  %3672 = vperm.xlu1 %10735, %v3515_v2   ;;  %v3064_v10 = vpop.permute.xlu0 %3063  ;;  %v19099_v2 = vld [vmem:[#allocation47_spill] sm:$0xff]  ;;  %v3202_v9 = vmul.f32 %v3156_v21, %v3049_v52  ;;  %v13733_v21 = vsub.f32 %v13352_v60, %v13527_v62 }
 0x3f9   :  { %19094 = vst [vmem:[#allocation13_spill] sm:$0xff] %v13689_v39  ;;  %10978 = vrcp.f32 %v13689_v39  ;;  %v3205_v36 = vmul.f32 %v3164_v22, %v3064_v10  ;;  %v13717_v7 = vsub.f32 %v19099_v2, %v3200_v57  ;;  %v3172_v2 = vrot.slane %v13714_v38, %v13139_v29 }
 0x3fa   :  { %v3518_v49 = vmul.f32 %v3468_v18, %v13698_v43  ;;  %v3517_v23 = vmul.f32 %v3468_v18, %v13632_v30 }
 0x3fb   :  { %v13705_v5 = vpop.eup %10974  ;;  %v13708_v1 = vsub.f32 %v13289_v13, %v3205_v36  ;;  %19100 = vst [vmem:[#allocation28_spill] sm:$0xff] %v13717_v7 }
 0x3fc   :  { %v3472_v10 = vrot.slane %v13705_v5, %v13570_v0  ;;  %v3069_v18 = vpop.permute.xlu1 %3068  ;;  %3687 = vperm.xlu0 %10734, %v3518_v49   ;;  %3682 = vperm.xlu1 %10735, %v3517_v23   ;;  %v3074_v43 = vpop.permute.xlu0 %3073  ;;  %v19101_v23 = vld [vmem:[#allocation44_spill] sm:$0xff]  ;;  %v3204_v49 = vmul.f32 %v3160_v16, %v3059_v11  ;;  %v13752_v16 = vsub.f32 %v13372_v4, %v13527_v62 }
 0x3fd   :  { %19097 = vst [vmem:[#allocation26_spill] sm:$0xff] %v13708_v1  ;;  %10980 = vrcp.f32 %v13708_v1  ;;  %v3207_v13 = vmul.f32 %v3168_v12, %v3074_v43  ;;  %v13736_v52 = vsub.f32 %v19101_v23, %v3202_v9  ;;  %v3176_v23 = vrot.slane %v13733_v21, %v13139_v29 }
 0x3fe   :  { %v3520_v36 = vmul.f32 %v3472_v10, %v13717_v7  ;;  %v3519_v30 = vmul.f32 %v3472_v10, %v13651_v58 }
 0x3ff   :  { %v13724_v56 = vpop.eup %10976  ;;  %v13727_v57 = vsub.f32 %v13312_v15, %v3207_v13  ;;  %19102 = vst [vmem:[#allocation29_spill] sm:$0xff] %v13736_v52 }
 0x400   :  { %v3476_v43 = vrot.slane %v13724_v56, %v13570_v0  ;;  %v3079_v10 = vpop.permute.xlu1 %3078  ;;  %3697 = vperm.xlu0 %10734, %v3520_v36   ;;  %3692 = vperm.xlu1 %10735, %v3519_v30   ;;  %v3084_v7 = vpop.permute.xlu0 %3083  ;;  %v13755_v30 = vsub.f32 %v13361_v14, %v3204_v49  ;;  %v3180_v49 = vrot.slane %v13752_v16, %v13139_v29 }
 0x401   :  { %10982 = vrcp.f32 %v13727_v57  ;;  %v3209_v15 = vmul.f32 %v3172_v2, %v3084_v7  ;;  %v3206_v7 = vmul.f32 %v3164_v22, %v3069_v18  ;;  %v13771_v22 = vsub.f32 %v13388_v8, %v13527_v62 }
 0x402   :  { %v3522_v13 = vmul.f32 %v3476_v43, %v13736_v52  ;;  %v3521_v58 = vmul.f32 %v3476_v43, %v13670_v63  ;;  %19104 = vst [vmem:[#allocation12_spill] sm:$0xff] %v13755_v30 }
 0x403   :  { %v13743_v38 = vpop.eup %10978  ;;  %v13746_v9 = vsub.f32 %v13332_v50, %v3209_v15 }
 0x404   :  { %v3480_v11 = vrot.slane %v13743_v38, %v13570_v0  ;;  %v3089_v36 = vpop.permute.xlu1 %3088  ;;  %3707 = vperm.xlu0 %10734, %v3522_v13   ;;  %3702 = vperm.xlu1 %10735, %v3521_v58   ;;  %v3094_v43 = vpop.permute.xlu0 %3093  ;;  %v19106_v58 = vld [vmem:[#allocation49_spill] sm:$0xff] }
 0x405   :  { %19103 = vst [vmem:[#allocation11_spill] sm:$0xff] %v13746_v9  ;;  %10984 = vrcp.f32 %v13746_v9  ;;  %v3211_v50 = vmul.f32 %v3176_v23, %v3094_v43  ;;  %v13774_v18 = vsub.f32 %v19106_v58, %v3206_v7  ;;  %v3208_v43 = vmul.f32 %v3168_v12, %v3079_v10  ;;  %v19108_v12 = vld [vmem:[#allocation46_spill] sm:$0xff] }
 0x406   :  { %v3524_v15 = vmul.f32 %v3480_v11, %v13755_v30  ;;  %v3523_v52 = vmul.f32 %v3480_v11, %v13689_v39  ;;  %v3184_v58 = vrot.slane %v13771_v22, %v13139_v29 }
 0x407   :  { %v13762_v63 = vpop.eup %10980  ;;  %v13765_v14 = vsub.f32 %v13352_v60, %v3211_v50  ;;  %19107 = vst [vmem:[#allocation31_spill] sm:$0xff] %v13774_v18  ;;  %v13789_v10 = vsub.f32 %v19108_v12, %v3208_v43  ;;  %v19110_v12 = vld [vmem:[#allocation52_spill] sm:$0xff] }
 0x408   :  { %v3484_v13 = vrot.slane %v13762_v63, %v13570_v0  ;;  %v3099_v11 = vpop.permute.xlu1 %3098  ;;  %3717 = vperm.xlu0 %10734, %v3524_v15   ;;  %3712 = vperm.xlu1 %10735, %v3523_v52   ;;  %v3104_v30 = vpop.permute.xlu0 %3103  ;;  %v3210_v15 = vmul.f32 %v3172_v2, %v3089_v36 }
 0x409   :  { %19105 = vst [vmem:[#allocation30_spill] sm:$0xff] %v13765_v14  ;;  %10986 = vrcp.f32 %v13765_v14  ;;  %v3213_v60 = vmul.f32 %v3180_v49, %v3104_v30  ;;  %19109 = vst [vmem:[#allocation14_spill] sm:$0xff] %v13789_v10 }
 0x40a   :  { %v3526_v50 = vmul.f32 %v3484_v13, %v13774_v18  ;;  %v3525_v39 = vmul.f32 %v3484_v13, %v13708_v1  ;;  %v13802_v29 = vsub.f32 %v19110_v12, %v3210_v15 }
 0x40b   :  { %v13781_v62 = vpop.eup %10982  ;;  %v13784_v7 = vsub.f32 %v13372_v4, %v3213_v60 }
 0x40c   :  { %v3488_v52 = vrot.slane %v13781_v62, %v13570_v0  ;;  %v3109_v30 = vpop.permute.xlu1 %3108  ;;  %3727 = vperm.xlu0 %10734, %v3526_v50   ;;  %3722 = vperm.xlu1 %10735, %v3525_v39   ;;  %v3114_v18 = vpop.permute.xlu0 %3113  ;;  %19111 = vst [vmem:[#allocation32_spill] sm:$0xff] %v13802_v29  ;;  %v3212_v39 = vmul.f32 %v3176_v23, %v3099_v11 }
 0x40d   :  { %10988 = vrcp.f32 %v13784_v7  ;;  %v3215_v13 = vmul.f32 %v3184_v58, %v3114_v18  ;;  %v3214_v12 = vmul.f32 %v3180_v49, %v3109_v30  ;;  %v3346_v49 = vrot.slane %v13537_v59, 2 }
 0x40e   :  { %v3528_v4 = vmul.f32 %v3488_v52, %v13789_v10  ;;  %v3527_v60 = vmul.f32 %v3488_v52, %v13727_v57 }
 0x40f   :  { %v13796_v1 = vpop.eup %10984  ;;  %v13799_v43 = vsub.f32 %v13388_v8, %v3215_v13  ;;  %v19112_v8 = vld [vmem:[#allocation48_spill] sm:$0xff] }
 0x410   :  { %v3492_v2 = vrot.slane %v13796_v1, %v13570_v0  ;;  %v3119_v36 = vpop.permute.xlu1 %3118  ;;  %3737 = vperm.xlu0 %10734, %v3528_v4   ;;  %3732 = vperm.xlu1 %10735, %v3527_v60   ;;  %v3252_v18 = vpop.permute.xlu0 %3251  ;;  %v13812_v13 = vsub.f32 %v19112_v8, %v3212_v39 }
 0x411   :  { %10990 = vrcp.f32 %v13799_v43  ;;  %v3216_v8 = vmul.f32 %v3184_v58, %v3119_v36  ;;  %v3348_v58 = vrot.slane %v13556_v54, 2  ;;  %v3349_v54 = vrot.slane %v13566_v48, 2 }
 0x412   :  { %v3530_v50 = vmul.f32 %v3492_v2, %v13802_v29  ;;  %v3529_v52 = vmul.f32 %v3492_v2, %v13746_v9  ;;  %19113 = vst [vmem:[#allocation16_spill] sm:$0xff] %v13812_v13  ;;  %v3345_v2 = vrot.slane %v13531_v46, 2  ;;  %v13822_v9 = vsub.f32 %v13421_v34, %v3214_v12 }
 0x413   :  { %v13809_v10 = vpop.eup %10986  ;;  %v3347_v34 = vrot.slane %v13546_v41, 2  ;;  %v13833_v12 = vsub.f32 %v13433_v40, %v3216_v8  ;;  %v3573_v8 = vrot.slane %v13591_v3, 3  ;;  %v3351_v3 = vrot.slane %v13600_v17, 2 }
 0x414   :  { %v3496_v15 = vrot.slane %v13809_v10, %v13570_v0  ;;  %v3257_v23 = vpop.permute.xlu1 %3256  ;;  %3747 = vperm.xlu0 %10734, %v3530_v50   ;;  %3742 = vperm.xlu1 %10735, %v3529_v52   ;;  %v3262_v11 = vpop.permute.xlu0 %3261  ;;  %v3377_v52 = vmul.f32 %v3345_v2, %v3252_v18 }
 0x416   :  { %v3532_v4 = vmul.f32 %v3496_v15, %v13812_v13  ;;  %v3531_v60 = vmul.f32 %v3496_v15, %v13765_v14  ;;  %v3378_v13 = vmul.f32 %v3346_v49, %v3257_v23  ;;  %v13839_v23 = vsub.f32 %v13428_v47, %v3377_v52 }
 0x417   :  { %v13818_v29 = vpop.eup %10988 }
 0x418   :  { %v3500_v39 = vrot.slane %v13818_v29, %v13570_v0  ;;  %v3267_v30 = vpop.permute.xlu1 %3266  ;;  %3757 = vperm.xlu0 %10734, %v3532_v4   ;;  %3752 = vperm.xlu1 %10735, %v3531_v60   ;;  %v3272_v50 = vpop.permute.xlu0 %3271  ;;  %v3379_v4 = vmul.f32 %v3347_v34, %v3262_v11  ;;  %v13843_v41 = vsub.f32 %v13438_v42, %v3378_v13 }
 0x419   :  { %v3380_v40 = vmul.f32 %v3348_v58, %v3267_v30  ;;  %v3381_v11 = vmul.f32 %v3349_v54, %v3272_v50  ;;  %v3575_v30 = vrot.slane %v13629_v51, 3 }
 0x41a   :  { %v3534_v15 = vmul.f32 %v3500_v39, %v13822_v9  ;;  %v3533_v14 = vmul.f32 %v3500_v39, %v13784_v7  ;;  %v3572_v39 = vrot.slane %v13572_v28, 3  ;;  %v3605_v42 = vmul.f32 %v3573_v8, %v13843_v41 }
 0x41b   :  { %v13829_v46 = vpop.eup %10990  ;;  %v13853_v13 = vsub.f32 %v13443_v31, %v3379_v4  ;;  %v13856_v28 = vsub.f32 %v13450_v19, %v3380_v40  ;;  %v13863_v50 = vsub.f32 %v13455_v32, %v3381_v11  ;;  %v3354_v4 = vrot.slane %v13657_v55, 2  ;;  %v19117_v11 = vld [vmem:[#allocation10_spill] sm:$0xff] }
 0x41c   :  { %v3504_v59 = vrot.slane %v13829_v46, %v13570_v0  ;;  %v3277_v36 = vpop.permute.xlu1 %3276  ;;  %3767 = vperm.xlu0 %10734, %v3534_v15   ;;  %3762 = vperm.xlu1 %10735, %v3533_v14   ;;  %v3282_v18 = vpop.permute.xlu0 %3281  ;;  %v3350_v14 = vrot.slane %v13581_v24, 2  ;;  %v3604_v47 = vmul.f32 %v3572_v39, %v13839_v23  ;;  %v3574_v24 = vrot.slane %v13610_v33, 3 }
 0x41d   :  { %v3352_v15 = vrot.slane %v13619_v44, 2  ;;  %v3383_v31 = vmul.f32 %v3351_v3, %v3282_v18  ;;  %v3607_v19 = vmul.f32 %v3575_v30, %v13856_v28  ;;  %v3576_v33 = vrot.slane %v13648_v26, 3 }
 0x41e   :  { %v3536_v60 = vmul.f32 %v3504_v59, %v13833_v12  ;;  %v3535_v2 = vmul.f32 %v3504_v59, %v13799_v43  ;;  %v3382_v48 = vmul.f32 %v3350_v14, %v3277_v36  ;;  %v3606_v59 = vmul.f32 %v3574_v24, %v13853_v13 }
 0x41f   :  { %v3577_v44 = vrot.slane %v13667_v35, 3  ;;  %v3353_v36 = vrot.slane %v13638_v37, 2  ;;  %v3608_v18 = vmul.f32 %v3576_v33, %v13863_v50  ;;  %v3578_v35 = vrot.slane %v13686_v45, 3 }
 0x420   :  { %v3287_v49 = vpop.permute.xlu1 %3286  ;;  %3777 = vperm.xlu0 %10734, %v3536_v60   ;;  %3772 = vperm.xlu1 %10735, %v3535_v2   ;;  %v3292_v52 = vpop.permute.xlu0 %3291  ;;  %v13868_v58 = vsub.f32 %v13463_v25, %v3382_v48  ;;  %v13876_v60 = vsub.f32 %v13467_v6, %v3383_v31  ;;  %v3355_v37 = vrot.slane %v13676_v27, 2  ;;  %v3579_v55 = vrot.slane %v13705_v5, 3  ;;  %v19118_v48 = vld [vmem:[#allocation51_spill] sm:$0xff] }
 0x421   :  { %v3384_v17 = vmul.f32 %v3352_v15, %v3287_v49  ;;  %v3385_v26 = vmul.f32 %v3353_v36, %v3292_v52  ;;  %v3356_v39 = vrot.slane %v13695_v61, 2  ;;  %v3357_v5 = vrot.slane %v19117_v11, 2  ;;  %v19120_v15 = vld [vmem:[#allocation53_spill] sm:$0xff] }
 0x422   :  { %v3609_v25 = vmul.f32 %v3577_v44, %v13868_v58  ;;  %v3610_v6 = vmul.f32 %v3578_v35, %v13876_v60  ;;  %v3580_v61 = vrot.slane %v13724_v56, 3  ;;  %v3581_v52 = vrot.slane %v13743_v38, 3  ;;  %v19128_v35 = vld [vmem:[#allocation57_spill] sm:$0xff] }
 0x423   :  { %v13880_v40 = vsub.f32 %v13476_v53, %v3384_v17  ;;  %v13889_v49 = vsub.f32 %v13479_v20, %v3385_v26  ;;  %v3582_v56 = vrot.slane %v13762_v63, 3  ;;  %v3360_v17 = vrot.slane %v13771_v22, 2  ;;  %v19126_v26 = vld [vmem:[#allocation56_spill] sm:$0xff] }
 0x424   :  { %v3297_v34 = vpop.permute.xlu1 %3296  ;;  %3915 = vperm.xlu0 %10734, %v3605_v42   ;;  %3910 = vperm.xlu1 %10735, %v3604_v47   ;;  %v3302_v51 = vpop.permute.xlu0 %3301  ;;  %v19115_v47 = vld [vmem:[#allocation50_spill] sm:$0xff]  ;;  %v3358_v42 = vrot.slane %v13733_v21, 2  ;;  %v3583_v21 = vrot.slane %v13781_v62, 3  ;;  %v3584_v62 = vrot.slane %v13796_v1, 3 }
 0x425   :  { %v3386_v2 = vmul.f32 %v3354_v4, %v3297_v34  ;;  %v3387_v54 = vmul.f32 %v3355_v37, %v3302_v51  ;;  %v3611_v53 = vmul.f32 %v3579_v55, %v13880_v40  ;;  %19114 = vst [vmem:[#allocation18_spill] sm:$0xff] %v13889_v49  ;;  %v3612_v20 = vmul.f32 %v3580_v61, %v13889_v49  ;;  %v19122_v51 = vld [vmem:[#allocation54_spill] sm:$0xff]  ;;  %v19124_v4 = vld [vmem:[#allocation55_spill] sm:$0xff] }
 0x426   :  { %v3586_v55 = vrot.slane %v13818_v29, 3  ;;  %v19132_v29 = vld [vmem:[#allocation20_spill] sm:$0xff] }
 0x427   :  { %v13892_v45 = vsub.f32 %v19115_v47, %v3386_v2  ;;  %v13899_v3 = vsub.f32 %v19118_v48, %v3387_v54  ;;  %v19130_v54 = vld [vmem:[#allocation9_spill] sm:$0xff]  ;;  %v19135_v48 = vld [vmem:[#allocation15_spill] sm:$0xff] }
 0x428   :  { %v3307_v32 = vpop.permute.xlu1 %3306  ;;  %3925 = vperm.xlu0 %10734, %v3607_v19   ;;  %3920 = vperm.xlu1 %10735, %v3606_v59   ;;  %v3312_v8 = vpop.permute.xlu0 %3311  ;;  %v3359_v19 = vrot.slane %v13752_v16, 2  ;;  %v3585_v16 = vrot.slane %v13809_v10, 3  ;;  %vm3537_vm13 = vcmp.eq.s32.totalorder %v19130_v54, 3  ;;  %v19133_v47 = vld [vmem:[#allocation21_spill] sm:$0xff] }
 0x429   :  { %19116 = vst [vmem:[#allocation17_spill] sm:$0xff] %v13892_v45  ;;  %v3388_v27 = vmul.f32 %v3356_v39, %v3307_v32  ;;  %19119 = vst [vmem:[#allocation39_spill] sm:$0xff] %v13899_v3  ;;  %v3389_v24 = vmul.f32 %v3357_v5, %v3312_v8  ;;  %v3613_v30 = vmul.f32 %v3581_v52, %v13892_v45  ;;  %v3587_v39 = vrot.slane %v13829_v46, 3 }
 0x42a   :  { %v3614_v33 = vmul.f32 %v3582_v56, %v13899_v3  ;;  %v19131_v8 = vmov 0.0  }
 0x42b   :  { %v13904_v34 = vsub.f32 %v19120_v15, %v3388_v27  ;;  %v13912_v44 = vsub.f32 %v19122_v51, %v3389_v24 }
 0x42c   :  { %3935 = vperm.xlu0 %10734, %v3609_v25   ;;  %3930 = vperm.xlu1 %10735, %v3608_v18   ;;  %v3317_v14 = vpop.permute.xlu1 %3316  ;;  %v3322_v59 = vpop.permute.xlu0 %3321 }
 0x42d   :  { %19121 = vst [vmem:[#allocation43_spill] sm:$0xff] %v13904_v34  ;;  %v3390_v31 = vmul.f32 %v3358_v42, %v3317_v14  ;;  %19123 = vst [vmem:[#allocation47_spill] sm:$0xff] %v13912_v44  ;;  %v3615_v36 = vmul.f32 %v3583_v21, %v13904_v34  ;;  %v3391_v63 = vmul.f32 %v3359_v19, %v3322_v59  ;;  %v13934_v14 = vsel %vm3537_vm13, 1.0, %v19131_v8  ;;  %v19137_v59 = vld [vmem:[#allocation40_spill] sm:$0xff] }
 0x42e   :  { %v3616_v22 = vmul.f32 %v3584_v62, %v13912_v44  ;;  %v13944_v27 = vsub.f32 %v19133_v47, %v13934_v14  ;;  %v13953_v24 = vsub.f32 %v19135_v48, %v13934_v14 }
 0x42f   :  { %v13916_v32 = vsub.f32 %v19124_v4, %v3390_v31  ;;  %v13923_v2 = vsub.f32 %v19126_v26, %v3391_v63 }
 0x430   :  { %3945 = vperm.xlu0 %10734, %v3611_v53   ;;  %3940 = vperm.xlu1 %10735, %v3610_v6   ;;  %v3327_v38 = vpop.permute.xlu1 %3326  ;;  %v11406_v6 = vmov 4   ;;  %v13938_v53 = vsub.f32 %v19132_v29, %v13934_v14  ;;  %v3787_v42 = vrot.slane %v13944_v27, %v13570_v0  ;;  %v3791_v56 = vrot.slane %v13953_v24, %v13570_v0 }
 0x431   :  { %19125 = vst [vmem:[#allocation44_spill] sm:$0xff] %v13916_v32  ;;  %v3392_v18 = vmul.f32 %v3360_v17, %v3327_v38  ;;  %v3617_v25 = vmul.f32 %v3585_v16, %v13916_v32  ;;  %19127 = vst [vmem:[#allocation49_spill] sm:$0xff] %v13923_v2  ;;  %v3618_v1 = vmul.f32 %v3586_v55, %v13923_v2 }
 0x432   :  { %v3783_v46 = vrot.slane %v13938_v53, %v13570_v0  ;;  %v13963_v38 = vsub.f32 %v19137_v59, %v13934_v14 }
 0x433   :  { %v13926_v37 = vsub.f32 %v19128_v35, %v3392_v18 }
 0x434   :  { %3955 = vperm.xlu0 %10734, %v3613_v30   ;;  %3950 = vperm.xlu1 %10735, %v3612_v20   ;;  %v3795_v51 = vrot.slane %v13963_v38, %v13570_v0 }
 0x435   :  { %19129 = vst [vmem:[#allocation46_spill] sm:$0xff] %v13926_v37  ;;  %v3619_v10 = vmul.f32 %v3587_v39, %v13926_v37  ;;  %v19143_v39 = vld [vmem:[#allocation34_spill] sm:$0xff] }
 0x438   :  { %3965 = vperm.xlu0 %10734, %v3615_v36   ;;  %3960 = vperm.xlu1 %10735, %v3614_v33   ;;  %v19139_v36 = vld [vmem:[#allocation38_spill] sm:$0xff] }
 0x439   :  { %v13973_v4 = vsub.f32 %v19139_v36, %v13934_v14 }
 0x43b   :  { %v3799_v55 = vrot.slane %v13973_v4, %v13570_v0 }
 0x43c   :  { %3975 = vperm.xlu0 %10734, %v3617_v25   ;;  %3970 = vperm.xlu1 %10735, %v3616_v22   ;;  %v19140_v22 = vld [vmem:[#allocation7_spill] sm:$0xff] }
 0x43d   :  { %v13977_v25 = vsub.s32 4, %v19140_v22 }
 0x43f   :  { %19141 = vst [vmem:[#allocation10_spill] sm:$0xff] %v13977_v25 }
 0x440   :  { %3985 = vperm.xlu0 %10734, %v3619_v10   ;;  %3980 = vperm.xlu1 %10735, %v3618_v1   ;;  %v13988_v1 = vsub.f32 %v19143_v39, %v13934_v14  ;;  %v19144_v10 = vld [vmem:[#allocation22_spill] sm:$0xff] }
 0x444   :  { %10737 = vset.pattern.permute.xlu0 %v11406_v6  ;;  %10736 = vset.pattern.permute.xlu1 %v11406_v6 }
 0x463   :  { %v3628_v11 = vpop.permute.xlu1 %3627  ;;  %v3623_v5 = vpop.permute.xlu0 %3622 }
 0x464   :  { %v3844_v61 = vmul.f32 %v3783_v46, %v3623_v5  ;;  %v3845_v63 = vmul.f32 %v3783_v46, %v3628_v11 }
 0x466   :  { %v13947_v52 = vsub.f32 %v19132_v29, %v3844_v61  ;;  %v13991_v6 = vsub.f32 %v19144_v10, %v3845_v63 }
 0x467   :  { %v3633_v20 = vpop.permute.xlu1 %3632  ;;  %v3638_v30 = vpop.permute.xlu0 %3637 }
 0x468   :  { %19134 = vst [vmem:[#allocation52_spill] sm:$0xff] %v13947_v52  ;;  %10992 = vrcp.f32 %v13947_v52  ;;  %v3846_v15 = vmul.f32 %v3787_v42, %v3633_v20  ;;  %19145 = vst [vmem:[#allocation53_spill] sm:$0xff] %v13991_v6  ;;  %v3847_v63 = vmul.f32 %v3787_v42, %v3638_v30  ;;  %v19149_v42 = vld [vmem:[#allocation24_spill] sm:$0xff] }
 0x469   :  { %v14024_v30 = vsub.f32 %v19149_v42, %v13934_v14 }
 0x46a   :  { %v13957_v31 = vsub.f32 %v19133_v47, %v3846_v15  ;;  %v3803_v15 = vrot.slane %v13988_v1, %v13570_v0 }
 0x46b   :  { %v3643_v21 = vpop.permute.xlu1 %3642  ;;  %v3648_v19 = vpop.permute.xlu0 %3647 }
 0x46c   :  { %19136 = vst [vmem:[#allocation48_spill] sm:$0xff] %v13957_v31  ;;  %10994 = vrcp.f32 %v13957_v31  ;;  %v3848_v17 = vmul.f32 %v3791_v56, %v3643_v21 }
 0x46e   :  { %v13967_v33 = vsub.f32 %v19135_v48, %v3848_v17 }
 0x46f   :  { %v3653_v18 = vpop.permute.xlu1 %3652  ;;  %v3658_v62 = vpop.permute.xlu0 %3657 }
 0x470   :  { %19138 = vst [vmem:[#allocation50_spill] sm:$0xff] %v13967_v33  ;;  %10996 = vrcp.f32 %v13967_v33  ;;  %v3850_v16 = vmul.f32 %v3795_v51, %v3653_v18 }
 0x472   :  { %v13979_v26 = vpop.eup %10992  ;;  %v13982_v35 = vsub.f32 %v19137_v59, %v3850_v16  ;;  %v19147_v59 = vld [vmem:[#allocation45_spill] sm:$0xff] }
 0x473   :  { %v3663_v29 = vpop.permute.xlu1 %3662  ;;  %v3668_v46 = vpop.permute.xlu0 %3667  ;;  %v4103_v47 = vrot.slane %v13979_v26, %v13977_v25  ;;  %v14007_v21 = vsub.f32 %v19147_v59, %v13934_v14 }
 0x474   :  { %19142 = vst [vmem:[#allocation51_spill] sm:$0xff] %v13982_v35  ;;  %10998 = vrcp.f32 %v13982_v35  ;;  %v3852_v11 = vmul.f32 %v3799_v55, %v3663_v29 }
 0x475   :  { %v4165_v5 = vmul.f32 %v4103_v47, %v13991_v6  ;;  %v4164_v61 = vmul.f32 %v4103_v47, %v13947_v52  ;;  %v3849_v6 = vmul.f32 %v3791_v56, %v3648_v19  ;;  %v19153_v56 = vld [vmem:[#allocation36_spill] sm:$0xff] }
 0x476   :  { %v13998_v48 = vpop.eup %10994  ;;  %v14001_v20 = vsub.f32 %v19139_v36, %v3852_v11  ;;  %v14020_v11 = vrot.slane %v14007_v21, %v13570_v0  ;;  %v14046_v19 = vsub.f32 %v19153_v56, %v13934_v14 }
 0x477   :  { %v4107_v17 = vrot.slane %v13998_v48, %v13977_v25  ;;  %v3673_v18 = vpop.permute.xlu1 %3672  ;;  %4286 = vperm.xlu0 %10737, %v4165_v5   ;;  %4281 = vperm.xlu1 %10736, %v4164_v61   ;;  %v3678_v16 = vpop.permute.xlu0 %3677  ;;  %v19150_v5 = vld [vmem:[#allocation41_spill] sm:$0xff] }
 0x478   :  { %19146 = vst [vmem:[#allocation54_spill] sm:$0xff] %v14001_v20  ;;  %11000 = vrcp.f32 %v14001_v20  ;;  %v3854_v10 = vmul.f32 %v3803_v15, %v3673_v18  ;;  %v14027_v61 = vsub.f32 %v19150_v5, %v3847_v63  ;;  %v14042_v5 = vrot.slane %v14024_v30, %v13570_v0 }
 0x479   :  { %v4166_v36 = vmul.f32 %v4107_v17, %v13957_v31 }
 0x47a   :  { %v14013_v29 = vpop.eup %10996  ;;  %v14016_v47 = vsub.f32 %v19143_v39, %v3854_v10  ;;  %19151 = vst [vmem:[#allocation56_spill] sm:$0xff] %v14027_v61  ;;  %v4167_v10 = vmul.f32 %v4107_v17, %v14027_v61  ;;  %v3851_v17 = vmul.f32 %v3795_v51, %v3658_v62  ;;  %v14064_v51 = vrot.slane %v14046_v19, %v13570_v0 }
 0x47b   :  { %v4111_v18 = vrot.slane %v14013_v29, %v13977_v25  ;;  %v3683_v22 = vpop.permute.xlu1 %3682  ;;  %4291 = vperm.xlu1 %10736, %v4166_v36   ;;  %v3688_v31 = vpop.permute.xlu0 %3687  ;;  %v19154_v36 = vld [vmem:[#allocation23_spill] sm:$0xff] }
 0x47c   :  { %19148 = vst [vmem:[#allocation55_spill] sm:$0xff] %v14016_v47  ;;  %11002 = vrcp.f32 %v14016_v47  ;;  %v3856_v39 = vmul.f32 %v14020_v11, %v3683_v22  ;;  %v14049_v54 = vsub.f32 %v19154_v36, %v3849_v6 }
 0x47d   :  { %v4168_v52 = vmul.f32 %v4111_v18, %v13967_v33 }
 0x47e   :  { %v14035_v8 = vpop.eup %10998  ;;  %v14038_v63 = vsub.f32 %v19147_v59, %v3856_v39  ;;  %19155 = vst [vmem:[#allocation20_spill] sm:$0xff] %v14049_v54  ;;  %v4169_v33 = vmul.f32 %v4111_v18, %v14049_v54  ;;  %v3853_v18 = vmul.f32 %v3799_v55, %v3668_v46  ;;  %v19162_v46 = vld [vmem:[#allocation25_spill] sm:$0xff] }
 0x47f   :  { %v4115_v22 = vrot.slane %v14035_v8, %v13977_v25  ;;  %v3693_v61 = vpop.permute.xlu1 %3692  ;;  %4301 = vperm.xlu0 %10737, %v4168_v52   ;;  %4296 = vperm.xlu1 %10736, %v4167_v10   ;;  %v3698_v59 = vpop.permute.xlu0 %3697  ;;  %v19157_v52 = vld [vmem:[#allocation13_spill] sm:$0xff]  ;;  %v19158_v10 = vld [vmem:[#allocation35_spill] sm:$0xff] }
 0x480   :  { %19152 = vst [vmem:[#allocation57_spill] sm:$0xff] %v14038_v63  ;;  %11004 = vrcp.f32 %v14038_v63  ;;  %v3858_v39 = vmul.f32 %v14042_v5, %v3693_v61  ;;  %v14068_v62 = vsub.f32 %v19157_v52, %v13934_v14  ;;  %v14071_v36 = vsub.f32 %v19158_v10, %v3851_v17 }
 0x481   :  { %v4170_v37 = vmul.f32 %v4115_v22, %v13982_v35  ;;  %v14093_v10 = vsub.f32 %v19162_v46, %v3853_v18 }
 0x482   :  { %v14057_v2 = vpop.eup %11000  ;;  %v14060_v6 = vsub.f32 %v19149_v42, %v3858_v39  ;;  %19159 = vst [vmem:[#allocation15_spill] sm:$0xff] %v14071_v36  ;;  %v4171_v35 = vmul.f32 %v4115_v22, %v14071_v36  ;;  %v14086_v55 = vrot.slane %v14068_v62, %v13570_v0  ;;  %v3855_v22 = vmul.f32 %v3803_v15, %v3678_v16 }
 0x483   :  { %v4119_v61 = vrot.slane %v14057_v2, %v13977_v25  ;;  %v3703_v54 = vpop.permute.xlu1 %3702  ;;  %4311 = vperm.xlu0 %10737, %v4170_v37   ;;  %4306 = vperm.xlu1 %10736, %v4169_v33   ;;  %v3708_v42 = vpop.permute.xlu0 %3707  ;;  %v19161_v37 = vld [vmem:[#allocation26_spill] sm:$0xff]  ;;  %19163 = vst [vmem:[#allocation38_spill] sm:$0xff] %v14093_v10 }
 0x484   :  { %19156 = vst [vmem:[#allocation21_spill] sm:$0xff] %v14060_v6  ;;  %11006 = vrcp.f32 %v14060_v6  ;;  %v3860_v39 = vmul.f32 %v14064_v51, %v3703_v54  ;;  %v14090_v33 = vsub.f32 %v19161_v37, %v13934_v14 }
 0x485   :  { %v4172_v32 = vmul.f32 %v4119_v61, %v14001_v20  ;;  %v4173_v20 = vmul.f32 %v4119_v61, %v14093_v10  ;;  %v3857_v61 = vmul.f32 %v14020_v11, %v3688_v31  ;;  %v19172_v11 = vld [vmem:[#allocation19_spill] sm:$0xff] }
 0x486   :  { %v14079_v44 = vpop.eup %11002  ;;  %v14082_v17 = vsub.f32 %v19153_v56, %v3860_v39  ;;  %v14108_v15 = vrot.slane %v14090_v33, %v13570_v0 }
 0x487   :  { %v4123_v54 = vrot.slane %v14079_v44, %v13977_v25  ;;  %v3713_v36 = vpop.permute.xlu1 %3712  ;;  %4321 = vperm.xlu0 %10737, %v4172_v32   ;;  %4316 = vperm.xlu1 %10736, %v4171_v35   ;;  %v3718_v56 = vpop.permute.xlu0 %3717  ;;  %v14112_v32 = vsub.f32 %v13727_v57, %v13934_v14  ;;  %v19166_v35 = vld [vmem:[#allocation37_spill] sm:$0xff] }
 0x488   :  { %19160 = vst [vmem:[#allocation40_spill] sm:$0xff] %v14082_v17  ;;  %11008 = vrcp.f32 %v14082_v17  ;;  %v3862_v39 = vmul.f32 %v14086_v55, %v3713_v36  ;;  %v14115_v16 = vsub.f32 %v19166_v35, %v3855_v22  ;;  %v14138_v35 = vsub.f32 %v19172_v11, %v3857_v61 }
 0x489   :  { %v4174_v34 = vmul.f32 %v4123_v54, %v14016_v47  ;;  %19165 = vst [vmem:[#allocation22_spill] sm:$0xff] %v14112_v32  ;;  %v14131_v31 = vrot.slane %v14112_v32, %v13570_v0 }
 0x48a   :  { %v14101_v3 = vpop.eup %11004  ;;  %v14104_v18 = vsub.f32 %v19157_v52, %v3862_v39  ;;  %19167 = vst [vmem:[#allocation45_spill] sm:$0xff] %v14115_v16  ;;  %v4175_v10 = vmul.f32 %v4123_v54, %v14115_v16  ;;  %19173 = vst [vmem:[#allocation23_spill] sm:$0xff] %v14138_v35 }
 0x48b   :  { %v4127_v36 = vrot.slane %v14101_v3, %v13977_v25  ;;  %v3723_v46 = vpop.permute.xlu1 %3722  ;;  %4331 = vperm.xlu0 %10737, %v4174_v34   ;;  %4326 = vperm.xlu1 %10736, %v4173_v20   ;;  %v3728_v52 = vpop.permute.xlu0 %3727  ;;  %v19170_v34 = vld [vmem:[#allocation11_spill] sm:$0xff] }
 0x48c   :  { %19164 = vst [vmem:[#allocation34_spill] sm:$0xff] %v14104_v18  ;;  %11010 = vrcp.f32 %v14104_v18  ;;  %v3864_v39 = vmul.f32 %v14108_v15, %v3723_v46  ;;  %v14135_v20 = vsub.f32 %v19170_v34, %v13934_v14  ;;  %v3859_v46 = vmul.f32 %v14042_v5, %v3698_v59 }
 0x48d   :  { %v4176_v47 = vmul.f32 %v4127_v36, %v14038_v63  ;;  %v4177_v63 = vmul.f32 %v4127_v36, %v14138_v35  ;;  %v3861_v36 = vmul.f32 %v14064_v51, %v3708_v42  ;;  %v14176_v51 = vsub.f32 %v13784_v7, %v13934_v14 }
 0x48e   :  { %v14124_v45 = vpop.eup %11006  ;;  %v14127_v22 = vsub.f32 %v19161_v37, %v3864_v39  ;;  %19171 = vst [vmem:[#allocation36_spill] sm:$0xff] %v14135_v20  ;;  %v3831_v5 = vrot.slane %v14135_v20, %v13570_v0 }
 0x48f   :  { %19168 = vst [vmem:[#allocation24_spill] sm:$0xff] %v14124_v45  ;;  %v4131_v54 = vrot.slane %v14124_v45, %v13977_v25  ;;  %v3733_v16 = vpop.permute.xlu1 %3732  ;;  %4341 = vperm.xlu0 %10737, %v4176_v47   ;;  %4336 = vperm.xlu1 %10736, %v4175_v10   ;;  %v3738_v37 = vpop.permute.xlu0 %3737  ;;  %v19175_v47 = vld [vmem:[#allocation30_spill] sm:$0xff]  ;;  %v19177_v10 = vld [vmem:[#allocation28_spill] sm:$0xff] }
 0x490   :  { %19169 = vst [vmem:[#allocation41_spill] sm:$0xff] %v14127_v22  ;;  %11012 = vrcp.f32 %v14127_v22  ;;  %v3866_v39 = vmul.f32 %v14131_v31, %v3733_v16  ;;  %v14156_v59 = vsub.f32 %v19175_v47, %v13934_v14  ;;  %v14159_v11 = vsub.f32 %v19177_v10, %v3859_v46 }
 0x491   :  { %v4178_v32 = vmul.f32 %v4131_v54, %v14060_v6 }
 0x492   :  { %v14147_v49 = vpop.eup %11008  ;;  %v14150_v61 = vsub.f32 %v13727_v57, %v3866_v39  ;;  %19176 = vst [vmem:[#allocation35_spill] sm:$0xff] %v14156_v59  ;;  %19178 = vst [vmem:[#allocation26_spill] sm:$0xff] %v14159_v11  ;;  %v4179_v6 = vmul.f32 %v4131_v54, %v14159_v11  ;;  %v3835_v10 = vrot.slane %v14156_v59, %v13570_v0 }
 0x493   :  { %v4135_v16 = vrot.slane %v14147_v49, %v13977_v25  ;;  %v3743_v35 = vpop.permute.xlu1 %3742  ;;  %4351 = vperm.xlu0 %10737, %v4178_v32   ;;  %4346 = vperm.xlu1 %10736, %v4177_v63   ;;  %v3748_v57 = vpop.permute.xlu0 %3747  ;;  %v19180_v63 = vld [vmem:[#allocation29_spill] sm:$0xff] }
 0x494   :  { %19174 = vst [vmem:[#allocation13_spill] sm:$0xff] %v14150_v61  ;;  %11014 = vrcp.f32 %v14150_v61  ;;  %v3868_v39 = vmul.f32 %v3831_v5, %v3743_v35  ;;  %v14179_v42 = vsub.f32 %v19180_v63, %v3861_v36  ;;  %v3863_v35 = vmul.f32 %v14086_v55, %v3718_v56 }
 0x495   :  { %v4180_v20 = vmul.f32 %v4135_v16, %v14082_v17  ;;  %v3839_v63 = vrot.slane %v14176_v51, %v13570_v0  ;;  %v14196_v55 = vsub.f32 %v13799_v43, %v13934_v14 }
 0x496   :  { %v14167_v45 = vpop.eup %11010  ;;  %v14170_v46 = vsub.f32 %v19170_v34, %v3868_v39  ;;  %19181 = vst [vmem:[#allocation37_spill] sm:$0xff] %v14179_v42  ;;  %v4181_v11 = vmul.f32 %v4135_v16, %v14179_v42  ;;  %v3865_v16 = vmul.f32 %v14108_v15, %v3728_v52  ;;  %v19184_v15 = vld [vmem:[#allocation31_spill] sm:$0xff] }
 0x497   :  { %v4139_v32 = vrot.slane %v14167_v45, %v13977_v25  ;;  %v3753_v54 = vpop.permute.xlu1 %3752  ;;  %4361 = vperm.xlu0 %10737, %v4180_v20   ;;  %4356 = vperm.xlu1 %10736, %v4179_v6   ;;  %v3758_v34 = vpop.permute.xlu0 %3757  ;;  %v19182_v6 = vld [vmem:[#allocation12_spill] sm:$0xff] }
 0x498   :  { %19179 = vst [vmem:[#allocation25_spill] sm:$0xff] %v14170_v46  ;;  %11016 = vrcp.f32 %v14170_v46  ;;  %v3870_v39 = vmul.f32 %v3835_v10, %v3753_v54  ;;  %v14199_v56 = vsub.f32 %v19182_v6, %v3863_v35  ;;  %v3843_v6 = vrot.slane %v14196_v55, %v13570_v0 }
 0x499   :  { %v4182_v17 = vmul.f32 %v4139_v32, %v14104_v18  ;;  %v14215_v52 = vsub.f32 %v19184_v15, %v3865_v16  ;;  %v19186_v15 = vld [vmem:[#allocation14_spill] sm:$0xff] }
 0x49a   :  { %v14187_v59 = vpop.eup %11012  ;;  %v14190_v36 = vsub.f32 %v19175_v47, %v3870_v39  ;;  %19183 = vst [vmem:[#allocation11_spill] sm:$0xff] %v14199_v56  ;;  %v4183_v42 = vmul.f32 %v4139_v32, %v14199_v56 }
 0x49b   :  { %v4143_v20 = vrot.slane %v14187_v59, %v13977_v25  ;;  %v3763_v54 = vpop.permute.xlu1 %3762  ;;  %4371 = vperm.xlu0 %10737, %v4182_v17   ;;  %4366 = vperm.xlu1 %10736, %v4181_v11   ;;  %v3768_v47 = vpop.permute.xlu0 %3767  ;;  %19185 = vst [vmem:[#allocation19_spill] sm:$0xff] %v14215_v52  ;;  %v3867_v11 = vmul.f32 %v14131_v31, %v3738_v37 }
 0x49c   :  { %11018 = vrcp.f32 %v14190_v36  ;;  %v3872_v39 = vmul.f32 %v3839_v63, %v3763_v54  ;;  %v3869_v37 = vmul.f32 %v3831_v5, %v3748_v57 }
 0x49d   :  { %v4184_v14 = vmul.f32 %v4143_v20, %v14127_v22  ;;  %v14229_v22 = vsub.f32 %v19186_v15, %v3867_v11  ;;  %v3871_v15 = vmul.f32 %v3835_v10, %v3758_v34 }
 0x49e   :  { %v14207_v18 = vpop.eup %11014  ;;  %v14210_v35 = vsub.f32 %v13784_v7, %v3872_v39  ;;  %v4185_v7 = vmul.f32 %v4143_v20, %v14215_v52 }
 0x49f   :  { %v4147_v17 = vrot.slane %v14207_v18, %v13977_v25  ;;  %v3773_v54 = vpop.permute.xlu1 %3772  ;;  %4381 = vperm.xlu0 %10737, %v4184_v14   ;;  %4376 = vperm.xlu1 %10736, %v4183_v42   ;;  %v3778_v32 = vpop.permute.xlu0 %3777  ;;  %19187 = vst [vmem:[#allocation30_spill] sm:$0xff] %v14229_v22 }
 0x4a0   :  { %11020 = vrcp.f32 %v14210_v35  ;;  %v3874_v56 = vmul.f32 %v3843_v6, %v3773_v54 }
 0x4a1   :  { %v4186_v39 = vmul.f32 %v4147_v17, %v14150_v61  ;;  %v4187_v20 = vmul.f32 %v4147_v17, %v14229_v22  ;;  %v19190_v22 = vld [vmem:[#allocation16_spill] sm:$0xff]  ;;  %v4004_v61 = vrot.slane %v13938_v53, 3  ;;  %v3875_v53 = vmul.f32 %v3843_v6, %v3778_v32 }
 0x4a2   :  { %v14223_v0 = vpop.eup %11016  ;;  %v14226_v16 = vsub.f32 %v13799_v43, %v3874_v56  ;;  %v19188_v43 = vld [vmem:[#allocation32_spill] sm:$0xff]  ;;  %v4008_v6 = vrot.slane %v13973_v4, 3  ;;  %v4233_v4 = vrot.slane %v14013_v29, 4 }
 0x4a3   :  { %v4151_v31 = vrot.slane %v14223_v0, %v13977_v25  ;;  %v3911_v42 = vpop.permute.xlu1 %3910  ;;  %4391 = vperm.xlu0 %10737, %v4186_v39   ;;  %4386 = vperm.xlu1 %10736, %v4185_v7   ;;  %v3916_v14 = vpop.permute.xlu0 %3915  ;;  %v14239_v56 = vsub.f32 %v19188_v43, %v3869_v37  ;;  %v3873_v43 = vmul.f32 %v3839_v63, %v3768_v47  ;;  %v4006_v47 = vrot.slane %v13953_v24, 3 }
 0x4a4   :  { %11022 = vrcp.f32 %v14226_v16  ;;  %v4231_v24 = vrot.slane %v13979_v26, 4  ;;  %v4232_v26 = vrot.slane %v13998_v48, 4  ;;  %v4234_v48 = vrot.slane %v14035_v8, 4 }
 0x4a5   :  { %v4188_v54 = vmul.f32 %v4151_v31, %v14170_v46  ;;  %19189 = vst [vmem:[#allocation28_spill] sm:$0xff] %v14239_v56  ;;  %v4189_v7 = vmul.f32 %v4151_v31, %v14239_v56  ;;  %v14248_v46 = vsub.f32 %v19190_v22, %v3871_v15  ;;  %v4036_v31 = vmul.f32 %v4004_v61, %v3911_v42 }
 0x4a6   :  { %v14236_v52 = vpop.eup %11018  ;;  %v4005_v22 = vrot.slane %v13944_v27, 3  ;;  %v14259_v15 = vsub.f32 %v13822_v9, %v3873_v43  ;;  %v4007_v9 = vrot.slane %v13963_v38, 3 }
 0x4a7   :  { %v4155_v11 = vrot.slane %v14236_v52, %v13977_v25  ;;  %v3921_v5 = vpop.permute.xlu1 %3920  ;;  %4401 = vperm.xlu0 %10737, %v4188_v54   ;;  %4396 = vperm.xlu1 %10736, %v4187_v20   ;;  %v3926_v57 = vpop.permute.xlu0 %3925  ;;  %19191 = vst [vmem:[#allocation29_spill] sm:$0xff] %v14248_v46  ;;  %v14266_v42 = vsub.f32 %v13839_v23, %v4036_v31  ;;  %v4010_v31 = vrot.slane %v14007_v21, 3  ;;  %v4235_v21 = vrot.slane %v14057_v2, 4 }
 0x4a8   :  { %v4039_v23 = vmul.f32 %v4007_v9, %v3926_v57  ;;  %v4236_v2 = vrot.slane %v14079_v44, 4 }
 0x4a9   :  { %v4190_v39 = vmul.f32 %v4155_v11, %v14190_v36  ;;  %v4191_v20 = vmul.f32 %v4155_v11, %v14248_v46  ;;  %v4037_v11 = vmul.f32 %v4005_v22, %v3916_v14  ;;  %v14271_v46 = vsub.f32 %v13833_v12, %v3875_v53 }
 0x4aa   :  { %v14245_v17 = vpop.eup %11020 }
 0x4ab   :  { %v4159_v37 = vrot.slane %v14245_v17, %v13977_v25  ;;  %v3931_v10 = vpop.permute.xlu1 %3930  ;;  %4411 = vperm.xlu0 %10737, %v4190_v39   ;;  %4406 = vperm.xlu1 %10736, %v4189_v7   ;;  %v3936_v34 = vpop.permute.xlu0 %3935  ;;  %v4038_v39 = vmul.f32 %v4006_v47, %v3921_v5  ;;  %v14276_v32 = vsub.f32 %v13843_v41, %v4037_v11 }
 0x4ac   :  { %v4040_v12 = vmul.f32 %v4008_v6, %v3931_v10  ;;  %v14288_v41 = vsub.f32 %v13856_v28, %v4039_v23  ;;  %v4012_v28 = vrot.slane %v14046_v19, 3  ;;  %v4237_v19 = vrot.slane %v14101_v3, 4  ;;  %v19194_v3 = vld [vmem:[#allocation24_spill] sm:$0xff] }
 0x4ad   :  { %v4192_v54 = vmul.f32 %v4159_v37, %v14210_v35  ;;  %v4193_v61 = vmul.f32 %v4159_v37, %v14259_v15  ;;  %v4263_v37 = vmul.f32 %v4231_v24, %v14266_v42  ;;  %v14281_v38 = vsub.f32 %v13853_v13, %v4038_v39  ;;  %v19193_v24 = vld [vmem:[#allocation22_spill] sm:$0xff] }
 0x4ae   :  { %v14255_v56 = vpop.eup %11022  ;;  %v4264_v22 = vmul.f32 %v4232_v26, %v14276_v32  ;;  %v14293_v10 = vsub.f32 %v13863_v50, %v4040_v12  ;;  %v4015_v6 = vrot.slane %v19193_v24, 3  ;;  %v4238_v23 = vrot.slane %v19194_v3, 4 }
 0x4af   :  { %v4163_v63 = vrot.slane %v14255_v56, %v13977_v25  ;;  %v3941_v7 = vpop.permute.xlu1 %3940  ;;  %4421 = vperm.xlu0 %10737, %v4192_v54   ;;  %4416 = vperm.xlu1 %10736, %v4191_v20   ;;  %v3946_v43 = vpop.permute.xlu0 %3945  ;;  %v4009_v20 = vrot.slane %v13988_v1, 3  ;;  %v4265_v13 = vmul.f32 %v4233_v4, %v14281_v38 }
 0x4b0   :  { %v4042_v1 = vmul.f32 %v4010_v31, %v3941_v7  ;;  %v4267_v50 = vmul.f32 %v4235_v21, %v14293_v10  ;;  %v19197_v31 = vld [vmem:[#allocation39_spill] sm:$0xff] }
 0x4b1   :  { %v4194_v27 = vmul.f32 %v4163_v63, %v14226_v16  ;;  %v4195_v5 = vmul.f32 %v4163_v63, %v14271_v46  ;;  %v4041_v57 = vmul.f32 %v4009_v20, %v3936_v34  ;;  %v4011_v63 = vrot.slane %v14024_v30, 3 }
 0x4b2   :  { %v4266_v34 = vmul.f32 %v4234_v48, %v14288_v41  ;;  %v14305_v47 = vsub.f32 %v13876_v60, %v4042_v1  ;;  %v4013_v30 = vrot.slane %v14068_v62, 3  ;;  %v19199_v1 = vld [vmem:[#allocation35_spill] sm:$0xff] }
 0x4b3   :  { %4431 = vperm.xlu0 %10737, %v4194_v27   ;;  %4426 = vperm.xlu1 %10736, %v4193_v61   ;;  %v3951_v14 = vpop.permute.xlu1 %3950  ;;  %v3956_v54 = vpop.permute.xlu0 %3955  ;;  %v14301_v53 = vsub.f32 %v13868_v58, %v4041_v57  ;;  %v4043_v8 = vmul.f32 %v4011_v63, %v3946_v43  ;;  %v4014_v61 = vrot.slane %v14090_v33, 3  ;;  %v19192_v43 = vld [vmem:[#allocation18_spill] sm:$0xff]  ;;  %v4239_v33 = vrot.slane %v14147_v49, 4  ;;  %v19200_v63 = vld [vmem:[#allocation43_spill] sm:$0xff] }
 0x4b4   :  { %v4044_v7 = vmul.f32 %v4012_v28, %v3951_v14  ;;  %v4045_v39 = vmul.f32 %v4013_v30, %v3956_v54  ;;  %v4269_v60 = vmul.f32 %v4237_v19, %v14305_v47  ;;  %v19195_v14 = vld [vmem:[#allocation36_spill] sm:$0xff]  ;;  %v4017_v48 = vrot.slane %v19199_v1, 3 }
 0x4b5   :  { %v4268_v58 = vmul.f32 %v4236_v2, %v14301_v53  ;;  %v14314_v9 = vsub.f32 %v13880_v40, %v4043_v8  ;;  %v4243_v30 = vrot.slane %v14223_v0, 4 }
 0x4b6   :  { %v14317_v44 = vsub.f32 %v19192_v43, %v4044_v7  ;;  %v4245_v43 = vrot.slane %v14245_v17, 4  ;;  %v19211_v17 = vmov 0.0  }
 0x4b7   :  { %4569 = vperm.xlu0 %10737, %v4263_v37   ;;  %4436 = vperm.xlu1 %10736, %v4195_v5   ;;  %v3961_v29 = vpop.permute.xlu1 %3960  ;;  %v3966_v11 = vpop.permute.xlu0 %3965  ;;  %v4016_v5 = vrot.slane %v19195_v14, 3  ;;  %v19196_v37 = vld [vmem:[#allocation17_spill] sm:$0xff]  ;;  %v4270_v26 = vmul.f32 %v4238_v23, %v14314_v9  ;;  %v11407_v23 = vmov 5   ;;  %v19212_v14 = vld [vmem:[#allocation52_spill] sm:$0xff] }
 0x4b8   :  { %v4046_v62 = vmul.f32 %v4014_v61, %v3961_v29  ;;  %v14324_v12 = vsub.f32 %v19196_v37, %v4045_v39  ;;  %v4047_v20 = vmul.f32 %v4015_v6, %v3966_v11  ;;  %v4271_v4 = vmul.f32 %v4239_v33, %v14317_v44  ;;  %v19204_v61 = vld [vmem:[#allocation44_spill] sm:$0xff]  ;;  %v19206_v39 = vld [vmem:[#allocation49_spill] sm:$0xff] }
 0x4b9   :  { %v4018_v29 = vrot.slane %v14176_v51, 3  ;;  %v4019_v51 = vrot.slane %v14196_v55, 3  ;;  %v4246_v6 = vrot.slane %v14255_v56, 4  ;;  %v19213_v37 = vld [vmem:[#allocation48_spill] sm:$0xff] }
 0x4ba   :  { %v14329_v57 = vsub.f32 %v19197_v31, %v4046_v62  ;;  %v14337_v28 = vsub.f32 %v19200_v63, %v4047_v20  ;;  %v19208_v62 = vld [vmem:[#allocation46_spill] sm:$0xff] }
 0x4bb   :  { %4579 = vperm.xlu0 %10737, %v4265_v13   ;;  %4574 = vperm.xlu1 %10736, %v4264_v22   ;;  %v3971_v27 = vpop.permute.xlu1 %3970  ;;  %v3976_v40 = vpop.permute.xlu0 %3975  ;;  %v4240_v22 = vrot.slane %v14167_v45, 4  ;;  %v4241_v13 = vrot.slane %v14187_v59, 4  ;;  %v4242_v59 = vrot.slane %v14207_v18, 4  ;;  %v4244_v18 = vrot.slane %v14236_v52, 4  ;;  %v19210_v52 = vld [vmem:[#allocation9_spill] sm:$0xff] }
 0x4bc   :  { %19198 = vst [vmem:[#allocation12_spill] sm:$0xff] %v14329_v57  ;;  %v4048_v54 = vmul.f32 %v4016_v5, %v3971_v27  ;;  %19201 = vst [vmem:[#allocation31_spill] sm:$0xff] %v14337_v28  ;;  %v4049_v45 = vmul.f32 %v4017_v48, %v3976_v40  ;;  %vm4196_vm14 = vcmp.eq.s32.totalorder %v19210_v52, 4 }
 0x4bd   :  { %v4272_v21 = vmul.f32 %v4240_v22, %v14324_v12  ;;  %v4274_v11 = vmul.f32 %v4242_v59, %v14337_v28  ;;  %v14365_v33 = vsel %vm4196_vm14, 1.0, %v19211_v17 }
 0x4be   :  { %v14369_v5 = vsub.f32 %v19212_v14, %v14365_v33  ;;  %v14375_v20 = vsub.f32 %v19213_v37, %v14365_v33 }
 0x4bf   :  { %4589 = vperm.xlu0 %10737, %v4267_v50   ;;  %4584 = vperm.xlu1 %10736, %v4266_v34   ;;  %v3981_v49 = vpop.permute.xlu1 %3980  ;;  %v4273_v34 = vmul.f32 %v4241_v13, %v14329_v57  ;;  %v19202_v50 = vld [vmem:[#allocation47_spill] sm:$0xff]  ;;  %v3986_v2 = vpop.permute.xlu0 %3985 }
 0x4c0   :  { %v14341_v8 = vsub.f32 %v19202_v50, %v4048_v54  ;;  %v4050_v7 = vmul.f32 %v4018_v29, %v3981_v49  ;;  %v4442_v56 = vrot.slane %v14369_v5, %v13977_v25  ;;  %v4446_v31 = vrot.slane %v14375_v20, %v13977_v25  ;;  %v19215_v54 = vld [vmem:[#allocation50_spill] sm:$0xff] }
 0x4c1   :  { %v14384_v22 = vsub.f32 %v19215_v54, %v14365_v33 }
 0x4c2   :  { %19203 = vst [vmem:[#allocation14_spill] sm:$0xff] %v14341_v8  ;;  %v4275_v19 = vmul.f32 %v4243_v30, %v14341_v8  ;;  %v14352_v27 = vsub.f32 %v19206_v39, %v4050_v7  ;;  %v19220_v39 = vld [vmem:[#allocation7_spill] sm:$0xff] }
 0x4c3   :  { %4599 = vperm.xlu0 %10737, %v4269_v60   ;;  %4594 = vperm.xlu1 %10736, %v4268_v58   ;;  %v14349_v58 = vsub.f32 %v19204_v61, %v4049_v45  ;;  %v4051_v60 = vmul.f32 %v4019_v51, %v3986_v2  ;;  %v4450_v29 = vrot.slane %v14384_v22, %v13977_v25  ;;  %v19219_v2 = vld [vmem:[#allocation54_spill] sm:$0xff] }
 0x4c4   :  { %19207 = vst [vmem:[#allocation16_spill] sm:$0xff] %v14352_v27  ;;  %v4277_v55 = vmul.f32 %v4245_v43, %v14352_v27  ;;  %v14404_v30 = vsub.f32 %v19219_v2, %v14365_v33 }
 0x4c5   :  { %19205 = vst [vmem:[#allocation32_spill] sm:$0xff] %v14349_v58  ;;  %v4276_v0 = vmul.f32 %v4244_v18, %v14349_v58  ;;  %v14359_v24 = vsub.f32 %v19208_v62, %v4051_v60  ;;  %v14408_v60 = vsub.s32 5, %v19220_v39 }
 0x4c7   :  { %4609 = vperm.xlu0 %10737, %v4271_v4   ;;  %4604 = vperm.xlu1 %10736, %v4270_v26   ;;  %19209 = vst [vmem:[#allocation18_spill] sm:$0xff] %v14359_v24  ;;  %v4278_v3 = vmul.f32 %v4246_v6, %v14359_v24  ;;  %19221 = vst [vmem:[#allocation17_spill] sm:$0xff] %v14408_v60 }
 0x4cb   :  { %4619 = vperm.xlu0 %10737, %v4273_v34   ;;  %4614 = vperm.xlu1 %10736, %v4272_v21   ;;  %v19217_v21 = vld [vmem:[#allocation51_spill] sm:$0xff] }
 0x4cc   :  { %v14394_v63 = vsub.f32 %v19217_v21, %v14365_v33 }
 0x4ce   :  { %v4454_v59 = vrot.slane %v14394_v63, %v13977_v25 }
 0x4cf   :  { %4629 = vperm.xlu0 %10737, %v4275_v19   ;;  %4624 = vperm.xlu1 %10736, %v4274_v11  }
 0x4d3   :  { %4639 = vperm.xlu0 %10737, %v4277_v55   ;;  %4634 = vperm.xlu1 %10736, %v4276_v0   ;;  %v4458_v0 = vrot.slane %v14404_v30, %v13977_v25  ;;  %v19223_v55 = vld [vmem:[#allocation55_spill] sm:$0xff] }
 0x4d4   :  { %v14419_v62 = vsub.f32 %v19223_v55, %v14365_v33 }
 0x4d7   :  { %4644 = vperm.xlu1 %10736, %v4278_v3   ;;  %10738 = vset.pattern.permute.xlu0 %v11407_v23  ;;  %v19224_v3 = vld [vmem:[#allocation53_spill] sm:$0xff] }
 0x4db   :  { %10739 = vset.pattern.permute.xlu1 %v11407_v23 }
 0x4f6   :  { %v4282_v40 = vpop.permute.xlu1 %4281  ;;  %v4287_v49 = vpop.permute.xlu0 %4286 }
 0x4f7   :  { %v4503_v26 = vmul.f32 %v4442_v56, %v4282_v40  ;;  %v4504_v51 = vmul.f32 %v4442_v56, %v4287_v49 }
 0x4f9   :  { %v14378_v4 = vsub.f32 %v19212_v14, %v4503_v26  ;;  %v14424_v23 = vsub.f32 %v19224_v3, %v4504_v51 }
 0x4fa   :  { %v4292_v13 = vpop.permute.xlu1 %4291 }
 0x4fb   :  { %19214 = vst [vmem:[#allocation22_spill] sm:$0xff] %v14378_v4  ;;  %11024 = vrcp.f32 %v14378_v4  ;;  %v4505_v1 = vmul.f32 %v4446_v31, %v4292_v13  ;;  %19225 = vst [vmem:[#allocation35_spill] sm:$0xff] %v14424_v23 }
 0x4fd   :  { %v14388_v48 = vsub.f32 %v19213_v37, %v4505_v1  ;;  %v4462_v1 = vrot.slane %v14419_v62, %v13977_v25 }
 0x4fe   :  { %v4297_v34 = vpop.permute.xlu1 %4296  ;;  %v4302_v50 = vpop.permute.xlu0 %4301 }
 0x4ff   :  { %19216 = vst [vmem:[#allocation24_spill] sm:$0xff] %v14388_v48  ;;  %11026 = vrcp.f32 %v14388_v48  ;;  %v4507_v45 = vmul.f32 %v4450_v29, %v4302_v50  ;;  %v4506_v14 = vmul.f32 %v4446_v31, %v4297_v34  ;;  %v19228_v50 = vld [vmem:[#allocation56_spill] sm:$0xff] }
 0x501   :  { %v14398_v7 = vsub.f32 %v19215_v54, %v4507_v45  ;;  %v14443_v45 = vsub.f32 %v19228_v50, %v4506_v14 }
 0x502   :  { %v4307_v11 = vpop.permute.xlu1 %4306  ;;  %v4312_v19 = vpop.permute.xlu0 %4311 }
 0x503   :  { %19218 = vst [vmem:[#allocation36_spill] sm:$0xff] %v14398_v7  ;;  %11028 = vrcp.f32 %v14398_v7  ;;  %v4509_v61 = vmul.f32 %v4454_v59, %v4312_v19  ;;  %19229 = vst [vmem:[#allocation47_spill] sm:$0xff] %v14443_v45  ;;  %v4508_v51 = vmul.f32 %v4450_v29, %v4307_v11  ;;  %v19231_v29 = vld [vmem:[#allocation21_spill] sm:$0xff] }
 0x504   :  { %v14457_v11 = vsub.f32 %v19231_v29, %v14365_v33 }
 0x505   :  { %v14410_v18 = vpop.eup %11024  ;;  %v14413_v43 = vsub.f32 %v19217_v21, %v4509_v61  ;;  %v19227_v21 = vld [vmem:[#allocation57_spill] sm:$0xff] }
 0x506   :  { %v4762_v6 = vrot.slane %v14410_v18, %v14408_v60  ;;  %v4317_v56 = vpop.permute.xlu1 %4316  ;;  %v4322_v37 = vpop.permute.xlu0 %4321  ;;  %v14438_v31 = vsub.f32 %v19227_v21, %v14365_v33 }
 0x507   :  { %19222 = vst [vmem:[#allocation39_spill] sm:$0xff] %v14413_v43  ;;  %11030 = vrcp.f32 %v14413_v43  ;;  %v4511_v40 = vmul.f32 %v4458_v0, %v4322_v37 }
 0x508   :  { %v4824_v26 = vmul.f32 %v4762_v6, %v14424_v23  ;;  %v4823_v54 = vmul.f32 %v4762_v6, %v14378_v4  ;;  %v4466_v14 = vrot.slane %v14438_v31, %v13977_v25 }
 0x509   :  { %v14429_v49 = vpop.eup %11026  ;;  %v14432_v13 = vsub.f32 %v19219_v2, %v4511_v40 }
 0x50a   :  { %v4766_v34 = vrot.slane %v14429_v49, %v14408_v60  ;;  %4940 = vperm.xlu0 %10738, %v4823_v54   ;;  %v4327_v19 = vpop.permute.xlu1 %4326  ;;  %4945 = vperm.xlu1 %10739, %v4824_v26   ;;  %v4332_v61 = vpop.permute.xlu0 %4331  ;;  %v19232_v26 = vld [vmem:[#allocation20_spill] sm:$0xff] }
 0x50b   :  { %19226 = vst [vmem:[#allocation43_spill] sm:$0xff] %v14432_v13  ;;  %11032 = vrcp.f32 %v14432_v13  ;;  %v4513_v2 = vmul.f32 %v4462_v1, %v4332_v61  ;;  %v14460_v54 = vsub.f32 %v19232_v26, %v4508_v51  ;;  %v4510_v61 = vmul.f32 %v4454_v59, %v4317_v56  ;;  %v19235_v59 = vld [vmem:[#allocation40_spill] sm:$0xff] }
 0x50c   :  { %v4826_v6 = vmul.f32 %v4766_v34, %v14443_v45  ;;  %v4825_v3 = vmul.f32 %v4766_v34, %v14388_v48  ;;  %v4470_v26 = vrot.slane %v14457_v11, %v13977_v25  ;;  %v14476_v56 = vsub.f32 %v19235_v59, %v14365_v33 }
 0x50d   :  { %v14448_v37 = vpop.eup %11028  ;;  %v14451_v40 = vsub.f32 %v19223_v55, %v4513_v2  ;;  %19233 = vst [vmem:[#allocation49_spill] sm:$0xff] %v14460_v54 }
 0x50e   :  { %v4770_v50 = vrot.slane %v14448_v37, %v14408_v60  ;;  %4955 = vperm.xlu0 %10738, %v4826_v6   ;;  %v4337_v34 = vpop.permute.xlu1 %4336  ;;  %4950 = vperm.xlu1 %10739, %v4825_v3   ;;  %v4342_v45 = vpop.permute.xlu0 %4341  ;;  %v19236_v6 = vld [vmem:[#allocation15_spill] sm:$0xff] }
 0x50f   :  { %19230 = vst [vmem:[#allocation44_spill] sm:$0xff] %v14451_v40  ;;  %11034 = vrcp.f32 %v14451_v40  ;;  %v4515_v55 = vmul.f32 %v4466_v14, %v4342_v45  ;;  %v14479_v3 = vsub.f32 %v19236_v6, %v4510_v61  ;;  %v4474_v6 = vrot.slane %v14476_v56, %v13977_v25 }
 0x510   :  { %v4828_v2 = vmul.f32 %v4770_v50, %v14460_v54  ;;  %v4827_v23 = vmul.f32 %v4770_v50, %v14398_v7  ;;  %v4512_v54 = vmul.f32 %v4458_v0, %v4327_v19  ;;  %v19239_v0 = vld [vmem:[#allocation34_spill] sm:$0xff] }
 0x511   :  { %v14467_v39 = vpop.eup %11030  ;;  %v14470_v51 = vsub.f32 %v19227_v21, %v4515_v55  ;;  %19237 = vst [vmem:[#allocation52_spill] sm:$0xff] %v14479_v3  ;;  %v14495_v19 = vsub.f32 %v19239_v0, %v14365_v33 }
 0x512   :  { %v4774_v45 = vrot.slane %v14467_v39, %v14408_v60  ;;  %v4347_v50 = vpop.permute.xlu1 %4346  ;;  %4965 = vperm.xlu0 %10738, %v4828_v2   ;;  %4960 = vperm.xlu1 %10739, %v4827_v23   ;;  %v4352_v7 = vpop.permute.xlu0 %4351  ;;  %v19240_v23 = vld [vmem:[#allocation38_spill] sm:$0xff] }
 0x513   :  { %19234 = vst [vmem:[#allocation46_spill] sm:$0xff] %v14470_v51  ;;  %11036 = vrcp.f32 %v14470_v51  ;;  %v4517_v21 = vmul.f32 %v4470_v26, %v4352_v7  ;;  %v14498_v2 = vsub.f32 %v19240_v23, %v4512_v54  ;;  %v4478_v23 = vrot.slane %v14495_v19, %v13977_v25 }
 0x514   :  { %v4830_v55 = vmul.f32 %v4774_v45, %v14479_v3  ;;  %v4829_v48 = vmul.f32 %v4774_v45, %v14413_v43  ;;  %v4514_v3 = vmul.f32 %v4462_v1, %v4337_v34  ;;  %v19243_v1 = vld [vmem:[#allocation41_spill] sm:$0xff] }
 0x515   :  { %v14486_v4 = vpop.eup %11032  ;;  %v14489_v61 = vsub.f32 %v19231_v29, %v4517_v21  ;;  %19241 = vst [vmem:[#allocation50_spill] sm:$0xff] %v14498_v2  ;;  %v14514_v34 = vsub.f32 %v19243_v1, %v14365_v33 }
 0x516   :  { %v4778_v7 = vrot.slane %v14486_v4, %v14408_v60  ;;  %v4357_v45 = vpop.permute.xlu1 %4356  ;;  %4975 = vperm.xlu0 %10738, %v4830_v55   ;;  %4970 = vperm.xlu1 %10739, %v4829_v48   ;;  %v4362_v43 = vpop.permute.xlu0 %4361  ;;  %v19244_v48 = vld [vmem:[#allocation45_spill] sm:$0xff] }
 0x517   :  { %19238 = vst [vmem:[#allocation48_spill] sm:$0xff] %v14489_v61  ;;  %11038 = vrcp.f32 %v14489_v61  ;;  %v4519_v29 = vmul.f32 %v4474_v6, %v4362_v43  ;;  %v14517_v55 = vsub.f32 %v19244_v48, %v4514_v3  ;;  %v4482_v48 = vrot.slane %v14514_v34, %v13977_v25 }
 0x518   :  { %v4832_v21 = vmul.f32 %v4778_v7, %v14498_v2  ;;  %v4831_v17 = vmul.f32 %v4778_v7, %v14432_v13  ;;  %v4516_v2 = vmul.f32 %v4466_v14, %v4347_v50  ;;  %v19247_v14 = vld [vmem:[#allocation13_spill] sm:$0xff] }
 0x519   :  { %v14505_v52 = vpop.eup %11034  ;;  %v14508_v54 = vsub.f32 %v19235_v59, %v4519_v29  ;;  %19245 = vst [vmem:[#allocation54_spill] sm:$0xff] %v14517_v55  ;;  %v14533_v50 = vsub.f32 %v19247_v14, %v14365_v33 }
 0x51a   :  { %v4782_v43 = vrot.slane %v14505_v52, %v14408_v60  ;;  %v4367_v7 = vpop.permute.xlu1 %4366  ;;  %4985 = vperm.xlu0 %10738, %v4832_v21   ;;  %4980 = vperm.xlu1 %10739, %v4831_v17   ;;  %v4372_v13 = vpop.permute.xlu0 %4371  ;;  %v19248_v17 = vld [vmem:[#allocation23_spill] sm:$0xff] }
 0x51b   :  { %19242 = vst [vmem:[#allocation51_spill] sm:$0xff] %v14508_v54  ;;  %11040 = vrcp.f32 %v14508_v54  ;;  %v4521_v59 = vmul.f32 %v4478_v23, %v4372_v13  ;;  %v14536_v21 = vsub.f32 %v19248_v17, %v4516_v2  ;;  %v4486_v17 = vrot.slane %v14533_v50, %v13977_v25 }
 0x51c   :  { %v4834_v29 = vmul.f32 %v4782_v43, %v14517_v55  ;;  %v4833_v24 = vmul.f32 %v4782_v43, %v14451_v40  ;;  %v4518_v55 = vmul.f32 %v4470_v26, %v4357_v45  ;;  %v19251_v26 = vld [vmem:[#allocation25_spill] sm:$0xff] }
 0x51d   :  { %v14524_v27 = vpop.eup %11036  ;;  %v14527_v3 = vsub.f32 %v19239_v0, %v4521_v59  ;;  %19249 = vst [vmem:[#allocation53_spill] sm:$0xff] %v14536_v21  ;;  %v14552_v45 = vsub.f32 %v19251_v26, %v14365_v33 }
 0x51e   :  { %v4786_v13 = vrot.slane %v14524_v27, %v14408_v60  ;;  %v4377_v43 = vpop.permute.xlu1 %4376  ;;  %4995 = vperm.xlu0 %10738, %v4834_v29   ;;  %4990 = vperm.xlu1 %10739, %v4833_v24   ;;  %v4382_v40 = vpop.permute.xlu0 %4381  ;;  %v19253_v24 = vld [vmem:[#allocation26_spill] sm:$0xff] }
 0x51f   :  { %19246 = vst [vmem:[#allocation55_spill] sm:$0xff] %v14527_v3  ;;  %11042 = vrcp.f32 %v14527_v3  ;;  %v4523_v0 = vmul.f32 %v4482_v48, %v4382_v40  ;;  %19252 = vst [vmem:[#allocation56_spill] sm:$0xff] %v14552_v45  ;;  %v14555_v29 = vsub.f32 %v19253_v24, %v4518_v55  ;;  %v4490_v24 = vrot.slane %v14552_v45, %v13977_v25 }
 0x520   :  { %v4836_v59 = vmul.f32 %v4786_v13, %v14536_v21  ;;  %v4835_v58 = vmul.f32 %v4786_v13, %v14470_v51  ;;  %v4520_v21 = vmul.f32 %v4474_v6, %v4367_v7  ;;  %v14571_v6 = vsub.f32 %v14190_v36, %v14365_v33 }
 0x521   :  { %v14543_v8 = vpop.eup %11038  ;;  %v14546_v2 = vsub.f32 %v19243_v1, %v4523_v0  ;;  %19254 = vst [vmem:[#allocation21_spill] sm:$0xff] %v14555_v29 }
 0x522   :  { %v4790_v40 = vrot.slane %v14543_v8, %v14408_v60  ;;  %v4387_v13 = vpop.permute.xlu1 %4386  ;;  %5005 = vperm.xlu0 %10738, %v4836_v59   ;;  %5000 = vperm.xlu1 %10739, %v4835_v58   ;;  %v4392_v51 = vpop.permute.xlu0 %4391  ;;  %19255 = vst [vmem:[#allocation20_spill] sm:$0xff] %v14571_v6  ;;  %v19256_v58 = vld [vmem:[#allocation37_spill] sm:$0xff]  ;;  %v4522_v59 = vmul.f32 %v4478_v23, %v4377_v43 }
 0x523   :  { %19250 = vst [vmem:[#allocation57_spill] sm:$0xff] %v14546_v2  ;;  %11044 = vrcp.f32 %v14546_v2  ;;  %v4525_v1 = vmul.f32 %v4486_v17, %v4392_v51  ;;  %v14574_v7 = vsub.f32 %v19256_v58, %v4520_v21  ;;  %v4494_v58 = vrot.slane %v14571_v6, %v13977_v25 }
 0x524   :  { %v4838_v0 = vmul.f32 %v4790_v40, %v14555_v29  ;;  %v4837_v28 = vmul.f32 %v4790_v40, %v14489_v61  ;;  %v14590_v23 = vsub.f32 %v14210_v35, %v14365_v33 }
 0x525   :  { %v14562_v57 = vpop.eup %11040  ;;  %v14565_v55 = vsub.f32 %v19247_v14, %v4525_v1  ;;  %19257 = vst [vmem:[#allocation40_spill] sm:$0xff] %v14574_v7 }
 0x526   :  { %v4794_v51 = vrot.slane %v14562_v57, %v14408_v60  ;;  %v4397_v40 = vpop.permute.xlu1 %4396  ;;  %5015 = vperm.xlu0 %10738, %v4838_v0   ;;  %5010 = vperm.xlu1 %10739, %v4837_v28   ;;  %v4402_v29 = vpop.permute.xlu0 %4401  ;;  %v19259_v28 = vld [vmem:[#allocation11_spill] sm:$0xff]  ;;  %v4524_v0 = vmul.f32 %v4482_v48, %v4387_v13  ;;  %v14609_v48 = vsub.f32 %v14226_v16, %v14365_v33 }
 0x527   :  { %11046 = vrcp.f32 %v14565_v55  ;;  %v4527_v14 = vmul.f32 %v4490_v24, %v4402_v29  ;;  %v14593_v43 = vsub.f32 %v19259_v28, %v4522_v59  ;;  %v4498_v28 = vrot.slane %v14590_v23, %v13977_v25 }
 0x528   :  { %v4840_v1 = vmul.f32 %v4794_v51, %v14574_v7  ;;  %v4839_v61 = vmul.f32 %v4794_v51, %v14508_v54 }
 0x529   :  { %v14581_v45 = vpop.eup %11042  ;;  %v14584_v21 = vsub.f32 %v19251_v26, %v4527_v14  ;;  %19260 = vst [vmem:[#allocation34_spill] sm:$0xff] %v14593_v43 }
 0x52a   :  { %v4798_v29 = vrot.slane %v14581_v45, %v14408_v60  ;;  %v4407_v51 = vpop.permute.xlu1 %4406  ;;  %5025 = vperm.xlu0 %10738, %v4840_v1   ;;  %5020 = vperm.xlu1 %10739, %v4839_v61   ;;  %v4412_v7 = vpop.permute.xlu0 %4411  ;;  %v19262_v61 = vld [vmem:[#allocation19_spill] sm:$0xff]  ;;  %v4526_v1 = vmul.f32 %v4486_v17, %v4397_v40  ;;  %v19264_v17 = vld [vmem:[#allocation30_spill] sm:$0xff] }
 0x52b   :  { %19258 = vst [vmem:[#allocation15_spill] sm:$0xff] %v14584_v21  ;;  %11048 = vrcp.f32 %v14584_v21  ;;  %v4529_v26 = vmul.f32 %v4494_v58, %v4412_v7  ;;  %v14612_v13 = vsub.f32 %v19262_v61, %v4524_v0  ;;  %v4502_v61 = vrot.slane %v14609_v48, %v13977_v25 }
 0x52c   :  { %v4842_v14 = vmul.f32 %v4798_v29, %v14593_v43  ;;  %v4841_v54 = vmul.f32 %v4798_v29, %v14527_v3  ;;  %v14627_v40 = vsub.f32 %v19264_v17, %v4526_v1  ;;  %v19266_v17 = vld [vmem:[#allocation28_spill] sm:$0xff] }
 0x52d   :  { %v14600_v6 = vpop.eup %11044  ;;  %v14603_v59 = vsub.f32 %v14190_v36, %v4529_v26  ;;  %19263 = vst [vmem:[#allocation41_spill] sm:$0xff] %v14612_v13 }
 0x52e   :  { %v4802_v7 = vrot.slane %v14600_v6, %v14408_v60  ;;  %v4417_v29 = vpop.permute.xlu1 %4416  ;;  %5035 = vperm.xlu0 %10738, %v4842_v14   ;;  %5030 = vperm.xlu1 %10739, %v4841_v54   ;;  %v4422_v43 = vpop.permute.xlu0 %4421  ;;  %19265 = vst [vmem:[#allocation45_spill] sm:$0xff] %v14627_v40  ;;  %v4528_v14 = vmul.f32 %v4490_v24, %v4407_v51 }
 0x52f   :  { %19261 = vst [vmem:[#allocation38_spill] sm:$0xff] %v14603_v59  ;;  %11050 = vrcp.f32 %v14603_v59  ;;  %v4531_v36 = vmul.f32 %v4498_v28, %v4422_v43 }
 0x530   :  { %v4844_v26 = vmul.f32 %v4802_v7, %v14612_v13  ;;  %v4843_v3 = vmul.f32 %v4802_v7, %v14546_v2  ;;  %v14640_v25 = vsub.f32 %v19266_v17, %v4528_v14 }
 0x531   :  { %v14619_v33 = vpop.eup %11046  ;;  %v14622_v0 = vsub.f32 %v14210_v35, %v4531_v36 }
 0x532   :  { %v4806_v54 = vrot.slane %v14619_v33, %v14408_v60  ;;  %v4427_v43 = vpop.permute.xlu1 %4426  ;;  %5045 = vperm.xlu0 %10738, %v4844_v26   ;;  %5040 = vperm.xlu1 %10739, %v4843_v3   ;;  %v4432_v13 = vpop.permute.xlu0 %4431  ;;  %19267 = vst [vmem:[#allocation13_spill] sm:$0xff] %v14640_v25  ;;  %v4530_v3 = vmul.f32 %v4494_v58, %v4417_v29 }
 0x533   :  { %11052 = vrcp.f32 %v14622_v0  ;;  %v4533_v7 = vmul.f32 %v4502_v61, %v4432_v13  ;;  %v4532_v17 = vmul.f32 %v4498_v28, %v4427_v43  ;;  %v4664_v28 = vrot.slane %v14375_v20, 4 }
 0x534   :  { %v4846_v35 = vmul.f32 %v4806_v54, %v14627_v40  ;;  %v4845_v36 = vmul.f32 %v4806_v54, %v14565_v55 }
 0x535   :  { %v14634_v2 = vpop.eup %11048  ;;  %v14637_v1 = vsub.f32 %v14226_v16, %v4533_v7  ;;  %v19268_v16 = vld [vmem:[#allocation29_spill] sm:$0xff] }
 0x536   :  { %v4810_v24 = vrot.slane %v14634_v2, %v14408_v60  ;;  %v4437_v51 = vpop.permute.xlu1 %4436  ;;  %5055 = vperm.xlu0 %10738, %v4846_v35   ;;  %5050 = vperm.xlu1 %10739, %v4845_v36   ;;  %v4570_v13 = vpop.permute.xlu0 %4569  ;;  %v14650_v7 = vsub.f32 %v19268_v16, %v4530_v3 }
 0x537   :  { %11054 = vrcp.f32 %v14637_v1  ;;  %v4534_v16 = vmul.f32 %v4502_v61, %v4437_v51  ;;  %v4666_v61 = vrot.slane %v14394_v63, 4  ;;  %v4667_v63 = vrot.slane %v14404_v30, 4 }
 0x538   :  { %v4848_v26 = vmul.f32 %v4810_v24, %v14640_v25  ;;  %v4847_v54 = vmul.f32 %v4810_v24, %v14584_v21  ;;  %19269 = vst [vmem:[#allocation23_spill] sm:$0xff] %v14650_v7  ;;  %v4663_v24 = vrot.slane %v14369_v5, 4  ;;  %v14660_v21 = vsub.f32 %v14259_v15, %v4532_v17 }
 0x539   :  { %v14647_v40 = vpop.eup %11050  ;;  %v4665_v15 = vrot.slane %v14384_v22, 4  ;;  %v14671_v17 = vsub.f32 %v14271_v46, %v4534_v16  ;;  %v4891_v16 = vrot.slane %v14429_v49, 5  ;;  %v4669_v49 = vrot.slane %v14438_v31, 4 }
 0x53a   :  { %v4814_v14 = vrot.slane %v14647_v40, %v14408_v60  ;;  %v4575_v58 = vpop.permute.xlu1 %4574  ;;  %5065 = vperm.xlu0 %10738, %v4848_v26   ;;  %5060 = vperm.xlu1 %10739, %v4847_v54   ;;  %v4580_v29 = vpop.permute.xlu0 %4579  ;;  %v4695_v54 = vmul.f32 %v4663_v24, %v4570_v13 }
 0x53c   :  { %v4850_v35 = vmul.f32 %v4814_v14, %v14650_v7  ;;  %v4849_v36 = vmul.f32 %v4814_v14, %v14603_v59  ;;  %v4696_v7 = vmul.f32 %v4664_v28, %v4575_v58  ;;  %v14677_v58 = vsub.f32 %v14266_v42, %v4695_v54 }
 0x53d   :  { %v14656_v25 = vpop.eup %11052 }
 0x53e   :  { %v4818_v3 = vrot.slane %v14656_v25, %v14408_v60  ;;  %v4585_v43 = vpop.permute.xlu1 %4584  ;;  %5075 = vperm.xlu0 %10738, %v4850_v35   ;;  %5070 = vperm.xlu1 %10739, %v4849_v36   ;;  %v4590_v26 = vpop.permute.xlu0 %4589  ;;  %v4697_v35 = vmul.f32 %v4665_v15, %v4580_v29  ;;  %v14681_v22 = vsub.f32 %v14276_v32, %v4696_v7 }
 0x53f   :  { %v4698_v46 = vmul.f32 %v4666_v61, %v4585_v43  ;;  %v4699_v29 = vmul.f32 %v4667_v63, %v4590_v26  ;;  %v4893_v43 = vrot.slane %v14467_v39, 5 }
 0x540   :  { %v4852_v14 = vmul.f32 %v4818_v3, %v14660_v21  ;;  %v4851_v59 = vmul.f32 %v4818_v3, %v14622_v0  ;;  %v4890_v3 = vrot.slane %v14410_v18, 5  ;;  %v4923_v32 = vmul.f32 %v4891_v16, %v14681_v22 }
 0x541   :  { %v14667_v5 = vpop.eup %11054  ;;  %v14691_v7 = vsub.f32 %v14281_v38, %v4697_v35  ;;  %v14694_v18 = vsub.f32 %v14288_v41, %v4698_v46  ;;  %v14701_v26 = vsub.f32 %v14293_v10, %v4699_v29  ;;  %v4672_v35 = vrot.slane %v14495_v19, 4 }
 0x542   :  { %v4822_v20 = vrot.slane %v14667_v5, %v14408_v60  ;;  %v4595_v51 = vpop.permute.xlu1 %4594  ;;  %5085 = vperm.xlu0 %10738, %v4852_v14   ;;  %5080 = vperm.xlu1 %10739, %v4851_v59   ;;  %v4600_v13 = vpop.permute.xlu0 %4599  ;;  %v4668_v59 = vrot.slane %v14419_v62, 4  ;;  %v4922_v42 = vmul.f32 %v4890_v3, %v14677_v58  ;;  %v4892_v62 = vrot.slane %v14448_v37, 5 }
 0x543   :  { %v4670_v14 = vrot.slane %v14457_v11, 4  ;;  %v4701_v38 = vmul.f32 %v4669_v49, %v4600_v13  ;;  %v4925_v41 = vmul.f32 %v4893_v43, %v14694_v18  ;;  %v4894_v37 = vrot.slane %v14486_v4, 5  ;;  %v19276_v43 = vld [vmem:[#allocation31_spill] sm:$0xff] }
 0x544   :  { %v4854_v36 = vmul.f32 %v4822_v20, %v14671_v17  ;;  %v4853_v24 = vmul.f32 %v4822_v20, %v14637_v1  ;;  %v4700_v30 = vmul.f32 %v4668_v59, %v4595_v51  ;;  %v4924_v20 = vmul.f32 %v4892_v62, %v14691_v7 }
 0x545   :  { %v4895_v11 = vrot.slane %v14505_v52, 5  ;;  %v4671_v51 = vrot.slane %v14476_v56, 4  ;;  %v4926_v13 = vmul.f32 %v4894_v37, %v14701_v26  ;;  %v4896_v52 = vrot.slane %v14524_v27, 5 }
 0x546   :  { %v4605_v28 = vpop.permute.xlu1 %4604  ;;  %5095 = vperm.xlu0 %10738, %v4854_v36   ;;  %5090 = vperm.xlu1 %10739, %v4853_v24   ;;  %v4610_v54 = vpop.permute.xlu0 %4609  ;;  %v14706_v61 = vsub.f32 %v14301_v53, %v4700_v30  ;;  %v14714_v36 = vsub.f32 %v14305_v47, %v4701_v38  ;;  %v4673_v56 = vrot.slane %v14514_v34, 4  ;;  %v4897_v19 = vrot.slane %v14543_v8, 5  ;;  %v19274_v30 = vld [vmem:[#allocation12_spill] sm:$0xff] }
 0x547   :  { %v4702_v31 = vmul.f32 %v4670_v14, %v4605_v28  ;;  %v4703_v4 = vmul.f32 %v4671_v51, %v4610_v54  ;;  %v4674_v3 = vrot.slane %v14533_v50, 4  ;;  %v4898_v50 = vrot.slane %v14562_v57, 5  ;;  %v19273_v54 = vld [vmem:[#allocation20_spill] sm:$0xff] }
 0x548   :  { %v4927_v53 = vmul.f32 %v4895_v11, %v14706_v61  ;;  %v4928_v47 = vmul.f32 %v4896_v52, %v14714_v36  ;;  %v4899_v29 = vrot.slane %v14581_v45, 5  ;;  %v4900_v57 = vrot.slane %v14600_v6, 5  ;;  %v19284_v52 = vld [vmem:[#allocation18_spill] sm:$0xff] }
 0x549   :  { %v14718_v46 = vsub.f32 %v14314_v9, %v4702_v31  ;;  %v14727_v28 = vsub.f32 %v14317_v44, %v4703_v4  ;;  %v4678_v31 = vrot.slane %v14609_v48, 4  ;;  %v19282_v4 = vld [vmem:[#allocation16_spill] sm:$0xff] }
 0x54a   :  { %v4615_v15 = vpop.permute.xlu1 %4614  ;;  %5233 = vperm.xlu0 %10738, %v4923_v32   ;;  %5228 = vperm.xlu1 %10739, %v4922_v42   ;;  %v4620_v39 = vpop.permute.xlu0 %4619  ;;  %v19272_v42 = vld [vmem:[#allocation56_spill] sm:$0xff]  ;;  %v4676_v32 = vrot.slane %v19273_v54, 4 }
 0x54b   :  { %v4704_v24 = vmul.f32 %v4672_v35, %v4615_v15  ;;  %v4705_v63 = vmul.f32 %v4673_v56, %v4620_v39  ;;  %v4929_v9 = vmul.f32 %v4897_v19, %v14718_v46  ;;  %19270 = vst [vmem:[#allocation25_spill] sm:$0xff] %v14727_v28  ;;  %v4675_v8 = vrot.slane %v19272_v42, 4  ;;  %v19278_v39 = vld [vmem:[#allocation14_spill] sm:$0xff]  ;;  %v19280_v35 = vld [vmem:[#allocation32_spill] sm:$0xff] }
 0x54c   :  { %v4930_v44 = vmul.f32 %v4898_v50, %v14727_v28  ;;  %v4904_v19 = vrot.slane %v14656_v25, 5  ;;  %v19288_v25 = vld [vmem:[#allocation22_spill] sm:$0xff] }
 0x54d   :  { %v14730_v27 = vsub.f32 %v14324_v12, %v4704_v24  ;;  %v14737_v49 = vsub.f32 %v19274_v30, %v4705_v63  ;;  %v19286_v63 = vld [vmem:[#allocation9_spill] sm:$0xff]  ;;  %v19291_v30 = vld [vmem:[#allocation36_spill] sm:$0xff] }
 0x54e   :  { %v4625_v10 = vpop.permute.xlu1 %4624  ;;  %5243 = vperm.xlu0 %10738, %v4925_v41   ;;  %5238 = vperm.xlu1 %10739, %v4924_v20   ;;  %v4630_v16 = vpop.permute.xlu0 %4629  ;;  %v4901_v20 = vrot.slane %v14619_v33, 5  ;;  %v4677_v41 = vrot.slane %v14590_v23, 4  ;;  %v4902_v33 = vrot.slane %v14634_v2, 5  ;;  %v4903_v23 = vrot.slane %v14647_v40, 5 }
 0x54f   :  { %19271 = vst [vmem:[#allocation26_spill] sm:$0xff] %v14730_v27  ;;  %v4706_v34 = vmul.f32 %v4674_v3, %v4625_v10  ;;  %19275 = vst [vmem:[#allocation37_spill] sm:$0xff] %v14737_v49  ;;  %v4707_v62 = vmul.f32 %v4675_v8, %v4630_v16  ;;  %v4931_v12 = vmul.f32 %v4899_v29, %v14730_v27  ;;  %v4905_v3 = vrot.slane %v14667_v5, 5 }
 0x550   :  { %v4932_v37 = vmul.f32 %v4900_v57, %v14737_v49  ;;  %vm4855_vm15 = vcmp.eq.s32.totalorder %v19286_v63, 5  ;;  %v19287_v16 = vmov 0.0  }
 0x551   :  { %v14742_v14 = vsub.f32 %v19276_v43, %v4706_v34  ;;  %v14750_v11 = vsub.f32 %v19278_v39, %v4707_v62  ;;  %v19289_v34 = vld [vmem:[#allocation24_spill] sm:$0xff] }
 0x552   :  { %5253 = vperm.xlu0 %10738, %v4927_v53   ;;  %5248 = vperm.xlu1 %10739, %v4926_v13   ;;  %v4635_v59 = vpop.permute.xlu1 %4634  ;;  %v4640_v38 = vpop.permute.xlu0 %4639 }
 0x553   :  { %19277 = vst [vmem:[#allocation11_spill] sm:$0xff] %v14742_v14  ;;  %v4708_v15 = vmul.f32 %v4676_v32, %v4635_v59  ;;  %19279 = vst [vmem:[#allocation19_spill] sm:$0xff] %v14750_v11  ;;  %v4933_v51 = vmul.f32 %v4901_v20, %v14742_v14  ;;  %v4709_v6 = vmul.f32 %v4677_v41, %v4640_v38  ;;  %v14772_v59 = vsel %vm4855_vm15, 1.0, %v19287_v16  ;;  %v19293_v38 = vld [vmem:[#allocation39_spill] sm:$0xff] }
 0x554   :  { %v4934_v48 = vmul.f32 %v4902_v33, %v14750_v11  ;;  %v14782_v42 = vsub.f32 %v19289_v34, %v14772_v59  ;;  %v14791_v62 = vsub.f32 %v19291_v30, %v14772_v59 }
 0x555   :  { %v14754_v10 = vsub.f32 %v19280_v35, %v4708_v15  ;;  %v14761_v24 = vsub.f32 %v19282_v4, %v4709_v6 }
 0x556   :  { %5263 = vperm.xlu0 %10738, %v4929_v9   ;;  %5258 = vperm.xlu1 %10739, %v4928_v47   ;;  %v4645_v45 = vpop.permute.xlu1 %4644  ;;  %v11408_v47 = vmov 6   ;;  %v14776_v9 = vsub.f32 %v19288_v25, %v14772_v59  ;;  %v5105_v32 = vrot.slane %v14782_v42, %v14408_v60  ;;  %v5109_v57 = vrot.slane %v14791_v62, %v14408_v60 }
 0x557   :  { %19281 = vst [vmem:[#allocation30_spill] sm:$0xff] %v14754_v10  ;;  %v4710_v13 = vmul.f32 %v4678_v31, %v4645_v45  ;;  %v4935_v53 = vmul.f32 %v4903_v23, %v14754_v10  ;;  %19283 = vst [vmem:[#allocation28_spill] sm:$0xff] %v14761_v24  ;;  %v4936_v2 = vmul.f32 %v4904_v19, %v14761_v24 }
 0x558   :  { %v5101_v5 = vrot.slane %v14776_v9, %v14408_v60  ;;  %v14801_v45 = vsub.f32 %v19293_v38, %v14772_v59 }
 0x559   :  { %v14764_v56 = vsub.f32 %v19284_v52, %v4710_v13 }
 0x55a   :  { %5273 = vperm.xlu0 %10738, %v4931_v12   ;;  %5268 = vperm.xlu1 %10739, %v4930_v44   ;;  %v5113_v39 = vrot.slane %v14801_v45, %v14408_v60 }
 0x55b   :  { %19285 = vst [vmem:[#allocation29_spill] sm:$0xff] %v14764_v56  ;;  %v4937_v40 = vmul.f32 %v4905_v3, %v14764_v56  ;;  %v19299_v3 = vld [vmem:[#allocation44_spill] sm:$0xff] }
 0x55e   :  { %5283 = vperm.xlu0 %10738, %v4933_v51   ;;  %5278 = vperm.xlu1 %10739, %v4932_v37   ;;  %v19295_v51 = vld [vmem:[#allocation43_spill] sm:$0xff] }
 0x55f   :  { %v14811_v35 = vsub.f32 %v19295_v51, %v14772_v59 }
 0x561   :  { %v5117_v19 = vrot.slane %v14811_v35, %v14408_v60 }
 0x562   :  { %5293 = vperm.xlu0 %10738, %v4935_v53   ;;  %5288 = vperm.xlu1 %10739, %v4934_v48   ;;  %v19296_v48 = vld [vmem:[#allocation7_spill] sm:$0xff] }
 0x563   :  { %v14815_v53 = vsub.s32 6, %v19296_v48 }
 0x565   :  { %19297 = vst [vmem:[#allocation31_spill] sm:$0xff] %v14815_v53 }
 0x566   :  { %5303 = vperm.xlu0 %10738, %v4937_v40   ;;  %5298 = vperm.xlu1 %10739, %v4936_v2   ;;  %v14826_v2 = vsub.f32 %v19299_v3, %v14772_v59  ;;  %v19300_v40 = vld [vmem:[#allocation35_spill] sm:$0xff] }
 0x56a   :  { %10741 = vset.pattern.permute.xlu0 %v11408_v47  ;;  %10740 = vset.pattern.permute.xlu1 %v11408_v47 }
 0x589   :  { %v4946_v8 = vpop.permute.xlu1 %4945  ;;  %v4941_v50 = vpop.permute.xlu0 %4940 }
 0x58a   :  { %v5162_v29 = vmul.f32 %v5101_v5, %v4941_v50  ;;  %v5163_v6 = vmul.f32 %v5101_v5, %v4946_v8 }
 0x58c   :  { %v14785_v54 = vsub.f32 %v19288_v25, %v5162_v29  ;;  %v14829_v47 = vsub.f32 %v19300_v40, %v5163_v6 }
 0x58d   :  { %v4951_v44 = vpop.permute.xlu1 %4950  ;;  %v4956_v12 = vpop.permute.xlu0 %4955 }
 0x58e   :  { %19290 = vst [vmem:[#allocation56_spill] sm:$0xff] %v14785_v54  ;;  %11056 = vrcp.f32 %v14785_v54  ;;  %v5164_v43 = vmul.f32 %v5105_v32, %v4951_v44  ;;  %19301 = vst [vmem:[#allocation32_spill] sm:$0xff] %v14829_v47  ;;  %v5165_v6 = vmul.f32 %v5105_v32, %v4956_v12  ;;  %v19305_v32 = vld [vmem:[#allocation48_spill] sm:$0xff] }
 0x58f   :  { %v14862_v12 = vsub.f32 %v19305_v32, %v14772_v59 }
 0x590   :  { %v14795_v15 = vsub.f32 %v19289_v34, %v5164_v43  ;;  %v5121_v43 = vrot.slane %v14826_v2, %v14408_v60 }
 0x591   :  { %v4961_v20 = vpop.permute.xlu1 %4960  ;;  %v4966_v41 = vpop.permute.xlu0 %4965 }
 0x592   :  { %19292 = vst [vmem:[#allocation20_spill] sm:$0xff] %v14795_v15  ;;  %11058 = vrcp.f32 %v14795_v15  ;;  %v5166_v31 = vmul.f32 %v5109_v57, %v4961_v20 }
 0x594   :  { %v14805_v37 = vsub.f32 %v19291_v30, %v5166_v31 }
 0x595   :  { %v4971_v13 = vpop.permute.xlu1 %4970  ;;  %v4976_v33 = vpop.permute.xlu0 %4975 }
 0x596   :  { %19294 = vst [vmem:[#allocation12_spill] sm:$0xff] %v14805_v37  ;;  %11060 = vrcp.f32 %v14805_v37  ;;  %v5168_v23 = vmul.f32 %v5113_v39, %v4971_v13 }
 0x598   :  { %v14817_v4 = vpop.eup %11056  ;;  %v14820_v52 = vsub.f32 %v19293_v38, %v5168_v23  ;;  %v19303_v38 = vld [vmem:[#allocation46_spill] sm:$0xff] }
 0x599   :  { %v4981_v25 = vpop.permute.xlu1 %4980  ;;  %v4986_v5 = vpop.permute.xlu0 %4985  ;;  %v5421_v34 = vrot.slane %v14817_v4, %v14815_v53  ;;  %v14845_v20 = vsub.f32 %v19303_v38, %v14772_v59 }
 0x59a   :  { %19298 = vst [vmem:[#allocation14_spill] sm:$0xff] %v14820_v52  ;;  %11062 = vrcp.f32 %v14820_v52  ;;  %v5170_v8 = vmul.f32 %v5117_v19, %v4981_v25 }
 0x59b   :  { %v5483_v50 = vmul.f32 %v5421_v34, %v14829_v47  ;;  %v5482_v29 = vmul.f32 %v5421_v34, %v14785_v54  ;;  %v5167_v47 = vmul.f32 %v5109_v57, %v4966_v41  ;;  %v19309_v57 = vld [vmem:[#allocation51_spill] sm:$0xff] }
 0x59c   :  { %v14836_v30 = vpop.eup %11058  ;;  %v14839_v44 = vsub.f32 %v19295_v51, %v5170_v8  ;;  %v14858_v8 = vrot.slane %v14845_v20, %v14408_v60  ;;  %v14884_v41 = vsub.f32 %v19309_v57, %v14772_v59 }
 0x59d   :  { %v5425_v31 = vrot.slane %v14836_v30, %v14815_v53  ;;  %v4991_v13 = vpop.permute.xlu1 %4990  ;;  %5604 = vperm.xlu0 %10741, %v5483_v50   ;;  %5599 = vperm.xlu1 %10740, %v5482_v29   ;;  %v4996_v23 = vpop.permute.xlu0 %4995  ;;  %v19306_v50 = vld [vmem:[#allocation47_spill] sm:$0xff] }
 0x59e   :  { %19302 = vst [vmem:[#allocation16_spill] sm:$0xff] %v14839_v44  ;;  %11064 = vrcp.f32 %v14839_v44  ;;  %v5172_v40 = vmul.f32 %v5121_v43, %v4991_v13  ;;  %v14865_v29 = vsub.f32 %v19306_v50, %v5165_v6  ;;  %v14880_v50 = vrot.slane %v14862_v12, %v14408_v60 }
 0x59f   :  { %v5484_v51 = vmul.f32 %v5425_v31, %v14795_v15 }
 0x5a0   :  { %v14851_v25 = vpop.eup %11060  ;;  %v14854_v34 = vsub.f32 %v19299_v3, %v5172_v40  ;;  %19307 = vst [vmem:[#allocation22_spill] sm:$0xff] %v14865_v29  ;;  %v5485_v40 = vmul.f32 %v5425_v31, %v14865_v29  ;;  %v5169_v31 = vmul.f32 %v5113_v39, %v4976_v33  ;;  %v14902_v39 = vrot.slane %v14884_v41, %v14408_v60 }
 0x5a1   :  { %v5429_v13 = vrot.slane %v14851_v25, %v14815_v53  ;;  %v5001_v48 = vpop.permute.xlu1 %5000  ;;  %5609 = vperm.xlu1 %10740, %v5484_v51   ;;  %v5006_v15 = vpop.permute.xlu0 %5005  ;;  %v19310_v51 = vld [vmem:[#allocation49_spill] sm:$0xff] }
 0x5a2   :  { %19304 = vst [vmem:[#allocation18_spill] sm:$0xff] %v14854_v34  ;;  %11066 = vrcp.f32 %v14854_v34  ;;  %v5174_v3 = vmul.f32 %v14858_v8, %v5001_v48  ;;  %v14887_v63 = vsub.f32 %v19310_v51, %v5167_v47 }
 0x5a3   :  { %v5486_v54 = vmul.f32 %v5429_v13, %v14805_v37 }
 0x5a4   :  { %v14873_v16 = vpop.eup %11062  ;;  %v14876_v6 = vsub.f32 %v19303_v38, %v5174_v3  ;;  %19311 = vst [vmem:[#allocation36_spill] sm:$0xff] %v14887_v63  ;;  %v5487_v37 = vmul.f32 %v5429_v13, %v14887_v63  ;;  %v5171_v13 = vmul.f32 %v5117_v19, %v4986_v5  ;;  %v19318_v5 = vld [vmem:[#allocation50_spill] sm:$0xff] }
 0x5a5   :  { %v5433_v48 = vrot.slane %v14873_v16, %v14815_v53  ;;  %v5011_v29 = vpop.permute.xlu1 %5010  ;;  %5619 = vperm.xlu0 %10741, %v5486_v54   ;;  %5614 = vperm.xlu1 %10740, %v5485_v40   ;;  %v5016_v38 = vpop.permute.xlu0 %5015  ;;  %v19313_v54 = vld [vmem:[#allocation55_spill] sm:$0xff]  ;;  %v19314_v40 = vld [vmem:[#allocation52_spill] sm:$0xff] }
 0x5a6   :  { %19308 = vst [vmem:[#allocation24_spill] sm:$0xff] %v14876_v6  ;;  %11068 = vrcp.f32 %v14876_v6  ;;  %v5176_v3 = vmul.f32 %v14880_v50, %v5011_v29  ;;  %v14906_v33 = vsub.f32 %v19313_v54, %v14772_v59  ;;  %v14909_v51 = vsub.f32 %v19314_v40, %v5169_v31 }
 0x5a7   :  { %v5488_v56 = vmul.f32 %v5433_v48, %v14820_v52  ;;  %v14931_v40 = vsub.f32 %v19318_v5, %v5171_v13 }
 0x5a8   :  { %v14895_v24 = vpop.eup %11064  ;;  %v14898_v47 = vsub.f32 %v19305_v32, %v5176_v3  ;;  %19315 = vst [vmem:[#allocation43_spill] sm:$0xff] %v14909_v51  ;;  %v5489_v52 = vmul.f32 %v5433_v48, %v14909_v51  ;;  %v14924_v19 = vrot.slane %v14906_v33, %v14408_v60  ;;  %v5173_v48 = vmul.f32 %v5121_v43, %v4996_v23 }
 0x5a9   :  { %v5437_v29 = vrot.slane %v14895_v24, %v14815_v53  ;;  %v5021_v63 = vpop.permute.xlu1 %5020  ;;  %5629 = vperm.xlu0 %10741, %v5488_v56   ;;  %5624 = vperm.xlu1 %10740, %v5487_v37   ;;  %v5026_v32 = vpop.permute.xlu0 %5025  ;;  %v19317_v56 = vld [vmem:[#allocation57_spill] sm:$0xff]  ;;  %19319 = vst [vmem:[#allocation35_spill] sm:$0xff] %v14931_v40 }
 0x5aa   :  { %19312 = vst [vmem:[#allocation39_spill] sm:$0xff] %v14898_v47  ;;  %11070 = vrcp.f32 %v14898_v47  ;;  %v5178_v3 = vmul.f32 %v14902_v39, %v5021_v63  ;;  %v14928_v37 = vsub.f32 %v19317_v56, %v14772_v59 }
 0x5ab   :  { %v5490_v10 = vmul.f32 %v5437_v29, %v14839_v44  ;;  %v5491_v44 = vmul.f32 %v5437_v29, %v14931_v40  ;;  %v5175_v29 = vmul.f32 %v14858_v8, %v5006_v15  ;;  %v19328_v8 = vld [vmem:[#allocation53_spill] sm:$0xff] }
 0x5ac   :  { %v14917_v11 = vpop.eup %11066  ;;  %v14920_v31 = vsub.f32 %v19309_v57, %v5178_v3  ;;  %v14946_v43 = vrot.slane %v14928_v37, %v14408_v60 }
 0x5ad   :  { %v5441_v63 = vrot.slane %v14917_v11, %v14815_v53  ;;  %v5031_v51 = vpop.permute.xlu1 %5030  ;;  %5639 = vperm.xlu0 %10741, %v5490_v10   ;;  %5634 = vperm.xlu1 %10740, %v5489_v52   ;;  %v5036_v57 = vpop.permute.xlu0 %5035  ;;  %v14950_v10 = vsub.f32 %v14565_v55, %v14772_v59  ;;  %v19322_v52 = vld [vmem:[#allocation54_spill] sm:$0xff] }
 0x5ae   :  { %19316 = vst [vmem:[#allocation44_spill] sm:$0xff] %v14920_v31  ;;  %11072 = vrcp.f32 %v14920_v31  ;;  %v5180_v3 = vmul.f32 %v14924_v19, %v5031_v51  ;;  %v14953_v23 = vsub.f32 %v19322_v52, %v5173_v48  ;;  %v14976_v52 = vsub.f32 %v19328_v8, %v5175_v29 }
 0x5af   :  { %v5492_v14 = vmul.f32 %v5441_v63, %v14854_v34  ;;  %19321 = vst [vmem:[#allocation48_spill] sm:$0xff] %v14950_v10  ;;  %v14969_v15 = vrot.slane %v14950_v10, %v14408_v60 }
 0x5b0   :  { %v14939_v49 = vpop.eup %11068  ;;  %v14942_v13 = vsub.f32 %v19313_v54, %v5180_v3  ;;  %19323 = vst [vmem:[#allocation47_spill] sm:$0xff] %v14953_v23  ;;  %v5493_v40 = vmul.f32 %v5441_v63, %v14953_v23  ;;  %19329 = vst [vmem:[#allocation52_spill] sm:$0xff] %v14976_v52 }
 0x5b1   :  { %v5445_v51 = vrot.slane %v14939_v49, %v14815_v53  ;;  %v5041_v5 = vpop.permute.xlu1 %5040  ;;  %5649 = vperm.xlu0 %10741, %v5492_v14   ;;  %5644 = vperm.xlu1 %10740, %v5491_v44   ;;  %v5046_v54 = vpop.permute.xlu0 %5045  ;;  %v19326_v14 = vld [vmem:[#allocation15_spill] sm:$0xff] }
 0x5b2   :  { %19320 = vst [vmem:[#allocation46_spill] sm:$0xff] %v14942_v13  ;;  %11074 = vrcp.f32 %v14942_v13  ;;  %v5182_v3 = vmul.f32 %v14946_v43, %v5041_v5  ;;  %v14973_v44 = vsub.f32 %v19326_v14, %v14772_v59  ;;  %v5177_v5 = vmul.f32 %v14880_v50, %v5016_v38 }
 0x5b3   :  { %v5494_v34 = vmul.f32 %v5445_v51, %v14876_v6  ;;  %v5495_v6 = vmul.f32 %v5445_v51, %v14976_v52  ;;  %v5179_v51 = vmul.f32 %v14902_v39, %v5026_v32  ;;  %v15014_v39 = vsub.f32 %v14622_v0, %v14772_v59 }
 0x5b4   :  { %v14962_v27 = vpop.eup %11070  ;;  %v14965_v48 = vsub.f32 %v19317_v56, %v5182_v3  ;;  %19327 = vst [vmem:[#allocation55_spill] sm:$0xff] %v14973_v44  ;;  %v5149_v50 = vrot.slane %v14973_v44, %v14408_v60 }
 0x5b5   :  { %19324 = vst [vmem:[#allocation51_spill] sm:$0xff] %v14962_v27  ;;  %v5449_v63 = vrot.slane %v14962_v27, %v14815_v53  ;;  %v5051_v23 = vpop.permute.xlu1 %5050  ;;  %5659 = vperm.xlu0 %10741, %v5494_v34   ;;  %5654 = vperm.xlu1 %10740, %v5493_v40   ;;  %v5056_v56 = vpop.permute.xlu0 %5055  ;;  %v19331_v34 = vld [vmem:[#allocation38_spill] sm:$0xff]  ;;  %v19333_v40 = vld [vmem:[#allocation21_spill] sm:$0xff] }
 0x5b6   :  { %19325 = vst [vmem:[#allocation49_spill] sm:$0xff] %v14965_v48  ;;  %11076 = vrcp.f32 %v14965_v48  ;;  %v5184_v3 = vmul.f32 %v14969_v15, %v5051_v23  ;;  %v14994_v38 = vsub.f32 %v19331_v34, %v14772_v59  ;;  %v14997_v8 = vsub.f32 %v19333_v40, %v5177_v5 }
 0x5b7   :  { %v5496_v10 = vmul.f32 %v5449_v63, %v14898_v47 }
 0x5b8   :  { %v14985_v28 = vpop.eup %11072  ;;  %v14988_v29 = vsub.f32 %v14565_v55, %v5184_v3  ;;  %19332 = vst [vmem:[#allocation50_spill] sm:$0xff] %v14994_v38  ;;  %19334 = vst [vmem:[#allocation54_spill] sm:$0xff] %v14997_v8  ;;  %v5497_v47 = vmul.f32 %v5449_v63, %v14997_v8  ;;  %v5153_v40 = vrot.slane %v14994_v38, %v14408_v60 }
 0x5b9   :  { %v5453_v23 = vrot.slane %v14985_v28, %v14815_v53  ;;  %v5061_v52 = vpop.permute.xlu1 %5060  ;;  %5669 = vperm.xlu0 %10741, %v5496_v10   ;;  %5664 = vperm.xlu1 %10740, %v5495_v6   ;;  %v5066_v55 = vpop.permute.xlu0 %5065  ;;  %v19336_v6 = vld [vmem:[#allocation40_spill] sm:$0xff] }
 0x5ba   :  { %19330 = vst [vmem:[#allocation57_spill] sm:$0xff] %v14988_v29  ;;  %11078 = vrcp.f32 %v14988_v29  ;;  %v5186_v3 = vmul.f32 %v5149_v50, %v5061_v52  ;;  %v15017_v32 = vsub.f32 %v19336_v6, %v5179_v51  ;;  %v5181_v52 = vmul.f32 %v14924_v19, %v5036_v57 }
 0x5bb   :  { %v5498_v44 = vmul.f32 %v5453_v23, %v14920_v31  ;;  %v5157_v6 = vrot.slane %v15014_v39, %v14408_v60  ;;  %v15034_v19 = vsub.f32 %v14637_v1, %v14772_v59 }
 0x5bc   :  { %v15005_v27 = vpop.eup %11074  ;;  %v15008_v5 = vsub.f32 %v19326_v14, %v5186_v3  ;;  %19337 = vst [vmem:[#allocation53_spill] sm:$0xff] %v15017_v32  ;;  %v5499_v8 = vmul.f32 %v5453_v23, %v15017_v32  ;;  %v5183_v23 = vmul.f32 %v14946_v43, %v5046_v54  ;;  %v19340_v43 = vld [vmem:[#allocation41_spill] sm:$0xff] }
 0x5bd   :  { %v5457_v10 = vrot.slane %v15005_v27, %v14815_v53  ;;  %v5071_v63 = vpop.permute.xlu1 %5070  ;;  %5679 = vperm.xlu0 %10741, %v5498_v44   ;;  %5674 = vperm.xlu1 %10740, %v5497_v47   ;;  %v5076_v14 = vpop.permute.xlu0 %5075  ;;  %v19338_v47 = vld [vmem:[#allocation34_spill] sm:$0xff] }
 0x5be   :  { %19335 = vst [vmem:[#allocation15_spill] sm:$0xff] %v15008_v5  ;;  %11080 = vrcp.f32 %v15008_v5  ;;  %v5188_v3 = vmul.f32 %v5153_v40, %v5071_v63  ;;  %v15037_v57 = vsub.f32 %v19338_v47, %v5181_v52  ;;  %v5161_v47 = vrot.slane %v15034_v19, %v14408_v60 }
 0x5bf   :  { %v5500_v31 = vmul.f32 %v5457_v10, %v14942_v13  ;;  %v15053_v54 = vsub.f32 %v19340_v43, %v5183_v23  ;;  %v19342_v43 = vld [vmem:[#allocation45_spill] sm:$0xff] }
 0x5c0   :  { %v15025_v38 = vpop.eup %11076  ;;  %v15028_v51 = vsub.f32 %v19331_v34, %v5188_v3  ;;  %19339 = vst [vmem:[#allocation38_spill] sm:$0xff] %v15037_v57  ;;  %v5501_v32 = vmul.f32 %v5457_v10, %v15037_v57 }
 0x5c1   :  { %v5461_v44 = vrot.slane %v15025_v38, %v14815_v53  ;;  %v5081_v63 = vpop.permute.xlu1 %5080  ;;  %5689 = vperm.xlu0 %10741, %v5500_v31   ;;  %5684 = vperm.xlu1 %10740, %v5499_v8   ;;  %v5086_v34 = vpop.permute.xlu0 %5085  ;;  %19341 = vst [vmem:[#allocation21_spill] sm:$0xff] %v15053_v54  ;;  %v5185_v8 = vmul.f32 %v14969_v15, %v5056_v56 }
 0x5c2   :  { %11082 = vrcp.f32 %v15028_v51  ;;  %v5190_v3 = vmul.f32 %v5157_v6, %v5081_v63  ;;  %v5187_v56 = vmul.f32 %v5149_v50, %v5066_v55 }
 0x5c3   :  { %v5502_v59 = vmul.f32 %v5461_v44, %v14965_v48  ;;  %v15067_v48 = vsub.f32 %v19342_v43, %v5185_v8  ;;  %v5189_v43 = vmul.f32 %v5153_v40, %v5076_v14 }
 0x5c4   :  { %v15045_v13 = vpop.eup %11078  ;;  %v15048_v52 = vsub.f32 %v14622_v0, %v5190_v3  ;;  %v5503_v0 = vmul.f32 %v5461_v44, %v15053_v54 }
 0x5c5   :  { %v5465_v31 = vrot.slane %v15045_v13, %v14815_v53  ;;  %v5091_v63 = vpop.permute.xlu1 %5090  ;;  %5699 = vperm.xlu0 %10741, %v5502_v59   ;;  %5694 = vperm.xlu1 %10740, %v5501_v32   ;;  %v5096_v10 = vpop.permute.xlu0 %5095  ;;  %19343 = vst [vmem:[#allocation40_spill] sm:$0xff] %v15067_v48 }
 0x5c6   :  { %11084 = vrcp.f32 %v15048_v52  ;;  %v5192_v57 = vmul.f32 %v5161_v47, %v5091_v63 }
 0x5c7   :  { %v5504_v3 = vmul.f32 %v5465_v31, %v14988_v29  ;;  %v5505_v44 = vmul.f32 %v5465_v31, %v15067_v48  ;;  %v19346_v48 = vld [vmem:[#allocation23_spill] sm:$0xff]  ;;  %v5322_v29 = vrot.slane %v14776_v9, 5  ;;  %v5193_v9 = vmul.f32 %v5161_v47, %v5096_v10 }
 0x5c8   :  { %v15061_v60 = vpop.eup %11080  ;;  %v15064_v23 = vsub.f32 %v14637_v1, %v5192_v57  ;;  %v19344_v1 = vld [vmem:[#allocation13_spill] sm:$0xff]  ;;  %v5326_v47 = vrot.slane %v14811_v35, 5  ;;  %v5551_v35 = vrot.slane %v14851_v25, 6 }
 0x5c9   :  { %v5469_v15 = vrot.slane %v15061_v60, %v14815_v53  ;;  %v5229_v32 = vpop.permute.xlu1 %5228  ;;  %5709 = vperm.xlu0 %10741, %v5504_v3   ;;  %5704 = vperm.xlu1 %10740, %v5503_v0   ;;  %v5234_v59 = vpop.permute.xlu0 %5233  ;;  %v15077_v57 = vsub.f32 %v19344_v1, %v5187_v56  ;;  %v5191_v1 = vmul.f32 %v5157_v6, %v5086_v34  ;;  %v5324_v34 = vrot.slane %v14791_v62, 5 }
 0x5ca   :  { %11086 = vrcp.f32 %v15064_v23  ;;  %v5549_v62 = vrot.slane %v14817_v4, 6  ;;  %v5550_v4 = vrot.slane %v14836_v30, 6  ;;  %v5552_v30 = vrot.slane %v14873_v16, 6 }
 0x5cb   :  { %v5506_v63 = vmul.f32 %v5469_v15, %v15008_v5  ;;  %19345 = vst [vmem:[#allocation34_spill] sm:$0xff] %v15077_v57  ;;  %v5507_v0 = vmul.f32 %v5469_v15, %v15077_v57  ;;  %v15086_v5 = vsub.f32 %v19346_v48, %v5189_v43  ;;  %v5354_v15 = vmul.f32 %v5322_v29, %v5229_v32 }
 0x5cc   :  { %v15074_v54 = vpop.eup %11082  ;;  %v5323_v48 = vrot.slane %v14782_v42, 5  ;;  %v15097_v43 = vsub.f32 %v14660_v21, %v5191_v1  ;;  %v5325_v21 = vrot.slane %v14801_v45, 5 }
 0x5cd   :  { %v5473_v8 = vrot.slane %v15074_v54, %v14815_v53  ;;  %v5239_v50 = vpop.permute.xlu1 %5238  ;;  %5719 = vperm.xlu0 %10741, %v5506_v63   ;;  %5714 = vperm.xlu1 %10740, %v5505_v44   ;;  %v5244_v55 = vpop.permute.xlu0 %5243  ;;  %19347 = vst [vmem:[#allocation41_spill] sm:$0xff] %v15086_v5  ;;  %v15104_v32 = vsub.f32 %v14677_v58, %v5354_v15  ;;  %v5328_v15 = vrot.slane %v14845_v20, 5  ;;  %v5553_v20 = vrot.slane %v14895_v24, 6 }
 0x5ce   :  { %v5357_v58 = vmul.f32 %v5325_v21, %v5244_v55  ;;  %v5554_v24 = vrot.slane %v14917_v11, 6 }
 0x5cf   :  { %v5508_v3 = vmul.f32 %v5473_v8, %v15028_v51  ;;  %v5509_v44 = vmul.f32 %v5473_v8, %v15086_v5  ;;  %v5355_v8 = vmul.f32 %v5323_v48, %v5234_v59  ;;  %v15109_v5 = vsub.f32 %v14671_v17, %v5193_v9 }
 0x5d0   :  { %v15083_v31 = vpop.eup %11084 }
 0x5d1   :  { %v5477_v56 = vrot.slane %v15083_v31, %v14815_v53  ;;  %v5249_v40 = vpop.permute.xlu1 %5248  ;;  %5729 = vperm.xlu0 %10741, %v5508_v3   ;;  %5724 = vperm.xlu1 %10740, %v5507_v0   ;;  %v5254_v14 = vpop.permute.xlu0 %5253  ;;  %v5356_v3 = vmul.f32 %v5324_v34, %v5239_v50  ;;  %v15114_v10 = vsub.f32 %v14681_v22, %v5355_v8 }
 0x5d2   :  { %v5358_v17 = vmul.f32 %v5326_v47, %v5249_v40  ;;  %v15126_v22 = vsub.f32 %v14694_v18, %v5357_v58  ;;  %v5330_v18 = vrot.slane %v14884_v41, 5  ;;  %v5555_v41 = vrot.slane %v14939_v49, 6  ;;  %v19350_v49 = vld [vmem:[#allocation51_spill] sm:$0xff] }
 0x5d3   :  { %v5510_v63 = vmul.f32 %v5477_v56, %v15048_v52  ;;  %v5511_v29 = vmul.f32 %v5477_v56, %v15097_v43  ;;  %v5581_v56 = vmul.f32 %v5549_v62, %v15104_v32  ;;  %v15119_v45 = vsub.f32 %v14691_v7, %v5356_v3  ;;  %v19349_v62 = vld [vmem:[#allocation48_spill] sm:$0xff] }
 0x5d4   :  { %v15093_v57 = vpop.eup %11086  ;;  %v5582_v48 = vmul.f32 %v5550_v4, %v15114_v10  ;;  %v15131_v40 = vsub.f32 %v14701_v26, %v5358_v17  ;;  %v5333_v47 = vrot.slane %v19349_v62, 5  ;;  %v5556_v58 = vrot.slane %v19350_v49, 6 }
 0x5d5   :  { %v5481_v6 = vrot.slane %v15093_v57, %v14815_v53  ;;  %v5259_v0 = vpop.permute.xlu1 %5258  ;;  %5739 = vperm.xlu0 %10741, %v5510_v63   ;;  %5734 = vperm.xlu1 %10740, %v5509_v44   ;;  %v5264_v1 = vpop.permute.xlu0 %5263  ;;  %v5327_v44 = vrot.slane %v14826_v2, 5  ;;  %v5583_v7 = vmul.f32 %v5551_v35, %v15119_v45 }
 0x5d6   :  { %v5360_v2 = vmul.f32 %v5328_v15, %v5259_v0  ;;  %v5585_v26 = vmul.f32 %v5553_v20, %v15131_v40  ;;  %v19353_v15 = vld [vmem:[#allocation37_spill] sm:$0xff] }
 0x5d7   :  { %v5512_v42 = vmul.f32 %v5481_v6, %v15064_v23  ;;  %v5513_v50 = vmul.f32 %v5481_v6, %v15109_v5  ;;  %v5359_v55 = vmul.f32 %v5327_v44, %v5254_v14  ;;  %v5329_v6 = vrot.slane %v14862_v12, 5 }
 0x5d8   :  { %v5584_v14 = vmul.f32 %v5552_v30, %v15126_v22  ;;  %v15143_v34 = vsub.f32 %v14714_v36, %v5360_v2  ;;  %v5331_v12 = vrot.slane %v14906_v33, 5  ;;  %v19354_v2 = vld [vmem:[#allocation50_spill] sm:$0xff] }
 0x5d9   :  { %5749 = vperm.xlu0 %10741, %v5512_v42   ;;  %5744 = vperm.xlu1 %10740, %v5511_v29   ;;  %v5269_v59 = vpop.permute.xlu1 %5268  ;;  %v5274_v63 = vpop.permute.xlu0 %5273  ;;  %v15139_v9 = vsub.f32 %v14706_v61, %v5359_v55  ;;  %v5361_v16 = vmul.f32 %v5329_v6, %v5264_v1  ;;  %v5332_v29 = vrot.slane %v14928_v37, 5  ;;  %v19348_v1 = vld [vmem:[#allocation25_spill] sm:$0xff]  ;;  %v5557_v37 = vrot.slane %v14985_v28, 6  ;;  %v19355_v6 = vld [vmem:[#allocation11_spill] sm:$0xff] }
 0x5da   :  { %v5362_v0 = vmul.f32 %v5330_v18, %v5269_v59  ;;  %v5363_v3 = vmul.f32 %v5331_v12, %v5274_v63  ;;  %v5587_v36 = vmul.f32 %v5555_v41, %v15143_v34  ;;  %v19351_v59 = vld [vmem:[#allocation55_spill] sm:$0xff]  ;;  %v5335_v30 = vrot.slane %v19354_v2, 5 }
 0x5db   :  { %v5586_v61 = vmul.f32 %v5554_v24, %v15139_v9  ;;  %v15152_v21 = vsub.f32 %v14718_v46, %v5361_v16  ;;  %v5561_v12 = vrot.slane %v15061_v60, 6 }
 0x5dc   :  { %v15155_v11 = vsub.f32 %v19348_v1, %v5362_v0  ;;  %v5563_v1 = vrot.slane %v15083_v31, 6  ;;  %v19366_v31 = vmov 0.0  }
 0x5dd   :  { %5887 = vperm.xlu0 %10741, %v5581_v56   ;;  %5754 = vperm.xlu1 %10740, %v5513_v50   ;;  %v5279_v25 = vpop.permute.xlu1 %5278  ;;  %v5284_v8 = vpop.permute.xlu0 %5283  ;;  %v5334_v50 = vrot.slane %v19351_v59, 5  ;;  %v19352_v56 = vld [vmem:[#allocation26_spill] sm:$0xff]  ;;  %v5588_v4 = vmul.f32 %v5556_v58, %v15152_v21  ;;  %v11409_v58 = vmov 7   ;;  %v19367_v59 = vld [vmem:[#allocation56_spill] sm:$0xff] }
 0x5de   :  { %v5364_v33 = vmul.f32 %v5332_v29, %v5279_v25  ;;  %v15162_v17 = vsub.f32 %v19352_v56, %v5363_v3  ;;  %v5365_v44 = vmul.f32 %v5333_v47, %v5284_v8  ;;  %v5589_v35 = vmul.f32 %v5557_v37, %v15155_v11  ;;  %v19359_v29 = vld [vmem:[#allocation30_spill] sm:$0xff]  ;;  %v19361_v3 = vld [vmem:[#allocation28_spill] sm:$0xff] }
 0x5df   :  { %v5336_v25 = vrot.slane %v15014_v39, 5  ;;  %v5337_v39 = vrot.slane %v15034_v19, 5  ;;  %v5564_v47 = vrot.slane %v15093_v57, 6  ;;  %v19368_v56 = vld [vmem:[#allocation20_spill] sm:$0xff] }
 0x5e0   :  { %v15167_v55 = vsub.f32 %v19353_v15, %v5364_v33  ;;  %v15175_v18 = vsub.f32 %v19355_v6, %v5365_v44  ;;  %v19363_v33 = vld [vmem:[#allocation29_spill] sm:$0xff] }
 0x5e1   :  { %5897 = vperm.xlu0 %10741, %v5583_v7   ;;  %5892 = vperm.xlu1 %10740, %v5582_v48   ;;  %v5289_v42 = vpop.permute.xlu1 %5288  ;;  %v5294_v46 = vpop.permute.xlu0 %5293  ;;  %v5558_v48 = vrot.slane %v15005_v27, 6  ;;  %v5559_v7 = vrot.slane %v15025_v38, 6  ;;  %v5560_v38 = vrot.slane %v15045_v13, 6  ;;  %v5562_v13 = vrot.slane %v15074_v54, 6  ;;  %v19365_v54 = vld [vmem:[#allocation9_spill] sm:$0xff] }
 0x5e2   :  { %v5366_v63 = vmul.f32 %v5334_v50, %v5289_v42  ;;  %19356 = vst [vmem:[#allocation45_spill] sm:$0xff] %v15175_v18  ;;  %v5367_v27 = vmul.f32 %v5335_v30, %v5294_v46  ;;  %vm5514_vm1 = vcmp.eq.s32.totalorder %v19365_v54, 6 }
 0x5e3   :  { %v5590_v20 = vmul.f32 %v5558_v48, %v15162_v17  ;;  %v5592_v8 = vmul.f32 %v5560_v38, %v15175_v18  ;;  %v15203_v37 = vsel %vm5514_vm1, 1.0, %v19366_v31 }
 0x5e4   :  { %v15207_v50 = vsub.f32 %v19367_v59, %v15203_v37  ;;  %v15213_v44 = vsub.f32 %v19368_v56, %v15203_v37 }
 0x5e5   :  { %5907 = vperm.xlu0 %10741, %v5585_v26   ;;  %5902 = vperm.xlu1 %10740, %v5584_v14   ;;  %v5299_v28 = vpop.permute.xlu1 %5298  ;;  %v5591_v14 = vmul.f32 %v5559_v7, %v15167_v55  ;;  %v19357_v26 = vld [vmem:[#allocation19_spill] sm:$0xff]  ;;  %v5304_v24 = vpop.permute.xlu0 %5303 }
 0x5e6   :  { %v15179_v16 = vsub.f32 %v19357_v26, %v5366_v63  ;;  %v5368_v0 = vmul.f32 %v5336_v25, %v5299_v28  ;;  %v5760_v57 = vrot.slane %v15207_v50, %v14815_v53  ;;  %v5764_v15 = vrot.slane %v15213_v44, %v14815_v53  ;;  %v19370_v63 = vld [vmem:[#allocation12_spill] sm:$0xff] }
 0x5e7   :  { %v15222_v48 = vsub.f32 %v19370_v63, %v15203_v37 }
 0x5e8   :  { %19358 = vst [vmem:[#allocation13_spill] sm:$0xff] %v15179_v16  ;;  %v5593_v41 = vmul.f32 %v5561_v12, %v15179_v16  ;;  %v15190_v42 = vsub.f32 %v19361_v3, %v5368_v0  ;;  %v19375_v3 = vld [vmem:[#allocation7_spill] sm:$0xff] }
 0x5e9   :  { %5917 = vperm.xlu0 %10741, %v5587_v36   ;;  %5912 = vperm.xlu1 %10740, %v5586_v61   ;;  %v15187_v61 = vsub.f32 %v19359_v29, %v5367_v27  ;;  %v5369_v36 = vmul.f32 %v5337_v39, %v5304_v24  ;;  %v5768_v25 = vrot.slane %v15222_v48, %v14815_v53  ;;  %v19374_v24 = vld [vmem:[#allocation16_spill] sm:$0xff] }
 0x5ea   :  { %19362 = vst [vmem:[#allocation25_spill] sm:$0xff] %v15190_v42  ;;  %v5595_v19 = vmul.f32 %v5563_v1, %v15190_v42  ;;  %v15242_v12 = vsub.f32 %v19374_v24, %v15203_v37 }
 0x5eb   :  { %19360 = vst [vmem:[#allocation23_spill] sm:$0xff] %v15187_v61  ;;  %v5594_v60 = vmul.f32 %v5562_v13, %v15187_v61  ;;  %v15197_v62 = vsub.f32 %v19363_v33, %v5369_v36  ;;  %v15246_v36 = vsub.s32 7, %v19375_v3 }
 0x5ed   :  { %5927 = vperm.xlu0 %10741, %v5589_v35   ;;  %5922 = vperm.xlu1 %10740, %v5588_v4   ;;  %19364 = vst [vmem:[#allocation48_spill] sm:$0xff] %v15197_v62  ;;  %v5596_v49 = vmul.f32 %v5564_v47, %v15197_v62 }
 0x5f1   :  { %5937 = vperm.xlu0 %10741, %v5591_v14   ;;  %5932 = vperm.xlu1 %10740, %v5590_v20   ;;  %v19372_v20 = vld [vmem:[#allocation14_spill] sm:$0xff] }
 0x5f2   :  { %v15232_v6 = vsub.f32 %v19372_v20, %v15203_v37 }
 0x5f4   :  { %v5772_v38 = vrot.slane %v15232_v6, %v14815_v53 }
 0x5f5   :  { %5947 = vperm.xlu0 %10741, %v5593_v41   ;;  %5942 = vperm.xlu1 %10740, %v5592_v8  }
 0x5f9   :  { %5957 = vperm.xlu0 %10741, %v5595_v19   ;;  %5952 = vperm.xlu1 %10740, %v5594_v60   ;;  %v5776_v60 = vrot.slane %v15242_v12, %v14815_v53  ;;  %v19377_v19 = vld [vmem:[#allocation18_spill] sm:$0xff] }
 0x5fa   :  { %v15257_v33 = vsub.f32 %v19377_v19, %v15203_v37 }
 0x5fd   :  { %5962 = vperm.xlu1 %10740, %v5596_v49   ;;  %10742 = vset.pattern.permute.xlu0 %v11409_v58  ;;  %v19378_v49 = vld [vmem:[#allocation32_spill] sm:$0xff] }
 0x601   :  { %10743 = vset.pattern.permute.xlu1 %v11409_v58 }
 0x61c   :  { %v5600_v46 = vpop.permute.xlu1 %5599  ;;  %v5605_v28 = vpop.permute.xlu0 %5604 }
 0x61d   :  { %v5821_v4 = vmul.f32 %v5760_v57, %v5600_v46  ;;  %v5822_v39 = vmul.f32 %v5760_v57, %v5605_v28 }
 0x61f   :  { %v15216_v35 = vsub.f32 %v19367_v59, %v5821_v4  ;;  %v15262_v58 = vsub.f32 %v19378_v49, %v5822_v39 }
 0x620   :  { %v5610_v7 = vpop.permute.xlu1 %5609 }
 0x621   :  { %19369 = vst [vmem:[#allocation51_spill] sm:$0xff] %v15216_v35  ;;  %11088 = vrcp.f32 %v15216_v35  ;;  %v5823_v2 = vmul.f32 %v5764_v15, %v5610_v7  ;;  %19379 = vst [vmem:[#allocation50_spill] sm:$0xff] %v15262_v58  ;;  %v5780_v7 = vrot.slane %v15257_v33, %v14815_v53 }
 0x623   :  { %v15226_v30 = vsub.f32 %v19368_v56, %v5823_v2  ;;  %v19381_v2 = vld [vmem:[#allocation24_spill] sm:$0xff] }
 0x624   :  { %v5615_v14 = vpop.permute.xlu1 %5614  ;;  %v5620_v26 = vpop.permute.xlu0 %5619 }
 0x625   :  { %19371 = vst [vmem:[#allocation55_spill] sm:$0xff] %v15226_v30  ;;  %11090 = vrcp.f32 %v15226_v30  ;;  %v5825_v27 = vmul.f32 %v5768_v25, %v5620_v26  ;;  %v5824_v59 = vmul.f32 %v5764_v15, %v5615_v14  ;;  %v19382_v14 = vld [vmem:[#allocation22_spill] sm:$0xff] }
 0x627   :  { %v15236_v0 = vsub.f32 %v19370_v63, %v5825_v27  ;;  %v15280_v26 = vsub.f32 %v19382_v14, %v5824_v59  ;;  %v19385_v59 = vld [vmem:[#allocation39_spill] sm:$0xff] }
 0x628   :  { %v5625_v8 = vpop.permute.xlu1 %5624  ;;  %v5630_v41 = vpop.permute.xlu0 %5629 }
 0x629   :  { %19373 = vst [vmem:[#allocation26_spill] sm:$0xff] %v15236_v0  ;;  %11092 = vrcp.f32 %v15236_v0  ;;  %v5827_v29 = vmul.f32 %v5772_v38, %v5630_v41  ;;  %19383 = vst [vmem:[#allocation19_spill] sm:$0xff] %v15280_v26  ;;  %v5826_v27 = vmul.f32 %v5768_v25, %v5625_v8  ;;  %v19386_v25 = vld [vmem:[#allocation36_spill] sm:$0xff] }
 0x62b   :  { %v15248_v13 = vpop.eup %11088  ;;  %v15251_v1 = vsub.f32 %v19372_v20, %v5827_v29  ;;  %v15275_v20 = vsub.f32 %v19381_v2, %v15203_v37  ;;  %v15296_v8 = vsub.f32 %v19386_v25, %v5826_v27  ;;  %v19389_v25 = vld [vmem:[#allocation44_spill] sm:$0xff] }
 0x62c   :  { %v6080_v47 = vrot.slane %v15248_v13, %v15246_v36  ;;  %v5635_v57 = vpop.permute.xlu1 %5634  ;;  %v5640_v56 = vpop.permute.xlu0 %5639 }
 0x62d   :  { %19376 = vst [vmem:[#allocation37_spill] sm:$0xff] %v15251_v1  ;;  %11094 = vrcp.f32 %v15251_v1  ;;  %v5829_v46 = vmul.f32 %v5776_v60, %v5640_v56  ;;  %v5784_v49 = vrot.slane %v15275_v20, %v14815_v53  ;;  %v15293_v56 = vsub.f32 %v19385_v59, %v15203_v37  ;;  %19387 = vst [vmem:[#allocation28_spill] sm:$0xff] %v15296_v8 }
 0x62e   :  { %v6141_v4 = vmul.f32 %v6080_v47, %v15262_v58  ;;  %v15311_v1 = vsub.f32 %v19389_v25, %v15203_v37 }
 0x62f   :  { %v15266_v63 = vpop.eup %11090  ;;  %v15269_v28 = vsub.f32 %v19374_v24, %v5829_v46  ;;  %v5788_v27 = vrot.slane %v15293_v56, %v14815_v53 }
 0x630   :  { %v6084_v15 = vrot.slane %v15266_v63, %v15246_v36  ;;  %v5645_v39 = vpop.permute.xlu1 %5644  ;;  %6242 = vperm.xlu0 %10742, %v6141_v4   ;;  %v5650_v41 = vpop.permute.xlu0 %5649  ;;  %v5828_v4 = vmul.f32 %v5772_v38, %v5635_v57  ;;  %v19390_v38 = vld [vmem:[#allocation43_spill] sm:$0xff] }
 0x631   :  { %19380 = vst [vmem:[#allocation11_spill] sm:$0xff] %v15269_v28  ;;  %11096 = vrcp.f32 %v15269_v28  ;;  %v5831_v24 = vmul.f32 %v5780_v7, %v5650_v41 }
 0x632   :  { %v6142_v29 = vmul.f32 %v6084_v15, %v15280_v26  ;;  %v15314_v57 = vsub.f32 %v19390_v38, %v5828_v4  ;;  %v5792_v4 = vrot.slane %v15311_v1, %v14815_v53  ;;  %v19393_v38 = vld [vmem:[#allocation46_spill] sm:$0xff] }
 0x633   :  { %v15284_v3 = vpop.eup %11092  ;;  %v15287_v47 = vsub.f32 %v19377_v19, %v5831_v24  ;;  %v15329_v0 = vsub.f32 %v19393_v38, %v15203_v37 }
 0x634   :  { %v6088_v46 = vrot.slane %v15284_v3, %v15246_v36  ;;  %v5655_v15 = vpop.permute.xlu1 %5654  ;;  %6247 = vperm.xlu1 %10743, %v6142_v29   ;;  %v5660_v14 = vpop.permute.xlu0 %5659  ;;  %19391 = vst [vmem:[#allocation56_spill] sm:$0xff] %v15314_v57 }
 0x635   :  { %19384 = vst [vmem:[#allocation30_spill] sm:$0xff] %v15287_v47  ;;  %11098 = vrcp.f32 %v15287_v47  ;;  %v5833_v19 = vmul.f32 %v5784_v49, %v5660_v14  ;;  %v5830_v14 = vmul.f32 %v5776_v60, %v5645_v39  ;;  %v19394_v60 = vld [vmem:[#allocation35_spill] sm:$0xff] }
 0x636   :  { %v6143_v41 = vmul.f32 %v6088_v46, %v15296_v8 }
 0x637   :  { %v15302_v24 = vpop.eup %11094  ;;  %v15305_v28 = vsub.f32 %v19381_v2, %v5833_v19  ;;  %v15332_v39 = vsub.f32 %v19394_v60, %v5830_v14  ;;  %v5796_v14 = vrot.slane %v15329_v0, %v14815_v53  ;;  %v19397_v60 = vld [vmem:[#allocation49_spill] sm:$0xff] }
 0x638   :  { %v6092_v29 = vrot.slane %v15302_v24, %v15246_v36  ;;  %v5665_v46 = vpop.permute.xlu1 %5664  ;;  %6252 = vperm.xlu1 %10743, %v6143_v41   ;;  %v5670_v47 = vpop.permute.xlu0 %5669  ;;  %v5832_v41 = vmul.f32 %v5780_v7, %v5655_v15  ;;  %v15347_v30 = vsub.f32 %v19397_v60, %v15203_v37  ;;  %v19398_v7 = vld [vmem:[#allocation47_spill] sm:$0xff] }
 0x639   :  { %19388 = vst [vmem:[#allocation29_spill] sm:$0xff] %v15305_v28  ;;  %11100 = vrcp.f32 %v15305_v28  ;;  %v5835_v2 = vmul.f32 %v5788_v27, %v5670_v47  ;;  %19395 = vst [vmem:[#allocation12_spill] sm:$0xff] %v15332_v39 }
 0x63a   :  { %v6144_v19 = vmul.f32 %v6092_v29, %v15314_v57  ;;  %v15350_v15 = vsub.f32 %v19398_v7, %v5832_v41  ;;  %v5800_v41 = vrot.slane %v15347_v30, %v14815_v53  ;;  %v19401_v7 = vld [vmem:[#allocation57_spill] sm:$0xff] }
 0x63b   :  { %v15320_v8 = vpop.eup %11096  ;;  %v15323_v26 = vsub.f32 %v19385_v59, %v5835_v2  ;;  %v15365_v31 = vsub.f32 %v19401_v7, %v15203_v37 }
 0x63c   :  { %v6096_v47 = vrot.slane %v15320_v8, %v15246_v36  ;;  %v5675_v29 = vpop.permute.xlu1 %5674  ;;  %6257 = vperm.xlu0 %10742, %v6144_v19   ;;  %v5680_v28 = vpop.permute.xlu0 %5679  ;;  %19399 = vst [vmem:[#allocation16_spill] sm:$0xff] %v15350_v15  ;;  %v5834_v19 = vmul.f32 %v5784_v49, %v5665_v46  ;;  %v19402_v49 = vld [vmem:[#allocation52_spill] sm:$0xff] }
 0x63d   :  { %19392 = vst [vmem:[#allocation20_spill] sm:$0xff] %v15323_v26  ;;  %11102 = vrcp.f32 %v15323_v26  ;;  %v5837_v59 = vmul.f32 %v5792_v4, %v5680_v28 }
 0x63e   :  { %v6145_v2 = vmul.f32 %v6096_v47, %v15332_v39  ;;  %v15368_v46 = vsub.f32 %v19402_v49, %v5834_v19  ;;  %v5804_v19 = vrot.slane %v15365_v31, %v14815_v53  ;;  %v19405_v49 = vld [vmem:[#allocation15_spill] sm:$0xff] }
 0x63f   :  { %v15338_v57 = vpop.eup %11098  ;;  %v15341_v58 = vsub.f32 %v19389_v25, %v5837_v59  ;;  %v15383_v62 = vsub.f32 %v19405_v49, %v15203_v37 }
 0x640   :  { %v6100_v28 = vrot.slane %v15338_v57, %v15246_v36  ;;  %v5685_v47 = vpop.permute.xlu1 %5684  ;;  %6262 = vperm.xlu1 %10743, %v6145_v2   ;;  %v5690_v26 = vpop.permute.xlu0 %5689  ;;  %19403 = vst [vmem:[#allocation18_spill] sm:$0xff] %v15368_v46  ;;  %v5836_v2 = vmul.f32 %v5788_v27, %v5675_v29  ;;  %v19406_v27 = vld [vmem:[#allocation54_spill] sm:$0xff] }
 0x641   :  { %19396 = vst [vmem:[#allocation14_spill] sm:$0xff] %v15341_v58  ;;  %11104 = vrcp.f32 %v15341_v58  ;;  %v5839_v25 = vmul.f32 %v5796_v14, %v5690_v26 }
 0x642   :  { %v6146_v59 = vmul.f32 %v6100_v28, %v15350_v15  ;;  %v15386_v29 = vsub.f32 %v19406_v27, %v5836_v2  ;;  %v5808_v2 = vrot.slane %v15383_v62, %v14815_v53  ;;  %v15401_v27 = vsub.f32 %v15028_v51, %v15203_v37 }
 0x643   :  { %v15356_v39 = vpop.eup %11100  ;;  %v15359_v35 = vsub.f32 %v19393_v38, %v5839_v25 }
 0x644   :  { %v6104_v26 = vrot.slane %v15356_v39, %v15246_v36  ;;  %v5695_v28 = vpop.permute.xlu1 %5694  ;;  %6267 = vperm.xlu0 %10742, %v6146_v59   ;;  %v5700_v58 = vpop.permute.xlu0 %5699  ;;  %19407 = vst [vmem:[#allocation24_spill] sm:$0xff] %v15386_v29  ;;  %v5838_v59 = vmul.f32 %v5792_v4, %v5685_v47  ;;  %v19409_v4 = vld [vmem:[#allocation53_spill] sm:$0xff] }
 0x645   :  { %19400 = vst [vmem:[#allocation7_spill] sm:$0xff] %v15359_v35  ;;  %11106 = vrcp.f32 %v15359_v35  ;;  %v5841_v38 = vmul.f32 %v5800_v41, %v5700_v58 }
 0x646   :  { %v6147_v25 = vmul.f32 %v6104_v26, %v15368_v46  ;;  %v15404_v47 = vsub.f32 %v19409_v4, %v5838_v59  ;;  %v5812_v59 = vrot.slane %v15401_v27, %v14815_v53  ;;  %v15419_v4 = vsub.f32 %v15048_v52, %v15203_v37 }
 0x647   :  { %v15374_v15 = vpop.eup %11102  ;;  %v15377_v54 = vsub.f32 %v19397_v60, %v5841_v38 }
 0x648   :  { %v6108_v58 = vrot.slane %v15374_v15, %v15246_v36  ;;  %v5705_v26 = vpop.permute.xlu1 %5704  ;;  %6272 = vperm.xlu1 %10743, %v6147_v25   ;;  %v5710_v35 = vpop.permute.xlu0 %5709  ;;  %19410 = vst [vmem:[#allocation39_spill] sm:$0xff] %v15404_v47  ;;  %v5840_v25 = vmul.f32 %v5796_v14, %v5695_v28  ;;  %v19412_v14 = vld [vmem:[#allocation38_spill] sm:$0xff] }
 0x649   :  { %19404 = vst [vmem:[#allocation32_spill] sm:$0xff] %v15377_v54  ;;  %11108 = vrcp.f32 %v15377_v54  ;;  %v5843_v60 = vmul.f32 %v5804_v19, %v5710_v35 }
 0x64a   :  { %v6148_v38 = vmul.f32 %v6108_v58, %v15386_v29  ;;  %v15422_v28 = vsub.f32 %v19412_v14, %v5840_v25  ;;  %v5816_v25 = vrot.slane %v15419_v4, %v14815_v53  ;;  %v15437_v14 = vsub.f32 %v15064_v23, %v15203_v37 }
 0x64b   :  { %v15392_v46 = vpop.eup %11104  ;;  %v15395_v42 = vsub.f32 %v19401_v7, %v5843_v60 }
 0x64c   :  { %v6112_v35 = vrot.slane %v15392_v46, %v15246_v36  ;;  %v5715_v58 = vpop.permute.xlu1 %5714  ;;  %6277 = vperm.xlu0 %10742, %v6148_v38   ;;  %v5720_v54 = vpop.permute.xlu0 %5719  ;;  %19413 = vst [vmem:[#allocation44_spill] sm:$0xff] %v15422_v28  ;;  %v5842_v38 = vmul.f32 %v5800_v41, %v5705_v26  ;;  %v19415_v41 = vld [vmem:[#allocation21_spill] sm:$0xff] }
 0x64d   :  { %19408 = vst [vmem:[#allocation22_spill] sm:$0xff] %v15395_v42  ;;  %11110 = vrcp.f32 %v15395_v42  ;;  %v5845_v7 = vmul.f32 %v5808_v2, %v5720_v54 }
 0x64e   :  { %v6149_v60 = vmul.f32 %v6112_v35, %v15404_v47  ;;  %v15440_v26 = vsub.f32 %v19415_v41, %v5842_v38  ;;  %v5820_v38 = vrot.slane %v15437_v14, %v14815_v53  ;;  %v19417_v41 = vld [vmem:[#allocation40_spill] sm:$0xff]  ;;  %v19420_v53 = vld [vmem:[#allocation34_spill] sm:$0xff] }
 0x64f   :  { %v15410_v29 = vpop.eup %11106  ;;  %v15413_v61 = vsub.f32 %v19405_v49, %v5845_v7 }
 0x650   :  { %v6116_v54 = vrot.slane %v15410_v29, %v15246_v36  ;;  %v5725_v35 = vpop.permute.xlu1 %5724  ;;  %6282 = vperm.xlu1 %10743, %v6149_v60   ;;  %v5730_v42 = vpop.permute.xlu0 %5729  ;;  %v5844_v60 = vmul.f32 %v5804_v19, %v5715_v58 }
 0x651   :  { %19411 = vst [vmem:[#allocation36_spill] sm:$0xff] %v15413_v61  ;;  %11112 = vrcp.f32 %v15413_v61  ;;  %v5847_v49 = vmul.f32 %v5812_v59, %v5730_v42  ;;  %v5846_v58 = vmul.f32 %v5808_v2, %v5725_v35 }
 0x652   :  { %v6150_v7 = vmul.f32 %v6116_v54, %v15422_v28  ;;  %v15454_v18 = vsub.f32 %v19417_v41, %v5844_v60 }
 0x653   :  { %v15428_v47 = vpop.eup %11108  ;;  %v15431_v16 = vsub.f32 %v15028_v51, %v5847_v49  ;;  %v15466_v60 = vsub.f32 %v19420_v53, %v5846_v58 }
 0x654   :  { %v6120_v42 = vrot.slane %v15428_v47, %v15246_v36  ;;  %v5735_v54 = vpop.permute.xlu1 %5734  ;;  %6287 = vperm.xlu0 %10742, %v6150_v7   ;;  %v5740_v61 = vpop.permute.xlu0 %5739  ;;  %19418 = vst [vmem:[#allocation35_spill] sm:$0xff] %v15454_v18 }
 0x655   :  { %19414 = vst [vmem:[#allocation43_spill] sm:$0xff] %v15431_v16  ;;  %11114 = vrcp.f32 %v15431_v16  ;;  %v5849_v51 = vmul.f32 %v5816_v25, %v5740_v61  ;;  %19421 = vst [vmem:[#allocation47_spill] sm:$0xff] %v15466_v60  ;;  %v5848_v2 = vmul.f32 %v5812_v59, %v5735_v54 }
 0x656   :  { %v6151_v49 = vmul.f32 %v6120_v42, %v15440_v26 }
 0x657   :  { %v15446_v28 = vpop.eup %11110  ;;  %v15449_v37 = vsub.f32 %v15048_v52, %v5849_v51 }
 0x658   :  { %v6124_v19 = vrot.slane %v15446_v28, %v15246_v36  ;;  %v5745_v7 = vpop.permute.xlu1 %5744  ;;  %6292 = vperm.xlu1 %10743, %v6151_v49   ;;  %v5750_v61 = vpop.permute.xlu0 %5749 }
 0x659   :  { %19416 = vst [vmem:[#allocation46_spill] sm:$0xff] %v15449_v37  ;;  %11116 = vrcp.f32 %v15449_v37  ;;  %v5851_v42 = vmul.f32 %v5820_v38, %v5750_v61  ;;  %v5981_v37 = vrot.slane %v15207_v50, 6  ;;  %v5850_v58 = vmul.f32 %v5816_v25, %v5745_v7 }
 0x65a   :  { %v6152_v16 = vmul.f32 %v6124_v19, %v15454_v18 }
 0x65b   :  { %v15460_v52 = vpop.eup %11112  ;;  %v15463_v51 = vsub.f32 %v15064_v23, %v5851_v42  ;;  %v19422_v23 = vld [vmem:[#allocation41_spill] sm:$0xff] }
 0x65c   :  { %v6128_v41 = vrot.slane %v15460_v52, %v15246_v36  ;;  %v5755_v35 = vpop.permute.xlu1 %5754  ;;  %6297 = vperm.xlu0 %10742, %v6152_v16   ;;  %v5888_v49 = vpop.permute.xlu0 %5887  ;;  %v15476_v42 = vsub.f32 %v19422_v23, %v5848_v2  ;;  %v5983_v23 = vrot.slane %v15222_v48, 6 }
 0x65d   :  { %19419 = vst [vmem:[#allocation49_spill] sm:$0xff] %v15463_v51  ;;  %11118 = vrcp.f32 %v15463_v51  ;;  %v6013_v16 = vmul.f32 %v5981_v37, %v5888_v49  ;;  %v5852_v2 = vmul.f32 %v5820_v38, %v5755_v35  ;;  %v5985_v35 = vrot.slane %v15242_v12, 6 }
 0x65e   :  { %v6153_v61 = vmul.f32 %v6128_v41, %v15466_v60  ;;  %v5982_v41 = vrot.slane %v15213_v44, 6  ;;  %v15485_v60 = vsub.f32 %v15097_v43, %v5850_v58  ;;  %v6192_v43 = vrot.slane %v15248_v13, 7 }
 0x65f   :  { %v15472_v19 = vpop.eup %11114  ;;  %v15491_v37 = vsub.f32 %v15104_v32, %v6013_v16  ;;  %v5984_v58 = vrot.slane %v15232_v6, 6  ;;  %v15499_v38 = vsub.f32 %v15109_v5, %v5852_v2  ;;  %v6194_v12 = vrot.slane %v15284_v3, 7 }
 0x660   :  { %v6132_v53 = vrot.slane %v15472_v19, %v15246_v36  ;;  %v5893_v18 = vpop.permute.xlu1 %5892  ;;  %6302 = vperm.xlu1 %10743, %v6153_v61   ;;  %v5898_v59 = vpop.permute.xlu0 %5897  ;;  %v5987_v2 = vrot.slane %v15275_v20, 6  ;;  %v6195_v3 = vrot.slane %v15302_v24, 7  ;;  %v6196_v20 = vrot.slane %v15320_v8, 7 }
 0x661   :  { %v6014_v61 = vmul.f32 %v5982_v41, %v5893_v18  ;;  %v6224_v18 = vmul.f32 %v6192_v43, %v15491_v37  ;;  %v5986_v41 = vrot.slane %v15257_v33, 6 }
 0x662   :  { %v6154_v54 = vmul.f32 %v6132_v53, %v15476_v42  ;;  %v6015_v53 = vmul.f32 %v5983_v23, %v5898_v59 }
 0x663   :  { %v15481_v51 = vpop.eup %11116  ;;  %v15507_v13 = vsub.f32 %v15114_v10, %v6014_v61  ;;  %v5988_v61 = vrot.slane %v15293_v56, 6  ;;  %v6197_v56 = vrot.slane %v15338_v57, 7 }
 0x664   :  { %v6136_v50 = vrot.slane %v15481_v51, %v15246_v36  ;;  %v5903_v25 = vpop.permute.xlu1 %5902  ;;  %6307 = vperm.xlu0 %10742, %v6154_v54   ;;  %v5908_v7 = vpop.permute.xlu0 %5907  ;;  %v15510_v6 = vsub.f32 %v15119_v45, %v6015_v53  ;;  %v5989_v53 = vrot.slane %v15311_v1, 6  ;;  %v5990_v1 = vrot.slane %v15329_v0, 6 }
 0x665   :  { %v6016_v59 = vmul.f32 %v5984_v58, %v5903_v25  ;;  %v6017_v5 = vmul.f32 %v5985_v35, %v5908_v7 }
 0x666   :  { %v6155_v49 = vmul.f32 %v6136_v50, %v15485_v60  ;;  %v6193_v50 = vrot.slane %v15266_v63, 7  ;;  %v6226_v7 = vmul.f32 %v6194_v12, %v15510_v6 }
 0x667   :  { %v15494_v44 = vpop.eup %11118  ;;  %v15522_v33 = vsub.f32 %v15131_v40, %v6017_v5 }
 0x668   :  { %v6140_v48 = vrot.slane %v15494_v44, %v15246_v36  ;;  %v5913_v32 = vpop.permute.xlu1 %5912  ;;  %6312 = vperm.xlu1 %10743, %v6155_v49   ;;  %v5918_v16 = vpop.permute.xlu0 %5917  ;;  %v15517_v49 = vsub.f32 %v15126_v22, %v6016_v59  ;;  %v6225_v45 = vmul.f32 %v6193_v50, %v15507_v13  ;;  %v5993_v50 = vrot.slane %v15383_v62, 6 }
 0x669   :  { %v6018_v10 = vmul.f32 %v5986_v41, %v5913_v32  ;;  %v6019_v63 = vmul.f32 %v5987_v2, %v5918_v16  ;;  %v6228_v40 = vmul.f32 %v6196_v20, %v15522_v33  ;;  %v6198_v32 = vrot.slane %v15356_v39, 7 }
 0x66a   :  { %v6156_v54 = vmul.f32 %v6140_v48, %v15499_v38  ;;  %v6227_v58 = vmul.f32 %v6195_v3, %v15517_v49  ;;  %v5991_v16 = vrot.slane %v15347_v30, 6  ;;  %v5992_v39 = vrot.slane %v15365_v31, 6  ;;  %v19424_v3 = vld [vmem:[#allocation13_spill] sm:$0xff] }
 0x66b   :  { %v15530_v48 = vsub.f32 %v15139_v9, %v6018_v10  ;;  %v15534_v35 = vsub.f32 %v15143_v34, %v6019_v63  ;;  %v6199_v30 = vrot.slane %v15374_v15, 7  ;;  %v6200_v41 = vrot.slane %v15392_v46, 7 }
 0x66c   :  { %v5923_v23 = vpop.permute.xlu1 %5922  ;;  %6317 = vperm.xlu0 %10742, %v6156_v54   ;;  %6418 = vperm.xlu1 %10743, %v6224_v18   ;;  %v5928_v25 = vpop.permute.xlu0 %5927  ;;  %v6201_v15 = vrot.slane %v15410_v29, 7  ;;  %v6202_v62 = vrot.slane %v15428_v47, 7  ;;  %v5994_v10 = vrot.slane %v15401_v27, 6  ;;  %v6203_v47 = vrot.slane %v15446_v28, 7 }
 0x66d   :  { %v6020_v24 = vmul.f32 %v5988_v61, %v5923_v23  ;;  %v6021_v8 = vmul.f32 %v5989_v53, %v5928_v25  ;;  %v6229_v9 = vmul.f32 %v6197_v56, %v15530_v48  ;;  %v6230_v34 = vmul.f32 %v6198_v32, %v15534_v35  ;;  %v19428_v32 = vld [vmem:[#allocation48_spill] sm:$0xff] }
 0x66e   :  { %v6204_v27 = vrot.slane %v15460_v52, 7  ;;  %v6205_v28 = vrot.slane %v15472_v19, 7  ;;  %v19431_v19 = vmov 0.0  }
 0x66f   :  { %v15543_v5 = vsub.f32 %v15152_v21, %v6020_v24  ;;  %v15546_v57 = vsub.f32 %v15155_v11, %v6021_v8  ;;  %v19427_v24 = vld [vmem:[#allocation25_spill] sm:$0xff] }
 0x670   :  { %v5933_v43 = vpop.permute.xlu1 %5932  ;;  %6423 = vperm.xlu0 %10742, %v6225_v45   ;;  %6428 = vperm.xlu1 %10743, %v6226_v7   ;;  %v5938_v22 = vpop.permute.xlu0 %5937  ;;  %v19423_v7 = vld [vmem:[#allocation45_spill] sm:$0xff] }
 0x671   :  { %v6022_v59 = vmul.f32 %v5990_v1, %v5933_v43  ;;  %v6023_v0 = vmul.f32 %v5991_v16, %v5938_v22  ;;  %v6231_v23 = vmul.f32 %v6199_v30, %v15543_v5  ;;  %v6232_v11 = vmul.f32 %v6200_v41, %v15546_v57 }
 0x672   :  { %v6206_v1 = vrot.slane %v15481_v51, 7  ;;  %v19430_v51 = vld [vmem:[#allocation9_spill] sm:$0xff] }
 0x673   :  { %v15553_v12 = vsub.f32 %v15162_v17, %v6022_v59  ;;  %v15558_v25 = vsub.f32 %v15167_v55, %v6023_v0  ;;  %v5995_v17 = vrot.slane %v15419_v4, 6  ;;  %v5996_v4 = vrot.slane %v15437_v14, 6 }
 0x674   :  { %v5943_v18 = vpop.permute.xlu1 %5942  ;;  %6433 = vperm.xlu0 %10742, %v6227_v58   ;;  %6438 = vperm.xlu1 %10743, %v6228_v40   ;;  %v5948_v54 = vpop.permute.xlu0 %5947  ;;  %v19425_v58 = vld [vmem:[#allocation23_spill] sm:$0xff]  ;;  %v11410_v59 = vmov 8   ;;  %vm6157_vm2 = vcmp.eq.s32.totalorder %v19430_v51, 7 }
 0x675   :  { %v6024_v2 = vmul.f32 %v5992_v39, %v5943_v18  ;;  %v6025_v31 = vmul.f32 %v5993_v50, %v5948_v54  ;;  %v6233_v45 = vmul.f32 %v6201_v15, %v15553_v12  ;;  %v6234_v55 = vmul.f32 %v6202_v62, %v15558_v25  ;;  %v19433_v39 = vld [vmem:[#allocation55_spill] sm:$0xff] }
 0x676   :  { %v6207_v18 = vrot.slane %v15494_v44, 7  ;;  %v15594_v54 = vsel %vm6157_vm2, 1.0, %v19431_v19  ;;  %v19437_v62 = vld [vmem:[#allocation19_spill] sm:$0xff] }
 0x677   :  { %v15566_v63 = vsub.f32 %v19423_v7, %v6024_v2  ;;  %v15570_v20 = vsub.f32 %v19424_v3, %v6025_v31  ;;  %v15604_v30 = vsub.f32 %v19433_v39, %v15594_v54  ;;  %v19434_v2 = vld [vmem:[#allocation50_spill] sm:$0xff] }
 0x678   :  { %6443 = vperm.xlu0 %10742, %v6229_v9   ;;  %6448 = vperm.xlu1 %10743, %v6230_v34   ;;  %v5953_v21 = vpop.permute.xlu1 %5952  ;;  %v5958_v46 = vpop.permute.xlu0 %5957  ;;  %v19432_v34 = vld [vmem:[#allocation51_spill] sm:$0xff] }
 0x679   :  { %v6026_v29 = vmul.f32 %v5994_v10, %v5953_v21  ;;  %v6027_v61 = vmul.f32 %v5995_v17, %v5958_v46  ;;  %v6235_v43 = vmul.f32 %v6203_v47, %v15566_v63  ;;  %v6236_v22 = vmul.f32 %v6204_v27, %v15570_v20 }
 0x67a   :  { %v15598_v0 = vsub.f32 %v19432_v34, %v15594_v54  ;;  %v19447_v34 = vld [vmem:[#allocation12_spill] sm:$0xff] }
 0x67b   :  { %v15578_v40 = vsub.f32 %v19425_v58, %v6026_v29  ;;  %v15581_v8 = vsub.f32 %v19427_v24, %v6027_v61  ;;  %v19440_v29 = vld [vmem:[#allocation28_spill] sm:$0xff] }
 0x67c   :  { %6453 = vperm.xlu0 %10742, %v6231_v23   ;;  %6458 = vperm.xlu1 %10743, %v6232_v11   ;;  %v5963_v53 = vpop.permute.xlu1 %5962  ;;  %v6323_v44 = vrot.slane %v15598_v0, %v15246_v36  ;;  %v6327_v23 = vrot.slane %v15604_v30, %v15246_v36  ;;  %v19436_v11 = vld [vmem:[#allocation26_spill] sm:$0xff]  ;;  %v19443_v58 = vld [vmem:[#allocation56_spill] sm:$0xff] }
 0x67d   :  { %19426 = vst [vmem:[#allocation57_spill] sm:$0xff] %v15578_v40  ;;  %v6028_v56 = vmul.f32 %v5996_v4, %v5963_v53  ;;  %v6237_v14 = vmul.f32 %v6205_v28, %v15578_v40  ;;  %v6238_v52 = vmul.f32 %v6206_v1, %v15581_v8  ;;  %v15613_v31 = vsub.f32 %v19436_v11, %v15594_v54  ;;  %v19442_v53 = vld [vmem:[#allocation11_spill] sm:$0xff]  ;;  %v19445_v28 = vld [vmem:[#allocation30_spill] sm:$0xff] }
 0x67e   :  { %v15633_v27 = vsub.f32 %v19442_v53, %v15594_v54  ;;  %v15645_v1 = vsub.f32 %v19445_v28, %v15594_v54 }
 0x67f   :  { %v15588_v16 = vsub.f32 %v19428_v32, %v6028_v56  ;;  %v6331_v17 = vrot.slane %v15613_v31, %v15246_v36  ;;  %v6514_v51 = vrot.slane %v15613_v31, 7 }
 0x680   :  { %6463 = vperm.xlu0 %10742, %v6233_v45   ;;  %6468 = vperm.xlu1 %10743, %v6234_v55   ;;  %v19439_v45 = vld [vmem:[#allocation37_spill] sm:$0xff]  ;;  %v6339_v56 = vrot.slane %v15633_v27, %v15246_v36  ;;  %v6343_v39 = vrot.slane %v15645_v1, %v15246_v36 }
 0x681   :  { %19429 = vst [vmem:[#allocation52_spill] sm:$0xff] %v15588_v16  ;;  %v6239_v9 = vmul.f32 %v6207_v18, %v15588_v16  ;;  %v15623_v7 = vsub.f32 %v19439_v45, %v15594_v54  ;;  %v6513_v16 = vrot.slane %v15604_v30, 7 }
 0x683   :  { %v6335_v47 = vrot.slane %v15623_v7, %v15246_v36  ;;  %v6515_v31 = vrot.slane %v15623_v7, 7 }
 0x684   :  { %6473 = vperm.xlu0 %10742, %v6235_v43   ;;  %6478 = vperm.xlu1 %10743, %v6236_v22  }
 0x688   :  { %6483 = vperm.xlu0 %10742, %v6237_v14   ;;  %6488 = vperm.xlu1 %10743, %v6238_v52   ;;  %v19446_v52 = vld [vmem:[#allocation8_spill] sm:$0xff] }
 0x68c   :  { %6493 = vperm.xlu0 %10742, %v6239_v9   ;;  %10744 = vset.pattern.permute.xlu1 %v11410_v59 }
 0x690   :  { %10745 = vset.pattern.permute.xlu0 %v11410_v59 }
 0x6af   :  { %v6243_v41 = vpop.permute.xlu0 %6242 }
 0x6b0   :  { %v6384_v50 = vmul.f32 %v6323_v44, %v6243_v41  ;;  %v19449_v41 = vld [vmem:[#allocation29_spill] sm:$0xff] }
 0x6b2   :  { %v15607_v21 = vsub.f32 %v19434_v2, %v6384_v50  ;;  %v15660_v50 = vsub.f32 %v19449_v41, %v15594_v54 }
 0x6b3   :  { %v6248_v15 = vpop.permute.xlu1 %6247 }
 0x6b4   :  { %19435 = vst [vmem:[#allocation15_spill] sm:$0xff] %v15607_v21  ;;  %11120 = vrcp.f32 %v15607_v21  ;;  %v6385_v46 = vmul.f32 %v6327_v23, %v6248_v15  ;;  %v6347_v45 = vrot.slane %v15660_v50, %v15246_v36  ;;  %v6518_v7 = vrot.slane %v15660_v50, 7 }
 0x6b6   :  { %v15617_v10 = vsub.f32 %v19437_v62, %v6385_v46  ;;  %v19450_v62 = vld [vmem:[#allocation16_spill] sm:$0xff] }
 0x6b7   :  { %v6253_v55 = vpop.permute.xlu1 %6252 }
 0x6b8   :  { %19438 = vst [vmem:[#allocation54_spill] sm:$0xff] %v15617_v10  ;;  %11122 = vrcp.f32 %v15617_v10  ;;  %v6386_v3 = vmul.f32 %v6331_v17, %v6253_v55  ;;  %v19452_v55 = vld [vmem:[#allocation20_spill] sm:$0xff] }
 0x6ba   :  { %v15627_v61 = vsub.f32 %v19440_v29, %v6386_v3  ;;  %v15675_v3 = vsub.f32 %v19452_v55, %v15594_v54 }
 0x6bb   :  { %v6258_v4 = vpop.permute.xlu0 %6257 }
 0x6bc   :  { %19441 = vst [vmem:[#allocation53_spill] sm:$0xff] %v15627_v61  ;;  %11124 = vrcp.f32 %v15627_v61  ;;  %v6387_v43 = vmul.f32 %v6335_v47, %v6258_v4  ;;  %v6351_v28 = vrot.slane %v15675_v3, %v15246_v36 }
 0x6be   :  { %v15636_v22 = vpop.eup %11120  ;;  %v15639_v24 = vsub.f32 %v19443_v58, %v6387_v43  ;;  %v19453_v58 = vld [vmem:[#allocation18_spill] sm:$0xff] }
 0x6bf   :  { %v6263_v14 = vpop.permute.xlu1 %6262  ;;  %v6611_v32 = vrot.slane %v15636_v22, %v19446_v52 }
 0x6c0   :  { %19444 = vst [vmem:[#allocation38_spill] sm:$0xff] %v15639_v24  ;;  %11126 = vrcp.f32 %v15639_v24  ;;  %v6388_v18 = vmul.f32 %v6339_v56, %v6263_v14  ;;  %v19455_v14 = vld [vmem:[#allocation14_spill] sm:$0xff] }
 0x6c1   :  { %v6672_v9 = vmul.f32 %v6611_v32, %v15607_v21  ;;  %v15690_v32 = vsub.f32 %v19455_v14, %v15594_v54  ;;  %v19461_v14 = vld [vmem:[#allocation32_spill] sm:$0xff] }
 0x6c2   :  { %v15651_v59 = vpop.eup %11122  ;;  %v15654_v44 = vsub.f32 %v19447_v34, %v6388_v18 }
 0x6c3   :  { %6725 = vperm.xlu1 %10744, %v6672_v9   ;;  %v6268_v2 = vpop.permute.xlu0 %6267  ;;  %v6615_v23 = vrot.slane %v15651_v59, %v19446_v52 }
 0x6c4   :  { %19448 = vst [vmem:[#allocation21_spill] sm:$0xff] %v15654_v44  ;;  %11128 = vrcp.f32 %v15654_v44  ;;  %v6389_v11 = vmul.f32 %v6343_v39, %v6268_v2  ;;  %v19456_v2 = vld [vmem:[#allocation24_spill] sm:$0xff] }
 0x6c5   :  { %v6673_v15 = vmul.f32 %v6615_v23, %v15617_v10 }
 0x6c6   :  { %v15666_v46 = vpop.eup %11124  ;;  %v15669_v17 = vsub.f32 %v19450_v62, %v6389_v11  ;;  %v6355_v11 = vrot.slane %v15690_v32, %v15246_v36 }
 0x6c7   :  { %v6273_v29 = vpop.permute.xlu1 %6272  ;;  %6730 = vperm.xlu0 %10745, %v6673_v15   ;;  %v6619_v47 = vrot.slane %v15666_v46, %v19446_v52  ;;  %v19458_v15 = vld [vmem:[#allocation7_spill] sm:$0xff] }
 0x6c8   :  { %19451 = vst [vmem:[#allocation40_spill] sm:$0xff] %v15669_v17  ;;  %11130 = vrcp.f32 %v15669_v17  ;;  %v6390_v53 = vmul.f32 %v6347_v45, %v6273_v29  ;;  %v15705_v62 = vsub.f32 %v19458_v15, %v15594_v54  ;;  %v19462_v15 = vld [vmem:[#allocation44_spill] sm:$0xff] }
 0x6c9   :  { %v6674_v4 = vmul.f32 %v6619_v47, %v15627_v61 }
 0x6ca   :  { %v15681_v43 = vpop.eup %11126  ;;  %v15684_v56 = vsub.f32 %v19453_v58, %v6390_v53 }
 0x6cb   :  { %6735 = vperm.xlu1 %10744, %v6674_v4   ;;  %v6278_v18 = vpop.permute.xlu0 %6277  ;;  %v6623_v9 = vrot.slane %v15681_v43, %v19446_v52  ;;  %v19459_v4 = vld [vmem:[#allocation39_spill] sm:$0xff] }
 0x6cc   :  { %19454 = vst [vmem:[#allocation34_spill] sm:$0xff] %v15684_v56  ;;  %11132 = vrcp.f32 %v15684_v56  ;;  %v6391_v34 = vmul.f32 %v6351_v28, %v6278_v18  ;;  %v6359_v28 = vrot.slane %v15705_v62, %v15246_v36  ;;  %v15720_v18 = vsub.f32 %v19461_v14, %v15594_v54 }
 0x6cd   :  { %v6675_v39 = vmul.f32 %v6623_v9, %v15639_v24 }
 0x6ce   :  { %v15696_v41 = vpop.eup %11128  ;;  %v15699_v23 = vsub.f32 %v19456_v2, %v6391_v34 }
 0x6cf   :  { %v6283_v45 = vpop.permute.xlu1 %6282  ;;  %6740 = vperm.xlu1 %10744, %v6675_v39   ;;  %v6627_v55 = vrot.slane %v15696_v41, %v19446_v52 }
 0x6d0   :  { %19457 = vst [vmem:[#allocation41_spill] sm:$0xff] %v15699_v23  ;;  %11134 = vrcp.f32 %v15699_v23  ;;  %v6392_v29 = vmul.f32 %v6355_v11, %v6283_v45 }
 0x6d1   :  { %v6676_v47 = vmul.f32 %v6627_v55, %v15654_v44  ;;  %v6363_v55 = vrot.slane %v15720_v18, %v15246_v36 }
 0x6d2   :  { %v15711_v53 = vpop.eup %11130  ;;  %v15714_v58 = vsub.f32 %v19459_v4, %v6392_v29  ;;  %v19464_v29 = vld [vmem:[#allocation22_spill] sm:$0xff] }
 0x6d3   :  { %6745 = vperm.xlu0 %10745, %v6676_v47   ;;  %v6288_v9 = vpop.permute.xlu0 %6287  ;;  %v6631_v34 = vrot.slane %v15711_v53, %v19446_v52  ;;  %v15735_v47 = vsub.f32 %v19464_v29, %v15594_v54  ;;  %v19466_v29 = vld [vmem:[#allocation36_spill] sm:$0xff] }
 0x6d4   :  { %19460 = vst [vmem:[#allocation45_spill] sm:$0xff] %v15714_v58  ;;  %11136 = vrcp.f32 %v15714_v58  ;;  %v6393_v39 = vmul.f32 %v6359_v28, %v6288_v9 }
 0x6d5   :  { %v6677_v2 = vmul.f32 %v6631_v34, %v15669_v17  ;;  %v15750_v17 = vsub.f32 %v19466_v29, %v15594_v54  ;;  %v19469_v29 = vld [vmem:[#allocation43_spill] sm:$0xff] }
 0x6d6   :  { %v15726_v11 = vpop.eup %11132  ;;  %v15729_v45 = vsub.f32 %v19462_v15, %v6393_v39  ;;  %v6367_v15 = vrot.slane %v15735_v47, %v15246_v36 }
 0x6d7   :  { %v6293_v4 = vpop.permute.xlu1 %6292  ;;  %6750 = vperm.xlu1 %10744, %v6677_v2   ;;  %v6635_v14 = vrot.slane %v15726_v11, %v19446_v52 }
 0x6d8   :  { %19463 = vst [vmem:[#allocation13_spill] sm:$0xff] %v15729_v45  ;;  %11138 = vrcp.f32 %v15729_v45  ;;  %v6394_v28 = vmul.f32 %v6363_v55, %v6293_v4 }
 0x6d9   :  { %v6678_v9 = vmul.f32 %v6635_v14, %v15684_v56  ;;  %v6371_v56 = vrot.slane %v15750_v17, %v15246_v36 }
 0x6da   :  { %v15741_v34 = vpop.eup %11134  ;;  %v15744_v39 = vsub.f32 %v15440_v26, %v6394_v28  ;;  %v19467_v26 = vld [vmem:[#allocation35_spill] sm:$0xff] }
 0x6db   :  { %6755 = vperm.xlu0 %10745, %v6678_v9   ;;  %v6298_v2 = vpop.permute.xlu0 %6297  ;;  %v6639_v44 = vrot.slane %v15741_v34, %v19446_v52  ;;  %v15765_v9 = vsub.f32 %v19469_v29, %v15594_v54  ;;  %v19472_v29 = vld [vmem:[#allocation46_spill] sm:$0xff] }
 0x6dc   :  { %19465 = vst [vmem:[#allocation23_spill] sm:$0xff] %v15744_v39  ;;  %11140 = vrcp.f32 %v15744_v39  ;;  %v6395_v55 = vmul.f32 %v6367_v15, %v6298_v2  ;;  %v15780_v10 = vsub.f32 %v19472_v29, %v15594_v54  ;;  %v19474_v29 = vld [vmem:[#allocation49_spill] sm:$0xff] }
 0x6dd   :  { %v6679_v4 = vmul.f32 %v6639_v44, %v15699_v23  ;;  %v6375_v23 = vrot.slane %v15765_v9, %v15246_v36 }
 0x6de   :  { %v15756_v14 = vpop.eup %11136  ;;  %v15759_v28 = vsub.f32 %v19467_v26, %v6395_v55  ;;  %v19470_v55 = vld [vmem:[#allocation47_spill] sm:$0xff] }
 0x6df   :  { %v6303_v24 = vpop.permute.xlu1 %6302  ;;  %6760 = vperm.xlu1 %10744, %v6679_v4   ;;  %v6643_v61 = vrot.slane %v15756_v14, %v19446_v52 }
 0x6e0   :  { %19468 = vst [vmem:[#allocation25_spill] sm:$0xff] %v15759_v28  ;;  %11142 = vrcp.f32 %v15759_v28  ;;  %v6396_v44 = vmul.f32 %v6371_v56, %v6303_v24 }
 0x6e1   :  { %v6680_v15 = vmul.f32 %v6643_v61, %v15714_v58 }
 0x6e2   :  { %v15771_v2 = vpop.eup %11138  ;;  %v15774_v26 = vsub.f32 %v19470_v55, %v6396_v44  ;;  %v6379_v55 = vrot.slane %v15780_v10, %v15246_v36 }
 0x6e3   :  { %6765 = vperm.xlu0 %10745, %v6680_v15   ;;  %v6308_v4 = vpop.permute.xlu0 %6307  ;;  %v6647_v21 = vrot.slane %v15771_v2, %v19446_v52  ;;  %v15795_v15 = vsub.f32 %v19474_v29, %v15594_v54 }
 0x6e4   :  { %19471 = vst [vmem:[#allocation48_spill] sm:$0xff] %v15774_v26  ;;  %11144 = vrcp.f32 %v15774_v26  ;;  %v6397_v61 = vmul.f32 %v6375_v23, %v6308_v4 }
 0x6e5   :  { %v6681_v24 = vmul.f32 %v6647_v21, %v15729_v45 }
 0x6e6   :  { %v15786_v56 = vpop.eup %11140  ;;  %v15789_v44 = vsub.f32 %v15476_v42, %v6397_v61  ;;  %v6383_v61 = vrot.slane %v15795_v15, %v15246_v36 }
 0x6e7   :  { %v6313_v58 = vpop.permute.xlu1 %6312  ;;  %6770 = vperm.xlu1 %10744, %v6681_v24   ;;  %v6651_v19 = vrot.slane %v15786_v56, %v19446_v52 }
 0x6e8   :  { %19473 = vst [vmem:[#allocation51_spill] sm:$0xff] %v15789_v44  ;;  %11146 = vrcp.f32 %v15789_v44  ;;  %v6398_v21 = vmul.f32 %v6379_v55, %v6313_v58 }
 0x6e9   :  { %v6682_v23 = vmul.f32 %v6651_v19, %v15744_v39 }
 0x6ea   :  { %v15801_v4 = vpop.eup %11142  ;;  %v15804_v42 = vsub.f32 %v15485_v60, %v6398_v21 }
 0x6eb   :  { %6775 = vperm.xlu0 %10745, %v6682_v23   ;;  %v6419_v54 = vpop.permute.xlu1 %6418  ;;  %v6318_v29 = vpop.permute.xlu0 %6317  ;;  %v6655_v24 = vrot.slane %v15801_v4, %v19446_v52 }
 0x6ec   :  { %11148 = vrcp.f32 %v15804_v42  ;;  %v6399_v45 = vmul.f32 %v6383_v61, %v6318_v29  ;;  %v6512_v61 = vrot.slane %v15598_v0, 7 }
 0x6ed   :  { %v6683_v58 = vmul.f32 %v6655_v24, %v15759_v28 }
 0x6ee   :  { %v15812_v19 = vpop.eup %11144  ;;  %v15815_v55 = vsub.f32 %v15499_v38, %v6399_v45  ;;  %v6544_v45 = vmul.f32 %v6512_v61, %v6419_v54 }
 0x6ef   :  { %v6429_v60 = vpop.permute.xlu1 %6428  ;;  %6780 = vperm.xlu1 %10744, %v6683_v58   ;;  %v6424_v21 = vpop.permute.xlu0 %6423  ;;  %v6659_v36 = vrot.slane %v15812_v19, %v19446_v52 }
 0x6f0   :  { %11150 = vrcp.f32 %v15815_v55  ;;  %v6546_v40 = vmul.f32 %v6514_v51, %v6429_v60 }
 0x6f1   :  { %v6684_v23 = vmul.f32 %v6659_v36, %v15774_v26 }
 0x6f2   :  { %v15821_v39 = vpop.eup %11146 }
 0x6f3   :  { %19475 = vst [vmem:[#allocation55_spill] sm:$0xff] %v15821_v39  ;;  %6785 = vperm.xlu0 %10745, %v6684_v23   ;;  %v6439_v29 = vpop.permute.xlu1 %6438  ;;  %v6434_v24 = vpop.permute.xlu0 %6433  ;;  %v6663_v38 = vrot.slane %v15821_v39, %v19446_v52  ;;  %v15834_v23 = vsub.f32 %v15491_v37, %v6544_v45  ;;  %v6545_v39 = vmul.f32 %v6513_v16, %v6424_v21  ;;  %v6517_v21 = vrot.slane %v15645_v1, 7 }
 0x6f4   :  { %v15846_v16 = vsub.f32 %v15510_v6, %v6546_v40  ;;  %v6547_v60 = vmul.f32 %v6515_v31, %v6434_v24  ;;  %v6520_v1 = vrot.slane %v15690_v32, 7  ;;  %v6522_v32 = vrot.slane %v15720_v18, 7 }
 0x6f5   :  { %v6685_v58 = vmul.f32 %v6663_v38, %v15789_v44  ;;  %v6516_v38 = vrot.slane %v15633_v27, 7  ;;  %v6707_v44 = vmul.f32 %v15636_v22, %v15834_v23  ;;  %v15849_v51 = vsub.f32 %v15507_v13, %v6545_v39 }
 0x6f6   :  { %v15827_v28 = vpop.eup %11148  ;;  %v6709_v6 = vmul.f32 %v15666_v46, %v15846_v16  ;;  %v15862_v40 = vsub.f32 %v15517_v49, %v6547_v60  ;;  %v6524_v31 = vrot.slane %v15750_v17, 7 }
 0x6f7   :  { %v6449_v36 = vpop.permute.xlu1 %6448  ;;  %6790 = vperm.xlu1 %10744, %v6685_v58   ;;  %v6444_v26 = vpop.permute.xlu0 %6443  ;;  %v6667_v0 = vrot.slane %v15827_v28, %v19446_v52  ;;  %v6548_v37 = vmul.f32 %v6516_v38, %v6439_v29  ;;  %v6708_v13 = vmul.f32 %v15651_v59, %v15849_v51 }
 0x6f8   :  { %v6550_v22 = vmul.f32 %v6518_v7, %v6449_v36  ;;  %v6549_v39 = vmul.f32 %v6517_v21, %v6444_v26  ;;  %v6710_v59 = vmul.f32 %v15681_v43, %v15862_v40 }
 0x6f9   :  { %v6686_v54 = vmul.f32 %v6667_v0, %v15804_v42  ;;  %v15855_v0 = vsub.f32 %v15522_v33, %v6548_v37 }
 0x6fa   :  { %v15837_v61 = vpop.eup %11150  ;;  %v15869_v24 = vsub.f32 %v15534_v35, %v6550_v22  ;;  %v15874_v49 = vsub.f32 %v15530_v48, %v6549_v39  ;;  %v19477_v22 = vld [vmem:[#allocation55_spill] sm:$0xff]  ;;  %v19481_v39 = vmov 0.0  }
 0x6fb   :  { %6795 = vperm.xlu0 %10745, %v6686_v54   ;;  %v6454_v30 = vpop.permute.xlu0 %6453  ;;  %v6671_v58 = vrot.slane %v15837_v61, %v19446_v52  ;;  %v6459_v45 = vpop.permute.xlu1 %6458  ;;  %v6711_v33 = vmul.f32 %v15696_v41, %v15855_v0 }
 0x6fc   :  { %v6552_v46 = vmul.f32 %v6520_v1, %v6459_v45  ;;  %v6713_v41 = vmul.f32 %v15726_v11, %v15869_v24  ;;  %v6712_v43 = vmul.f32 %v15711_v53, %v15874_v49  ;;  %v6525_v45 = vrot.slane %v15765_v9, 7 }
 0x6fd   :  { %v6687_v27 = vmul.f32 %v6671_v58, %v15815_v55 }
 0x6fe   :  { %v15883_v48 = vsub.f32 %v15546_v57, %v6552_v46 }
 0x6ff   :  { %6901 = vperm.xlu0 %10745, %v6707_v44   ;;  %6800 = vperm.xlu1 %10744, %v6687_v27   ;;  %v6464_v29 = vpop.permute.xlu0 %6463  ;;  %v6469_v50 = vpop.permute.xlu1 %6468  ;;  %v6519_v44 = vrot.slane %v15675_v3, 7  ;;  %v6521_v3 = vrot.slane %v15705_v62, 7  ;;  %v6523_v62 = vrot.slane %v15735_v47, 7  ;;  %v6526_v47 = vrot.slane %v15780_v10, 7 }
 0x700   :  { %v6554_v35 = vmul.f32 %v6522_v32, %v6469_v50  ;;  %v6715_v53 = vmul.f32 %v15756_v14, %v15883_v48  ;;  %v6527_v10 = vrot.slane %v15795_v15, 7 }
 0x701   :  { %v6551_v26 = vmul.f32 %v6519_v44, %v6454_v30  ;;  %v6553_v18 = vmul.f32 %v6521_v3, %v6464_v29 }
 0x702   :  { %v15891_v11 = vsub.f32 %v15558_v25, %v6554_v35 }
 0x703   :  { %6911 = vperm.xlu0 %10745, %v6709_v6   ;;  %6906 = vperm.xlu1 %10744, %v6708_v13   ;;  %v6474_v36 = vpop.permute.xlu0 %6473  ;;  %v6479_v54 = vpop.permute.xlu1 %6478  ;;  %v15886_v38 = vsub.f32 %v15543_v5, %v6551_v26  ;;  %v15898_v5 = vsub.f32 %v15553_v12, %v6553_v18  ;;  %v19478_v6 = vld [vmem:[#allocation52_spill] sm:$0xff]  ;;  %v19480_v13 = vld [vmem:[#allocation9_spill] sm:$0xff]  ;;  %v19487_v18 = vld [vmem:[#allocation38_spill] sm:$0xff] }
 0x704   :  { %v6556_v30 = vmul.f32 %v6524_v31, %v6479_v54  ;;  %v6555_v37 = vmul.f32 %v6523_v62, %v6474_v36  ;;  %v6717_v25 = vmul.f32 %v15786_v56, %v15891_v11  ;;  %vm6688_vm3 = vcmp.eq.s32.totalorder %v19480_v13, 8  ;;  %v19485_v36 = vld [vmem:[#allocation53_spill] sm:$0xff] }
 0x705   :  { %v6714_v57 = vmul.f32 %v15741_v34, %v15886_v38  ;;  %v6716_v34 = vmul.f32 %v15771_v2, %v15898_v5  ;;  %v19476_v2 = vld [vmem:[#allocation57_spill] sm:$0xff]  ;;  %v15934_v50 = vsel %vm6688_vm3, 1.0, %v19481_v39 }
 0x706   :  { %v15905_v60 = vsub.f32 %v15570_v20, %v6556_v30  ;;  %v15910_v12 = vsub.f32 %v15566_v63, %v6555_v37  ;;  %v15953_v3 = vsub.f32 %v19485_v36, %v15934_v50  ;;  %v15963_v31 = vsub.f32 %v19487_v18, %v15934_v50 }
 0x707   :  { %6921 = vperm.xlu0 %10745, %v6711_v33   ;;  %6916 = vperm.xlu1 %10744, %v6710_v59   ;;  %v6484_v58 = vpop.permute.xlu0 %6483  ;;  %v6489_v17 = vpop.permute.xlu1 %6488  ;;  %v19483_v33 = vld [vmem:[#allocation54_spill] sm:$0xff] }
 0x708   :  { %v6558_v14 = vmul.f32 %v6526_v47, %v6489_v17  ;;  %v6557_v27 = vmul.f32 %v6525_v45, %v6484_v58  ;;  %v6719_v9 = vmul.f32 %v15812_v19, %v15905_v60  ;;  %v6718_v20 = vmul.f32 %v15801_v4, %v15910_v12 }
 0x709   :  { %v11411_v4 = vmov 9   ;;  %v15944_v59 = vsub.f32 %v19483_v33, %v15934_v50 }
 0x70a   :  { %v15918_v56 = vsub.f32 %v15581_v8, %v6558_v14  ;;  %v15921_v21 = vsub.f32 %v19476_v2, %v6557_v27  ;;  %v19491_v14 = vld [vmem:[#allocation40_spill] sm:$0xff] }
 0x70b   :  { %6931 = vperm.xlu0 %10745, %v6713_v41   ;;  %6926 = vperm.xlu1 %10744, %v6712_v43   ;;  %v6494_v7 = vpop.permute.xlu0 %6493  ;;  %v6810_v32 = vrot.slane %v15944_v59, %v19446_v52  ;;  %v6814_v43 = vrot.slane %v15953_v3, %v19446_v52  ;;  %v15985_v27 = vsub.f32 %v19491_v14, %v15934_v50 }
 0x70c   :  { %v6559_v63 = vmul.f32 %v6527_v10, %v6494_v7  ;;  %v6721_v15 = vmul.f32 %v15827_v28, %v15918_v56  ;;  %v6720_v29 = vmul.f32 %v19477_v22, %v15921_v21  ;;  %v19482_v28 = vld [vmem:[#allocation15_spill] sm:$0xff]  ;;  %v19492_v10 = vld [vmem:[#allocation42_spill] sm:$0xff] }
 0x70d   :  { %v15938_v1 = vsub.f32 %v19482_v28, %v15934_v50  ;;  %v6826_v22 = vrot.slane %v15985_v27, %v19446_v52 }
 0x70e   :  { %v15928_v19 = vsub.f32 %v19478_v6, %v6559_v63 }
 0x70f   :  { %6941 = vperm.xlu0 %10745, %v6715_v53   ;;  %6936 = vperm.xlu1 %10744, %v6714_v57   ;;  %v6806_v44 = vrot.slane %v15938_v1, %v19446_v52  ;;  %v6818_v53 = vrot.slane %v15963_v31, %v19446_v52  ;;  %v19489_v57 = vld [vmem:[#allocation21_spill] sm:$0xff] }
 0x710   :  { %19479 = vst [vmem:[#allocation50_spill] sm:$0xff] %v15928_v19  ;;  %v6722_v8 = vmul.f32 %v15837_v61, %v15928_v19  ;;  %v15973_v37 = vsub.f32 %v19489_v57, %v15934_v50 }
 0x713   :  { %6951 = vperm.xlu0 %10745, %v6717_v25   ;;  %6946 = vperm.xlu1 %10744, %v6716_v34   ;;  %v6822_v34 = vrot.slane %v15973_v37, %v19446_v52 }
 0x717   :  { %6961 = vperm.xlu0 %10745, %v6719_v9   ;;  %6956 = vperm.xlu1 %10744, %v6718_v20  }
 0x71b   :  { %6971 = vperm.xlu0 %10745, %v6721_v15   ;;  %6966 = vperm.xlu1 %10744, %v6720_v29   ;;  %v19494_v29 = vld [vmem:[#allocation34_spill] sm:$0xff] }
 0x71c   :  { %v16000_v6 = vsub.f32 %v19494_v29, %v15934_v50 }
 0x71f   :  { %6976 = vperm.xlu1 %10744, %v6722_v8   ;;  %10746 = vset.pattern.permute.xlu0 %v11411_v4 }
 0x723   :  { %10747 = vset.pattern.permute.xlu1 %v11411_v4 }
 0x742   :  { %v6726_v61 = vpop.permute.xlu1 %6725 }
 0x743   :  { %v6867_v46 = vmul.f32 %v6806_v44, %v6726_v61 }
 0x745   :  { %v15947_v26 = vsub.f32 %v19482_v28, %v6867_v46  ;;  %v6830_v46 = vrot.slane %v16000_v6, %v19446_v52 }
 0x746   :  { %v6731_v41 = vpop.permute.xlu0 %6730 }
 0x747   :  { %19484 = vst [vmem:[#allocation26_spill] sm:$0xff] %v15947_v26  ;;  %11152 = vrcp.f32 %v15947_v26  ;;  %v6868_v35 = vmul.f32 %v6810_v32, %v6731_v41  ;;  %v19496_v32 = vld [vmem:[#allocation41_spill] sm:$0xff] }
 0x749   :  { %v15957_v54 = vsub.f32 %v19483_v33, %v6868_v35 }
 0x74a   :  { %v6736_v62 = vpop.permute.xlu1 %6735 }
 0x74b   :  { %19486 = vst [vmem:[#allocation19_spill] sm:$0xff] %v15957_v54  ;;  %11154 = vrcp.f32 %v15957_v54  ;;  %v6869_v30 = vmul.f32 %v6814_v43, %v6736_v62 }
 0x74d   :  { %v15967_v58 = vsub.f32 %v19485_v36, %v6869_v30  ;;  %v16015_v36 = vsub.f32 %v19496_v32, %v15934_v50 }
 0x74e   :  { %v6741_v17 = vpop.permute.xlu1 %6740 }
 0x74f   :  { %19488 = vst [vmem:[#allocation37_spill] sm:$0xff] %v15967_v58  ;;  %11156 = vrcp.f32 %v15967_v58  ;;  %v6870_v47 = vmul.f32 %v6818_v53, %v6741_v17  ;;  %v6834_v53 = vrot.slane %v16015_v36, %v19446_v52 }
 0x751   :  { %v15976_v45 = vpop.eup %11152  ;;  %v15979_v25 = vsub.f32 %v19487_v18, %v6870_v47 }
 0x752   :  { %v6746_v7 = vpop.permute.xlu0 %6745  ;;  %v7046_v9 = vrot.slane %v15976_v45, %v19492_v10 }
 0x753   :  { %19490 = vst [vmem:[#allocation28_spill] sm:$0xff] %v15979_v25  ;;  %11158 = vrcp.f32 %v15979_v25  ;;  %v6871_v20 = vmul.f32 %v6822_v34, %v6746_v7 }
 0x754   :  { %v7107_v2 = vmul.f32 %v7046_v9, %v15947_v26 }
 0x755   :  { %v15991_v63 = vpop.eup %11154  ;;  %v15994_v15 = vsub.f32 %v19489_v57, %v6871_v20  ;;  %v19498_v57 = vld [vmem:[#allocation45_spill] sm:$0xff] }
 0x756   :  { %7208 = vperm.xlu0 %10746, %v7107_v2   ;;  %v6751_v8 = vpop.permute.xlu1 %6750  ;;  %v7050_v4 = vrot.slane %v15991_v63, %v19492_v10  ;;  %v16030_v17 = vsub.f32 %v19498_v57, %v15934_v50 }
 0x757   :  { %19493 = vst [vmem:[#allocation11_spill] sm:$0xff] %v15994_v15  ;;  %11160 = vrcp.f32 %v15994_v15  ;;  %v6872_v28 = vmul.f32 %v6826_v22, %v6751_v8  ;;  %v19500_v22 = vld [vmem:[#allocation13_spill] sm:$0xff] }
 0x758   :  { %v7108_v44 = vmul.f32 %v7050_v4, %v15957_v54  ;;  %v6838_v2 = vrot.slane %v16030_v17, %v19446_v52 }
 0x759   :  { %v16006_v33 = vpop.eup %11156  ;;  %v16009_v61 = vsub.f32 %v19491_v14, %v6872_v28 }
 0x75a   :  { %7213 = vperm.xlu1 %10747, %v7108_v44   ;;  %v6756_v41 = vpop.permute.xlu0 %6755  ;;  %v7054_v35 = vrot.slane %v16006_v33, %v19492_v10 }
 0x75b   :  { %19495 = vst [vmem:[#allocation56_spill] sm:$0xff] %v16009_v61  ;;  %11162 = vrcp.f32 %v16009_v61  ;;  %v6873_v43 = vmul.f32 %v6830_v46, %v6756_v41 }
 0x75c   :  { %v7109_v18 = vmul.f32 %v7054_v35, %v15967_v58  ;;  %v19502_v35 = vld [vmem:[#allocation23_spill] sm:$0xff] }
 0x75d   :  { %v16021_v62 = vpop.eup %11158  ;;  %v16024_v30 = vsub.f32 %v19494_v29, %v6873_v43  ;;  %v16045_v29 = vsub.f32 %v19500_v22, %v15934_v50  ;;  %v16060_v43 = vsub.f32 %v19502_v35, %v15934_v50 }
 0x75e   :  { %v6761_v47 = vpop.permute.xlu1 %6760  ;;  %7218 = vperm.xlu1 %10747, %v7109_v18   ;;  %v7058_v34 = vrot.slane %v16021_v62, %v19492_v10 }
 0x75f   :  { %19497 = vst [vmem:[#allocation30_spill] sm:$0xff] %v16024_v30  ;;  %11164 = vrcp.f32 %v16024_v30  ;;  %v6874_v14 = vmul.f32 %v6834_v53, %v6761_v47  ;;  %v6842_v41 = vrot.slane %v16045_v29, %v19446_v52 }
 0x760   :  { %v7110_v7 = vmul.f32 %v7058_v34, %v15979_v25 }
 0x761   :  { %v16036_v9 = vpop.eup %11160  ;;  %v16039_v20 = vsub.f32 %v19496_v32, %v6874_v14 }
 0x762   :  { %7223 = vperm.xlu0 %10746, %v7110_v7   ;;  %v6766_v8 = vpop.permute.xlu0 %6765  ;;  %v7062_v4 = vrot.slane %v16036_v9, %v19492_v10  ;;  %v6846_v7 = vrot.slane %v16060_v43, %v19446_v52 }
 0x763   :  { %19499 = vst [vmem:[#allocation8_spill] sm:$0xff] %v16039_v20  ;;  %11166 = vrcp.f32 %v16039_v20  ;;  %v6875_v28 = vmul.f32 %v6838_v2, %v6766_v8  ;;  %v19504_v2 = vld [vmem:[#allocation25_spill] sm:$0xff] }
 0x764   :  { %v7111_v44 = vmul.f32 %v7062_v4, %v15994_v15  ;;  %v16075_v8 = vsub.f32 %v19504_v2, %v15934_v50 }
 0x765   :  { %v16051_v46 = vpop.eup %11162  ;;  %v16054_v32 = vsub.f32 %v19498_v57, %v6875_v28 }
 0x766   :  { %v6771_v18 = vpop.permute.xlu1 %6770  ;;  %7228 = vperm.xlu1 %10747, %v7111_v44   ;;  %v7066_v53 = vrot.slane %v16051_v46, %v19492_v10 }
 0x767   :  { %19501 = vst [vmem:[#allocation12_spill] sm:$0xff] %v16054_v32  ;;  %11168 = vrcp.f32 %v16054_v32  ;;  %v6876_v47 = vmul.f32 %v6842_v41, %v6771_v18 }
 0x768   :  { %v7112_v34 = vmul.f32 %v7066_v53, %v16009_v61  ;;  %v6850_v53 = vrot.slane %v16075_v8, %v19446_v52 }
 0x769   :  { %v16066_v14 = vpop.eup %11164  ;;  %v16069_v57 = vsub.f32 %v19500_v22, %v6876_v47  ;;  %v19506_v47 = vld [vmem:[#allocation48_spill] sm:$0xff] }
 0x76a   :  { %7233 = vperm.xlu0 %10746, %v7112_v34   ;;  %v6776_v4 = vpop.permute.xlu0 %6775  ;;  %v7070_v28 = vrot.slane %v16066_v14, %v19492_v10  ;;  %v16090_v34 = vsub.f32 %v19506_v47, %v15934_v50 }
 0x76b   :  { %19503 = vst [vmem:[#allocation29_spill] sm:$0xff] %v16069_v57  ;;  %11170 = vrcp.f32 %v16069_v57  ;;  %v6877_v44 = vmul.f32 %v6846_v7, %v6776_v4 }
 0x76c   :  { %v7113_v41 = vmul.f32 %v7070_v28, %v16024_v30  ;;  %v19508_v30 = vld [vmem:[#allocation51_spill] sm:$0xff] }
 0x76d   :  { %v16081_v18 = vpop.eup %11166  ;;  %v16084_v22 = vsub.f32 %v19502_v35, %v6877_v44  ;;  %v6854_v44 = vrot.slane %v16090_v34, %v19446_v52  ;;  %v16105_v25 = vsub.f32 %v19508_v30, %v15934_v50 }
 0x76e   :  { %v6781_v61 = vpop.permute.xlu1 %6780  ;;  %7238 = vperm.xlu1 %10747, %v7113_v41   ;;  %v7074_v15 = vrot.slane %v16081_v18, %v19492_v10 }
 0x76f   :  { %19505 = vst [vmem:[#allocation16_spill] sm:$0xff] %v16084_v22  ;;  %11172 = vrcp.f32 %v16084_v22  ;;  %v6878_v7 = vmul.f32 %v6850_v53, %v6781_v61 }
 0x770   :  { %v7114_v4 = vmul.f32 %v7074_v15, %v16039_v20 }
 0x771   :  { %v16096_v28 = vpop.eup %11168  ;;  %v16099_v35 = vsub.f32 %v19504_v2, %v6878_v7  ;;  %v6858_v7 = vrot.slane %v16105_v25, %v19446_v52 }
 0x772   :  { %7243 = vperm.xlu0 %10746, %v7114_v4   ;;  %v6786_v41 = vpop.permute.xlu0 %6785  ;;  %v7078_v58 = vrot.slane %v16096_v28, %v19492_v10  ;;  %v16120_v4 = vsub.f32 %v15804_v42, %v15934_v50 }
 0x773   :  { %19507 = vst [vmem:[#allocation20_spill] sm:$0xff] %v16099_v35  ;;  %11174 = vrcp.f32 %v16099_v35  ;;  %v6879_v15 = vmul.f32 %v6854_v44, %v6786_v41 }
 0x774   :  { %v7115_v61 = vmul.f32 %v7078_v58, %v16054_v32  ;;  %v16135_v32 = vsub.f32 %v15815_v55, %v15934_v50 }
 0x775   :  { %v16111_v53 = vpop.eup %11170  ;;  %v16114_v2 = vsub.f32 %v19506_v47, %v6879_v15  ;;  %v6862_v15 = vrot.slane %v16120_v4, %v19446_v52 }
 0x776   :  { %v6791_v20 = vpop.permute.xlu1 %6790  ;;  %7248 = vperm.xlu1 %10747, %v7115_v61   ;;  %v7082_v54 = vrot.slane %v16111_v53, %v19492_v10 }
 0x777   :  { %19509 = vst [vmem:[#allocation18_spill] sm:$0xff] %v16114_v2  ;;  %11176 = vrcp.f32 %v16114_v2  ;;  %v6880_v58 = vmul.f32 %v6858_v7, %v6791_v20 }
 0x778   :  { %v7116_v44 = vmul.f32 %v7082_v54, %v16069_v57 }
 0x779   :  { %v16126_v41 = vpop.eup %11172  ;;  %v16129_v47 = vsub.f32 %v19508_v30, %v6880_v58  ;;  %v6866_v58 = vrot.slane %v16135_v32, %v19446_v52 }
 0x77a   :  { %7253 = vperm.xlu0 %10746, %v7116_v44   ;;  %v6796_v61 = vpop.permute.xlu0 %6795  ;;  %v7086_v26 = vrot.slane %v16126_v41, %v19492_v10 }
 0x77b   :  { %19510 = vst [vmem:[#allocation14_spill] sm:$0xff] %v16129_v47  ;;  %11178 = vrcp.f32 %v16129_v47  ;;  %v6881_v54 = vmul.f32 %v6862_v15, %v6796_v61 }
 0x77c   :  { %v7117_v20 = vmul.f32 %v7086_v26, %v16084_v22 }
 0x77d   :  { %v16141_v7 = vpop.eup %11174  ;;  %v16144_v30 = vsub.f32 %v15804_v42, %v6881_v54 }
 0x77e   :  { %v6801_v50 = vpop.permute.xlu1 %6800  ;;  %7258 = vperm.xlu1 %10747, %v7117_v20   ;;  %v6902_v44 = vpop.permute.xlu0 %6901  ;;  %v7090_v57 = vrot.slane %v16141_v7, %v19492_v10 }
 0x77f   :  { %11180 = vrcp.f32 %v16144_v30  ;;  %v6882_v39 = vmul.f32 %v6866_v58, %v6801_v50 }
 0x780   :  { %v7118_v15 = vmul.f32 %v7090_v57, %v16099_v35 }
 0x781   :  { %v16152_v26 = vpop.eup %11176  ;;  %v16155_v61 = vsub.f32 %v15815_v55, %v6882_v39  ;;  %v6979_v55 = vmul.f32 %v6902_v44, %v15938_v1  ;;  %v7158_v44 = vrot.slane %v15976_v45, 1 }
 0x782   :  { %7263 = vperm.xlu0 %10746, %v7118_v15   ;;  %v6907_v42 = vpop.permute.xlu1 %6906  ;;  %v6912_v54 = vpop.permute.xlu0 %6911  ;;  %v7094_v52 = vrot.slane %v16152_v26, %v19492_v10 }
 0x783   :  { %11182 = vrcp.f32 %v16155_v61  ;;  %v6981_v19 = vmul.f32 %v6912_v54, %v15953_v3  ;;  %v7160_v54 = vrot.slane %v16006_v33, 1 }
 0x784   :  { %v7119_v20 = vmul.f32 %v7094_v52, %v16114_v2  ;;  %v16172_v2 = vsub.f32 %v15834_v23, %v6979_v55 }
 0x785   :  { %v16161_v22 = vpop.eup %11178  ;;  %v16188_v3 = vsub.f32 %v15846_v16, %v6981_v19 }
 0x786   :  { %19511 = vst [vmem:[#allocation24_spill] sm:$0xff] %v16161_v22  ;;  %v6917_v58 = vpop.permute.xlu1 %6916  ;;  %7268 = vperm.xlu1 %10747, %v7119_v20   ;;  %v6922_v57 = vpop.permute.xlu0 %6921  ;;  %v7098_v50 = vrot.slane %v16161_v22, %v19492_v10  ;;  %v6980_v20 = vmul.f32 %v6907_v42, %v15944_v59 }
 0x787   :  { %v6982_v23 = vmul.f32 %v6917_v58, %v15963_v31  ;;  %v6983_v42 = vmul.f32 %v6922_v57, %v15973_v37  ;;  %v7192_v16 = vmul.f32 %v7160_v54, %v16188_v3 }
 0x788   :  { %v7120_v39 = vmul.f32 %v7098_v50, %v16129_v47  ;;  %v7190_v47 = vmul.f32 %v7158_v44, %v16172_v2  ;;  %v16185_v59 = vsub.f32 %v15849_v51, %v6980_v20 }
 0x789   :  { %v16167_v15 = vpop.eup %11180  ;;  %v16201_v19 = vsub.f32 %v15855_v0, %v6983_v42  ;;  %v7168_v42 = vrot.slane %v16126_v41, 1  ;;  %v7170_v41 = vrot.slane %v16152_v26, 1 }
 0x78a   :  { %7273 = vperm.xlu0 %10746, %v7120_v39   ;;  %v6927_v35 = vpop.permute.xlu1 %6926  ;;  %v6932_v13 = vpop.permute.xlu0 %6931  ;;  %v7102_v52 = vrot.slane %v16167_v15, %v19492_v10 }
 0x78b   :  { %v6984_v31 = vmul.f32 %v6927_v35, %v15985_v27  ;;  %v6985_v37 = vmul.f32 %v6932_v13, %v16000_v6  ;;  %v7163_v6 = vrot.slane %v16051_v46, 1  ;;  %v7165_v46 = vrot.slane %v16081_v18, 1 }
 0x78c   :  { %v7121_v22 = vmul.f32 %v7102_v52, %v16144_v30  ;;  %v16195_v52 = vsub.f32 %v15862_v40, %v6982_v23  ;;  %v7167_v18 = vrot.slane %v16111_v53, 1  ;;  %v7169_v53 = vrot.slane %v16141_v7, 1 }
 0x78d   :  { %v16177_v1 = vpop.eup %11182  ;;  %v16208_v27 = vsub.f32 %v15874_v49, %v6984_v31  ;;  %v16212_v57 = vsub.f32 %v15869_v24, %v6985_v37  ;;  %v7172_v7 = vrot.slane %v16167_v15, 1  ;;  %v19514_v37 = vld [vmem:[#allocation50_spill] sm:$0xff]  ;;  %v19516_v15 = vld [vmem:[#allocation9_spill] sm:$0xff] }
 0x78e   :  { %v6937_v50 = vpop.permute.xlu1 %6936  ;;  %7278 = vperm.xlu1 %10747, %v7121_v22   ;;  %v7106_v39 = vrot.slane %v16177_v1, %v19492_v10  ;;  %v6942_v55 = vpop.permute.xlu0 %6941  ;;  %v7159_v22 = vrot.slane %v15991_v63, 1  ;;  %v7161_v63 = vrot.slane %v16021_v62, 1  ;;  %vm7123_vm4 = vcmp.eq.s32.totalorder %v19516_v15, 9 }
 0x78f   :  { %v6986_v0 = vmul.f32 %v6937_v50, %v16015_v36  ;;  %v6987_v13 = vmul.f32 %v6942_v55, %v16030_v17  ;;  %v7195_v20 = vmul.f32 %v7163_v6, %v16208_v27 }
 0x790   :  { %v7122_v45 = vmul.f32 %v7106_v39, %v16155_v61  ;;  %v7191_v58 = vmul.f32 %v7159_v22, %v16185_v59  ;;  %v7193_v40 = vmul.f32 %v7161_v63, %v16195_v52 }
 0x791   :  { %v16222_v24 = vsub.f32 %v15886_v38, %v6986_v0  ;;  %v16225_v36 = vsub.f32 %v15883_v48, %v6987_v13  ;;  %v19519_v0 = vld [vmem:[#allocation19_spill] sm:$0xff] }
 0x792   :  { %7283 = vperm.xlu0 %10746, %v7122_v45   ;;  %7384 = vperm.xlu1 %10747, %v7190_v47   ;;  %v6947_v51 = vpop.permute.xlu1 %6946  ;;  %v6952_v33 = vpop.permute.xlu0 %6951  ;;  %v7162_v47 = vrot.slane %v16036_v9, 1  ;;  %v7164_v9 = vrot.slane %v16066_v14, 1  ;;  %v7166_v14 = vrot.slane %v16096_v28, 1 }
 0x793   :  { %v6988_v49 = vmul.f32 %v6947_v51, %v16045_v29  ;;  %v6989_v17 = vmul.f32 %v6952_v33, %v16060_v43  ;;  %v7197_v38 = vmul.f32 %v7165_v46, %v16222_v24  ;;  %v19517_v33 = vmov 0.0  }
 0x794   :  { %v7194_v35 = vmul.f32 %v7162_v47, %v16201_v19  ;;  %v7196_v39 = vmul.f32 %v7164_v9, %v16212_v57  ;;  %v7198_v55 = vmul.f32 %v7166_v14, %v16225_v36  ;;  %v16274_v47 = vsel %vm7123_vm4, 1.0, %v19517_v33 }
 0x795   :  { %v16231_v50 = vsub.f32 %v15898_v5, %v6988_v49  ;;  %v16237_v48 = vsub.f32 %v15891_v11, %v6989_v17  ;;  %v16284_v13 = vsub.f32 %v19519_v0, %v16274_v47  ;;  %v19521_v49 = vld [vmem:[#allocation37_spill] sm:$0xff] }
 0x796   :  { %7389 = vperm.xlu0 %10746, %v7191_v58   ;;  %7394 = vperm.xlu1 %10747, %v7192_v16   ;;  %v6957_v62 = vpop.permute.xlu1 %6956  ;;  %v6962_v44 = vpop.permute.xlu0 %6961 }
 0x797   :  { %v6990_v29 = vmul.f32 %v6957_v62, %v16075_v8  ;;  %v6991_v43 = vmul.f32 %v6962_v44, %v16090_v34  ;;  %v7199_v5 = vmul.f32 %v7167_v18, %v16231_v50  ;;  %v7200_v45 = vmul.f32 %v7168_v42, %v16237_v48 }
 0x798   :  { %v16293_v44 = vsub.f32 %v19521_v49, %v16274_v47 }
 0x799   :  { %v16244_v8 = vsub.f32 %v15910_v12, %v6990_v29  ;;  %v16248_v22 = vsub.f32 %v15905_v60, %v6991_v43  ;;  %v19523_v29 = vld [vmem:[#allocation28_spill] sm:$0xff] }
 0x79a   :  { %7399 = vperm.xlu0 %10746, %v7193_v40   ;;  %7404 = vperm.xlu1 %10747, %v7194_v35   ;;  %v6967_v23 = vpop.permute.xlu1 %6966  ;;  %v6972_v28 = vpop.permute.xlu0 %6971  ;;  %v19518_v40 = vld [vmem:[#allocation26_spill] sm:$0xff]  ;;  %v7297_v14 = vrot.slane %v16293_v44, %v19492_v10  ;;  %v7480_v15 = vrot.slane %v16293_v44, 1 }
 0x79b   :  { %v6992_v11 = vmul.f32 %v6967_v23, %v16105_v25  ;;  %v6993_v34 = vmul.f32 %v6972_v28, %v16120_v4  ;;  %v7201_v31 = vmul.f32 %v7169_v53, %v16244_v8  ;;  %v7202_v12 = vmul.f32 %v7170_v41, %v16248_v22  ;;  %v19513_v4 = vld [vmem:[#allocation24_spill] sm:$0xff]  ;;  %v19525_v28 = vld [vmem:[#allocation11_spill] sm:$0xff] }
 0x79c   :  { %v7171_v58 = vrot.slane %v19513_v4, 1  ;;  %v16278_v35 = vsub.f32 %v19518_v40, %v16274_v47  ;;  %v16303_v23 = vsub.f32 %v19523_v29, %v16274_v47  ;;  %v16313_v42 = vsub.f32 %v19525_v28, %v16274_v47 }
 0x79d   :  { %v16257_v51 = vsub.f32 %v15921_v21, %v6992_v11  ;;  %v16260_v60 = vsub.f32 %v15918_v56, %v6993_v34  ;;  %v7173_v21 = vrot.slane %v16177_v1, 1 }
 0x79e   :  { %7409 = vperm.xlu0 %10746, %v7195_v20   ;;  %7414 = vperm.xlu1 %10747, %v7196_v39   ;;  %v6977_v54 = vpop.permute.xlu1 %6976  ;;  %v7289_v1 = vrot.slane %v16278_v35, %v19492_v10  ;;  %v7293_v20 = vrot.slane %v16284_v13, %v19492_v10  ;;  %v7301_v18 = vrot.slane %v16303_v23, %v19492_v10  ;;  %v7482_v44 = vrot.slane %v16313_v42, 1 }
 0x79f   :  { %19512 = vst [vmem:[#allocation7_spill] sm:$0xff] %v16257_v51  ;;  %v6994_v25 = vmul.f32 %v6977_v54, %v16135_v32  ;;  %v7203_v26 = vmul.f32 %v7171_v58, %v16257_v51  ;;  %v7204_v16 = vmul.f32 %v7172_v7, %v16260_v60  ;;  %v11412_v32 = vmov 10   ;;  %v19527_v54 = vld [vmem:[#allocation56_spill] sm:$0xff] }
 0x7a0   :  { %v7305_v53 = vrot.slane %v16313_v42, %v19492_v10  ;;  %v16325_v41 = vsub.f32 %v19527_v54, %v16274_v47 }
 0x7a1   :  { %v16268_v63 = vsub.f32 %v19514_v37, %v6994_v25  ;;  %v19530_v37 = vld [vmem:[#allocation30_spill] sm:$0xff] }
 0x7a2   :  { %7419 = vperm.xlu0 %10746, %v7197_v38   ;;  %7424 = vperm.xlu1 %10747, %v7198_v55  }
 0x7a3   :  { %19515 = vst [vmem:[#allocation39_spill] sm:$0xff] %v16268_v63  ;;  %v7205_v56 = vmul.f32 %v7173_v21, %v16268_v63  ;;  %v16340_v21 = vsub.f32 %v19530_v37, %v16274_v47  ;;  %v7479_v63 = vrot.slane %v16284_v13, 1  ;;  %v7481_v13 = vrot.slane %v16303_v23, 1 }
 0x7a5   :  { %v7484_v23 = vrot.slane %v16340_v21, 1 }
 0x7a6   :  { %7429 = vperm.xlu0 %10746, %v7199_v5   ;;  %7434 = vperm.xlu1 %10747, %v7200_v45  }
 0x7aa   :  { %7439 = vperm.xlu0 %10746, %v7201_v31   ;;  %7444 = vperm.xlu1 %10747, %v7202_v12   ;;  %v19528_v12 = vld [vmem:[#allocation27_spill] sm:$0xff] }
 0x7ae   :  { %7449 = vperm.xlu0 %10746, %v7203_v26   ;;  %7454 = vperm.xlu1 %10747, %v7204_v16   ;;  %v7309_v16 = vrot.slane %v16325_v41, %v19492_v10 }
 0x7b2   :  { %7459 = vperm.xlu0 %10746, %v7205_v56   ;;  %10748 = vset.pattern.permute.xlu1 %v11412_v32 }
 0x7b6   :  { %10749 = vset.pattern.permute.xlu0 %v11412_v32 }
 0x7d5   :  { %v7209_v6 = vpop.permute.xlu0 %7208 }
 0x7d6   :  { %v7350_v62 = vmul.f32 %v7289_v1, %v7209_v6 }
 0x7d8   :  { %v16287_v9 = vsub.f32 %v19518_v40, %v7350_v62  ;;  %v7313_v62 = vrot.slane %v16340_v21, %v19492_v10 }
 0x7d9   :  { %v7214_v39 = vpop.permute.xlu1 %7213 }
 0x7da   :  { %19520 = vst [vmem:[#allocation32_spill] sm:$0xff] %v16287_v9  ;;  %11184 = vrcp.f32 %v16287_v9  ;;  %v7351_v17 = vmul.f32 %v7293_v20, %v7214_v39  ;;  %v19532_v20 = vld [vmem:[#allocation8_spill] sm:$0xff] }
 0x7dc   :  { %v16297_v46 = vsub.f32 %v19519_v0, %v7351_v17 }
 0x7dd   :  { %v7219_v38 = vpop.permute.xlu1 %7218 }
 0x7de   :  { %19522 = vst [vmem:[#allocation44_spill] sm:$0xff] %v16297_v46  ;;  %11186 = vrcp.f32 %v16297_v46  ;;  %v7352_v55 = vmul.f32 %v7297_v14, %v7219_v38 }
 0x7e0   :  { %v16307_v43 = vsub.f32 %v19521_v49, %v7352_v55  ;;  %v16355_v49 = vsub.f32 %v19532_v20, %v16274_v47 }
 0x7e1   :  { %v7224_v5 = vpop.permute.xlu0 %7223 }
 0x7e2   :  { %19524 = vst [vmem:[#allocation22_spill] sm:$0xff] %v16307_v43  ;;  %11188 = vrcp.f32 %v16307_v43  ;;  %v7353_v45 = vmul.f32 %v7301_v18, %v7224_v5  ;;  %v7317_v18 = vrot.slane %v16355_v49, %v19492_v10 }
 0x7e4   :  { %v16316_v11 = vpop.eup %11184  ;;  %v16319_v34 = vsub.f32 %v19523_v29, %v7353_v45 }
 0x7e5   :  { %v7229_v31 = vpop.permute.xlu1 %7228  ;;  %v7577_v25 = vrot.slane %v16316_v11, %v19528_v12 }
 0x7e6   :  { %19526 = vst [vmem:[#allocation36_spill] sm:$0xff] %v16319_v34  ;;  %11190 = vrcp.f32 %v16319_v34  ;;  %v7354_v4 = vmul.f32 %v7305_v53, %v7229_v31 }
 0x7e7   :  { %v7638_v58 = vmul.f32 %v7577_v25, %v16287_v9 }
 0x7e8   :  { %v16331_v7 = vpop.eup %11186  ;;  %v16334_v26 = vsub.f32 %v19525_v28, %v7354_v4  ;;  %v19534_v28 = vld [vmem:[#allocation12_spill] sm:$0xff] }
 0x7e9   :  { %7739 = vperm.xlu1 %10748, %v7638_v58   ;;  %v7234_v56 = vpop.permute.xlu0 %7233  ;;  %v7581_v32 = vrot.slane %v16331_v7, %v19528_v12  ;;  %v16370_v5 = vsub.f32 %v19534_v28, %v16274_v47 }
 0x7ea   :  { %19529 = vst [vmem:[#allocation35_spill] sm:$0xff] %v16334_v26  ;;  %11192 = vrcp.f32 %v16334_v26  ;;  %v7355_v40 = vmul.f32 %v7309_v16, %v7234_v56  ;;  %v19536_v16 = vld [vmem:[#allocation29_spill] sm:$0xff] }
 0x7eb   :  { %v7639_v1 = vmul.f32 %v7581_v32, %v16297_v46  ;;  %v7321_v58 = vrot.slane %v16370_v5, %v19492_v10 }
 0x7ec   :  { %v16346_v0 = vpop.eup %11188  ;;  %v16349_v6 = vsub.f32 %v19527_v54, %v7355_v40 }
 0x7ed   :  { %7744 = vperm.xlu0 %10749, %v7639_v1   ;;  %v7239_v39 = vpop.permute.xlu1 %7238  ;;  %v7585_v17 = vrot.slane %v16346_v0, %v19528_v12 }
 0x7ee   :  { %19531 = vst [vmem:[#allocation43_spill] sm:$0xff] %v16349_v6  ;;  %11194 = vrcp.f32 %v16349_v6  ;;  %v7356_v14 = vmul.f32 %v7313_v62, %v7239_v39 }
 0x7ef   :  { %v7640_v29 = vmul.f32 %v7585_v17, %v16307_v43  ;;  %v19538_v17 = vld [vmem:[#allocation16_spill] sm:$0xff] }
 0x7f0   :  { %v16361_v38 = vpop.eup %11190  ;;  %v16364_v55 = vsub.f32 %v19530_v37, %v7356_v14  ;;  %v16385_v37 = vsub.f32 %v19536_v16, %v16274_v47  ;;  %v16400_v14 = vsub.f32 %v19538_v17, %v16274_v47 }
 0x7f1   :  { %7749 = vperm.xlu1 %10748, %v7640_v29   ;;  %v7244_v45 = vpop.permute.xlu0 %7243  ;;  %v7589_v53 = vrot.slane %v16361_v38, %v19528_v12 }
 0x7f2   :  { %19533 = vst [vmem:[#allocation47_spill] sm:$0xff] %v16364_v55  ;;  %11196 = vrcp.f32 %v16364_v55  ;;  %v7357_v54 = vmul.f32 %v7317_v18, %v7244_v45  ;;  %v7325_v39 = vrot.slane %v16385_v37, %v19492_v10 }
 0x7f3   :  { %v7641_v31 = vmul.f32 %v7589_v53, %v16319_v34 }
 0x7f4   :  { %v16376_v25 = vpop.eup %11192  ;;  %v16379_v4 = vsub.f32 %v19532_v20, %v7357_v54 }
 0x7f5   :  { %v7249_v56 = vpop.permute.xlu1 %7248  ;;  %7754 = vperm.xlu1 %10748, %v7641_v31   ;;  %v7593_v32 = vrot.slane %v16376_v25, %v19528_v12  ;;  %v7329_v31 = vrot.slane %v16400_v14, %v19492_v10 }
 0x7f6   :  { %19535 = vst [vmem:[#allocation46_spill] sm:$0xff] %v16379_v4  ;;  %11198 = vrcp.f32 %v16379_v4  ;;  %v7358_v40 = vmul.f32 %v7321_v58, %v7249_v56  ;;  %v19540_v58 = vld [vmem:[#allocation20_spill] sm:$0xff] }
 0x7f7   :  { %v7642_v1 = vmul.f32 %v7593_v32, %v16334_v26  ;;  %v16415_v56 = vsub.f32 %v19540_v58, %v16274_v47 }
 0x7f8   :  { %v16391_v62 = vpop.eup %11194  ;;  %v16394_v20 = vsub.f32 %v19534_v28, %v7358_v40 }
 0x7f9   :  { %7759 = vperm.xlu0 %10749, %v7642_v1   ;;  %v7254_v29 = vpop.permute.xlu0 %7253  ;;  %v7597_v18 = vrot.slane %v16391_v62, %v19528_v12 }
 0x7fa   :  { %19537 = vst [vmem:[#allocation49_spill] sm:$0xff] %v16394_v20  ;;  %11200 = vrcp.f32 %v16394_v20  ;;  %v7359_v45 = vmul.f32 %v7325_v39, %v7254_v29 }
 0x7fb   :  { %v7643_v53 = vmul.f32 %v7597_v18, %v16349_v6  ;;  %v7333_v18 = vrot.slane %v16415_v56, %v19492_v10 }
 0x7fc   :  { %v16406_v54 = vpop.eup %11196  ;;  %v16409_v28 = vsub.f32 %v19536_v16, %v7359_v45  ;;  %v19542_v45 = vld [vmem:[#allocation18_spill] sm:$0xff] }
 0x7fd   :  { %v7259_v32 = vpop.permute.xlu1 %7258  ;;  %7764 = vperm.xlu1 %10748, %v7643_v53   ;;  %v7601_v40 = vrot.slane %v16406_v54, %v19528_v12  ;;  %v16430_v6 = vsub.f32 %v19542_v45, %v16274_v47 }
 0x7fe   :  { %19539 = vst [vmem:[#allocation57_spill] sm:$0xff] %v16409_v28  ;;  %11202 = vrcp.f32 %v16409_v28  ;;  %v7360_v1 = vmul.f32 %v7329_v31, %v7259_v32 }
 0x7ff   :  { %v7644_v39 = vmul.f32 %v7601_v40, %v16364_v55  ;;  %v19544_v55 = vld [vmem:[#allocation14_spill] sm:$0xff] }
 0x800   :  { %v16421_v29 = vpop.eup %11198  ;;  %v16424_v16 = vsub.f32 %v19538_v17, %v7360_v1  ;;  %v7337_v1 = vrot.slane %v16430_v6, %v19492_v10 }
 0x801   :  { %7769 = vperm.xlu0 %10749, %v7644_v39   ;;  %v7264_v53 = vpop.permute.xlu0 %7263  ;;  %v7605_v26 = vrot.slane %v16421_v29, %v19528_v12  ;;  %v16445_v39 = vsub.f32 %v19544_v55, %v16274_v47 }
 0x802   :  { %19541 = vst [vmem:[#allocation55_spill] sm:$0xff] %v16424_v16  ;;  %11204 = vrcp.f32 %v16424_v16  ;;  %v7361_v31 = vmul.f32 %v7333_v18, %v7264_v53 }
 0x803   :  { %v7645_v32 = vmul.f32 %v7605_v26, %v16379_v4  ;;  %v16460_v4 = vsub.f32 %v16144_v30, %v16274_v47 }
 0x804   :  { %v16436_v40 = vpop.eup %11200  ;;  %v16439_v17 = vsub.f32 %v19540_v58, %v7361_v31  ;;  %v7341_v31 = vrot.slane %v16445_v39, %v19492_v10 }
 0x805   :  { %v7269_v34 = vpop.permute.xlu1 %7268  ;;  %7774 = vperm.xlu1 %10748, %v7645_v32   ;;  %v7609_v43 = vrot.slane %v16436_v40, %v19528_v12 }
 0x806   :  { %19543 = vst [vmem:[#allocation52_spill] sm:$0xff] %v16439_v17  ;;  %11206 = vrcp.f32 %v16439_v17  ;;  %v7362_v26 = vmul.f32 %v7337_v1, %v7269_v34 }
 0x807   :  { %v7646_v18 = vmul.f32 %v7609_v43, %v16394_v20 }
 0x808   :  { %v16451_v53 = vpop.eup %11202  ;;  %v16454_v58 = vsub.f32 %v19542_v45, %v7362_v26  ;;  %v7345_v26 = vrot.slane %v16460_v4, %v19492_v10 }
 0x809   :  { %7779 = vperm.xlu0 %10749, %v7646_v18   ;;  %v7274_v32 = vpop.permute.xlu0 %7273  ;;  %v7613_v46 = vrot.slane %v16451_v53, %v19528_v12  ;;  %v16475_v18 = vsub.f32 %v16155_v61, %v16274_v47 }
 0x80a   :  { %19545 = vst [vmem:[#allocation15_spill] sm:$0xff] %v16454_v58  ;;  %11208 = vrcp.f32 %v16454_v58  ;;  %v7363_v43 = vmul.f32 %v7341_v31, %v7274_v32 }
 0x80b   :  { %v7647_v34 = vmul.f32 %v7613_v46, %v16409_v28 }
 0x80c   :  { %v16466_v1 = vpop.eup %11204  ;;  %v16469_v45 = vsub.f32 %v19544_v55, %v7363_v43  ;;  %v7349_v43 = vrot.slane %v16475_v18, %v19492_v10 }
 0x80d   :  { %v7279_v20 = vpop.permute.xlu1 %7278  ;;  %7784 = vperm.xlu1 %10748, %v7647_v34   ;;  %v7617_v9 = vrot.slane %v16466_v1, %v19528_v12 }
 0x80e   :  { %19546 = vst [vmem:[#allocation54_spill] sm:$0xff] %v16469_v45  ;;  %11210 = vrcp.f32 %v16469_v45  ;;  %v7364_v46 = vmul.f32 %v7345_v26, %v7279_v20 }
 0x80f   :  { %v7648_v31 = vmul.f32 %v7617_v9, %v16424_v16 }
 0x810   :  { %v16481_v32 = vpop.eup %11206  ;;  %v16484_v55 = vsub.f32 %v16144_v30, %v7364_v46 }
 0x811   :  { %7789 = vperm.xlu0 %10749, %v7648_v31   ;;  %v7385_v47 = vpop.permute.xlu1 %7384  ;;  %v7284_v28 = vpop.permute.xlu0 %7283  ;;  %v7621_v34 = vrot.slane %v16481_v32, %v19528_v12 }
 0x812   :  { %11212 = vrcp.f32 %v16484_v55  ;;  %v7365_v33 = vmul.f32 %v7349_v43, %v7284_v28  ;;  %v7478_v28 = vrot.slane %v16278_v35, 1 }
 0x813   :  { %v7649_v20 = vmul.f32 %v7621_v34, %v16439_v17 }
 0x814   :  { %v16492_v9 = vpop.eup %11208  ;;  %v16495_v26 = vsub.f32 %v16155_v61, %v7365_v33  ;;  %v7510_v33 = vmul.f32 %v7478_v28, %v7385_v47 }
 0x815   :  { %v7395_v30 = vpop.permute.xlu1 %7394  ;;  %7794 = vperm.xlu1 %10748, %v7649_v20   ;;  %v7390_v46 = vpop.permute.xlu0 %7389  ;;  %v7625_v10 = vrot.slane %v16492_v9, %v19528_v12 }
 0x816   :  { %11214 = vrcp.f32 %v16495_v26  ;;  %v7512_v51 = vmul.f32 %v7480_v15, %v7395_v30 }
 0x817   :  { %v7650_v31 = vmul.f32 %v7625_v10, %v16454_v58 }
 0x818   :  { %v16501_v16 = vpop.eup %11210 }
 0x819   :  { %19547 = vst [vmem:[#allocation53_spill] sm:$0xff] %v16501_v16  ;;  %7799 = vperm.xlu0 %10749, %v7650_v31   ;;  %v7405_v43 = vpop.permute.xlu1 %7404  ;;  %v7400_v34 = vpop.permute.xlu0 %7399  ;;  %v7629_v61 = vrot.slane %v16501_v16, %v19528_v12  ;;  %v16514_v31 = vsub.f32 %v16172_v2, %v7510_v33  ;;  %v7511_v16 = vmul.f32 %v7479_v63, %v7390_v46  ;;  %v7691_v46 = vrot.slane %v16346_v0, 2 }
 0x81a   :  { %v7514_v33 = vmul.f32 %v7482_v44, %v7405_v43  ;;  %v16526_v63 = vsub.f32 %v16188_v3, %v7512_v51  ;;  %v7693_v0 = vrot.slane %v16376_v25, 2 }
 0x81b   :  { %v7651_v20 = vmul.f32 %v7629_v61, %v16469_v45  ;;  %v7689_v61 = vrot.slane %v16316_v11, 2  ;;  %v16529_v30 = vsub.f32 %v16185_v59, %v7511_v16  ;;  %v7513_v11 = vmul.f32 %v7481_v13, %v7400_v34 }
 0x81c   :  { %v16507_v17 = vpop.eup %11212  ;;  %v16537_v43 = vsub.f32 %v16201_v19, %v7514_v33  ;;  %v7723_v59 = vmul.f32 %v7691_v46, %v16526_v63  ;;  %v7486_v34 = vrot.slane %v16370_v5, 1  ;;  %v7485_v19 = vrot.slane %v16355_v49, 1 }
 0x81d   :  { %v7415_v10 = vpop.permute.xlu1 %7414  ;;  %7804 = vperm.xlu1 %10748, %v7651_v20   ;;  %v7410_v58 = vpop.permute.xlu0 %7409  ;;  %v7633_v35 = vrot.slane %v16507_v17, %v19528_v12  ;;  %v7721_v2 = vmul.f32 %v7689_v61, %v16514_v31  ;;  %v7488_v5 = vrot.slane %v16400_v14, 1  ;;  %v7694_v49 = vrot.slane %v16391_v62, 2 }
 0x81e   :  { %v7516_v3 = vmul.f32 %v7484_v23, %v7415_v10  ;;  %v7725_v10 = vmul.f32 %v7693_v0, %v16537_v43  ;;  %v7697_v62 = vrot.slane %v16436_v40, 2  ;;  %v7699_v40 = vrot.slane %v16466_v1, 2 }
 0x81f   :  { %v7652_v47 = vmul.f32 %v7633_v35, %v16484_v55  ;;  %v7690_v35 = vrot.slane %v16331_v7, 2 }
 0x820   :  { %v16517_v28 = vpop.eup %11214  ;;  %v16550_v61 = vsub.f32 %v16212_v57, %v7516_v3  ;;  %v7492_v3 = vrot.slane %v16460_v4, 1  ;;  %v7700_v4 = vrot.slane %v16481_v32, 2 }
 0x821   :  { %7809 = vperm.xlu0 %10749, %v7652_v47   ;;  %v7420_v20 = vpop.permute.xlu0 %7419  ;;  %v7637_v45 = vrot.slane %v16517_v28, %v19528_v12  ;;  %v7425_v15 = vpop.permute.xlu1 %7424  ;;  %v7483_v47 = vrot.slane %v16325_v41, 1  ;;  %v7722_v16 = vmul.f32 %v7690_v35, %v16529_v30  ;;  %v7692_v41 = vrot.slane %v16361_v38, 2 }
 0x822   :  { %v7518_v25 = vmul.f32 %v7486_v34, %v7425_v15  ;;  %v7517_v44 = vmul.f32 %v7485_v19, %v7420_v20  ;;  %v7695_v38 = vrot.slane %v16406_v54, 2  ;;  %v7490_v20 = vrot.slane %v16430_v6, 1 }
 0x823   :  { %v7653_v42 = vmul.f32 %v7637_v45, %v16495_v26  ;;  %v16542_v45 = vsub.f32 %v16195_v52, %v7513_v11  ;;  %v7515_v21 = vmul.f32 %v7483_v47, %v7410_v58 }
 0x824   :  { %v7727_v57 = vmul.f32 %v7695_v38, %v16550_v61  ;;  %v16563_v15 = vsub.f32 %v16225_v36, %v7518_v25  ;;  %v16566_v54 = vsub.f32 %v16222_v24, %v7517_v44  ;;  %v19551_v25 = vld [vmem:[#allocation39_spill] sm:$0xff] }
 0x825   :  { %7915 = vperm.xlu0 %10749, %v7721_v2   ;;  %7814 = vperm.xlu1 %10748, %v7653_v42   ;;  %v7430_v51 = vpop.permute.xlu0 %7429  ;;  %v7435_v7 = vpop.permute.xlu1 %7434  ;;  %v7724_v52 = vmul.f32 %v7692_v41, %v16542_v45  ;;  %v16554_v58 = vsub.f32 %v16208_v27, %v7515_v21  ;;  %v7487_v2 = vrot.slane %v16385_v37, 1  ;;  %v7696_v37 = vrot.slane %v16421_v29, 2 }
 0x826   :  { %v7520_v33 = vmul.f32 %v7488_v5, %v7435_v7  ;;  %v7489_v42 = vrot.slane %v16415_v56, 1  ;;  %v7729_v35 = vmul.f32 %v7697_v62, %v16563_v15  ;;  %v7698_v56 = vrot.slane %v16451_v53, 2 }
 0x827   :  { %v7726_v27 = vmul.f32 %v7694_v49, %v16554_v58  ;;  %v7519_v14 = vmul.f32 %v7487_v2, %v7430_v51  ;;  %v7728_v24 = vmul.f32 %v7696_v37, %v16566_v54  ;;  %v7701_v53 = vrot.slane %v16492_v9, 2  ;;  %v19555_v2 = vld [vmem:[#allocation32_spill] sm:$0xff]  ;;  %v19558_v37 = vld [vmem:[#allocation22_spill] sm:$0xff] }
 0x828   :  { %v16573_v23 = vsub.f32 %v16237_v48, %v7520_v33  ;;  %v7491_v48 = vrot.slane %v16445_v39, 1  ;;  %v7493_v39 = vrot.slane %v16475_v18, 1  ;;  %v7703_v9 = vrot.slane %v16507_v17, 2  ;;  %v19553_v17 = vld [vmem:[#allocation9_spill] sm:$0xff]  ;;  %v19556_v33 = vld [vmem:[#allocation44_spill] sm:$0xff] }
 0x829   :  { %7925 = vperm.xlu0 %10749, %v7723_v59   ;;  %7920 = vperm.xlu1 %10748, %v7722_v16   ;;  %v7440_v13 = vpop.permute.xlu0 %7439  ;;  %v7445_v11 = vpop.permute.xlu1 %7444  ;;  %v16578_v47 = vsub.f32 %v16231_v50, %v7519_v14  ;;  %v11413_v5 = vmov 11   ;;  %vm7654_vm5 = vcmp.eq.s32.totalorder %v19553_v17, 10 }
 0x82a   :  { %v7522_v46 = vmul.f32 %v7490_v20, %v7445_v11  ;;  %v7521_v6 = vmul.f32 %v7489_v42, %v7440_v13  ;;  %v7731_v51 = vmul.f32 %v7699_v40, %v16573_v23  ;;  %v19554_v13 = vmov 0.0  }
 0x82b   :  { %v7730_v50 = vmul.f32 %v7698_v56, %v16578_v47  ;;  %v16614_v49 = vsel %vm7654_vm5, 1.0, %v19554_v13 }
 0x82c   :  { %v16586_v59 = vsub.f32 %v16248_v22, %v7522_v46  ;;  %v16590_v16 = vsub.f32 %v16244_v8, %v7521_v6  ;;  %v19549_v8 = vld [vmem:[#allocation7_spill] sm:$0xff]  ;;  %v16624_v11 = vsub.f32 %v19556_v33, %v16614_v49  ;;  %v16633_v42 = vsub.f32 %v19558_v37, %v16614_v49  ;;  %v19560_v6 = vld [vmem:[#allocation36_spill] sm:$0xff] }
 0x82d   :  { %7935 = vperm.xlu0 %10749, %v7725_v10   ;;  %7930 = vperm.xlu1 %10748, %v7724_v52   ;;  %v7450_v36 = vpop.permute.xlu0 %7449  ;;  %v7455_v29 = vpop.permute.xlu1 %7454  ;;  %v19550_v10 = vld [vmem:[#allocation53_spill] sm:$0xff]  ;;  %v16643_v40 = vsub.f32 %v19560_v6, %v16614_v49 }
 0x82e   :  { %v7524_v1 = vmul.f32 %v7492_v3, %v7455_v29  ;;  %v7523_v21 = vmul.f32 %v7491_v48, %v7450_v36  ;;  %v7733_v7 = vmul.f32 %v7701_v53, %v16586_v59  ;;  %v7732_v22 = vmul.f32 %v7700_v4, %v16590_v16 }
 0x82f   :  { %v7702_v52 = vrot.slane %v19550_v10, 2  ;;  %v7824_v62 = vrot.slane %v16624_v11, %v19528_v12  ;;  %v7832_v48 = vrot.slane %v16643_v40, %v19528_v12  ;;  %v8010_v17 = vrot.slane %v16624_v11, 2 }
 0x830   :  { %v16598_v41 = vsub.f32 %v16260_v60, %v7524_v1  ;;  %v16601_v34 = vsub.f32 %v19549_v8, %v7523_v21  ;;  %v7704_v60 = vrot.slane %v16517_v28, 2  ;;  %v19565_v8 = vld [vmem:[#allocation33_spill] sm:$0xff]  ;;  %v8012_v11 = vrot.slane %v16643_v40, 2 }
 0x831   :  { %7945 = vperm.xlu0 %10749, %v7727_v57   ;;  %7940 = vperm.xlu1 %10748, %v7726_v27   ;;  %v7460_v0 = vpop.permute.xlu0 %7459  ;;  %v16618_v57 = vsub.f32 %v19555_v2, %v16614_v49 }
 0x832   :  { %19548 = vst [vmem:[#allocation38_spill] sm:$0xff] %v16598_v41  ;;  %v7525_v19 = vmul.f32 %v7493_v39, %v7460_v0  ;;  %v7735_v18 = vmul.f32 %v7703_v9, %v16598_v41  ;;  %v7734_v32 = vmul.f32 %v7702_v52, %v16601_v34  ;;  %v19564_v39 = vld [vmem:[#allocation43_spill] sm:$0xff] }
 0x833   :  { %v7820_v28 = vrot.slane %v16618_v57, %v19528_v12 }
 0x834   :  { %v16608_v44 = vsub.f32 %v19551_v25, %v7525_v19  ;;  %v19567_v25 = vld [vmem:[#allocation47_spill] sm:$0xff] }
 0x835   :  { %7955 = vperm.xlu0 %10749, %v7729_v35   ;;  %7950 = vperm.xlu1 %10748, %v7728_v24   ;;  %v7828_v24 = vrot.slane %v16633_v42, %v19528_v12 }
 0x836   :  { %19552 = vst [vmem:[#allocation21_spill] sm:$0xff] %v16608_v44  ;;  %v7736_v38 = vmul.f32 %v7704_v60, %v16608_v44  ;;  %v16680_v60 = vsub.f32 %v19567_v25, %v16614_v49  ;;  %v8011_v44 = vrot.slane %v16633_v42, 2 }
 0x839   :  { %7965 = vperm.xlu0 %10749, %v7731_v51   ;;  %7960 = vperm.xlu1 %10748, %v7730_v50   ;;  %v19562_v51 = vld [vmem:[#allocation35_spill] sm:$0xff] }
 0x83a   :  { %v16653_v50 = vsub.f32 %v19562_v51, %v16614_v49 }
 0x83c   :  { %v7836_v4 = vrot.slane %v16653_v50, %v19528_v12  ;;  %v8013_v42 = vrot.slane %v16653_v50, 2 }
 0x83d   :  { %7975 = vperm.xlu0 %10749, %v7733_v7   ;;  %7970 = vperm.xlu1 %10748, %v7732_v22   ;;  %v16665_v7 = vsub.f32 %v19564_v39, %v16614_v49 }
 0x83f   :  { %v8014_v50 = vrot.slane %v16665_v7, 2 }
 0x841   :  { %7985 = vperm.xlu0 %10749, %v7735_v18   ;;  %7980 = vperm.xlu1 %10748, %v7734_v32   ;;  %v7840_v32 = vrot.slane %v16665_v7, %v19528_v12 }
 0x845   :  { %7990 = vperm.xlu1 %10748, %v7736_v38   ;;  %10750 = vset.pattern.permute.xlu0 %v11413_v5 }
 0x849   :  { %10751 = vset.pattern.permute.xlu1 %v11413_v5 }
 0x868   :  { %v7740_v27 = vpop.permute.xlu1 %7739 }
 0x869   :  { %v7881_v14 = vmul.f32 %v7820_v28, %v7740_v27 }
 0x86b   :  { %v16627_v20 = vsub.f32 %v19555_v2, %v7881_v14  ;;  %v7844_v14 = vrot.slane %v16680_v60, %v19528_v12 }
 0x86c   :  { %v7745_v46 = vpop.permute.xlu0 %7744 }
 0x86d   :  { %19557 = vst [vmem:[#allocation40_spill] sm:$0xff] %v16627_v20  ;;  %11216 = vrcp.f32 %v16627_v20  ;;  %v7882_v36 = vmul.f32 %v7824_v62, %v7745_v46  ;;  %v19569_v62 = vld [vmem:[#allocation46_spill] sm:$0xff] }
 0x86f   :  { %v16637_v35 = vsub.f32 %v19556_v33, %v7882_v36 }
 0x870   :  { %v7750_v29 = vpop.permute.xlu1 %7749 }
 0x871   :  { %19559 = vst [vmem:[#allocation42_spill] sm:$0xff] %v16637_v35  ;;  %11218 = vrcp.f32 %v16637_v35  ;;  %v7883_v56 = vmul.f32 %v7828_v24, %v7750_v29 }
 0x873   :  { %v16647_v3 = vsub.f32 %v19558_v37, %v7883_v56  ;;  %v16695_v37 = vsub.f32 %v19569_v62, %v16614_v49 }
 0x874   :  { %v7755_v1 = vpop.permute.xlu1 %7754 }
 0x875   :  { %19561 = vst [vmem:[#allocation34_spill] sm:$0xff] %v16647_v3  ;;  %11220 = vrcp.f32 %v16647_v3  ;;  %v7884_v21 = vmul.f32 %v7832_v48, %v7755_v1  ;;  %v7848_v48 = vrot.slane %v16695_v37, %v19528_v12 }
 0x877   :  { %v16656_v53 = vpop.eup %11216  ;;  %v16659_v0 = vsub.f32 %v19560_v6, %v7884_v21 }
 0x878   :  { %v7760_v22 = vpop.permute.xlu0 %7759  ;;  %v8108_v19 = vrot.slane %v16656_v53, %v19565_v8 }
 0x879   :  { %19563 = vst [vmem:[#allocation41_spill] sm:$0xff] %v16659_v0  ;;  %11222 = vrcp.f32 %v16659_v0  ;;  %v7885_v9 = vmul.f32 %v7836_v4, %v7760_v22 }
 0x87a   :  { %v8169_v10 = vmul.f32 %v8108_v19, %v16627_v20 }
 0x87b   :  { %v16671_v52 = vpop.eup %11218  ;;  %v16674_v18 = vsub.f32 %v19562_v51, %v7885_v9  ;;  %v19571_v51 = vld [vmem:[#allocation49_spill] sm:$0xff] }
 0x87c   :  { %8270 = vperm.xlu0 %10750, %v8169_v10   ;;  %v7765_v38 = vpop.permute.xlu1 %7764  ;;  %v8112_v5 = vrot.slane %v16671_v52, %v19565_v8  ;;  %v16710_v1 = vsub.f32 %v19571_v51, %v16614_v49 }
 0x87d   :  { %19566 = vst [vmem:[#allocation45_spill] sm:$0xff] %v16674_v18  ;;  %11224 = vrcp.f32 %v16674_v18  ;;  %v7886_v2 = vmul.f32 %v7840_v32, %v7765_v38  ;;  %v19573_v32 = vld [vmem:[#allocation57_spill] sm:$0xff] }
 0x87e   :  { %v8170_v28 = vmul.f32 %v8112_v5, %v16637_v35  ;;  %v7852_v10 = vrot.slane %v16710_v1, %v19528_v12 }
 0x87f   :  { %v16686_v33 = vpop.eup %11220  ;;  %v16689_v27 = vsub.f32 %v19564_v39, %v7886_v2 }
 0x880   :  { %8275 = vperm.xlu1 %10751, %v8170_v28   ;;  %v7770_v46 = vpop.permute.xlu0 %7769  ;;  %v8116_v36 = vrot.slane %v16686_v33, %v19565_v8 }
 0x881   :  { %19568 = vst [vmem:[#allocation13_spill] sm:$0xff] %v16689_v27  ;;  %11226 = vrcp.f32 %v16689_v27  ;;  %v7887_v24 = vmul.f32 %v7844_v14, %v7770_v46 }
 0x882   :  { %v8171_v6 = vmul.f32 %v8116_v36, %v16647_v3  ;;  %v19575_v36 = vld [vmem:[#allocation55_spill] sm:$0xff] }
 0x883   :  { %v16701_v29 = vpop.eup %11222  ;;  %v16704_v56 = vsub.f32 %v19567_v25, %v7887_v24  ;;  %v16725_v25 = vsub.f32 %v19573_v32, %v16614_v49  ;;  %v16740_v24 = vsub.f32 %v19575_v36, %v16614_v49 }
 0x884   :  { %v7775_v21 = vpop.permute.xlu1 %7774  ;;  %8280 = vperm.xlu1 %10751, %v8171_v6   ;;  %v8120_v4 = vrot.slane %v16701_v29, %v19565_v8 }
 0x885   :  { %19570 = vst [vmem:[#allocation23_spill] sm:$0xff] %v16704_v56  ;;  %11228 = vrcp.f32 %v16704_v56  ;;  %v7888_v39 = vmul.f32 %v7848_v48, %v7775_v21  ;;  %v7856_v46 = vrot.slane %v16725_v25, %v19528_v12 }
 0x886   :  { %v8172_v22 = vmul.f32 %v8120_v4, %v16659_v0 }
 0x887   :  { %v16716_v19 = vpop.eup %11224  ;;  %v16719_v9 = vsub.f32 %v19569_v62, %v7888_v39 }
 0x888   :  { %8285 = vperm.xlu0 %10750, %v8172_v22   ;;  %v7780_v38 = vpop.permute.xlu0 %7779  ;;  %v8124_v5 = vrot.slane %v16716_v19, %v19565_v8  ;;  %v7860_v22 = vrot.slane %v16740_v24, %v19528_v12 }
 0x889   :  { %19572 = vst [vmem:[#allocation25_spill] sm:$0xff] %v16719_v9  ;;  %11230 = vrcp.f32 %v16719_v9  ;;  %v7889_v2 = vmul.f32 %v7852_v10, %v7780_v38  ;;  %v19577_v10 = vld [vmem:[#allocation52_spill] sm:$0xff] }
 0x88a   :  { %v8173_v28 = vmul.f32 %v8124_v5, %v16674_v18  ;;  %v16755_v38 = vsub.f32 %v19577_v10, %v16614_v49 }
 0x88b   :  { %v16731_v14 = vpop.eup %11226  ;;  %v16734_v62 = vsub.f32 %v19571_v51, %v7889_v2 }
 0x88c   :  { %v7785_v6 = vpop.permute.xlu1 %7784  ;;  %8290 = vperm.xlu1 %10751, %v8173_v28   ;;  %v8128_v48 = vrot.slane %v16731_v14, %v19565_v8 }
 0x88d   :  { %19574 = vst [vmem:[#allocation48_spill] sm:$0xff] %v16734_v62  ;;  %11232 = vrcp.f32 %v16734_v62  ;;  %v7890_v21 = vmul.f32 %v7856_v46, %v7785_v6 }
 0x88e   :  { %v8174_v4 = vmul.f32 %v8128_v48, %v16689_v27  ;;  %v7864_v48 = vrot.slane %v16755_v38, %v19528_v12 }
 0x88f   :  { %v16746_v39 = vpop.eup %11228  ;;  %v16749_v51 = vsub.f32 %v19573_v32, %v7890_v21  ;;  %v19579_v21 = vld [vmem:[#allocation15_spill] sm:$0xff] }
 0x890   :  { %8295 = vperm.xlu0 %10750, %v8174_v4   ;;  %v7790_v5 = vpop.permute.xlu0 %7789  ;;  %v8132_v2 = vrot.slane %v16746_v39, %v19565_v8  ;;  %v16770_v4 = vsub.f32 %v19579_v21, %v16614_v49 }
 0x891   :  { %19576 = vst [vmem:[#allocation51_spill] sm:$0xff] %v16749_v51  ;;  %11234 = vrcp.f32 %v16749_v51  ;;  %v7891_v28 = vmul.f32 %v7860_v22, %v7790_v5 }
 0x892   :  { %v8175_v46 = vmul.f32 %v8132_v2, %v16704_v56  ;;  %v19581_v56 = vld [vmem:[#allocation54_spill] sm:$0xff] }
 0x893   :  { %v16761_v6 = vpop.eup %11230  ;;  %v16764_v32 = vsub.f32 %v19575_v36, %v7891_v28  ;;  %v7868_v28 = vrot.slane %v16770_v4, %v19528_v12  ;;  %v16785_v0 = vsub.f32 %v19581_v56, %v16614_v49 }
 0x894   :  { %v7795_v27 = vpop.permute.xlu1 %7794  ;;  %8300 = vperm.xlu1 %10751, %v8175_v46   ;;  %v8136_v18 = vrot.slane %v16761_v6, %v19565_v8 }
 0x895   :  { %19578 = vst [vmem:[#allocation24_spill] sm:$0xff] %v16764_v32  ;;  %11236 = vrcp.f32 %v16764_v32  ;;  %v7892_v22 = vmul.f32 %v7864_v48, %v7795_v27 }
 0x896   :  { %v8176_v5 = vmul.f32 %v8136_v18, %v16719_v9 }
 0x897   :  { %v16776_v2 = vpop.eup %11232  ;;  %v16779_v36 = vsub.f32 %v19577_v10, %v7892_v22  ;;  %v7872_v22 = vrot.slane %v16785_v0, %v19528_v12 }
 0x898   :  { %8305 = vperm.xlu0 %10750, %v8176_v5   ;;  %v7800_v46 = vpop.permute.xlu0 %7799  ;;  %v8140_v3 = vrot.slane %v16776_v2, %v19565_v8  ;;  %v16800_v5 = vsub.f32 %v16484_v55, %v16614_v49 }
 0x899   :  { %19580 = vst [vmem:[#allocation50_spill] sm:$0xff] %v16779_v36  ;;  %11238 = vrcp.f32 %v16779_v36  ;;  %v7893_v18 = vmul.f32 %v7868_v28, %v7800_v46 }
 0x89a   :  { %v8177_v27 = vmul.f32 %v8140_v3, %v16734_v62  ;;  %v16815_v62 = vsub.f32 %v16495_v26, %v16614_v49 }
 0x89b   :  { %v16791_v48 = vpop.eup %11234  ;;  %v16794_v10 = vsub.f32 %v19579_v21, %v7893_v18  ;;  %v7876_v18 = vrot.slane %v16800_v5, %v19528_v12 }
 0x89c   :  { %v7805_v9 = vpop.permute.xlu1 %7804  ;;  %8310 = vperm.xlu1 %10751, %v8177_v27   ;;  %v8144_v35 = vrot.slane %v16791_v48, %v19565_v8 }
 0x89d   :  { %19582 = vst [vmem:[#allocation26_spill] sm:$0xff] %v16794_v10  ;;  %11240 = vrcp.f32 %v16794_v10  ;;  %v7894_v3 = vmul.f32 %v7872_v22, %v7805_v9 }
 0x89e   :  { %v8178_v28 = vmul.f32 %v8144_v35, %v16749_v51 }
 0x89f   :  { %v16806_v46 = vpop.eup %11236  ;;  %v16809_v21 = vsub.f32 %v19581_v56, %v7894_v3  ;;  %v7880_v3 = vrot.slane %v16815_v62, %v19528_v12 }
 0x8a0   :  { %8315 = vperm.xlu0 %10750, %v8178_v28   ;;  %v7810_v27 = vpop.permute.xlu0 %7809  ;;  %v8148_v20 = vrot.slane %v16806_v46, %v19565_v8 }
 0x8a1   :  { %19583 = vst [vmem:[#allocation19_spill] sm:$0xff] %v16809_v21  ;;  %11242 = vrcp.f32 %v16809_v21  ;;  %v7895_v35 = vmul.f32 %v7876_v18, %v7810_v27 }
 0x8a2   :  { %v8179_v9 = vmul.f32 %v8148_v20, %v16764_v32 }
 0x8a3   :  { %v16821_v22 = vpop.eup %11238  ;;  %v16824_v56 = vsub.f32 %v16484_v55, %v7895_v35 }
 0x8a4   :  { %v7815_v49 = vpop.permute.xlu1 %7814  ;;  %8320 = vperm.xlu1 %10751, %v8179_v9   ;;  %v7916_v28 = vpop.permute.xlu0 %7915  ;;  %v8152_v51 = vrot.slane %v16821_v22, %v19565_v8 }
 0x8a5   :  { %11244 = vrcp.f32 %v16824_v56  ;;  %v7896_v13 = vmul.f32 %v7880_v3, %v7815_v49  ;;  %v8009_v3 = vrot.slane %v16618_v57, 2 }
 0x8a6   :  { %v8180_v18 = vmul.f32 %v8152_v51, %v16779_v36 }
 0x8a7   :  { %v16832_v20 = vpop.eup %11240  ;;  %v16835_v27 = vsub.f32 %v16495_v26, %v7896_v13  ;;  %v8041_v13 = vmul.f32 %v8009_v3, %v7916_v28 }
 0x8a8   :  { %8325 = vperm.xlu0 %10750, %v8180_v18   ;;  %v7921_v55 = vpop.permute.xlu1 %7920  ;;  %v7926_v35 = vpop.permute.xlu0 %7925  ;;  %v8156_v12 = vrot.slane %v16832_v20, %v19565_v8 }
 0x8a9   :  { %11246 = vrcp.f32 %v16835_v27  ;;  %v8042_v41 = vmul.f32 %v8010_v17, %v7921_v55 }
 0x8aa   :  { %v8181_v9 = vmul.f32 %v8156_v12, %v16794_v10 }
 0x8ab   :  { %v16841_v32 = vpop.eup %11242 }
 0x8ac   :  { %19584 = vst [vmem:[#allocation37_spill] sm:$0xff] %v16841_v32  ;;  %v7931_v51 = vpop.permute.xlu1 %7930  ;;  %8330 = vperm.xlu1 %10751, %v8181_v9   ;;  %v7936_v49 = vpop.permute.xlu0 %7935  ;;  %v8160_v26 = vrot.slane %v16841_v32, %v19565_v8  ;;  %v16854_v9 = vsub.f32 %v16514_v31, %v8041_v13  ;;  %v8043_v32 = vmul.f32 %v8011_v44, %v7926_v35  ;;  %v8221_v35 = vrot.slane %v16671_v52, 3 }
 0x8ad   :  { %v8044_v13 = vmul.f32 %v8012_v11, %v7931_v51  ;;  %v16866_v44 = vsub.f32 %v16529_v30, %v8042_v41  ;;  %v8223_v52 = vrot.slane %v16701_v29, 3 }
 0x8ae   :  { %v8182_v18 = vmul.f32 %v8160_v26, %v16809_v21  ;;  %v8220_v26 = vrot.slane %v16656_v53, 3  ;;  %v16869_v55 = vsub.f32 %v16526_v63, %v8043_v32  ;;  %v8045_v53 = vmul.f32 %v8013_v42, %v7936_v49 }
 0x8af   :  { %v16847_v36 = vpop.eup %11244  ;;  %v16877_v51 = vsub.f32 %v16542_v45, %v8044_v13  ;;  %v8253_v63 = vmul.f32 %v8221_v35, %v16866_v44  ;;  %v8016_v49 = vrot.slane %v16695_v37, 2  ;;  %v8017_v45 = vrot.slane %v16710_v1, 2 }
 0x8b0   :  { %8335 = vperm.xlu0 %10750, %v8182_v18   ;;  %v7941_v12 = vpop.permute.xlu1 %7940  ;;  %v7946_v10 = vpop.permute.xlu0 %7945  ;;  %v8164_v57 = vrot.slane %v16847_v36, %v19565_v8  ;;  %v8252_v31 = vmul.f32 %v8220_v26, %v16854_v9  ;;  %v8018_v37 = vrot.slane %v16725_v25, 2  ;;  %v8226_v1 = vrot.slane %v16746_v39, 3 }
 0x8b1   :  { %v8046_v30 = vmul.f32 %v8014_v50, %v7941_v12  ;;  %v8255_v12 = vmul.f32 %v8223_v52, %v16877_v51  ;;  %v8227_v39 = vrot.slane %v16761_v6, 3  ;;  %v8229_v6 = vrot.slane %v16791_v48, 3 }
 0x8b2   :  { %v8183_v28 = vmul.f32 %v8164_v57, %v16824_v56  ;;  %v8222_v57 = vrot.slane %v16686_v33, 3 }
 0x8b3   :  { %v16857_v3 = vpop.eup %11246  ;;  %v16890_v26 = vsub.f32 %v16554_v58, %v8046_v30  ;;  %v8022_v30 = vrot.slane %v16785_v0, 2  ;;  %v8232_v0 = vrot.slane %v16832_v20, 3 }
 0x8b4   :  { %v7951_v18 = vpop.permute.xlu1 %7950  ;;  %8340 = vperm.xlu1 %10751, %v8183_v28   ;;  %v8168_v21 = vrot.slane %v16857_v3, %v19565_v8  ;;  %v7956_v17 = vpop.permute.xlu0 %7955  ;;  %v8015_v28 = vrot.slane %v16680_v60, 2  ;;  %v8254_v32 = vmul.f32 %v8222_v57, %v16869_v55  ;;  %v8224_v60 = vrot.slane %v16716_v19, 3 }
 0x8b5   :  { %v8048_v29 = vmul.f32 %v8016_v49, %v7951_v18  ;;  %v8049_v11 = vmul.f32 %v8017_v45, %v7956_v17  ;;  %v8225_v19 = vrot.slane %v16731_v14, 3  ;;  %v8020_v17 = vrot.slane %v16755_v38, 2 }
 0x8b6   :  { %v8184_v40 = vmul.f32 %v8168_v21, %v16835_v27  ;;  %v16882_v21 = vsub.f32 %v16537_v43, %v8045_v53  ;;  %v8047_v7 = vmul.f32 %v8015_v28, %v7946_v10 }
 0x8b7   :  { %v8257_v58 = vmul.f32 %v8225_v19, %v16890_v26  ;;  %v16903_v18 = vsub.f32 %v16566_v54, %v8048_v29  ;;  %v16906_v14 = vsub.f32 %v16563_v15, %v8049_v11  ;;  %v19588_v29 = vld [vmem:[#allocation21_spill] sm:$0xff] }
 0x8b8   :  { %8345 = vperm.xlu0 %10750, %v8184_v40   ;;  %8446 = vperm.xlu1 %10751, %v8252_v31   ;;  %v7961_v41 = vpop.permute.xlu1 %7960  ;;  %v7966_v33 = vpop.permute.xlu0 %7965  ;;  %v8256_v43 = vmul.f32 %v8224_v60, %v16882_v21  ;;  %v16894_v10 = vsub.f32 %v16550_v61, %v8047_v7  ;;  %v8019_v31 = vrot.slane %v16740_v24, 2  ;;  %v8228_v24 = vrot.slane %v16776_v2, 3 }
 0x8b9   :  { %v8050_v13 = vmul.f32 %v8018_v37, %v7961_v41  ;;  %v8021_v40 = vrot.slane %v16770_v4, 2  ;;  %v8259_v57 = vmul.f32 %v8227_v39, %v16903_v18  ;;  %v8230_v4 = vrot.slane %v16806_v46, 3 }
 0x8ba   :  { %v8258_v61 = vmul.f32 %v8226_v1, %v16894_v10  ;;  %v8051_v25 = vmul.f32 %v8019_v31, %v7966_v33  ;;  %v8260_v15 = vmul.f32 %v8228_v24, %v16906_v14  ;;  %v8231_v46 = vrot.slane %v16821_v22, 3  ;;  %v19592_v31 = vld [vmem:[#allocation40_spill] sm:$0xff]  ;;  %v19595_v24 = vld [vmem:[#allocation34_spill] sm:$0xff] }
 0x8bb   :  { %v16913_v50 = vsub.f32 %v16578_v47, %v8050_v13  ;;  %v8023_v47 = vrot.slane %v16800_v5, 2  ;;  %v8024_v5 = vrot.slane %v16815_v62, 2  ;;  %v11414_v37 = vmov 12   ;;  %v19593_v13 = vld [vmem:[#allocation42_spill] sm:$0xff] }
 0x8bc   :  { %8451 = vperm.xlu0 %10750, %v8253_v63   ;;  %8456 = vperm.xlu1 %10751, %v8254_v32   ;;  %v7971_v42 = vpop.permute.xlu1 %7970  ;;  %v7976_v53 = vpop.permute.xlu0 %7975  ;;  %v16918_v28 = vsub.f32 %v16573_v23, %v8051_v25 }
 0x8bd   :  { %v8052_v35 = vmul.f32 %v8020_v17, %v7971_v42  ;;  %v8053_v38 = vmul.f32 %v8021_v40, %v7976_v53  ;;  %v8261_v41 = vmul.f32 %v8229_v6, %v16913_v50  ;;  %v19591_v42 = vmov 0.0  }
 0x8be   :  { %v8262_v23 = vmul.f32 %v8230_v4, %v16918_v28 }
 0x8bf   :  { %v16926_v63 = vsub.f32 %v16590_v16, %v8052_v35  ;;  %v16930_v32 = vsub.f32 %v16586_v59, %v8053_v38  ;;  %v19586_v59 = vld [vmem:[#allocation38_spill] sm:$0xff]  ;;  %v19597_v38 = vld [vmem:[#allocation41_spill] sm:$0xff] }
 0x8c0   :  { %8461 = vperm.xlu0 %10750, %v8255_v12   ;;  %8466 = vperm.xlu1 %10751, %v8256_v43   ;;  %v7981_v54 = vpop.permute.xlu1 %7980  ;;  %v7986_v2 = vpop.permute.xlu0 %7985  ;;  %v19587_v12 = vld [vmem:[#allocation37_spill] sm:$0xff]  ;;  %v8234_v43 = vrot.slane %v16847_v36, 3 }
 0x8c1   :  { %v8054_v48 = vmul.f32 %v8022_v30, %v7981_v54  ;;  %v8055_v7 = vmul.f32 %v8023_v47, %v7986_v2  ;;  %v8263_v33 = vmul.f32 %v8231_v46, %v16926_v63  ;;  %v8264_v16 = vmul.f32 %v8232_v0, %v16930_v32  ;;  %v19590_v36 = vld [vmem:[#allocation9_spill] sm:$0xff] }
 0x8c2   :  { %v8233_v22 = vrot.slane %v19587_v12, 3  ;;  %vm8185_vm6 = vcmp.eq.s32.totalorder %v19590_v36, 11 }
 0x8c3   :  { %v16938_v60 = vsub.f32 %v16601_v34, %v8054_v48  ;;  %v16941_v49 = vsub.f32 %v19586_v59, %v8055_v7  ;;  %v8235_v34 = vrot.slane %v16857_v3, 3  ;;  %v16954_v1 = vsel %vm8185_vm6, 1.0, %v19591_v42  ;;  %v19602_v59 = vld [vmem:[#allocation10_spill] sm:$0xff] }
 0x8c4   :  { %8471 = vperm.xlu0 %10750, %v8257_v58   ;;  %8476 = vperm.xlu1 %10751, %v8258_v61   ;;  %v7991_v52 = vpop.permute.xlu1 %7990  ;;  %v16958_v58 = vsub.f32 %v19592_v31, %v16954_v1  ;;  %v16964_v53 = vsub.f32 %v19593_v13, %v16954_v1  ;;  %v16973_v40 = vsub.f32 %v19595_v24, %v16954_v1 }
 0x8c5   :  { %19585 = vst [vmem:[#allocation28_spill] sm:$0xff] %v16938_v60  ;;  %v8056_v45 = vmul.f32 %v8024_v5, %v7991_v52  ;;  %v8265_v62 = vmul.f32 %v8233_v22, %v16938_v60  ;;  %v8266_v20 = vmul.f32 %v8234_v43, %v16941_v49  ;;  %v16983_v6 = vsub.f32 %v19597_v38, %v16954_v1  ;;  %v19601_v5 = vld [vmem:[#allocation13_spill] sm:$0xff] }
 0x8c6   :  { %v8351_v3 = vrot.slane %v16958_v58, %v19565_v8  ;;  %v8355_v39 = vrot.slane %v16964_v53, %v19565_v8  ;;  %v8542_v36 = vrot.slane %v16973_v40, 3 }
 0x8c7   :  { %v16948_v11 = vsub.f32 %v19588_v29, %v8056_v45  ;;  %v8363_v47 = vrot.slane %v16983_v6, %v19565_v8  ;;  %v19604_v29 = vld [vmem:[#allocation23_spill] sm:$0xff] }
 0x8c8   :  { %8481 = vperm.xlu0 %10750, %v8259_v57   ;;  %8486 = vperm.xlu1 %10751, %v8260_v15   ;;  %v8359_v15 = vrot.slane %v16973_v40, %v19565_v8 }
 0x8c9   :  { %19589 = vst [vmem:[#allocation11_spill] sm:$0xff] %v16948_v11  ;;  %v8267_v19 = vmul.f32 %v8235_v34, %v16948_v11  ;;  %v17020_v34 = vsub.f32 %v19604_v29, %v16954_v1  ;;  %v8541_v11 = vrot.slane %v16964_v53, 3  ;;  %v8543_v53 = vrot.slane %v16983_v6, 3 }
 0x8cb   :  { %v8546_v6 = vrot.slane %v17020_v34, 3 }
 0x8cc   :  { %8491 = vperm.xlu0 %10750, %v8261_v41   ;;  %8496 = vperm.xlu1 %10751, %v8262_v23   ;;  %v19599_v41 = vld [vmem:[#allocation45_spill] sm:$0xff] }
 0x8cd   :  { %v16993_v23 = vsub.f32 %v19599_v41, %v16954_v1 }
 0x8cf   :  { %v8367_v0 = vrot.slane %v16993_v23, %v19565_v8  ;;  %v8544_v40 = vrot.slane %v16993_v23, 3 }
 0x8d0   :  { %8501 = vperm.xlu0 %10750, %v8263_v33   ;;  %8506 = vperm.xlu1 %10751, %v8264_v16   ;;  %v17005_v33 = vsub.f32 %v19601_v5, %v16954_v1 }
 0x8d4   :  { %8511 = vperm.xlu0 %10750, %v8265_v62   ;;  %8516 = vperm.xlu1 %10751, %v8266_v20   ;;  %v8371_v20 = vrot.slane %v17005_v33, %v19565_v8 }
 0x8d8   :  { %8521 = vperm.xlu0 %10750, %v8267_v19   ;;  %10752 = vset.pattern.permute.xlu1 %v11414_v37 }
 0x8dc   :  { %10753 = vset.pattern.permute.xlu0 %v11414_v37 }
 0x8fb   :  { %v8271_v61 = vpop.permute.xlu0 %8270 }
 0x8fc   :  { %v8412_v25 = vmul.f32 %v8351_v3, %v8271_v61 }
 0x8fe   :  { %v16967_v17 = vsub.f32 %v19592_v31, %v8412_v25  ;;  %v8375_v25 = vrot.slane %v17020_v34, %v19565_v8 }
 0x8ff   :  { %v8276_v35 = vpop.permute.xlu1 %8275 }
 0x900   :  { %19594 = vst [vmem:[#allocation56_spill] sm:$0xff] %v16967_v17  ;;  %11248 = vrcp.f32 %v16967_v17  ;;  %v8413_v54 = vmul.f32 %v8355_v39, %v8276_v35  ;;  %v19606_v39 = vld [vmem:[#allocation25_spill] sm:$0xff] }
 0x902   :  { %v16977_v57 = vsub.f32 %v19593_v13, %v8413_v54 }
 0x903   :  { %v8281_v2 = vpop.permute.xlu1 %8280 }
 0x904   :  { %19596 = vst [vmem:[#allocation27_spill] sm:$0xff] %v16977_v57  ;;  %11250 = vrcp.f32 %v16977_v57  ;;  %v8414_v4 = vmul.f32 %v8359_v15, %v8281_v2 }
 0x906   :  { %v16987_v30 = vsub.f32 %v19595_v24, %v8414_v4  ;;  %v17035_v24 = vsub.f32 %v19606_v39, %v16954_v1 }
 0x907   :  { %v8286_v48 = vpop.permute.xlu0 %8285 }
 0x908   :  { %19598 = vst [vmem:[#allocation30_spill] sm:$0xff] %v16987_v30  ;;  %11252 = vrcp.f32 %v16987_v30  ;;  %v8415_v7 = vmul.f32 %v8363_v47, %v8286_v48  ;;  %v8379_v47 = vrot.slane %v17035_v24, %v19565_v8 }
 0x90a   :  { %v16996_v46 = vpop.eup %11248  ;;  %v16999_v52 = vsub.f32 %v19597_v38, %v8415_v7 }
 0x90b   :  { %v8291_v16 = vpop.permute.xlu1 %8290  ;;  %v8639_v45 = vrot.slane %v16996_v46, %v19602_v59 }
 0x90c   :  { %19600 = vst [vmem:[#allocation8_spill] sm:$0xff] %v16999_v52  ;;  %11254 = vrcp.f32 %v16999_v52  ;;  %v8416_v12 = vmul.f32 %v8367_v0, %v8291_v16 }
 0x90d   :  { %v8700_v22 = vmul.f32 %v8639_v45, %v16967_v17 }
 0x90e   :  { %v17011_v43 = vpop.eup %11250  ;;  %v17014_v62 = vsub.f32 %v19599_v41, %v8416_v12  ;;  %v19608_v41 = vld [vmem:[#allocation48_spill] sm:$0xff] }
 0x90f   :  { %8801 = vperm.xlu1 %10752, %v8700_v22   ;;  %v8296_v19 = vpop.permute.xlu0 %8295  ;;  %v8643_v37 = vrot.slane %v17011_v43, %v19602_v59  ;;  %v17050_v48 = vsub.f32 %v19608_v41, %v16954_v1 }
 0x910   :  { %19603 = vst [vmem:[#allocation12_spill] sm:$0xff] %v17014_v62  ;;  %11256 = vrcp.f32 %v17014_v62  ;;  %v8417_v31 = vmul.f32 %v8371_v20, %v8296_v19  ;;  %v19610_v20 = vld [vmem:[#allocation51_spill] sm:$0xff] }
 0x911   :  { %v8701_v3 = vmul.f32 %v8643_v37, %v16977_v57  ;;  %v8383_v22 = vrot.slane %v17050_v48, %v19565_v8 }
 0x912   :  { %v17026_v13 = vpop.eup %11252  ;;  %v17029_v61 = vsub.f32 %v19601_v5, %v8417_v31 }
 0x913   :  { %8806 = vperm.xlu0 %10753, %v8701_v3   ;;  %v8301_v35 = vpop.permute.xlu1 %8300  ;;  %v8647_v54 = vrot.slane %v17026_v13, %v19602_v59 }
 0x914   :  { %19605 = vst [vmem:[#allocation29_spill] sm:$0xff] %v17029_v61  ;;  %11258 = vrcp.f32 %v17029_v61  ;;  %v8418_v15 = vmul.f32 %v8375_v25, %v8301_v35 }
 0x915   :  { %v8702_v38 = vmul.f32 %v8647_v54, %v16987_v30  ;;  %v19612_v54 = vld [vmem:[#allocation24_spill] sm:$0xff] }
 0x916   :  { %v17041_v2 = vpop.eup %11254  ;;  %v17044_v4 = vsub.f32 %v19604_v29, %v8418_v15  ;;  %v17065_v29 = vsub.f32 %v19610_v20, %v16954_v1  ;;  %v17080_v15 = vsub.f32 %v19612_v54, %v16954_v1 }
 0x917   :  { %8811 = vperm.xlu1 %10752, %v8702_v38   ;;  %v8306_v7 = vpop.permute.xlu0 %8305  ;;  %v8651_v0 = vrot.slane %v17041_v2, %v19602_v59 }
 0x918   :  { %19607 = vst [vmem:[#allocation16_spill] sm:$0xff] %v17044_v4  ;;  %11260 = vrcp.f32 %v17044_v4  ;;  %v8419_v5 = vmul.f32 %v8379_v47, %v8306_v7  ;;  %v8387_v35 = vrot.slane %v17065_v29, %v19565_v8 }
 0x919   :  { %v8703_v16 = vmul.f32 %v8651_v0, %v16999_v52 }
 0x91a   :  { %v17056_v45 = vpop.eup %11256  ;;  %v17059_v12 = vsub.f32 %v19606_v39, %v8419_v5 }
 0x91b   :  { %v8311_v19 = vpop.permute.xlu1 %8310  ;;  %8816 = vperm.xlu1 %10752, %v8703_v16   ;;  %v8655_v37 = vrot.slane %v17056_v45, %v19602_v59  ;;  %v8391_v16 = vrot.slane %v17080_v15, %v19565_v8 }
 0x91c   :  { %19609 = vst [vmem:[#allocation20_spill] sm:$0xff] %v17059_v12  ;;  %11262 = vrcp.f32 %v17059_v12  ;;  %v8420_v31 = vmul.f32 %v8383_v22, %v8311_v19  ;;  %v19614_v22 = vld [vmem:[#allocation50_spill] sm:$0xff] }
 0x91d   :  { %v8704_v3 = vmul.f32 %v8655_v37, %v17014_v62  ;;  %v17095_v19 = vsub.f32 %v19614_v22, %v16954_v1 }
 0x91e   :  { %v17071_v25 = vpop.eup %11258  ;;  %v17074_v39 = vsub.f32 %v19608_v41, %v8420_v31 }
 0x91f   :  { %8821 = vperm.xlu0 %10753, %v8704_v3   ;;  %v8316_v38 = vpop.permute.xlu0 %8315  ;;  %v8659_v47 = vrot.slane %v17071_v25, %v19602_v59 }
 0x920   :  { %19611 = vst [vmem:[#allocation18_spill] sm:$0xff] %v17074_v39  ;;  %11264 = vrcp.f32 %v17074_v39  ;;  %v8421_v7 = vmul.f32 %v8387_v35, %v8316_v38 }
 0x921   :  { %v8705_v0 = vmul.f32 %v8659_v47, %v17029_v61  ;;  %v8395_v47 = vrot.slane %v17095_v19, %v19565_v8 }
 0x922   :  { %v17086_v5 = vpop.eup %11260  ;;  %v17089_v41 = vsub.f32 %v19610_v20, %v8421_v7  ;;  %v19616_v7 = vld [vmem:[#allocation26_spill] sm:$0xff] }
 0x923   :  { %v8321_v37 = vpop.permute.xlu1 %8320  ;;  %8826 = vperm.xlu1 %10752, %v8705_v0   ;;  %v8663_v31 = vrot.slane %v17086_v5, %v19602_v59  ;;  %v17110_v61 = vsub.f32 %v19616_v7, %v16954_v1 }
 0x924   :  { %19613 = vst [vmem:[#allocation14_spill] sm:$0xff] %v17089_v41  ;;  %11266 = vrcp.f32 %v17089_v41  ;;  %v8422_v3 = vmul.f32 %v8391_v16, %v8321_v37 }
 0x925   :  { %v8706_v35 = vmul.f32 %v8663_v31, %v17044_v4  ;;  %v19618_v4 = vld [vmem:[#allocation19_spill] sm:$0xff] }
 0x926   :  { %v17101_v38 = vpop.eup %11262  ;;  %v17104_v20 = vsub.f32 %v19612_v54, %v8422_v3  ;;  %v8399_v3 = vrot.slane %v17110_v61, %v19565_v8 }
 0x927   :  { %8831 = vperm.xlu0 %10753, %v8706_v35   ;;  %v8326_v0 = vpop.permute.xlu0 %8325  ;;  %v8667_v62 = vrot.slane %v17101_v38, %v19602_v59  ;;  %v17125_v35 = vsub.f32 %v19618_v4, %v16954_v1 }
 0x928   :  { %19615 = vst [vmem:[#allocation7_spill] sm:$0xff] %v17104_v20  ;;  %11268 = vrcp.f32 %v17104_v20  ;;  %v8423_v16 = vmul.f32 %v8395_v47, %v8326_v0 }
 0x929   :  { %v8707_v37 = vmul.f32 %v8667_v62, %v17059_v12  ;;  %v17140_v12 = vsub.f32 %v16824_v56, %v16954_v1 }
 0x92a   :  { %v17116_v31 = vpop.eup %11264  ;;  %v17119_v54 = vsub.f32 %v19614_v22, %v8423_v16  ;;  %v8403_v16 = vrot.slane %v17125_v35, %v19565_v8 }
 0x92b   :  { %v8331_v52 = vpop.permute.xlu1 %8330  ;;  %8836 = vperm.xlu1 %10752, %v8707_v37   ;;  %v8671_v30 = vrot.slane %v17116_v31, %v19602_v59 }
 0x92c   :  { %19617 = vst [vmem:[#allocation53_spill] sm:$0xff] %v17119_v54  ;;  %11270 = vrcp.f32 %v17119_v54  ;;  %v8424_v62 = vmul.f32 %v8399_v3, %v8331_v52 }
 0x92d   :  { %v8708_v47 = vmul.f32 %v8671_v30, %v17074_v39 }
 0x92e   :  { %v17131_v0 = vpop.eup %11266  ;;  %v17134_v22 = vsub.f32 %v19616_v7, %v8424_v62  ;;  %v8407_v62 = vrot.slane %v17140_v12, %v19565_v8 }
 0x92f   :  { %8841 = vperm.xlu0 %10753, %v8708_v47   ;;  %v8336_v37 = vpop.permute.xlu0 %8335  ;;  %v8675_v57 = vrot.slane %v17131_v0, %v19602_v59  ;;  %v17155_v47 = vsub.f32 %v16835_v27, %v16954_v1 }
 0x930   :  { %19619 = vst [vmem:[#allocation39_spill] sm:$0xff] %v17134_v22  ;;  %11272 = vrcp.f32 %v17134_v22  ;;  %v8425_v30 = vmul.f32 %v8403_v16, %v8336_v37 }
 0x931   :  { %v8709_v52 = vmul.f32 %v8675_v57, %v17089_v41 }
 0x932   :  { %v17146_v3 = vpop.eup %11268  ;;  %v17149_v7 = vsub.f32 %v19618_v4, %v8425_v30  ;;  %v8411_v30 = vrot.slane %v17155_v47, %v19565_v8 }
 0x933   :  { %v8341_v39 = vpop.permute.xlu1 %8340  ;;  %8846 = vperm.xlu1 %10752, %v8709_v52   ;;  %v8679_v17 = vrot.slane %v17146_v3, %v19602_v59 }
 0x934   :  { %19620 = vst [vmem:[#allocation32_spill] sm:$0xff] %v17149_v7  ;;  %11274 = vrcp.f32 %v17149_v7  ;;  %v8426_v57 = vmul.f32 %v8407_v62, %v8341_v39 }
 0x935   :  { %v8710_v16 = vmul.f32 %v8679_v17, %v17104_v20 }
 0x936   :  { %v17161_v37 = vpop.eup %11270  ;;  %v17164_v4 = vsub.f32 %v16824_v56, %v8426_v57 }
 0x937   :  { %8851 = vperm.xlu0 %10753, %v8710_v16   ;;  %v8447_v1 = vpop.permute.xlu1 %8446  ;;  %v8346_v41 = vpop.permute.xlu0 %8345  ;;  %v8683_v52 = vrot.slane %v17161_v37, %v19602_v59 }
 0x938   :  { %11276 = vrcp.f32 %v17164_v4  ;;  %v8427_v42 = vmul.f32 %v8411_v30, %v8346_v41  ;;  %v8540_v41 = vrot.slane %v16958_v58, 3 }
 0x939   :  { %v8711_v39 = vmul.f32 %v8683_v52, %v17119_v54 }
 0x93a   :  { %v17172_v17 = vpop.eup %11272  ;;  %v17175_v62 = vsub.f32 %v16835_v27, %v8427_v42  ;;  %v8572_v42 = vmul.f32 %v8540_v41, %v8447_v1 }
 0x93b   :  { %v8457_v56 = vpop.permute.xlu1 %8456  ;;  %8856 = vperm.xlu1 %10752, %v8711_v39   ;;  %v8452_v57 = vpop.permute.xlu0 %8451  ;;  %v8687_v8 = vrot.slane %v17172_v17, %v19602_v59 }
 0x93c   :  { %11278 = vrcp.f32 %v17175_v62  ;;  %v8574_v60 = vmul.f32 %v8542_v36, %v8457_v56 }
 0x93d   :  { %v8712_v16 = vmul.f32 %v8687_v8, %v17134_v22 }
 0x93e   :  { %v17181_v20 = vpop.eup %11274 }
 0x93f   :  { %19621 = vst [vmem:[#allocation44_spill] sm:$0xff] %v17181_v20  ;;  %8861 = vperm.xlu0 %10753, %v8712_v16   ;;  %v8467_v30 = vpop.permute.xlu1 %8466  ;;  %v8462_v52 = vpop.permute.xlu0 %8461  ;;  %v8691_v27 = vrot.slane %v17181_v20, %v19602_v59  ;;  %v17194_v16 = vsub.f32 %v16854_v9, %v8572_v42  ;;  %v8573_v20 = vmul.f32 %v8541_v11, %v8452_v57  ;;  %v8753_v57 = vrot.slane %v17026_v13, 4 }
 0x940   :  { %v8576_v42 = vmul.f32 %v8544_v40, %v8467_v30  ;;  %v17206_v11 = vsub.f32 %v16869_v55, %v8574_v60  ;;  %v8755_v13 = vrot.slane %v17056_v45, 4 }
 0x941   :  { %v8713_v39 = vmul.f32 %v8691_v27, %v17149_v7  ;;  %v8751_v27 = vrot.slane %v16996_v46, 4  ;;  %v17209_v56 = vsub.f32 %v16866_v44, %v8573_v20  ;;  %v8575_v46 = vmul.f32 %v8543_v53, %v8462_v52 }
 0x942   :  { %v17187_v54 = vpop.eup %11276  ;;  %v17217_v30 = vsub.f32 %v16882_v21, %v8576_v42  ;;  %v8785_v44 = vmul.f32 %v8753_v57, %v17206_v11  ;;  %v8548_v52 = vrot.slane %v17050_v48, 3  ;;  %v8547_v21 = vrot.slane %v17035_v24, 3 }
 0x943   :  { %v8477_v8 = vpop.permute.xlu1 %8476  ;;  %8866 = vperm.xlu1 %10752, %v8713_v39   ;;  %v8472_v22 = vpop.permute.xlu0 %8471  ;;  %v8695_v58 = vrot.slane %v17187_v54, %v19602_v59  ;;  %v8783_v9 = vmul.f32 %v8751_v27, %v17194_v16  ;;  %v8550_v48 = vrot.slane %v17080_v15, 3  ;;  %v8756_v24 = vrot.slane %v17071_v25, 4 }
 0x944   :  { %v8578_v55 = vmul.f32 %v8546_v6, %v8477_v8  ;;  %v8787_v8 = vmul.f32 %v8755_v13, %v17217_v30  ;;  %v8759_v25 = vrot.slane %v17116_v31, 4  ;;  %v8761_v31 = vrot.slane %v17146_v3, 4 }
 0x945   :  { %v8714_v1 = vmul.f32 %v8695_v58, %v17164_v4  ;;  %v8752_v58 = vrot.slane %v17011_v43, 4 }
 0x946   :  { %v17197_v41 = vpop.eup %11278  ;;  %v17230_v27 = vsub.f32 %v16894_v10, %v8578_v55  ;;  %v8554_v55 = vrot.slane %v17140_v12, 3  ;;  %v8762_v12 = vrot.slane %v17161_v37, 4 }
 0x947   :  { %8871 = vperm.xlu0 %10753, %v8714_v1   ;;  %v8482_v39 = vpop.permute.xlu0 %8481  ;;  %v8699_v7 = vrot.slane %v17197_v41, %v19602_v59  ;;  %v8487_v36 = vpop.permute.xlu1 %8486  ;;  %v8545_v1 = vrot.slane %v17005_v33, 3  ;;  %v8784_v20 = vmul.f32 %v8752_v58, %v17209_v56  ;;  %v8754_v33 = vrot.slane %v17041_v2, 4 }
 0x948   :  { %v8580_v45 = vmul.f32 %v8548_v52, %v8487_v36  ;;  %v8579_v40 = vmul.f32 %v8547_v21, %v8482_v39  ;;  %v8757_v2 = vrot.slane %v17086_v5, 4  ;;  %v8552_v39 = vrot.slane %v17110_v61, 3 }
 0x949   :  { %v8715_v23 = vmul.f32 %v8699_v7, %v17175_v62  ;;  %v17222_v7 = vsub.f32 %v16877_v51, %v8575_v46  ;;  %v8577_v34 = vmul.f32 %v8545_v1, %v8472_v22 }
 0x94a   :  { %v8789_v10 = vmul.f32 %v8757_v2, %v17230_v27  ;;  %v17243_v36 = vsub.f32 %v16906_v14, %v8580_v45  ;;  %v17246_v5 = vsub.f32 %v16903_v18, %v8579_v40  ;;  %v19625_v45 = vld [vmem:[#allocation11_spill] sm:$0xff] }
 0x94b   :  { %8977 = vperm.xlu0 %10753, %v8783_v9   ;;  %8876 = vperm.xlu1 %10752, %v8715_v23   ;;  %v8492_v60 = vpop.permute.xlu0 %8491  ;;  %v8497_v43 = vpop.permute.xlu1 %8496  ;;  %v8786_v51 = vmul.f32 %v8754_v33, %v17222_v7  ;;  %v17234_v22 = vsub.f32 %v16890_v26, %v8577_v34  ;;  %v8549_v9 = vrot.slane %v17065_v29, 3  ;;  %v8758_v29 = vrot.slane %v17101_v38, 4 }
 0x94c   :  { %v8582_v42 = vmul.f32 %v8550_v48, %v8497_v43  ;;  %v8551_v23 = vrot.slane %v17095_v19, 3  ;;  %v8791_v58 = vmul.f32 %v8759_v25, %v17243_v36  ;;  %v8760_v19 = vrot.slane %v17131_v0, 4 }
 0x94d   :  { %v8788_v26 = vmul.f32 %v8756_v24, %v17234_v22  ;;  %v8581_v15 = vmul.f32 %v8549_v9, %v8492_v60  ;;  %v8790_v18 = vmul.f32 %v8758_v29, %v17246_v5  ;;  %v8763_v0 = vrot.slane %v17172_v17, 4  ;;  %v19629_v9 = vld [vmem:[#allocation56_spill] sm:$0xff]  ;;  %v19632_v29 = vld [vmem:[#allocation30_spill] sm:$0xff] }
 0x94e   :  { %v17253_v6 = vsub.f32 %v16918_v28, %v8582_v42  ;;  %v8553_v28 = vrot.slane %v17125_v35, 3  ;;  %v8555_v35 = vrot.slane %v17155_v47, 3  ;;  %v8765_v17 = vrot.slane %v17187_v54, 4  ;;  %v19627_v54 = vld [vmem:[#allocation9_spill] sm:$0xff]  ;;  %v19630_v42 = vld [vmem:[#allocation27_spill] sm:$0xff] }
 0x94f   :  { %8987 = vperm.xlu0 %10753, %v8785_v44   ;;  %8982 = vperm.xlu1 %10752, %v8784_v20   ;;  %v8502_v53 = vpop.permute.xlu0 %8501  ;;  %v8507_v46 = vpop.permute.xlu1 %8506  ;;  %v17258_v1 = vsub.f32 %v16913_v50, %v8581_v15  ;;  %v11415_v48 = vmov 13   ;;  %vm8716_vm7 = vcmp.eq.s32.totalorder %v19627_v54, 12 }
 0x950   :  { %v8584_v57 = vmul.f32 %v8552_v39, %v8507_v46  ;;  %v8583_v61 = vmul.f32 %v8551_v23, %v8502_v53  ;;  %v8793_v60 = vmul.f32 %v8761_v31, %v17253_v6  ;;  %v19628_v53 = vmov 0.0  }
 0x951   :  { %v8792_v50 = vmul.f32 %v8760_v19, %v17258_v1  ;;  %v17294_v24 = vsel %vm8716_vm7, 1.0, %v19628_v53 }
 0x952   :  { %v17266_v44 = vsub.f32 %v16930_v32, %v8584_v57  ;;  %v17270_v20 = vsub.f32 %v16926_v63, %v8583_v61  ;;  %v19623_v63 = vld [vmem:[#allocation28_spill] sm:$0xff]  ;;  %v17304_v46 = vsub.f32 %v19630_v42, %v17294_v24  ;;  %v17313_v23 = vsub.f32 %v19632_v29, %v17294_v24 }
 0x953   :  { %8997 = vperm.xlu0 %10753, %v8787_v8   ;;  %8992 = vperm.xlu1 %10752, %v8786_v51   ;;  %v8512_v14 = vpop.permute.xlu0 %8511  ;;  %v8517_v38 = vpop.permute.xlu1 %8516  ;;  %v19624_v8 = vld [vmem:[#allocation44_spill] sm:$0xff] }
 0x954   :  { %v8586_v3 = vmul.f32 %v8554_v55, %v8517_v38  ;;  %v8585_v34 = vmul.f32 %v8553_v28, %v8512_v14  ;;  %v8795_v43 = vmul.f32 %v8763_v0, %v17266_v44  ;;  %v8794_v32 = vmul.f32 %v8762_v12, %v17270_v20  ;;  %v19634_v61 = vld [vmem:[#allocation8_spill] sm:$0xff] }
 0x955   :  { %v8764_v51 = vrot.slane %v19624_v8, 4  ;;  %v8886_v25 = vrot.slane %v17304_v46, %v19602_v59  ;;  %v17323_v31 = vsub.f32 %v19634_v61, %v17294_v24  ;;  %v9072_v54 = vrot.slane %v17304_v46, 4 }
 0x956   :  { %v17278_v33 = vsub.f32 %v16941_v49, %v8586_v3  ;;  %v17281_v52 = vsub.f32 %v19623_v63, %v8585_v34  ;;  %v8766_v49 = vrot.slane %v17197_v41, 4  ;;  %v19639_v63 = vld [vmem:[#allocation17_spill] sm:$0xff] }
 0x957   :  { %9007 = vperm.xlu0 %10753, %v8789_v10   ;;  %9002 = vperm.xlu1 %10752, %v8788_v26   ;;  %v8522_v13 = vpop.permute.xlu0 %8521  ;;  %v17298_v10 = vsub.f32 %v19629_v9, %v17294_v24  ;;  %v8894_v28 = vrot.slane %v17323_v31, %v19602_v59  ;;  %v9074_v46 = vrot.slane %v17323_v31, 4 }
 0x958   :  { %19622 = vst [vmem:[#allocation22_spill] sm:$0xff] %v17278_v33  ;;  %v8587_v21 = vmul.f32 %v8555_v35, %v8522_v13  ;;  %v8797_v47 = vmul.f32 %v8765_v17, %v17278_v33  ;;  %v8796_v37 = vmul.f32 %v8764_v51, %v17281_v52  ;;  %v19638_v35 = vld [vmem:[#allocation29_spill] sm:$0xff] }
 0x959   :  { %v8882_v41 = vrot.slane %v17298_v10, %v19602_v59 }
 0x95a   :  { %v17288_v40 = vsub.f32 %v19625_v45, %v8587_v21  ;;  %v19641_v45 = vld [vmem:[#allocation16_spill] sm:$0xff] }
 0x95b   :  { %9017 = vperm.xlu0 %10753, %v8791_v58   ;;  %9012 = vperm.xlu1 %10752, %v8790_v18   ;;  %v8890_v18 = vrot.slane %v17313_v23, %v19602_v59 }
 0x95c   :  { %19626 = vst [vmem:[#allocation36_spill] sm:$0xff] %v17288_v40  ;;  %v8798_v2 = vmul.f32 %v8766_v49, %v17288_v40  ;;  %v17360_v49 = vsub.f32 %v19641_v45, %v17294_v24  ;;  %v9073_v40 = vrot.slane %v17313_v23, 4 }
 0x95f   :  { %9027 = vperm.xlu0 %10753, %v8793_v60   ;;  %9022 = vperm.xlu1 %10752, %v8792_v50   ;;  %v19636_v60 = vld [vmem:[#allocation12_spill] sm:$0xff] }
 0x960   :  { %v17333_v50 = vsub.f32 %v19636_v60, %v17294_v24 }
 0x962   :  { %v8898_v12 = vrot.slane %v17333_v50, %v19602_v59  ;;  %v9075_v23 = vrot.slane %v17333_v50, 4 }
 0x963   :  { %9037 = vperm.xlu0 %10753, %v8795_v43   ;;  %9032 = vperm.xlu1 %10752, %v8794_v32   ;;  %v17345_v43 = vsub.f32 %v19638_v35, %v17294_v24 }
 0x965   :  { %v9076_v50 = vrot.slane %v17345_v43, 4 }
 0x967   :  { %9047 = vperm.xlu0 %10753, %v8797_v47   ;;  %9042 = vperm.xlu1 %10752, %v8796_v37   ;;  %v8902_v37 = vrot.slane %v17345_v43, %v19602_v59 }
 0x96b   :  { %9052 = vperm.xlu1 %10752, %v8798_v2   ;;  %10754 = vset.pattern.permute.xlu0 %v11415_v48 }
 0x96f   :  { %10755 = vset.pattern.permute.xlu1 %v11415_v48 }
 0x98e   :  { %v8802_v26 = vpop.permute.xlu1 %8801 }
 0x98f   :  { %v8943_v15 = vmul.f32 %v8882_v41, %v8802_v26 }
 0x991   :  { %v17307_v39 = vsub.f32 %v19629_v9, %v8943_v15  ;;  %v8906_v15 = vrot.slane %v17360_v49, %v19602_v59 }
 0x992   :  { %v8807_v57 = vpop.permute.xlu0 %8806 }
 0x993   :  { %19631 = vst [vmem:[#allocation35_spill] sm:$0xff] %v17307_v39  ;;  %11280 = vrcp.f32 %v17307_v39  ;;  %v8944_v14 = vmul.f32 %v8886_v25, %v8807_v57  ;;  %v19643_v25 = vld [vmem:[#allocation20_spill] sm:$0xff] }
 0x995   :  { %v17317_v58 = vsub.f32 %v19630_v42, %v8944_v14 }
 0x996   :  { %v8812_v38 = vpop.permute.xlu1 %8811 }
 0x997   :  { %19633 = vst [vmem:[#allocation43_spill] sm:$0xff] %v17317_v58  ;;  %11282 = vrcp.f32 %v17317_v58  ;;  %v8945_v19 = vmul.f32 %v8890_v18, %v8812_v38 }
 0x999   :  { %v17327_v55 = vsub.f32 %v19632_v29, %v8945_v19  ;;  %v17375_v29 = vsub.f32 %v19643_v25, %v17294_v24 }
 0x99a   :  { %v8817_v3 = vpop.permute.xlu1 %8816 }
 0x99b   :  { %19635 = vst [vmem:[#allocation33_spill] sm:$0xff] %v17327_v55  ;;  %11284 = vrcp.f32 %v17327_v55  ;;  %v8946_v34 = vmul.f32 %v8894_v28, %v8817_v3  ;;  %v8910_v28 = vrot.slane %v17375_v29, %v19602_v59 }
 0x99d   :  { %v17336_v0 = vpop.eup %11280  ;;  %v17339_v13 = vsub.f32 %v19634_v61, %v8946_v34 }
 0x99e   :  { %v8822_v32 = vpop.permute.xlu0 %8821  ;;  %v9170_v21 = vrot.slane %v17336_v0, %v19639_v63 }
 0x99f   :  { %19637 = vst [vmem:[#allocation47_spill] sm:$0xff] %v17339_v13  ;;  %11286 = vrcp.f32 %v17339_v13  ;;  %v8947_v17 = vmul.f32 %v8898_v12, %v8822_v32 }
 0x9a0   :  { %v9231_v8 = vmul.f32 %v9170_v21, %v17307_v39 }
 0x9a1   :  { %v17351_v51 = vpop.eup %11282  ;;  %v17354_v47 = vsub.f32 %v19636_v60, %v8947_v17  ;;  %v19645_v60 = vld [vmem:[#allocation18_spill] sm:$0xff] }
 0x9a2   :  { %9332 = vperm.xlu0 %10754, %v9231_v8   ;;  %v8827_v2 = vpop.permute.xlu1 %8826  ;;  %v9174_v48 = vrot.slane %v17351_v51, %v19639_v63  ;;  %v17390_v3 = vsub.f32 %v19645_v60, %v17294_v24 }
 0x9a3   :  { %19640 = vst [vmem:[#allocation46_spill] sm:$0xff] %v17354_v47  ;;  %11288 = vrcp.f32 %v17354_v47  ;;  %v8948_v9 = vmul.f32 %v8902_v37, %v8827_v2  ;;  %v19647_v37 = vld [vmem:[#allocation14_spill] sm:$0xff] }
 0x9a4   :  { %v9232_v41 = vmul.f32 %v9174_v48, %v17317_v58  ;;  %v8914_v8 = vrot.slane %v17390_v3, %v19602_v59 }
 0x9a5   :  { %v17366_v42 = vpop.eup %11284  ;;  %v17369_v26 = vsub.f32 %v19638_v35, %v8948_v9 }
 0x9a6   :  { %9337 = vperm.xlu1 %10755, %v9232_v41   ;;  %v8832_v57 = vpop.permute.xlu0 %8831  ;;  %v9178_v14 = vrot.slane %v17366_v42, %v19639_v63 }
 0x9a7   :  { %19642 = vst [vmem:[#allocation49_spill] sm:$0xff] %v17369_v26  ;;  %11290 = vrcp.f32 %v17369_v26  ;;  %v8949_v18 = vmul.f32 %v8906_v15, %v8832_v57 }
 0x9a8   :  { %v9233_v61 = vmul.f32 %v9178_v14, %v17327_v55  ;;  %v19649_v14 = vld [vmem:[#allocation7_spill] sm:$0xff] }
 0x9a9   :  { %v17381_v38 = vpop.eup %11286  ;;  %v17384_v19 = vsub.f32 %v19641_v45, %v8949_v18  ;;  %v17405_v45 = vsub.f32 %v19647_v37, %v17294_v24  ;;  %v17420_v18 = vsub.f32 %v19649_v14, %v17294_v24 }
 0x9aa   :  { %v8837_v34 = vpop.permute.xlu1 %8836  ;;  %9342 = vperm.xlu1 %10755, %v9233_v61   ;;  %v9182_v12 = vrot.slane %v17381_v38, %v19639_v63 }
 0x9ab   :  { %19644 = vst [vmem:[#allocation57_spill] sm:$0xff] %v17384_v19  ;;  %11292 = vrcp.f32 %v17384_v19  ;;  %v8950_v35 = vmul.f32 %v8910_v28, %v8837_v34  ;;  %v8918_v57 = vrot.slane %v17405_v45, %v19602_v59 }
 0x9ac   :  { %v9234_v32 = vmul.f32 %v9182_v12, %v17339_v13 }
 0x9ad   :  { %v17396_v21 = vpop.eup %11288  ;;  %v17399_v17 = vsub.f32 %v19643_v25, %v8950_v35 }
 0x9ae   :  { %9347 = vperm.xlu0 %10754, %v9234_v32   ;;  %v8842_v2 = vpop.permute.xlu0 %8841  ;;  %v9186_v48 = vrot.slane %v17396_v21, %v19639_v63  ;;  %v8922_v32 = vrot.slane %v17420_v18, %v19602_v59 }
 0x9af   :  { %19646 = vst [vmem:[#allocation55_spill] sm:$0xff] %v17399_v17  ;;  %11294 = vrcp.f32 %v17399_v17  ;;  %v8951_v9 = vmul.f32 %v8914_v8, %v8842_v2  ;;  %v19651_v8 = vld [vmem:[#allocation53_spill] sm:$0xff] }
 0x9b0   :  { %v9235_v41 = vmul.f32 %v9186_v48, %v17354_v47  ;;  %v17435_v2 = vsub.f32 %v19651_v8, %v17294_v24 }
 0x9b1   :  { %v17411_v15 = vpop.eup %11290  ;;  %v17414_v25 = vsub.f32 %v19645_v60, %v8951_v9 }
 0x9b2   :  { %v8847_v61 = vpop.permute.xlu1 %8846  ;;  %9352 = vperm.xlu1 %10755, %v9235_v41   ;;  %v9190_v28 = vrot.slane %v17411_v15, %v19639_v63 }
 0x9b3   :  { %19648 = vst [vmem:[#allocation52_spill] sm:$0xff] %v17414_v25  ;;  %11296 = vrcp.f32 %v17414_v25  ;;  %v8952_v34 = vmul.f32 %v8918_v57, %v8847_v61 }
 0x9b4   :  { %v9236_v12 = vmul.f32 %v9190_v28, %v17369_v26  ;;  %v8926_v28 = vrot.slane %v17435_v2, %v19602_v59 }
 0x9b5   :  { %v17426_v35 = vpop.eup %11292  ;;  %v17429_v60 = vsub.f32 %v19647_v37, %v8952_v34  ;;  %v19653_v34 = vld [vmem:[#allocation39_spill] sm:$0xff] }
 0x9b6   :  { %9357 = vperm.xlu0 %10754, %v9236_v12   ;;  %v8852_v48 = vpop.permute.xlu0 %8851  ;;  %v9194_v9 = vrot.slane %v17426_v35, %v19639_v63  ;;  %v17450_v12 = vsub.f32 %v19653_v34, %v17294_v24 }
 0x9b7   :  { %19650 = vst [vmem:[#allocation15_spill] sm:$0xff] %v17429_v60  ;;  %11298 = vrcp.f32 %v17429_v60  ;;  %v8953_v41 = vmul.f32 %v8922_v32, %v8852_v48 }
 0x9b8   :  { %v9237_v57 = vmul.f32 %v9194_v9, %v17384_v19  ;;  %v19655_v19 = vld [vmem:[#allocation32_spill] sm:$0xff] }
 0x9b9   :  { %v17441_v61 = vpop.eup %11294  ;;  %v17444_v37 = vsub.f32 %v19649_v14, %v8953_v41  ;;  %v8930_v41 = vrot.slane %v17450_v12, %v19602_v59  ;;  %v17465_v13 = vsub.f32 %v19655_v19, %v17294_v24 }
 0x9ba   :  { %v8857_v26 = vpop.permute.xlu1 %8856  ;;  %9362 = vperm.xlu1 %10755, %v9237_v57   ;;  %v9198_v47 = vrot.slane %v17441_v61, %v19639_v63 }
 0x9bb   :  { %19652 = vst [vmem:[#allocation54_spill] sm:$0xff] %v17444_v37  ;;  %11300 = vrcp.f32 %v17444_v37  ;;  %v8954_v32 = vmul.f32 %v8926_v28, %v8857_v26 }
 0x9bc   :  { %v9238_v48 = vmul.f32 %v9198_v47, %v17399_v17 }
 0x9bd   :  { %v17456_v9 = vpop.eup %11296  ;;  %v17459_v14 = vsub.f32 %v19651_v8, %v8954_v32  ;;  %v8934_v32 = vrot.slane %v17465_v13, %v19602_v59 }
 0x9be   :  { %9367 = vperm.xlu0 %10754, %v9238_v48   ;;  %v8862_v57 = vpop.permute.xlu0 %8861  ;;  %v9202_v55 = vrot.slane %v17456_v9, %v19639_v63  ;;  %v17480_v48 = vsub.f32 %v17164_v4, %v17294_v24 }
 0x9bf   :  { %19654 = vst [vmem:[#allocation38_spill] sm:$0xff] %v17459_v14  ;;  %11302 = vrcp.f32 %v17459_v14  ;;  %v8955_v47 = vmul.f32 %v8930_v41, %v8862_v57 }
 0x9c0   :  { %v9239_v26 = vmul.f32 %v9202_v55, %v17414_v25  ;;  %v17495_v25 = vsub.f32 %v17175_v62, %v17294_v24 }
 0x9c1   :  { %v17471_v28 = vpop.eup %11298  ;;  %v17474_v8 = vsub.f32 %v19653_v34, %v8955_v47  ;;  %v8938_v47 = vrot.slane %v17480_v48, %v19602_v59 }
 0x9c2   :  { %v8867_v17 = vpop.permute.xlu1 %8866  ;;  %9372 = vperm.xlu1 %10755, %v9239_v26   ;;  %v9206_v58 = vrot.slane %v17471_v28, %v19639_v63 }
 0x9c3   :  { %19656 = vst [vmem:[#allocation37_spill] sm:$0xff] %v17474_v8  ;;  %11304 = vrcp.f32 %v17474_v8  ;;  %v8956_v55 = vmul.f32 %v8934_v32, %v8867_v17 }
 0x9c4   :  { %v9240_v41 = vmul.f32 %v9206_v58, %v17429_v60 }
 0x9c5   :  { %v17486_v57 = vpop.eup %11300  ;;  %v17489_v34 = vsub.f32 %v19655_v19, %v8956_v55  ;;  %v8942_v55 = vrot.slane %v17495_v25, %v19602_v59 }
 0x9c6   :  { %9377 = vperm.xlu0 %10754, %v9240_v41   ;;  %v8872_v26 = vpop.permute.xlu0 %8871  ;;  %v9210_v39 = vrot.slane %v17486_v57, %v19639_v63 }
 0x9c7   :  { %19657 = vst [vmem:[#allocation21_spill] sm:$0xff] %v17489_v34  ;;  %11306 = vrcp.f32 %v17489_v34  ;;  %v8957_v58 = vmul.f32 %v8938_v47, %v8872_v26 }
 0x9c8   :  { %v9241_v17 = vmul.f32 %v9210_v39, %v17444_v37 }
 0x9c9   :  { %v17501_v32 = vpop.eup %11302  ;;  %v17504_v19 = vsub.f32 %v17164_v4, %v8957_v58 }
 0x9ca   :  { %v8877_v24 = vpop.permute.xlu1 %8876  ;;  %9382 = vperm.xlu1 %10755, %v9241_v17   ;;  %v8978_v41 = vpop.permute.xlu0 %8977  ;;  %v9214_v60 = vrot.slane %v17501_v32, %v19639_v63 }
 0x9cb   :  { %11308 = vrcp.f32 %v17504_v19  ;;  %v8958_v53 = vmul.f32 %v8942_v55, %v8877_v24  ;;  %v9071_v55 = vrot.slane %v17298_v10, 4 }
 0x9cc   :  { %v9242_v47 = vmul.f32 %v9214_v60, %v17459_v14 }
 0x9cd   :  { %v17512_v39 = vpop.eup %11304  ;;  %v17515_v26 = vsub.f32 %v17175_v62, %v8958_v53  ;;  %v9103_v53 = vmul.f32 %v9071_v55, %v8978_v41 }
 0x9ce   :  { %9387 = vperm.xlu0 %10754, %v9242_v47   ;;  %v8983_v4 = vpop.permute.xlu1 %8982  ;;  %v8988_v58 = vpop.permute.xlu0 %8987  ;;  %v9218_v59 = vrot.slane %v17512_v39, %v19639_v63 }
 0x9cf   :  { %11310 = vrcp.f32 %v17515_v26  ;;  %v9104_v33 = vmul.f32 %v9072_v54, %v8983_v4 }
 0x9d0   :  { %v9243_v17 = vmul.f32 %v9218_v59, %v17474_v8 }
 0x9d1   :  { %v17521_v37 = vpop.eup %11306 }
 0x9d2   :  { %19658 = vst [vmem:[#allocation40_spill] sm:$0xff] %v17521_v37  ;;  %v8993_v60 = vpop.permute.xlu1 %8992  ;;  %9392 = vperm.xlu1 %10755, %v9243_v17   ;;  %v8998_v24 = vpop.permute.xlu0 %8997  ;;  %v9222_v62 = vrot.slane %v17521_v37, %v19639_v63  ;;  %v17534_v17 = vsub.f32 %v17194_v16, %v9103_v53  ;;  %v9105_v37 = vmul.f32 %v9073_v40, %v8988_v58  ;;  %v9283_v58 = vrot.slane %v17351_v51, 5 }
 0x9d3   :  { %v9106_v53 = vmul.f32 %v9074_v46, %v8993_v60  ;;  %v17546_v40 = vsub.f32 %v17209_v56, %v9104_v33  ;;  %v9285_v51 = vrot.slane %v17381_v38, 5 }
 0x9d4   :  { %v9244_v47 = vmul.f32 %v9222_v62, %v17489_v34  ;;  %v9282_v62 = vrot.slane %v17336_v0, 5  ;;  %v17549_v4 = vsub.f32 %v17206_v11, %v9105_v37  ;;  %v9107_v0 = vmul.f32 %v9075_v23, %v8998_v24 }
 0x9d5   :  { %v17527_v14 = vpop.eup %11308  ;;  %v17557_v60 = vsub.f32 %v17222_v7, %v9106_v53  ;;  %v9315_v11 = vmul.f32 %v9283_v58, %v17546_v40  ;;  %v9078_v24 = vrot.slane %v17375_v29, 4  ;;  %v9079_v7 = vrot.slane %v17390_v3, 4 }
 0x9d6   :  { %9397 = vperm.xlu0 %10754, %v9244_v47   ;;  %v9003_v59 = vpop.permute.xlu1 %9002  ;;  %v9008_v8 = vpop.permute.xlu0 %9007  ;;  %v9226_v10 = vrot.slane %v17527_v14, %v19639_v63  ;;  %v9314_v16 = vmul.f32 %v9282_v62, %v17534_v17  ;;  %v9080_v29 = vrot.slane %v17405_v45, 4  ;;  %v9288_v3 = vrot.slane %v17426_v35, 5 }
 0x9d7   :  { %v9108_v56 = vmul.f32 %v9076_v50, %v9003_v59  ;;  %v9317_v59 = vmul.f32 %v9285_v51, %v17557_v60  ;;  %v9289_v35 = vrot.slane %v17441_v61, 5  ;;  %v9291_v61 = vrot.slane %v17471_v28, 5 }
 0x9d8   :  { %v9245_v41 = vmul.f32 %v9226_v10, %v17504_v19  ;;  %v9284_v10 = vrot.slane %v17366_v42, 5 }
 0x9d9   :  { %v17537_v55 = vpop.eup %11310  ;;  %v17570_v62 = vsub.f32 %v17234_v22, %v9108_v56  ;;  %v9084_v56 = vrot.slane %v17465_v13, 4  ;;  %v9294_v13 = vrot.slane %v17512_v39, 5 }
 0x9da   :  { %v9013_v47 = vpop.permute.xlu1 %9012  ;;  %9402 = vperm.xlu1 %10755, %v9245_v41   ;;  %v9230_v34 = vrot.slane %v17537_v55, %v19639_v63  ;;  %v9018_v54 = vpop.permute.xlu0 %9017  ;;  %v9077_v41 = vrot.slane %v17360_v49, 4  ;;  %v9316_v37 = vmul.f32 %v9284_v10, %v17549_v4  ;;  %v9286_v49 = vrot.slane %v17396_v21, 5 }
 0x9db   :  { %v9110_v38 = vmul.f32 %v9078_v24, %v9013_v47  ;;  %v9111_v46 = vmul.f32 %v9079_v7, %v9018_v54  ;;  %v9287_v21 = vrot.slane %v17411_v15, 5  ;;  %v9082_v54 = vrot.slane %v17435_v2, 4 }
 0x9dc   :  { %v9246_v31 = vmul.f32 %v9230_v34, %v17515_v26  ;;  %v17562_v34 = vsub.f32 %v17217_v30, %v9107_v0  ;;  %v9109_v43 = vmul.f32 %v9077_v41, %v9008_v8 }
 0x9dd   :  { %v9319_v22 = vmul.f32 %v9287_v21, %v17570_v62  ;;  %v17583_v47 = vsub.f32 %v17246_v5, %v9110_v38  ;;  %v17586_v15 = vsub.f32 %v17243_v36, %v9111_v46  ;;  %v19662_v38 = vld [vmem:[#allocation36_spill] sm:$0xff] }
 0x9de   :  { %9407 = vperm.xlu0 %10754, %v9246_v31   ;;  %9508 = vperm.xlu1 %10755, %v9314_v16   ;;  %v9023_v33 = vpop.permute.xlu1 %9022  ;;  %v9028_v42 = vpop.permute.xlu0 %9027  ;;  %v9318_v30 = vmul.f32 %v9286_v49, %v17562_v34  ;;  %v17574_v8 = vsub.f32 %v17230_v27, %v9109_v43  ;;  %v9081_v16 = vrot.slane %v17420_v18, 4  ;;  %v9290_v18 = vrot.slane %v17456_v9, 5 }
 0x9df   :  { %v9112_v53 = vmul.f32 %v9080_v29, %v9023_v33  ;;  %v9083_v31 = vrot.slane %v17450_v12, 4  ;;  %v9321_v10 = vmul.f32 %v9289_v35, %v17583_v47  ;;  %v9292_v12 = vrot.slane %v17486_v57, 5 }
 0x9e0   :  { %v9320_v27 = vmul.f32 %v9288_v3, %v17574_v8  ;;  %v9113_v45 = vmul.f32 %v9081_v16, %v9028_v42  ;;  %v9322_v36 = vmul.f32 %v9290_v18, %v17586_v15  ;;  %v9293_v57 = vrot.slane %v17501_v32, 5  ;;  %v19666_v16 = vld [vmem:[#allocation35_spill] sm:$0xff]  ;;  %v19669_v18 = vld [vmem:[#allocation33_spill] sm:$0xff] }
 0x9e1   :  { %v17593_v50 = vsub.f32 %v17258_v1, %v9112_v53  ;;  %v9085_v1 = vrot.slane %v17480_v48, 4  ;;  %v9086_v48 = vrot.slane %v17495_v25, 4  ;;  %v11416_v29 = vmov 14   ;;  %v19667_v53 = vld [vmem:[#allocation43_spill] sm:$0xff] }
 0x9e2   :  { %9513 = vperm.xlu0 %10754, %v9315_v11   ;;  %9518 = vperm.xlu1 %10755, %v9316_v37   ;;  %v9033_v23 = vpop.permute.xlu1 %9032  ;;  %v9038_v0 = vpop.permute.xlu0 %9037  ;;  %v17598_v41 = vsub.f32 %v17253_v6, %v9113_v45 }
 0x9e3   :  { %v9114_v58 = vmul.f32 %v9082_v54, %v9033_v23  ;;  %v9115_v2 = vmul.f32 %v9083_v31, %v9038_v0  ;;  %v9323_v33 = vmul.f32 %v9291_v61, %v17593_v50  ;;  %v19665_v23 = vmov 0.0  }
 0x9e4   :  { %v9324_v6 = vmul.f32 %v9292_v12, %v17598_v41 }
 0x9e5   :  { %v17606_v11 = vsub.f32 %v17270_v20, %v9114_v58  ;;  %v17610_v37 = vsub.f32 %v17266_v44, %v9115_v2  ;;  %v19660_v44 = vld [vmem:[#allocation22_spill] sm:$0xff]  ;;  %v19671_v2 = vld [vmem:[#allocation47_spill] sm:$0xff] }
 0x9e6   :  { %9523 = vperm.xlu0 %10754, %v9317_v59   ;;  %9528 = vperm.xlu1 %10755, %v9318_v30   ;;  %v9043_v5 = vpop.permute.xlu1 %9042  ;;  %v9048_v9 = vpop.permute.xlu0 %9047  ;;  %v19661_v59 = vld [vmem:[#allocation40_spill] sm:$0xff]  ;;  %v9296_v30 = vrot.slane %v17527_v14, 5  ;;  %v19664_v14 = vld [vmem:[#allocation9_spill] sm:$0xff] }
 0x9e7   :  { %v9116_v28 = vmul.f32 %v9084_v56, %v9043_v5  ;;  %v9117_v43 = vmul.f32 %v9085_v1, %v9048_v9  ;;  %v9325_v42 = vmul.f32 %v9293_v57, %v17606_v11  ;;  %v9326_v20 = vmul.f32 %v9294_v13, %v17610_v37 }
 0x9e8   :  { %v9295_v32 = vrot.slane %v19661_v59, 5  ;;  %vm9247_vm8 = vcmp.eq.s32.totalorder %v19664_v14, 13 }
 0x9e9   :  { %v17618_v49 = vsub.f32 %v17281_v52, %v9116_v28  ;;  %v17621_v24 = vsub.f32 %v19660_v44, %v9117_v43  ;;  %v9297_v52 = vrot.slane %v17537_v55, 5  ;;  %v17634_v3 = vsel %vm9247_vm8, 1.0, %v19665_v23  ;;  %v19676_v44 = vld [vmem:[#allocation31_spill] sm:$0xff] }
 0x9ea   :  { %9533 = vperm.xlu0 %10754, %v9319_v22   ;;  %9538 = vperm.xlu1 %10755, %v9320_v27   ;;  %v9053_v51 = vpop.permute.xlu1 %9052  ;;  %v17638_v22 = vsub.f32 %v19666_v16, %v17634_v3  ;;  %v17644_v0 = vsub.f32 %v19667_v53, %v17634_v3  ;;  %v17653_v31 = vsub.f32 %v19669_v18, %v17634_v3 }
 0x9eb   :  { %19659 = vst [vmem:[#allocation42_spill] sm:$0xff] %v17618_v49  ;;  %v9118_v7 = vmul.f32 %v9086_v48, %v9053_v51  ;;  %v9327_v25 = vmul.f32 %v9295_v32, %v17618_v49  ;;  %v9328_v39 = vmul.f32 %v9296_v30, %v17621_v24  ;;  %v17663_v61 = vsub.f32 %v19671_v2, %v17634_v3  ;;  %v19675_v48 = vld [vmem:[#allocation49_spill] sm:$0xff] }
 0x9ec   :  { %v9413_v55 = vrot.slane %v17638_v22, %v19639_v63  ;;  %v9417_v35 = vrot.slane %v17644_v0, %v19639_v63  ;;  %v9604_v14 = vrot.slane %v17653_v31, 5 }
 0x9ed   :  { %v17628_v46 = vsub.f32 %v19662_v38, %v9118_v7  ;;  %v9425_v1 = vrot.slane %v17663_v61, %v19639_v63  ;;  %v19678_v38 = vld [vmem:[#allocation57_spill] sm:$0xff] }
 0x9ee   :  { %9543 = vperm.xlu0 %10754, %v9321_v10   ;;  %9548 = vperm.xlu1 %10755, %v9322_v36   ;;  %v9421_v36 = vrot.slane %v17653_v31, %v19639_v63 }
 0x9ef   :  { %19663 = vst [vmem:[#allocation34_spill] sm:$0xff] %v17628_v46  ;;  %v9329_v21 = vmul.f32 %v9297_v52, %v17628_v46  ;;  %v17700_v52 = vsub.f32 %v19678_v38, %v17634_v3  ;;  %v9603_v46 = vrot.slane %v17644_v0, 5  ;;  %v9605_v0 = vrot.slane %v17663_v61, 5 }
 0x9f1   :  { %v9608_v61 = vrot.slane %v17700_v52, 5 }
 0x9f2   :  { %9553 = vperm.xlu0 %10754, %v9323_v33   ;;  %9558 = vperm.xlu1 %10755, %v9324_v6   ;;  %v19673_v33 = vld [vmem:[#allocation46_spill] sm:$0xff] }
 0x9f3   :  { %v17673_v6 = vsub.f32 %v19673_v33, %v17634_v3 }
 0x9f5   :  { %v9429_v13 = vrot.slane %v17673_v6, %v19639_v63  ;;  %v9606_v31 = vrot.slane %v17673_v6, 5 }
 0x9f6   :  { %9563 = vperm.xlu0 %10754, %v9325_v42   ;;  %9568 = vperm.xlu1 %10755, %v9326_v20   ;;  %v17685_v42 = vsub.f32 %v19675_v48, %v17634_v3 }
 0x9fa   :  { %9573 = vperm.xlu0 %10754, %v9327_v25   ;;  %9578 = vperm.xlu1 %10755, %v9328_v39   ;;  %v9433_v39 = vrot.slane %v17685_v42, %v19639_v63 }
 0x9fe   :  { %9583 = vperm.xlu0 %10754, %v9329_v21   ;;  %10756 = vset.pattern.permute.xlu1 %v11416_v29 }
 0xa02   :  { %10757 = vset.pattern.permute.xlu0 %v11416_v29 }
 0xa21   :  { %v9333_v27 = vpop.permute.xlu0 %9332 }
 0xa22   :  { %v9474_v45 = vmul.f32 %v9413_v55, %v9333_v27 }
 0xa24   :  { %v17647_v54 = vsub.f32 %v19666_v16, %v9474_v45  ;;  %v9437_v45 = vrot.slane %v17700_v52, %v19639_v63 }
 0xa25   :  { %v9338_v58 = vpop.permute.xlu1 %9337 }
 0xa26   :  { %19668 = vst [vmem:[#allocation41_spill] sm:$0xff] %v17647_v54  ;;  %11312 = vrcp.f32 %v17647_v54  ;;  %v9475_v5 = vmul.f32 %v9417_v35, %v9338_v58  ;;  %v19680_v35 = vld [vmem:[#allocation55_spill] sm:$0xff] }
 0xa28   :  { %v17657_v10 = vsub.f32 %v19667_v53, %v9475_v5 }
 0xa29   :  { %v9343_v9 = vpop.permute.xlu1 %9342 }
 0xa2a   :  { %19670 = vst [vmem:[#allocation45_spill] sm:$0xff] %v17657_v10  ;;  %11314 = vrcp.f32 %v17657_v10  ;;  %v9476_v12 = vmul.f32 %v9421_v36, %v9343_v9 }
 0xa2c   :  { %v17667_v56 = vsub.f32 %v19669_v18, %v9476_v12  ;;  %v17715_v18 = vsub.f32 %v19680_v35, %v17634_v3 }
 0xa2d   :  { %v9348_v28 = vpop.permute.xlu0 %9347 }
 0xa2e   :  { %19672 = vst [vmem:[#allocation13_spill] sm:$0xff] %v17667_v56  ;;  %11316 = vrcp.f32 %v17667_v56  ;;  %v9477_v43 = vmul.f32 %v9425_v1, %v9348_v28  ;;  %v9441_v1 = vrot.slane %v17715_v18, %v19639_v63 }
 0xa30   :  { %v17676_v57 = vpop.eup %11312  ;;  %v17679_v51 = vsub.f32 %v19671_v2, %v9477_v43 }
 0xa31   :  { %v9353_v20 = vpop.permute.xlu1 %9352  ;;  %v9701_v7 = vrot.slane %v17676_v57, %v19676_v44 }
 0xa32   :  { %19674 = vst [vmem:[#allocation10_spill] sm:$0xff] %v17679_v51  ;;  %11318 = vrcp.f32 %v17679_v51  ;;  %v9478_v59 = vmul.f32 %v9429_v13, %v9353_v20 }
 0xa33   :  { %v9762_v32 = vmul.f32 %v9701_v7, %v17647_v54 }
 0xa34   :  { %v17691_v30 = vpop.eup %11314  ;;  %v17694_v25 = vsub.f32 %v19673_v33, %v9478_v59  ;;  %v19682_v33 = vld [vmem:[#allocation52_spill] sm:$0xff] }
 0xa35   :  { %9863 = vperm.xlu1 %10756, %v9762_v32   ;;  %v9358_v21 = vpop.permute.xlu0 %9357  ;;  %v9705_v29 = vrot.slane %v17691_v30, %v19676_v44  ;;  %v17730_v28 = vsub.f32 %v19682_v33, %v17634_v3 }
 0xa36   :  { %19677 = vst [vmem:[#allocation23_spill] sm:$0xff] %v17694_v25  ;;  %11320 = vrcp.f32 %v17694_v25  ;;  %v9479_v16 = vmul.f32 %v9433_v39, %v9358_v21  ;;  %v19684_v39 = vld [vmem:[#allocation15_spill] sm:$0xff] }
 0xa37   :  { %v9763_v55 = vmul.f32 %v9705_v29, %v17657_v10  ;;  %v9445_v32 = vrot.slane %v17730_v28, %v19639_v63 }
 0xa38   :  { %v17706_v53 = vpop.eup %11316  ;;  %v17709_v27 = vsub.f32 %v19675_v48, %v9479_v16 }
 0xa39   :  { %9868 = vperm.xlu0 %10757, %v9763_v55   ;;  %v9363_v58 = vpop.permute.xlu1 %9362  ;;  %v9709_v5 = vrot.slane %v17706_v53, %v19676_v44 }
 0xa3a   :  { %19679 = vst [vmem:[#allocation25_spill] sm:$0xff] %v17709_v27  ;;  %11322 = vrcp.f32 %v17709_v27  ;;  %v9480_v36 = vmul.f32 %v9437_v45, %v9363_v58 }
 0xa3b   :  { %v9764_v2 = vmul.f32 %v9709_v5, %v17667_v56  ;;  %v19686_v5 = vld [vmem:[#allocation54_spill] sm:$0xff] }
 0xa3c   :  { %v17721_v9 = vpop.eup %11318  ;;  %v17724_v12 = vsub.f32 %v19678_v38, %v9480_v36  ;;  %v17745_v38 = vsub.f32 %v19684_v39, %v17634_v3  ;;  %v17760_v36 = vsub.f32 %v19686_v5, %v17634_v3 }
 0xa3d   :  { %9873 = vperm.xlu1 %10756, %v9764_v2   ;;  %v9368_v43 = vpop.permute.xlu0 %9367  ;;  %v9713_v13 = vrot.slane %v17721_v9, %v19676_v44 }
 0xa3e   :  { %19681 = vst [vmem:[#allocation48_spill] sm:$0xff] %v17724_v12  ;;  %11324 = vrcp.f32 %v17724_v12  ;;  %v9481_v48 = vmul.f32 %v9441_v1, %v9368_v43  ;;  %v9449_v58 = vrot.slane %v17745_v38, %v19639_v63 }
 0xa3f   :  { %v9765_v20 = vmul.f32 %v9713_v13, %v17679_v51 }
 0xa40   :  { %v17736_v7 = vpop.eup %11320  ;;  %v17739_v59 = vsub.f32 %v19680_v35, %v9481_v48 }
 0xa41   :  { %v9373_v21 = vpop.permute.xlu1 %9372  ;;  %9878 = vperm.xlu1 %10756, %v9765_v20   ;;  %v9717_v29 = vrot.slane %v17736_v7, %v19676_v44  ;;  %v9453_v20 = vrot.slane %v17760_v36, %v19639_v63 }
 0xa42   :  { %19683 = vst [vmem:[#allocation51_spill] sm:$0xff] %v17739_v59  ;;  %11326 = vrcp.f32 %v17739_v59  ;;  %v9482_v16 = vmul.f32 %v9445_v32, %v9373_v21  ;;  %v19688_v32 = vld [vmem:[#allocation38_spill] sm:$0xff] }
 0xa43   :  { %v9766_v55 = vmul.f32 %v9717_v29, %v17694_v25  ;;  %v17775_v21 = vsub.f32 %v19688_v32, %v17634_v3 }
 0xa44   :  { %v17751_v45 = vpop.eup %11322  ;;  %v17754_v35 = vsub.f32 %v19682_v33, %v9482_v16 }
 0xa45   :  { %9883 = vperm.xlu0 %10757, %v9766_v55   ;;  %v9378_v2 = vpop.permute.xlu0 %9377  ;;  %v9721_v1 = vrot.slane %v17751_v45, %v19676_v44 }
 0xa46   :  { %19685 = vst [vmem:[#allocation24_spill] sm:$0xff] %v17754_v35  ;;  %11328 = vrcp.f32 %v17754_v35  ;;  %v9483_v43 = vmul.f32 %v9449_v58, %v9378_v2 }
 0xa47   :  { %v9767_v13 = vmul.f32 %v9721_v1, %v17709_v27  ;;  %v9457_v1 = vrot.slane %v17775_v21, %v19639_v63 }
 0xa48   :  { %v17766_v48 = vpop.eup %11324  ;;  %v17769_v33 = vsub.f32 %v19684_v39, %v9483_v43  ;;  %v19690_v43 = vld [vmem:[#allocation37_spill] sm:$0xff] }
 0xa49   :  { %v9383_v29 = vpop.permute.xlu1 %9382  ;;  %9888 = vperm.xlu1 %10756, %v9767_v13   ;;  %v9725_v16 = vrot.slane %v17766_v48, %v19676_v44  ;;  %v17790_v27 = vsub.f32 %v19690_v43, %v17634_v3 }
 0xa4a   :  { %19687 = vst [vmem:[#allocation50_spill] sm:$0xff] %v17769_v33  ;;  %11330 = vrcp.f32 %v17769_v33  ;;  %v9484_v55 = vmul.f32 %v9453_v20, %v9383_v29 }
 0xa4b   :  { %v9768_v58 = vmul.f32 %v9725_v16, %v17724_v12  ;;  %v19692_v12 = vld [vmem:[#allocation21_spill] sm:$0xff] }
 0xa4c   :  { %v17781_v2 = vpop.eup %11326  ;;  %v17784_v39 = vsub.f32 %v19686_v5, %v9484_v55  ;;  %v9461_v55 = vrot.slane %v17790_v27, %v19639_v63 }
 0xa4d   :  { %9893 = vperm.xlu0 %10757, %v9768_v58   ;;  %v9388_v13 = vpop.permute.xlu0 %9387  ;;  %v9729_v25 = vrot.slane %v17781_v2, %v19676_v44  ;;  %v17805_v58 = vsub.f32 %v19692_v12, %v17634_v3 }
 0xa4e   :  { %19689 = vst [vmem:[#allocation26_spill] sm:$0xff] %v17784_v39  ;;  %11332 = vrcp.f32 %v17784_v39  ;;  %v9485_v20 = vmul.f32 %v9457_v1, %v9388_v13 }
 0xa4f   :  { %v9769_v29 = vmul.f32 %v9729_v25, %v17739_v59  ;;  %v17820_v59 = vsub.f32 %v17504_v19, %v17634_v3 }
 0xa50   :  { %v17796_v16 = vpop.eup %11328  ;;  %v17799_v5 = vsub.f32 %v19688_v32, %v9485_v20  ;;  %v9465_v20 = vrot.slane %v17805_v58, %v19639_v63 }
 0xa51   :  { %v9393_v51 = vpop.permute.xlu1 %9392  ;;  %9898 = vperm.xlu1 %10756, %v9769_v29   ;;  %v9733_v56 = vrot.slane %v17796_v16, %v19676_v44 }
 0xa52   :  { %19691 = vst [vmem:[#allocation19_spill] sm:$0xff] %v17799_v5  ;;  %11334 = vrcp.f32 %v17799_v5  ;;  %v9486_v25 = vmul.f32 %v9461_v55, %v9393_v51 }
 0xa53   :  { %v9770_v1 = vmul.f32 %v9733_v56, %v17754_v35 }
 0xa54   :  { %v17811_v13 = vpop.eup %11330  ;;  %v17814_v32 = vsub.f32 %v19690_v43, %v9486_v25  ;;  %v9469_v25 = vrot.slane %v17820_v59, %v19639_v63 }
 0xa55   :  { %9903 = vperm.xlu0 %10757, %v9770_v1   ;;  %v9398_v29 = vpop.permute.xlu0 %9397  ;;  %v9737_v10 = vrot.slane %v17811_v13, %v19676_v44  ;;  %v17835_v1 = vsub.f32 %v17515_v26, %v17634_v3 }
 0xa56   :  { %19693 = vst [vmem:[#allocation28_spill] sm:$0xff] %v17814_v32  ;;  %11336 = vrcp.f32 %v17814_v32  ;;  %v9487_v56 = vmul.f32 %v9465_v20, %v9398_v29 }
 0xa57   :  { %v9771_v51 = vmul.f32 %v9737_v10, %v17769_v33 }
 0xa58   :  { %v17826_v55 = vpop.eup %11332  ;;  %v17829_v43 = vsub.f32 %v19692_v12, %v9487_v56  ;;  %v9473_v56 = vrot.slane %v17835_v1, %v19639_v63 }
 0xa59   :  { %v9403_v35 = vpop.permute.xlu1 %9402  ;;  %9908 = vperm.xlu1 %10756, %v9771_v51   ;;  %v9741_v54 = vrot.slane %v17826_v55, %v19676_v44 }
 0xa5a   :  { %19694 = vst [vmem:[#allocation44_spill] sm:$0xff] %v17829_v43  ;;  %11338 = vrcp.f32 %v17829_v43  ;;  %v9488_v10 = vmul.f32 %v9469_v25, %v9403_v35 }
 0xa5b   :  { %v9772_v20 = vmul.f32 %v9741_v54, %v17784_v39 }
 0xa5c   :  { %v17841_v29 = vpop.eup %11334  ;;  %v17844_v12 = vsub.f32 %v17504_v19, %v9488_v10 }
 0xa5d   :  { %9913 = vperm.xlu0 %10757, %v9772_v20   ;;  %v9509_v3 = vpop.permute.xlu1 %9508  ;;  %v9408_v33 = vpop.permute.xlu0 %9407  ;;  %v9745_v51 = vrot.slane %v17841_v29, %v19676_v44 }
 0xa5e   :  { %11340 = vrcp.f32 %v17844_v12  ;;  %v9489_v23 = vmul.f32 %v9473_v56, %v9408_v33  ;;  %v9602_v33 = vrot.slane %v17638_v22, 5 }
 0xa5f   :  { %v9773_v35 = vmul.f32 %v9745_v51, %v17799_v5 }
 0xa60   :  { %v17852_v54 = vpop.eup %11336  ;;  %v17855_v25 = vsub.f32 %v17515_v26, %v9489_v23  ;;  %v9634_v23 = vmul.f32 %v9602_v33, %v9509_v3 }
 0xa61   :  { %v9519_v19 = vpop.permute.xlu1 %9518  ;;  %9918 = vperm.xlu1 %10756, %v9773_v35   ;;  %v9514_v10 = vpop.permute.xlu0 %9513  ;;  %v9749_v63 = vrot.slane %v17852_v54, %v19676_v44 }
 0xa62   :  { %11342 = vrcp.f32 %v17855_v25  ;;  %v9636_v49 = vmul.f32 %v9604_v14, %v9519_v19 }
 0xa63   :  { %v9774_v20 = vmul.f32 %v9749_v63, %v17814_v32 }
 0xa64   :  { %v17861_v39 = vpop.eup %11338 }
 0xa65   :  { %19695 = vst [vmem:[#allocation11_spill] sm:$0xff] %v17861_v39  ;;  %9923 = vperm.xlu0 %10757, %v9774_v20   ;;  %v9529_v56 = vpop.permute.xlu1 %9528  ;;  %v9524_v51 = vpop.permute.xlu0 %9523  ;;  %v9753_v26 = vrot.slane %v17861_v39, %v19676_v44  ;;  %v17874_v20 = vsub.f32 %v17534_v17, %v9634_v23  ;;  %v9635_v39 = vmul.f32 %v9603_v46, %v9514_v10  ;;  %v9815_v10 = vrot.slane %v17706_v53, 6 }
 0xa66   :  { %v9638_v23 = vmul.f32 %v9606_v31, %v9529_v56  ;;  %v17886_v46 = vsub.f32 %v17549_v4, %v9636_v49  ;;  %v9817_v53 = vrot.slane %v17736_v7, 6 }
 0xa67   :  { %v9775_v35 = vmul.f32 %v9753_v26, %v17829_v43  ;;  %v9813_v26 = vrot.slane %v17676_v57, 6  ;;  %v17889_v19 = vsub.f32 %v17546_v40, %v9635_v39  ;;  %v9637_v57 = vmul.f32 %v9605_v0, %v9524_v51 }
 0xa68   :  { %v17867_v5 = vpop.eup %11340  ;;  %v17897_v56 = vsub.f32 %v17562_v34, %v9638_v23  ;;  %v9847_v40 = vmul.f32 %v9815_v10, %v17886_v46  ;;  %v9610_v51 = vrot.slane %v17730_v28, 5  ;;  %v9609_v34 = vrot.slane %v17715_v18, 5 }
 0xa69   :  { %v9539_v63 = vpop.permute.xlu1 %9538  ;;  %9928 = vperm.xlu1 %10756, %v9775_v35   ;;  %v9534_v32 = vpop.permute.xlu0 %9533  ;;  %v9757_v22 = vrot.slane %v17867_v5, %v19676_v44  ;;  %v9845_v17 = vmul.f32 %v9813_v26, %v17874_v20  ;;  %v9612_v28 = vrot.slane %v17760_v36, 5  ;;  %v9818_v18 = vrot.slane %v17751_v45, 6 }
 0xa6a   :  { %v9640_v4 = vmul.f32 %v9608_v61, %v9539_v63  ;;  %v9849_v63 = vmul.f32 %v9817_v53, %v17897_v56  ;;  %v9821_v45 = vrot.slane %v17796_v16, 6  ;;  %v9823_v16 = vrot.slane %v17826_v55, 6 }
 0xa6b   :  { %v9776_v3 = vmul.f32 %v9757_v22, %v17844_v12  ;;  %v9814_v22 = vrot.slane %v17691_v30, 6 }
 0xa6c   :  { %v17877_v33 = vpop.eup %11342  ;;  %v17910_v26 = vsub.f32 %v17574_v8, %v9640_v4  ;;  %v9616_v4 = vrot.slane %v17820_v59, 5  ;;  %v9824_v59 = vrot.slane %v17841_v29, 6 }
 0xa6d   :  { %9933 = vperm.xlu0 %10757, %v9776_v3   ;;  %v9544_v35 = vpop.permute.xlu0 %9543  ;;  %v9761_v43 = vrot.slane %v17877_v33, %v19676_v44  ;;  %v9549_v14 = vpop.permute.xlu1 %9548  ;;  %v9607_v3 = vrot.slane %v17685_v42, 5  ;;  %v9846_v39 = vmul.f32 %v9814_v22, %v17889_v19  ;;  %v9816_v42 = vrot.slane %v17721_v9, 6 }
 0xa6e   :  { %v9642_v7 = vmul.f32 %v9610_v51, %v9549_v14  ;;  %v9641_v31 = vmul.f32 %v9609_v34, %v9544_v35  ;;  %v9819_v9 = vrot.slane %v17766_v48, 6  ;;  %v9614_v35 = vrot.slane %v17790_v27, 5 }
 0xa6f   :  { %v9777_v6 = vmul.f32 %v9761_v43, %v17855_v25  ;;  %v17902_v43 = vsub.f32 %v17557_v60, %v9637_v57  ;;  %v9639_v52 = vmul.f32 %v9607_v3, %v9534_v32 }
 0xa70   :  { %v9851_v8 = vmul.f32 %v9819_v9, %v17910_v26  ;;  %v17923_v14 = vsub.f32 %v17586_v15, %v9642_v7  ;;  %v17926_v48 = vsub.f32 %v17583_v47, %v9641_v31  ;;  %v19698_v7 = vld [vmem:[#allocation34_spill] sm:$0xff] }
 0xa71   :  { %10039 = vperm.xlu0 %10757, %v9845_v17   ;;  %9938 = vperm.xlu1 %10756, %v9777_v6   ;;  %v9554_v49 = vpop.permute.xlu0 %9553  ;;  %v9559_v30 = vpop.permute.xlu1 %9558  ;;  %v9848_v60 = vmul.f32 %v9816_v42, %v17902_v43  ;;  %v17914_v32 = vsub.f32 %v17570_v62, %v9639_v52  ;;  %v9611_v17 = vrot.slane %v17745_v38, 5  ;;  %v9820_v38 = vrot.slane %v17781_v2, 6 }
 0xa72   :  { %v9644_v23 = vmul.f32 %v9612_v28, %v9559_v30  ;;  %v9613_v6 = vrot.slane %v17775_v21, 5  ;;  %v9853_v22 = vmul.f32 %v9821_v45, %v17923_v14  ;;  %v9822_v21 = vrot.slane %v17811_v13, 6  ;;  %v19702_v45 = vld [vmem:[#allocation45_spill] sm:$0xff] }
 0xa73   :  { %v9850_v62 = vmul.f32 %v9818_v18, %v17914_v32  ;;  %v9643_v36 = vmul.f32 %v9611_v17, %v9554_v49  ;;  %v9852_v47 = vmul.f32 %v9820_v38, %v17926_v48  ;;  %v9825_v13 = vrot.slane %v17852_v54, 6 }
 0xa74   :  { %v17933_v61 = vsub.f32 %v17598_v41, %v9644_v23  ;;  %v9615_v41 = vrot.slane %v17805_v58, 5  ;;  %v9617_v58 = vrot.slane %v17835_v1, 5  ;;  %v9827_v54 = vrot.slane %v17867_v5, 6 }
 0xa75   :  { %10049 = vperm.xlu0 %10757, %v9847_v40   ;;  %10044 = vperm.xlu1 %10756, %v9846_v39   ;;  %v9564_v0 = vpop.permute.xlu0 %9563  ;;  %v9569_v57 = vpop.permute.xlu1 %9568  ;;  %v17938_v3 = vsub.f32 %v17593_v50, %v9643_v36  ;;  %v11417_v28 = vmov 15  }
 0xa76   :  { %v9646_v10 = vmul.f32 %v9614_v35, %v9569_v57  ;;  %v9645_v27 = vmul.f32 %v9613_v6, %v9564_v0  ;;  %v9855_v49 = vmul.f32 %v9823_v16, %v17933_v61  ;;  %v19699_v0 = vld [vmem:[#allocation9_spill] sm:$0xff]  ;;  %v19704_v16 = vld [vmem:[#allocation10_spill] sm:$0xff] }
 0xa77   :  { %v9854_v50 = vmul.f32 %v9822_v21, %v17938_v3  ;;  %vm9778_vm9 = vcmp.eq.s32.totalorder %v19699_v0, 14  ;;  %v19701_v57 = vld [vmem:[#allocation41_spill] sm:$0xff]  ;;  %vm10229_vm10 = vcmp.eq.s32.totalorder %v19699_v0, 15 }
 0xa78   :  { %v17946_v40 = vsub.f32 %v17610_v37, %v9646_v10  ;;  %v17950_v39 = vsub.f32 %v17606_v11, %v9645_v27  ;;  %v19696_v11 = vld [vmem:[#allocation42_spill] sm:$0xff] }
 0xa79   :  { %10059 = vperm.xlu0 %10757, %v9849_v63   ;;  %10054 = vperm.xlu1 %10756, %v9848_v60   ;;  %v9574_v15 = vpop.permute.xlu0 %9573  ;;  %v9579_v2 = vpop.permute.xlu1 %9578  ;;  %v19697_v63 = vld [vmem:[#allocation11_spill] sm:$0xff] }
 0xa7a   :  { %v9648_v55 = vmul.f32 %v9616_v4, %v9579_v2  ;;  %v9647_v52 = vmul.f32 %v9615_v41, %v9574_v15  ;;  %v9857_v30 = vmul.f32 %v9825_v13, %v17946_v40  ;;  %v9856_v37 = vmul.f32 %v9824_v59, %v17950_v39 }
 0xa7b   :  { %v9826_v60 = vrot.slane %v19697_v63, 6 }
 0xa7c   :  { %v17958_v42 = vsub.f32 %v17621_v24, %v9648_v55  ;;  %v17961_v51 = vsub.f32 %v19696_v11, %v9647_v52  ;;  %v9828_v24 = vrot.slane %v17877_v33, 6  ;;  %v19706_v55 = vld [vmem:[#allocation23_spill] sm:$0xff] }
 0xa7d   :  { %10069 = vperm.xlu0 %10757, %v9851_v8   ;;  %10064 = vperm.xlu1 %10756, %v9850_v62   ;;  %v9584_v53 = vpop.permute.xlu0 %9583  ;;  %v19700_v8 = vmov 0.0  }
 0xa7e   :  { %v9649_v34 = vmul.f32 %v9617_v58, %v9584_v53  ;;  %v9859_v1 = vmul.f32 %v9827_v54, %v17958_v42  ;;  %v9858_v29 = vmul.f32 %v9826_v60, %v17961_v51  ;;  %v17974_v23 = vsel %vm9778_vm9, 1.0, %v19700_v8  ;;  %v19707_v53 = vld [vmem:[#allocation25_spill] sm:$0xff]  ;;  %v19709_v54 = vld [vmem:[#allocation48_spill] sm:$0xff] }
 0xa7f   :  { %v17978_v62 = vsub.f32 %v19701_v57, %v17974_v23  ;;  %v17984_v38 = vsub.f32 %v19702_v45, %v17974_v23  ;;  %v17994_v2 = vsub.f32 %v19704_v16, %v17974_v23  ;;  %v18003_v52 = vsub.f32 %v19706_v55, %v17974_v23 }
 0xa80   :  { %v17968_v31 = vsub.f32 %v19698_v7, %v9649_v34  ;;  %v18009_v59 = vsub.f32 %v19707_v53, %v17974_v23  ;;  %v18017_v63 = vsub.f32 %v19709_v54, %v17974_v23 }
 0xa81   :  { %10079 = vperm.xlu0 %10757, %v9853_v22   ;;  %10074 = vperm.xlu1 %10756, %v9852_v47   ;;  %v9944_v35 = vrot.slane %v17978_v62, %v19676_v44  ;;  %v19703_v22 = vld [vmem:[#allocation13_spill] sm:$0xff]  ;;  %v9948_v27 = vrot.slane %v17984_v38, %v19676_v44  ;;  %v9956_v13 = vrot.slane %v17994_v2, %v19676_v44 }
 0xa82   :  { %v9860_v9 = vmul.f32 %v9828_v24, %v17968_v31  ;;  %v17988_v47 = vsub.f32 %v19703_v22, %v17974_v23  ;;  %v9960_v60 = vrot.slane %v18003_v52, %v19676_v44 }
 0xa85   :  { %10089 = vperm.xlu0 %10757, %v9855_v49   ;;  %10084 = vperm.xlu1 %10756, %v9854_v50   ;;  %v9952_v50 = vrot.slane %v17988_v47, %v19676_v44 }
 0xa89   :  { %10099 = vperm.xlu0 %10757, %v9857_v30   ;;  %10094 = vperm.xlu1 %10756, %v9856_v37  }
 0xa8d   :  { %10109 = vperm.xlu0 %10757, %v9859_v1   ;;  %10104 = vperm.xlu1 %10756, %v9858_v29   ;;  %v9964_v1 = vrot.slane %v18009_v59, %v19676_v44  ;;  %v19710_v29 = vld [vmem:[#allocation51_spill] sm:$0xff] }
 0xa8e   :  { %v18025_v7 = vsub.f32 %v19710_v29, %v17974_v23 }
 0xa91   :  { %10114 = vperm.xlu1 %10756, %v9860_v9   ;;  %10758 = vset.pattern.permute.xlu0 %v11417_v28 }
 0xa95   :  { %10759 = vset.pattern.permute.xlu1 %v11417_v28 }
 0xab4   :  { %v9864_v5 = vpop.permute.xlu1 %9863 }
 0xab5   :  { %v10005_v15 = vmul.f32 %v9944_v35, %v9864_v5 }
 0xab7   :  { %v17997_v41 = vsub.f32 %v19701_v57, %v10005_v15  ;;  %v9968_v57 = vrot.slane %v18017_v63, %v19676_v44  ;;  %v9972_v15 = vrot.slane %v18025_v7, %v19676_v44 }
 0xab8   :  { %v9869_v17 = vpop.permute.xlu0 %9868 }
 0xab9   :  { %19705 = vst [vmem:[#allocation56_spill] sm:$0xff] %v17997_v41  ;;  %v10006_v49 = vmul.f32 %v9948_v27, %v9869_v17  ;;  %11344 = vrcp.f32 %v17997_v41  ;;  %v19721_v41 = vld [vmem:[#allocation44_spill] sm:$0xff] }
 0xabb   :  { %v18013_v11 = vsub.f32 %v19702_v45, %v10006_v49  ;;  %v19716_v49 = vld [vmem:[#allocation26_spill] sm:$0xff] }
 0xabc   :  { %v9874_v18 = vpop.permute.xlu1 %9873 }
 0xabd   :  { %v10007_v37 = vmul.f32 %v9952_v50, %v9874_v18  ;;  %19708 = vst [vmem:[#allocation27_spill] sm:$0xff] %v18013_v11  ;;  %11346 = vrcp.f32 %v18013_v11  ;;  %v18058_v50 = vsub.f32 %v19716_v49, %v17974_v23 }
 0xabf   :  { %v18030_v28 = vsub.f32 %v19703_v22, %v10007_v37  ;;  %v19714_v22 = vld [vmem:[#allocation50_spill] sm:$0xff]  ;;  %v10133_v37 = vrot.slane %v17978_v62, 6 }
 0xac0   :  { %v9879_v33 = vpop.permute.xlu1 %9878 }
 0xac1   :  { %v10008_v34 = vmul.f32 %v9956_v13, %v9879_v33  ;;  %19711 = vst [vmem:[#allocation30_spill] sm:$0xff] %v18030_v28  ;;  %v19713_v33 = vld [vmem:[#allocation24_spill] sm:$0xff]  ;;  %11348 = vrcp.f32 %v18030_v28 }
 0xac2   :  { %v18040_v35 = vsub.f32 %v19713_v33, %v17974_v23  ;;  %v19720_v28 = vld [vmem:[#allocation28_spill] sm:$0xff] }
 0xac3   :  { %v18034_v18 = vsub.f32 %v19704_v16, %v10008_v34  ;;  %v18091_v11 = vsub.f32 %v19720_v28, %v17974_v23 }
 0xac4   :  { %v9884_v36 = vpop.permute.xlu0 %9883  ;;  %v9976_v34 = vrot.slane %v18040_v35, %v19676_v44 }
 0xac5   :  { %v10009_v5 = vmul.f32 %v9960_v60, %v9884_v36  ;;  %19712 = vst [vmem:[#allocation8_spill] sm:$0xff] %v18034_v18  ;;  %v18046_v36 = vsub.f32 %v19714_v22, %v17974_v23  ;;  %11350 = vrcp.f32 %v18034_v18  ;;  %v10134_v60 = vrot.slane %v17984_v38, 6 }
 0xac6   :  { %v10137_v38 = vrot.slane %v18003_v52, 6  ;;  %v18095_v52 = vsub.f32 %v19721_v41, %v17974_v23 }
 0xac8   :  { %v9889_v6 = vpop.permute.xlu1 %9888  ;;  %v9996_v8 = vrot.slane %v18095_v52, %v19676_v44 }
 0xac9   :  { %v10010_v17 = vmul.f32 %v9964_v1, %v9889_v6  ;;  %v18054_v6 = vsub.f32 %v19706_v55, %v10009_v5  ;;  %v10135_v55 = vrot.slane %v17988_v47, 6  ;;  %v10136_v1 = vrot.slane %v17994_v2, 6  ;;  %v11345_v5 = vpop.eup %11344 }
 0xaca   :  { %v9984_v2 = vrot.slane %v18058_v50, %v19676_v44 }
 0xacb   :  { %19715 = vst [vmem:[#allocation12_spill] sm:$0xff] %v18054_v6  ;;  %11352 = vrcp.f32 %v18054_v6  ;;  %v10264_v6 = vrot.slane %v11345_v5, 7 }
 0xacc   :  { %v9894_v10 = vpop.permute.xlu0 %9893  ;;  %v19726_v0 = vld [vmem:[#allocation8_spill] sm:$0xff] }
 0xacd   :  { %v10011_v45 = vmul.f32 %v9968_v57, %v9894_v10  ;;  %v18062_v10 = vsub.f32 %v19707_v53, %v10010_v17  ;;  %v9980_v53 = vrot.slane %v18046_v36, %v19676_v44 }
 0xacf   :  { %19717 = vst [vmem:[#allocation29_spill] sm:$0xff] %v18062_v10  ;;  %v18071_v57 = vsub.f32 %v19709_v54, %v10011_v45  ;;  %11354 = vrcp.f32 %v18062_v10 }
 0xad0   :  { %v9899_v21 = vpop.permute.xlu1 %9898 }
 0xad1   :  { %v10012_v13 = vmul.f32 %v9972_v15, %v9899_v21  ;;  %19718 = vst [vmem:[#allocation17_spill] sm:$0xff] %v18071_v57  ;;  %v19719_v21 = vld [vmem:[#allocation19_spill] sm:$0xff]  ;;  %11356 = vrcp.f32 %v18071_v57  ;;  %v9992_v57 = vrot.slane %v18091_v11, %v19676_v44 }
 0xad2   :  { %v18077_v17 = vsub.f32 %v19719_v21, %v17974_v23 }
 0xad3   :  { %v18087_v45 = vsub.f32 %v19710_v29, %v10012_v13  ;;  %v18106_v13 = vsub.f32 %v17844_v12, %v17974_v23 }
 0xad4   :  { %v9904_v4 = vpop.permute.xlu0 %9903 }
 0xad5   :  { %v10013_v47 = vmul.f32 %v9976_v34, %v9904_v4  ;;  %v11347_v34 = vpop.eup %11346  ;;  %11358 = vrcp.f32 %v18087_v45 }
 0xad6   :  { %v11349_v10 = vpop.eup %11348 }
 0xad7   :  { %v18109_v5 = vsub.f32 %v19713_v33, %v10013_v47  ;;  %v18122_v33 = vsub.f32 %v17855_v25, %v17974_v23 }
 0xad8   :  { %v9909_v58 = vpop.permute.xlu1 %9908 }
 0xad9   :  { %v10014_v18 = vmul.f32 %v9980_v53, %v9909_v58  ;;  %v9988_v58 = vrot.slane %v18077_v17, %v19676_v44  ;;  %11360 = vrcp.f32 %v18109_v5 }
 0xadc   :  { %v9914_v30 = vpop.permute.xlu0 %9913 }
 0xadd   :  { %v10015_v29 = vmul.f32 %v9984_v2, %v9914_v30  ;;  %v18114_v30 = vsub.f32 %v19714_v22, %v10014_v18  ;;  %v10000_v22 = vrot.slane %v18106_v13, %v19676_v44 }
 0xadf   :  { %v18128_v18 = vsub.f32 %v19716_v49, %v10015_v29  ;;  %11362 = vrcp.f32 %v18114_v30 }
 0xae0   :  { %v9919_v24 = vpop.permute.xlu1 %9918 }
 0xae1   :  { %v10016_v2 = vmul.f32 %v9988_v58, %v9919_v24  ;;  %11364 = vrcp.f32 %v18128_v18 }
 0xae3   :  { %v18140_v49 = vsub.f32 %v19719_v21, %v10016_v2 }
 0xae4   :  { %v18027_v9 = vpop.permute.xlu0 %9923 }
 0xae5   :  { %v10017_v24 = vmul.f32 %v9992_v57, %v18027_v9  ;;  %v10266_v57 = vrot.slane %v11349_v10, 7  ;;  %11366 = vrcp.f32 %v18140_v49 }
 0xae7   :  { %v18151_v21 = vsub.f32 %v19720_v28, %v10017_v24 }
 0xae8   :  { %v18048_v27 = vpop.permute.xlu1 %9928 }
 0xae9   :  { %v10018_v9 = vmul.f32 %v9996_v8, %v18048_v27  ;;  %11368 = vrcp.f32 %v18151_v21 }
 0xaec   :  { %v18050_v16 = vpop.permute.xlu0 %9933 }
 0xaed   :  { %v10019_v8 = vmul.f32 %v10000_v22, %v18050_v16  ;;  %v10140_v16 = vrot.slane %v18025_v7, 6 }
 0xaf0   :  { %v18079_v62 = vpop.permute.xlu1 %9938  ;;  %v10040_v15 = vpop.permute.xlu0 %10039 }
 0xaf1   :  { %v10165_v54 = vmul.f32 %v10133_v37, %v10040_v15  ;;  %v10138_v37 = vrot.slane %v18009_v59, 6 }
 0xaf3   :  { %v18098_v4 = vsub.f32 %v17874_v20, %v10165_v54 }
 0xaf4   :  { %v10045_v53 = vpop.permute.xlu1 %10044  ;;  %v10050_v15 = vpop.permute.xlu0 %10049 }
 0xaf5   :  { %v10296_v20 = vmul.f32 %v10264_v6, %v18098_v4  ;;  %v10166_v54 = vmul.f32 %v10134_v60, %v10045_v53  ;;  %v10167_v59 = vmul.f32 %v10135_v55, %v10050_v15  ;;  %v10265_v60 = vrot.slane %v11347_v34, 7  ;;  %v11351_v55 = vpop.eup %11350 }
 0xaf6   :  { %v11353_v29 = vpop.eup %11352  ;;  %v10267_v15 = vrot.slane %v11351_v55, 7 }
 0xaf7   :  { %v18125_v6 = vsub.f32 %v17889_v19, %v10166_v54  ;;  %10314 = vperm.xlu0 %10758, %v10296_v20   ;;  %v18134_v47 = vsub.f32 %v17886_v46, %v10167_v59  ;;  %v10004_v46 = vrot.slane %v18122_v33, %v19676_v44  ;;  %v10268_v55 = vrot.slane %v11353_v29, 7 }
 0xaf8   :  { %v10055_v58 = vpop.permute.xlu1 %10054  ;;  %v10060_v23 = vpop.permute.xlu0 %10059  ;;  %v10143_v29 = vrot.slane %v18058_v50, 6 }
 0xaf9   :  { %v10297_v19 = vmul.f32 %v10265_v60, %v18125_v6  ;;  %v10168_v34 = vmul.f32 %v10136_v1, %v10055_v58  ;;  %v10169_v53 = vmul.f32 %v10137_v38, %v10060_v23  ;;  %v10139_v1 = vrot.slane %v18017_v63, 6  ;;  %v11355_v38 = vpop.eup %11354 }
 0xafa   :  { %v10298_v27 = vmul.f32 %v10266_v57, %v18134_v47  ;;  %v11357_v63 = vpop.eup %11356  ;;  %v18161_v60 = vsub.f32 %v19721_v41, %v10018_v9  ;;  %v10020_v28 = vmul.f32 %v10004_v46, %v18079_v62  ;;  %v10269_v24 = vrot.slane %v11355_v38, 7 }
 0xafb   :  { %v18146_v20 = vsub.f32 %v17902_v43, %v10168_v34  ;;  %10319 = vperm.xlu1 %10759, %v10297_v19   ;;  %v18157_v43 = vsub.f32 %v17897_v56, %v10169_v53  ;;  %v10141_v56 = vrot.slane %v18040_v35, 6  ;;  %v18171_v58 = vsub.f32 %v17844_v12, %v10019_v8 }
 0xafc   :  { %v10065_v10 = vpop.permute.xlu1 %10064  ;;  %v10070_v54 = vpop.permute.xlu0 %10069  ;;  %11370 = vrcp.f32 %v18161_v60  ;;  %v18180_v35 = vsub.f32 %v17855_v25, %v10020_v28  ;;  %v10270_v53 = vrot.slane %v11357_v63, 7 }
 0xafd   :  { %v10299_v44 = vmul.f32 %v10267_v15, %v18146_v20  ;;  %v10170_v59 = vmul.f32 %v10138_v37, %v10065_v10  ;;  %v10171_v2 = vmul.f32 %v10139_v1, %v10070_v54  ;;  %v11359_v37 = vpop.eup %11358  ;;  %v10300_v23 = vmul.f32 %v10268_v55, %v18157_v43 }
 0xafe   :  { %v11361_v9 = vpop.eup %11360  ;;  %v10271_v12 = vrot.slane %v11359_v37, 7  ;;  %11372 = vrcp.f32 %v18171_v58 }
 0xaff   :  { %v18166_v22 = vsub.f32 %v17914_v32, %v10170_v59  ;;  %10329 = vperm.xlu0 %10758, %v10299_v44   ;;  %10324 = vperm.xlu1 %10759, %v10298_v27   ;;  %v18174_v41 = vsub.f32 %v17910_v26, %v10171_v2  ;;  %v10142_v26 = vrot.slane %v18046_v36, 6  ;;  %v11363_v46 = vpop.eup %11362  ;;  %11374 = vrcp.f32 %v18180_v35 }
 0xb00   :  { %v10075_v62 = vpop.permute.xlu1 %10074  ;;  %v10080_v7 = vpop.permute.xlu0 %10079  ;;  %v10144_v36 = vrot.slane %v18077_v17, 6  ;;  %v10272_v50 = vrot.slane %v11361_v9, 7  ;;  %v10273_v54 = vrot.slane %v11363_v46, 7  ;;  %v10145_v59 = vrot.slane %v18091_v11, 6 }
 0xb01   :  { %v10301_v32 = vmul.f32 %v10269_v24, %v18166_v22  ;;  %v10172_v19 = vmul.f32 %v10140_v16, %v10075_v62  ;;  %v10173_v34 = vmul.f32 %v10141_v56, %v10080_v7  ;;  %v10302_v15 = vmul.f32 %v10270_v53, %v18174_v41  ;;  %v11365_v10 = vpop.eup %11364 }
 0xb02   :  { %v11367_v2 = vpop.eup %11366  ;;  %v10274_v37 = vrot.slane %v11365_v10, 7  ;;  %v10146_v11 = vrot.slane %v18095_v52, 6  ;;  %v10148_v52 = vrot.slane %v18122_v33, 6 }
 0xb03   :  { %v18183_v57 = vsub.f32 %v17926_v48, %v10172_v19  ;;  %10339 = vperm.xlu0 %10758, %v10301_v32   ;;  %10334 = vperm.xlu1 %10759, %v10300_v23   ;;  %v18191_v8 = vsub.f32 %v17923_v14, %v10173_v34  ;;  %v11369_v56 = vpop.eup %11368 }
 0xb04   :  { %v10085_v1 = vpop.permute.xlu1 %10084  ;;  %v10090_v25 = vpop.permute.xlu0 %10089 }
 0xb05   :  { %v10303_v38 = vmul.f32 %v10271_v12, %v18183_v57  ;;  %v10174_v48 = vmul.f32 %v10142_v26, %v10085_v1  ;;  %v10175_v27 = vmul.f32 %v10143_v29, %v10090_v25  ;;  %v10304_v16 = vmul.f32 %v10272_v50, %v18191_v8 }
 0xb06   :  { %v11371_v7 = vpop.eup %11370  ;;  %v10276_v26 = vrot.slane %v11369_v56, 7 }
 0xb07   :  { %v18196_v44 = vsub.f32 %v17938_v3, %v10174_v48  ;;  %10349 = vperm.xlu0 %10758, %v10303_v38   ;;  %10344 = vperm.xlu1 %10759, %v10302_v15   ;;  %v18200_v14 = vsub.f32 %v17933_v61, %v10175_v27  ;;  %v10275_v3 = vrot.slane %v11367_v2, 7  ;;  %v10147_v61 = vrot.slane %v18106_v13, 6 }
 0xb08   :  { %v10095_v63 = vpop.permute.xlu1 %10094  ;;  %v10100_v28 = vpop.permute.xlu0 %10099  ;;  %v10277_v29 = vrot.slane %v11371_v7, 7  ;;  %v19728_v7 = vld [vmem:[#allocation29_spill] sm:$0xff] }
 0xb09   :  { %v10305_v55 = vmul.f32 %v10273_v54, %v18196_v44  ;;  %v10176_v17 = vmul.f32 %v10144_v36, %v10095_v63  ;;  %v10177_v24 = vmul.f32 %v10145_v59, %v10100_v28  ;;  %v10306_v23 = vmul.f32 %v10274_v37, %v18200_v14 }
 0xb0a   :  { %v19722_v36 = vmov 0.0  }
 0xb0b   :  { %v18205_v62 = vsub.f32 %v17950_v39, %v10176_v17  ;;  %10359 = vperm.xlu0 %10758, %v10305_v55   ;;  %10354 = vperm.xlu1 %10759, %v10304_v16   ;;  %v18212_v53 = vsub.f32 %v17946_v40, %v10177_v24  ;;  %v11373_v39 = vpop.eup %11372  ;;  %v18230_v50 = vsel %vm10229_vm10, 1.0, %v19722_v36  ;;  %v19725_v17 = vld [vmem:[#allocation30_spill] sm:$0xff] }
 0xb0c   :  { %v10105_v32 = vpop.permute.xlu1 %10104  ;;  %v10110_v19 = vpop.permute.xlu0 %10109  ;;  %v10278_v48 = vrot.slane %v11373_v39, 7  ;;  %v10234_v24 = vsub.f32 %v19725_v17, %v18230_v50  ;;  %v10235_v56 = vsub.f32 %v19726_v0, %v18230_v50 }
 0xb0d   :  { %v10307_v34 = vmul.f32 %v10275_v3, %v18205_v62  ;;  %v10178_v9 = vmul.f32 %v10146_v11, %v10105_v32  ;;  %v10179_v12 = vmul.f32 %v10147_v61, %v10110_v19  ;;  %v11375_v13 = vpop.eup %11374  ;;  %v10308_v1 = vmul.f32 %v10276_v26, %v18212_v53  ;;  %v19727_v11 = vld [vmem:[#allocation12_spill] sm:$0xff] }
 0xb0e   :  { %v10279_v27 = vrot.slane %v11375_v13, 7  ;;  %v10236_v61 = vsub.f32 %v19727_v11, %v18230_v50  ;;  %v10411_v19 = vrot.slane %v10235_v56, 7 }
 0xb0f   :  { %v18215_v46 = vsub.f32 %v17961_v51, %v10178_v9  ;;  %10369 = vperm.xlu0 %10758, %v10307_v34   ;;  %10364 = vperm.xlu1 %10759, %v10306_v23   ;;  %v18221_v40 = vsub.f32 %v17958_v42, %v10179_v12  ;;  %v19723_v42 = vld [vmem:[#allocation56_spill] sm:$0xff]  ;;  %v10237_v23 = vsub.f32 %v19728_v7, %v18230_v50 }
 0xb10   :  { %v10115_v15 = vpop.permute.xlu1 %10114  ;;  %v10232_v54 = vsub.f32 %v19723_v42, %v18230_v50  ;;  %v10412_v26 = vrot.slane %v10236_v61, 7 }
 0xb11   :  { %v10309_v25 = vmul.f32 %v10277_v29, %v18215_v46  ;;  %v10180_v38 = vmul.f32 %v10148_v52, %v10115_v15  ;;  %v10310_v51 = vmul.f32 %v10278_v48, %v18221_v40  ;;  %v10413_v29 = vrot.slane %v10237_v23, 7  ;;  %v19729_v15 = vld [vmem:[#allocation17_spill] sm:$0xff] }
 0xb12   :  { %v10408_v59 = vrot.slane %v10232_v54, 7 }
 0xb13   :  { %v18224_v10 = vsub.f32 %v17968_v31, %v10180_v38  ;;  %10379 = vperm.xlu0 %10758, %v10309_v25   ;;  %10374 = vperm.xlu1 %10759, %v10308_v1   ;;  %v19724_v31 = vld [vmem:[#allocation27_spill] sm:$0xff]  ;;  %v10238_v1 = vsub.f32 %v19729_v15, %v18230_v50 }
 0xb14   :  { %v10233_v2 = vsub.f32 %v19724_v31, %v18230_v50 }
 0xb15   :  { %v10311_v33 = vmul.f32 %v10279_v27, %v18224_v10  ;;  %v10414_v36 = vrot.slane %v10238_v1, 7 }
 0xb16   :  { %v10409_v55 = vrot.slane %v10233_v2, 7 }
 0xb17   :  { %10389 = vperm.xlu0 %10758, %v10311_v33   ;;  %10384 = vperm.xlu1 %10759, %v10310_v51   ;;  %v10240_v51 = vsub.f32 %v18109_v5, %v18230_v50 }
 0xb19   :  { %v10416_v2 = vrot.slane %v10240_v51, 7 }
 0xb76   :  { %v10315_v63 = vpop.permute.xlu0 %10314 }
 0xb77   :  { %v10440_v28 = vmul.f32 %v10408_v59, %v10315_v63 }
 0xb79   :  { %v10456_v16 = vsub.f32 %v18098_v4, %v10440_v28  ;;  %v10410_v4 = vrot.slane %v10234_v24, 7  ;;  %v10244_v24 = vsub.f32 %v18151_v21, %v18230_v50 }
 0xb7a   :  { %v10320_v37 = vpop.permute.xlu1 %10319 }
 0xb7b   :  { %10472 = vst.msk [vmem:[#allocation4] sm:$0x1] %vm454_vm0, %v10456_v16  ;;  %v10441_v3 = vmul.f32 %v10409_v55, %v10320_v37  ;;  %v10420_v61 = vrot.slane %v10244_v24, 7 }
 0xb7d   :  { %v10457_v32 = vsub.f32 %v18125_v6, %v10441_v3  ;;  %v10239_v6 = vsub.f32 %v18087_v45, %v18230_v50 }
 0xb7e   :  { %v10325_v34 = vpop.permute.xlu1 %10324  ;;  %v10330_v9 = vpop.permute.xlu0 %10329 }
 0xb7f   :  { %10473 = vst.msk [vmem:[#allocation4 + $0x1] sm:$0x1] %vm454_vm0, %v10457_v32  ;;  %v10442_v12 = vmul.f32 %v10410_v4, %v10325_v34  ;;  %v10443_v39 = vmul.f32 %v10411_v19, %v10330_v9  ;;  %v10415_v45 = vrot.slane %v10239_v6, 7 }
 0xb81   :  { %v10458_v52 = vsub.f32 %v18134_v47, %v10442_v12  ;;  %v10459_v13 = vsub.f32 %v18146_v20, %v10443_v39  ;;  %v10241_v47 = vsub.f32 %v18114_v30, %v18230_v50 }
 0xb82   :  { %v10335_v25 = vpop.permute.xlu1 %10334  ;;  %v10340_v38 = vpop.permute.xlu0 %10339 }
 0xb83   :  { %10474 = vst.msk [vmem:[#allocation4 + $0x2] sm:$0x1] %vm454_vm0, %v10458_v52  ;;  %10475 = vst.msk [vmem:[#allocation4 + $0x3] sm:$0x1] %vm454_vm0, %v10459_v13  ;;  %v10444_v48 = vmul.f32 %v10412_v26, %v10335_v25  ;;  %v10445_v27 = vmul.f32 %v10413_v29, %v10340_v38  ;;  %v10417_v63 = vrot.slane %v10241_v47, 7 }
 0xb85   :  { %v10460_v20 = vsub.f32 %v18157_v43, %v10444_v48  ;;  %v10461_v33 = vsub.f32 %v18166_v22, %v10445_v27  ;;  %v10242_v43 = vsub.f32 %v18128_v18, %v18230_v50  ;;  %v10243_v22 = vsub.f32 %v18140_v49, %v18230_v50 }
 0xb86   :  { %v10345_v42 = vpop.permute.xlu1 %10344  ;;  %v10350_v54 = vpop.permute.xlu0 %10349 }
 0xb87   :  { %10476 = vst.msk [vmem:[#allocation4 + $0x4] sm:$0x1] %vm454_vm0, %v10460_v20  ;;  %10477 = vst.msk [vmem:[#allocation4 + $0x5] sm:$0x1] %vm454_vm0, %v10461_v33  ;;  %v10446_v59 = vmul.f32 %v10414_v36, %v10345_v42  ;;  %v10447_v31 = vmul.f32 %v10415_v45, %v10350_v54  ;;  %v10418_v0 = vrot.slane %v10242_v43, 7  ;;  %v10419_v49 = vrot.slane %v10243_v22, 7 }
 0xb89   :  { %v10462_v5 = vsub.f32 %v18174_v41, %v10446_v59  ;;  %v10463_v30 = vsub.f32 %v18183_v57, %v10447_v31  ;;  %v10245_v41 = vsub.f32 %v18161_v60, %v18230_v50 }
 0xb8a   :  { %v10355_v28 = vpop.permute.xlu1 %10354  ;;  %v10360_v16 = vpop.permute.xlu0 %10359 }
 0xb8b   :  { %10478 = vst.msk [vmem:[#allocation4 + $0x6] sm:$0x1] %vm454_vm0, %v10462_v5  ;;  %10479 = vst.msk [vmem:[#allocation4 + $0x7] sm:$0x1] %vm454_vm0, %v10463_v30  ;;  %v10448_v55 = vmul.f32 %v10416_v2, %v10355_v28  ;;  %v10449_v17 = vmul.f32 %v10417_v63, %v10360_v16  ;;  %v10421_v7 = vrot.slane %v10245_v41, 7 }
 0xb8d   :  { %v10464_v57 = vsub.f32 %v18191_v8, %v10448_v55  ;;  %v10465_v18 = vsub.f32 %v18196_v44, %v10449_v17  ;;  %v10246_v8 = vsub.f32 %v18171_v58, %v18230_v50  ;;  %v10247_v44 = vsub.f32 %v18180_v35, %v18230_v50 }
 0xb8e   :  { %v10365_v56 = vpop.permute.xlu1 %10364  ;;  %v10370_v37 = vpop.permute.xlu0 %10369 }
 0xb8f   :  { %10480 = vst.msk [vmem:[#allocation4 + $0x8] sm:$0x1] %vm454_vm0, %v10464_v57  ;;  %10481 = vst.msk [vmem:[#allocation4 + $0x9] sm:$0x1] %vm454_vm0, %v10465_v18  ;;  %v10450_v3 = vmul.f32 %v10418_v0, %v10365_v56  ;;  %v10451_v11 = vmul.f32 %v10419_v49, %v10370_v37  ;;  %v10422_v9 = vrot.slane %v10246_v8, 7 }
 0xb91   :  { %v10466_v21 = vsub.f32 %v18200_v14, %v10450_v3  ;;  %v10467_v60 = vsub.f32 %v18205_v62, %v10451_v11  ;;  %v10423_v62 = vrot.slane %v10247_v44, 7 }
 0xb92   :  { %v10375_v23 = vpop.permute.xlu1 %10374  ;;  %v10380_v32 = vpop.permute.xlu0 %10379 }
 0xb93   :  { %10482 = vst.msk [vmem:[#allocation4 + $0xa] sm:$0x1] %vm454_vm0, %v10466_v21  ;;  %10483 = vst.msk [vmem:[#allocation4 + $0xb] sm:$0x1] %vm454_vm0, %v10467_v60  ;;  %v10452_v4 = vmul.f32 %v10420_v61, %v10375_v23  ;;  %v10453_v19 = vmul.f32 %v10421_v7, %v10380_v32 }
 0xb95   :  { %v10468_v34 = vsub.f32 %v18212_v53, %v10452_v4  ;;  %v10469_v14 = vsub.f32 %v18215_v46, %v10453_v19 }
 0xb96   :  { %v10385_v12 = vpop.permute.xlu1 %10384  ;;  %v10390_v39 = vpop.permute.xlu0 %10389 }
 0xb97   :  { %10484 = vst.msk [vmem:[#allocation4 + $0xc] sm:$0x1] %vm454_vm0, %v10468_v34  ;;  %10485 = vst.msk [vmem:[#allocation4 + $0xd] sm:$0x1] %vm454_vm0, %v10469_v14  ;;  %v10454_v58 = vmul.f32 %v10422_v9, %v10385_v12  ;;  %v10455_v35 = vmul.f32 %v10423_v62, %v10390_v39 }
 0xb99   :  { %v10470_v50 = vsub.f32 %v18221_v40, %v10454_v58  ;;  %v10471_v26 = vsub.f32 %v18224_v10, %v10455_v35 }
 0xb9b   :  { %10486 = vst.msk [vmem:[#allocation4 + $0xe] sm:$0x1] %vm454_vm0, %v10470_v50  ;;  %10487 = vst.msk [vmem:[#allocation4 + $0xf] sm:$0x1] %vm454_vm0, %v10471_v26 }
 0xb9c   :  { %11388 = shalt.err (!%p11385_p4)
}
 0xb9d   :  { %s11389_s1 = scalar_lea.hbm %s18314_s6, 256 }
 0xb9e   :  { %p11390_p5 = scmp.ne.s32.totalorder %s18314_s6, %s11389_s1  ;;  %p11393_p6 = scmp.lt.u32.totalorder %s11389_s1, %s18314_s6 }
 0xba0   :  { %p11395_p7 = pnand %p11393_p6, %p11390_p5 }
 0xba2   :  { %11398 = shalt.err (!%p11395_p7)
}
 0xba3   :  { %s11419_s9 = smov 16   ;;  %s11420_s10 = smov 1  }
 0xba4   :  { %10499 = dma.vmem_to_hbm [thread:$0]  %s10494_s26, 256, %s18314_s6, [#allocation5], %s11419_s9, %s11419_s9, %s11420_s10  }
 0xba5   :  { %11399 = dma.done.wait [#allocation5], 256  }
 0xba6   :  { %11400 = vsyncadd [#allocation5], 4294967040 }
 0xba7   :  { %10503 = vsyncpa [#allocation5], 1 }

</bundles_post_ra>
